<compile_context>
chip_gen: v5e
topology: v5e:2x2
jax: 0.10.0
libtpu: 0.0.40
codegen_flags: <defaults>
</compile_context>

<pallas_src>
import functools

import jax
import jax.numpy as jnp
from jax.experimental import pallas as pl
from jax.experimental.pallas import tpu as pltpu

_TM_MAX = 1024
_TN_MAX = 256
_LANE = 128


def _round_up(x, m):
    return ((x + m - 1) // m) * m


# --------------------------------------------------------------------------
# Stride-1 conv as a "shifted flat rows" GEMM
#   A  : (rows, Cp)  = spatially padded input flattened over (N, Hp, Wp)
#   tap (i, j) of the kernel corresponds to a constant row offset i*Wp + j,
#   assembled in-kernel from the current and the next M-block.
# --------------------------------------------------------------------------
def _conv_kernel(*refs, offs, tm, relu, pre_relu, has_res, multi_tap):
    it = 0
    a_ref = refs[it]; it += 1
    an_ref = None
    if multi_tap:
        an_ref = refs[it]; it += 1
    w_ref = refs[it]; it += 1
    b_ref = refs[it]; it += 1
    r_ref = None
    if has_res:
        r_ref = refs[it]; it += 1
    o_ref = refs[it]

    a0 = a_ref[...]
    if pre_relu:
        a0 = jnp.maximum(a0, 0)

    if multi_tap:
        an = an_ref[...]
        if pre_relu:
            an = jnp.maximum(an, 0)
        ab = jnp.concatenate([a0, an], axis=0)                # (2*tm, Cp)
        # lane-aligned concat of the kh*kw shifted views -> one MXU dot over
        # K = T*Cp (accumulation stays inside the MXU, no per-tap VMEM RMW).
        a_full = jnp.concatenate(
            [ab[off:off + tm, :] for off in offs], axis=1)    # (tm, T*Cp)
    else:
        a_full = a0

    out = jnp.dot(a_full, w_ref[...], preferred_element_type=jnp.float32)
    out = out + b_ref[...].astype(jnp.float32)
    if has_res:
        out = out + r_ref[...].astype(jnp.float32)
    if relu:
        out = jnp.maximum(out, 0.0)
    o_ref[...] = out.astype(o_ref.dtype)


def _conv_s1_gemm(x_nhwc, w, b, *, pad_hw, relu=False, pre_relu=False,
                  residual=None, out_dtype=jnp.bfloat16):
    """Stride-1 convolution.  x: (N,H,W,Cin), w: (kh,kw,Cin,Cout), b: (Cout,).
    pad_hw = ((top,bottom),(left,right)).  Optional fused residual/ReLU."""
    N, H, W, Cin = x_nhwc.shape
    kh, kw, _, Cout = w.shape
    (pt, pb), (pL, pR) = pad_hw
    Hp, Wp = H + pt + pb, W + pL + pR
    Ho, Wo = Hp - kh + 1, Wp - kw + 1
    T = kh * kw
    multi_tap = T > 1

    # channel lane padding so the in-kernel tap concatenation is 128-aligned
    Cp = _round_up(Cin, _LANE) if multi_tap else Cin
    xp = jnp.pad(x_nhwc.astype(jnp.bfloat16),
                 ((0, 0), (pt, pb), (pL, pR), (0, Cp - Cin)))
    M = N * Hp * Wp
    a2d = xp.reshape(M, Cp)

    offs = [i * Wp + j for i in range(kh) for j in range(kw)]
    tail = offs[-1]

    Cout_p = _round_up(Cout, _LANE)
    tn = 256 if (Cout_p % 256 == 0 and _TN_MAX >= 256) else 128
    tn = min(tn, Cout_p)
    tm = min(_TM_MAX, _round_up(M, _LANE))
    if multi_tap:
        tm = max(tm, _round_up(tail + 1, _LANE))     # taps must fit in 2 blocks
    Mp = _round_up(M, tm)
    nmb = Mp // tm
    rows_needed = Mp + (tm if multi_tap else 0)      # extra zero block for a_next
    a2d = jnp.pad(a2d, ((0, rows_needed - M), (0, 0)))

    w_p = jnp.pad(w.astype(jnp.bfloat16),
                  ((0, 0), (0, 0), (0, Cp - Cin), (0, Cout_p - Cout)))
    w_p = w_p.reshape(T * Cp, Cout_p)                # tap-major K layout
    b_p = jnp.pad(b.astype(jnp.float32), (0, Cout_p - Cout)).reshape(1, Cout_p)

    operands = [a2d]
    in_specs = [pl.BlockSpec((tm, Cp), lambda m, n: (m, 0))]
    if multi_tap:
        operands.append(a2d)
        in_specs.append(pl.BlockSpec((tm, Cp), lambda m, n: (m + 1, 0)))
    operands += [w_p, b_p]
    in_specs += [pl.BlockSpec((T * Cp, tn), lambda m, n: (0, n)),
                 pl.BlockSpec((1, tn), lambda m, n: (0, n))]

    has_res = residual is not None
    if has_res:
        # residual fusion is only used for 1x1 convs (M == N*H*W exactly)
        r2d = jnp.pad(residual.astype(jnp.bfloat16).reshape(M, Cout),
                      ((0, rows_needed - M), (0, Cout_p - Cout)))
        operands.append(r2d)
        in_specs.append(pl.BlockSpec((tm, tn), lambda m, n: (m, n)))

    kern = functools.partial(_conv_kernel, offs=tuple(offs), tm=tm, relu=relu,
                             pre_relu=pre_relu, has_res=has_res,
                             multi_tap=multi_tap)

    # VMEM budget from the actual block footprint (double-buffered inputs,
    # the assembled tap matrix and the f32 dot result), clamped for v7x.
    blk_bytes = (2 * (2 if multi_tap else 1) * tm * Cp * 2
                 + 2 * T * Cp * tn * 2
                 + 2 * tn * 4
                 + (2 * tm * tn * 2 if has_res else 0)
                 + 2 * tm * tn * jnp.dtype(out_dtype).itemsize
                 + tm * T * Cp * 2
                 + tm * tn * 4)
    vmem_limit = int(min(max(2 * blk_bytes + (4 << 20), 16 << 20), 64 << 20))

    out = pl.pallas_call(
        kern,
        out_shape=jax.ShapeDtypeStruct((Mp, Cout_p), out_dtype),
        grid=(nmb, Cout_p // tn),
        in_specs=in_specs,
        out_specs=pl.BlockSpec((tm, tn), lambda m, n: (m, n)),
        compiler_params=pltpu.CompilerParams(
            dimension_semantics=("parallel", "parallel"),
            vmem_limit_bytes=vmem_limit),
    )(*operands)

    out = out[:M, :Cout].reshape(N, Hp, Wp, Cout)[:, :Ho, :Wo, :]
    return out


def conv2d_3x3(x, w, b, **kw):
    return _conv_s1_gemm(x, w, b, pad_hw=((1, 1), (1, 1)), **kw)


def conv2d_1x1(x, w, b, **kw):
    return _conv_s1_gemm(x, w, b, pad_hw=((0, 0), (0, 0)), **kw)


def conv2d_4x4_s2(x, w, b, *, relu=False, out_dtype=jnp.bfloat16):
    """Conv2d(kernel=4, stride=2, padding=1) == space-to-depth(2) of the padded
    input followed by a single stride-1 2x2 VALID conv with rearranged weights."""
    N, H, W, Cin = x.shape
    Cout = w.shape[3]
    xp = jnp.pad(x, ((0, 0), (1, 1), (1, 1), (0, 0)))
    Hs, Ws = (H + 2) // 2, (W + 2) // 2
    xs = xp.reshape(N, Hs, 2, Ws, 2, Cin).transpose(0, 1, 3, 2, 4, 5)
    xs = xs.reshape(N, Hs, Ws, 4 * Cin)
    wr = w.reshape(2, 2, 2, 2, Cin, Cout).transpose(0, 2, 1, 3, 4, 5)
    wr = wr.reshape(2, 2, 4 * Cin, Cout)
    return _conv_s1_gemm(xs, wr, b, pad_hw=((0, 0), (0, 0)),
                         relu=relu, out_dtype=out_dtype)


def conv_transpose2d_4x4_s2(x, w, b, *, relu=False, out_dtype=jnp.bfloat16):
    """ConvTranspose2d(kernel=4, stride=2, padding=1): the 4 output phases are
    fused into ONE stride-1 2x2 conv (pad 1) with 4*Cout channels, followed by
    a single pixel interleave in XLA."""
    N, H, W, Cin = x.shape
    Cout = w.shape[3]
    subs = []
    for r in (0, 1):
        for c in (0, 1):
            sub = jnp.stack(
                [jnp.stack([w[3 - 2 * a - r, 3 - 2 * bb - c]
                            for bb in (0, 1)], axis=0) for a in (0, 1)], axis=0)
            subs.append(sub)                               # (2,2,Cin,Cout)
    w_f = jnp.concatenate(subs, axis=-1)                   # (2,2,Cin,4*Cout)
    b_f = jnp.concatenate([b, b, b, b], axis=0)
    y = _conv_s1_gemm(x, w_f, b_f, pad_hw=((1, 1), (1, 1)),
                      relu=relu, out_dtype=out_dtype)      # (N,H+1,W+1,4*Cout)
    y4 = y.reshape(N, H + 1, W + 1, 4, Cout)
    rows = []
    for r in (0, 1):
        cols = [y4[:, r:r + H, c:c + W, r * 2 + c, :] for c in (0, 1)]
        rows.append(jnp.stack(cols, axis=3))               # (N,H,W,2,Cout)
    y = jnp.stack(rows, axis=2)                            # (N,H,2,W,2,Cout)
    return y.reshape(N, 2 * H, 2 * W, Cout)


def residual_stack(h, blocks):
    # block: h = h + conv1x1(relu(conv3x3(relu(h)))); ReLU after the last block,
    # residual add + trailing ReLU fused into the 1x1 GEMM.
    n = len(blocks)
    if n == 0:
        return jnp.maximum(h, 0)
    for bi, (w3, b3, w1, b1) in enumerate(blocks):
        t = conv2d_3x3(h, w3, b3, relu=True, pre_relu=True)
        h = conv2d_1x1(t, w1, b1, residual=h, relu=(bi == n - 1))
    return h


# --------------------------------------------------------------------------
# Vector quantizer (EMA variant, inference path): f32 distances, chunked K,
# running argmin, fully parallel M grid.  The kernel emits argmin indices;
# the exact-f32 codebook lookup / histogram / commitment loss are tiny XLA ops.
# --------------------------------------------------------------------------
def _vq_kernel(z_ref, e_ref, e2_ref, idx_ref, *, k_codes, kc):
    z = z_ref[...]                                          # (tm, Dp) f32
    Kp = e_ref.shape[0]
    tm = z.shape[0]

    run_min = jnp.full((tm, 1), jnp.inf, jnp.float32)
    run_idx = jnp.zeros((tm, 1), jnp.int32)
    for c0 in range(0, Kp, kc):
        e_c = e_ref[c0:c0 + kc, :]                          # (kc, Dp)
        e2_c = e2_ref[:, c0:c0 + kc]                        # (1, kc)
        # |z-e|^2 up to the per-row constant |z|^2 (argmin-invariant)
        ze = jax.lax.dot_general(z, e_c, (((1,), (1,)), ((), ())),
                                 preferred_element_type=jnp.float32)
        d = e2_c - 2.0 * ze                                 # (tm, kc)
        col = jax.lax.broadcasted_iota(jnp.int32, d.shape, 1) + c0
        d = jnp.where(col < k_codes, d, jnp.float32(jnp.inf))
        cmin = jnp.min(d, axis=1, keepdims=True)
        cand = jnp.where(d <= cmin, col, jnp.int32(2 ** 30))
        cidx = jnp.min(cand, axis=1, keepdims=True)         # first argmin in chunk
        better = cmin < run_min                              # strict: keep earlier chunk on ties
        run_idx = jnp.where(better, cidx, run_idx)
        run_min = jnp.where(better, cmin, run_min)

    idx_ref[...] = run_idx


def vector_quantize(z_flat, emb, beta):
    M, D = z_flat.shape
    K = emb.shape[0]
    Dp = _round_up(D, _LANE)
    Kp = _round_up(K, _LANE)
    if Kp % 512 == 0:
        kc = 512
    elif Kp % 256 == 0:
        kc = 256
    else:
        kc = 128
    kc = min(kc, Kp)

    tm = min(256, _round_up(M, 8))
    Mp = _round_up(M, tm)

    z_p = jnp.pad(z_flat.astype(jnp.float32), ((0, Mp - M), (0, Dp - D)))
    e_p = jnp.pad(emb.astype(jnp.float32), ((0, Kp - K), (0, Dp - D)))
    e2 = jnp.sum(e_p * e_p, axis=1).reshape(1, Kp)          # hoisted out of the kernel

    vmem_limit = int(min(
        2 * (tm * Dp * 4 + Kp * Dp * 4 + Kp * 4 + tm * 4)
        + 8 * tm * kc * 4 + (8 << 20), 64 << 20))

    kern = functools.partial(_vq_kernel, k_codes=K, kc=kc)
    idx = pl.pallas_call(
        kern,
        out_shape=jax.ShapeDtypeStruct((Mp, 1), jnp.int32),
        grid=(Mp // tm,),
        in_specs=[pl.BlockSpec((tm, Dp), lambda i: (i, 0)),
                  pl.BlockSpec((Kp, Dp), lambda i: (0, 0)),
                  pl.BlockSpec((1, Kp), lambda i: (0, 0))],
        out_specs=pl.BlockSpec((tm, 1), lambda i: (i, 0)),
        compiler_params=pltpu.CompilerParams(
            dimension_semantics=("parallel",),
            vmem_limit_bytes=vmem_limit),
    )(z_p, e_p, e2)

    idx = idx[:M, 0]
    q = jnp.take(emb.astype(jnp.float32), idx, axis=0)      # exact f32 lookup
    counts = jnp.zeros((K,), jnp.float32).at[idx].add(1.0)
    loss = beta * jnp.mean((q - z_flat.astype(jnp.float32)) ** 2)
    avg_probs = counts / M
    perplexity = jnp.exp(-jnp.sum(avg_probs * jnp.log(avg_probs + 1e-10)))
    return q, loss, perplexity


# --------------------------------------------------------------------------
# VQVAE forward
# --------------------------------------------------------------------------
def vqvae_forward(params, x_nchw, beta=0.25):
    x = jnp.transpose(x_nchw, (0, 2, 3, 1))                 # NCHW -> NHWC

    # Encoder
    h = conv2d_4x4_s2(x, *params["enc1"], relu=True)
    h = conv2d_4x4_s2(h, *params["enc2"], relu=True)
    h = conv2d_3x3(h, *params["enc3"])
    h = residual_stack(h, params["enc_res"])

    # pre-VQ 1x1 conv (f32 output feeds the quantizer)
    z = conv2d_1x1(h, *params["pre_vq"], out_dtype=jnp.float32)
    N, Hh, Ww, D = z.shape
    z_flat = z.reshape(N * Hh * Ww, D)

    # Vector quantizer (EMA variant, inference path)
    q_flat, loss, perplexity = vector_quantize(z_flat, params["emb"], beta)
    q = q_flat.reshape(N, Hh, Ww, D)

    # Decoder
    h = conv2d_3x3(q, *params["dec1"])
    h = residual_stack(h, params["dec_res"])
    h = conv_transpose2d_4x4_s2(h, *params["deconv1"], relu=True)
    xr = conv_transpose2d_4x4_s2(h, *params["deconv2"], out_dtype=jnp.float32)

    x_recon = jnp.transpose(xr, (0, 3, 1, 2))               # back to NCHW
    q_nchw = jnp.transpose(q, (0, 3, 1, 2))
    return x_recon, loss, perplexity, q_nchw


# --------------------------------------------------------------------------
# Deterministic parameter init (weights in HWIO layout)
# --------------------------------------------------------------------------
def init_params(key, in_ch, hidden, num_res, res_ch, D, K):
    keys = iter(jax.random.split(key, 64))

    def conv_p(kh, kw, cin, cout):
        w = jax.random.normal(next(keys), (kh, kw, cin, cout),
                              jnp.float32) / jnp.sqrt(float(kh * kw * cin))
        b = jax.random.normal(next(keys), (cout,), jnp.float32) * 0.01
        return (w, b)

    params = {
        "enc1": conv_p(4, 4, in_ch, hidden // 2),
        "enc2": conv_p(4, 4, hidden // 2, hidden),
        "enc3": conv_p(3, 3, hidden, hidden),
        "enc_res": [conv_p(3, 3, hidden, res_ch) + conv_p(1, 1, res_ch, hidden)
                    for _ in range(num_res)],
        "pre_vq": conv_p(1, 1, hidden, D),
        "emb": jax.random.normal(next(keys), (K, D), jnp.float32) * 0.5,
        "dec1": conv_p(3, 3, D, hidden),
        "dec_res": [conv_p(3, 3, hidden, res_ch) + conv_p(1, 1, res_ch, hidden)
                    for _ in range(num_res)],
        "deconv1": conv_p(4, 4, hidden, hidden // 2),
        "deconv2": conv_p(4, 4, hidden // 2, in_ch),
    }
    return params


if __name__ == "__main__":
    key = jax.random.PRNGKey(0)
    pkey, xkey = jax.random.split(key)

    in_ch, hidden, num_res, res_ch, D, K = 3, 16, 2, 8, 8, 16
    params = init_params(pkey, in_ch, hidden, num_res, res_ch, D, K)

    x = jax.random.normal(xkey, (2, in_ch, 16, 16), jnp.float32)

    fwd = jax.jit(vqvae_forward)
    x_recon, loss, perplexity, quantized = fwd(params, x, 0.25)
    jax.block_until_ready((x_recon, loss, perplexity, quantized))

    assert x_recon.shape == (2, in_ch, 16, 16)
    assert quantized.shape == (2, D, 4, 4)
    assert loss.shape == () and perplexity.shape == ()
    assert bool(jnp.all(jnp.isfinite(x_recon)))
    assert bool(jnp.isfinite(loss)) and bool(jnp.isfinite(perplexity))
    print("KERNEL_OK")
</pallas_src>

<mosaic_0001>
module attributes {stable_mosaic.version = 11 : i64} {
  func.func @_conv_kernel(%arg0: i32, %arg1: i32, %arg2: memref<256x128xbf16, #tpu.memory_space<vmem>>, %arg3: memref<256x128xbf16, #tpu.memory_space<vmem>>, %arg4: memref<512x128xbf16, #tpu.memory_space<vmem>>, %arg5: memref<1x128xf32, #tpu.memory_space<vmem>>, %arg6: memref<256x128xbf16, #tpu.memory_space<vmem>>) attributes {dimension_semantics = [#tpu.dimension_semantics<parallel>, #tpu.dimension_semantics<parallel>], iteration_bounds = array<i64: 1, 1>, scalar_prefetch = 0 : i64, scratch_operands = 0 : i64, tpu.core_type = #tpu.core_type<tc>, window_params = [{transform_indices = @transform_0, window_bounds = array<i64: 256, 128>}, {transform_indices = @transform_1, window_bounds = array<i64: 256, 128>}, {transform_indices = @transform_2, window_bounds = array<i64: 512, 128>}, {transform_indices = @transform_3, window_bounds = array<i64: 1, 128>}, {transform_indices = @transform_4, window_bounds = array<i64: 256, 128>}]} {
    %c0 = arith.constant 0 : index
    %c0_0 = arith.constant 0 : index
    %0 = vector.load %arg2[%c0, %c0_0] : memref<256x128xbf16, #tpu.memory_space<vmem>>, vector<256x128xbf16>
    %c0_1 = arith.constant 0 : index
    %c0_2 = arith.constant 0 : index
    %1 = vector.load %arg3[%c0_1, %c0_2] : memref<256x128xbf16, #tpu.memory_space<vmem>>, vector<256x128xbf16>
    %2 = tpu.concatenate %0, %1 in 0 : vector<256x128xbf16>, vector<256x128xbf16> -> vector<512x128xbf16>
    %3 = vector.extract_strided_slice %2 {offsets = [0, 0], sizes = [256, 128], strides = [1, 1]} : vector<512x128xbf16> to vector<256x128xbf16>
    %4 = vector.extract_strided_slice %2 {offsets = [1, 0], sizes = [256, 128], strides = [1, 1]} : vector<512x128xbf16> to vector<256x128xbf16>
    %5 = vector.extract_strided_slice %2 {offsets = [9, 0], sizes = [256, 128], strides = [1, 1]} : vector<512x128xbf16> to vector<256x128xbf16>
    %6 = vector.extract_strided_slice %2 {offsets = [10, 0], sizes = [256, 128], strides = [1, 1]} : vector<512x128xbf16> to vector<256x128xbf16>
    %7 = tpu.concatenate %3, %4, %5, %6 in 1 : vector<256x128xbf16>, vector<256x128xbf16>, vector<256x128xbf16>, vector<256x128xbf16> -> vector<256x512xbf16>
    %c0_3 = arith.constant 0 : index
    %c0_4 = arith.constant 0 : index
    %8 = vector.load %arg4[%c0_3, %c0_4] : memref<512x128xbf16, #tpu.memory_space<vmem>>, vector<512x128xbf16>
    %cst = arith.constant dense<0.000000e+00> : vector<256x128xf32>
    %9 = tpu.matmul %7, %8, %cst {dimension_numbers = #tpu.dot_dimension_numbers<[1], [0], [0], [1], [0, 0, 1, 1], [], []>} : vector<256x512xbf16>, vector<512x128xbf16>, vector<256x128xf32> -> vector<256x128xf32>
    %c0_5 = arith.constant 0 : index
    %c0_6 = arith.constant 0 : index
    %10 = vector.load %arg5[%c0_5, %c0_6] : memref<1x128xf32, #tpu.memory_space<vmem>>, vector<1x128xf32>
    %11 = vector.broadcast %10 : vector<1x128xf32> to vector<256x128xf32>
    %12 = arith.addf %9, %11 : vector<256x128xf32>
    %cst_7 = arith.constant 0.000000e+00 : f32
    %13 = vector.broadcast %cst_7 : f32 to vector<256x128xf32>
    %14 = arith.maximumf %12, %13 : vector<256x128xf32>
    %15 = arith.truncf %14 : vector<256x128xf32> to vector<256x128xbf16>
    %c0_8 = arith.constant 0 : index
    %c0_9 = arith.constant 0 : index
    %16 = vector.load %arg6[%c0_8, %c0_9] : memref<256x128xbf16, #tpu.memory_space<vmem>>, vector<256x128xbf16>
    tpu.vector_store %arg6[%c0_8, %c0_9], %15 {strides = array<i32>} : memref<256x128xbf16, #tpu.memory_space<vmem>>, vector<256x128xbf16>,
    return
  }
  func.func @transform_0(%arg0: i32, %arg1: i32) -> (i32, i32) {
    %c0_i32 = arith.constant 0 : i32
    %c0_i32_0 = arith.constant 0 : i32
    return %arg0, %c0_i32 : i32, i32
  }
  func.func @transform_1(%arg0: i32, %arg1: i32) -> (i32, i32) {
    %c1_i32 = arith.constant 1 : i32
    %0 = arith.addi %arg0, %c1_i32 : i32
    %c0_i32 = arith.constant 0 : i32
    %c0_i32_0 = arith.constant 0 : i32
    return %0, %c0_i32 : i32, i32
  }
  func.func @transform_2(%arg0: i32, %arg1: i32) -> (i32, i32) {
    %c0_i32 = arith.constant 0 : i32
    %c0_i32_0 = arith.constant 0 : i32
    return %c0_i32, %arg1 : i32, i32
  }
  func.func @transform_3(%arg0: i32, %arg1: i32) -> (i32, i32) {
    %c0_i32 = arith.constant 0 : i32
    %c0_i32_0 = arith.constant 0 : i32
    return %c0_i32, %arg1 : i32, i32
  }
  func.func @transform_4(%arg0: i32, %arg1: i32) -> (i32, i32) {
    %c0_i32 = arith.constant 0 : i32
    return %arg0, %arg1 : i32, i32
  }
}

module attributes {stable_mosaic.version = 11 : i64} {
  func.func @_conv_kernel(%arg0: i32, %arg1: i32, %arg2: memref<128x128xbf16, #tpu.memory_space<vmem>>, %arg3: memref<128x128xbf16, #tpu.memory_space<vmem>>, %arg4: memref<512x128xbf16, #tpu.memory_space<vmem>>, %arg5: memref<1x128xf32, #tpu.memory_space<vmem>>, %arg6: memref<128x128xbf16, #tpu.memory_space<vmem>>) attributes {dimension_semantics = [#tpu.dimension_semantics<parallel>, #tpu.dimension_semantics<parallel>], iteration_bounds = array<i64: 1, 1>, scalar_prefetch = 0 : i64, scratch_operands = 0 : i64, tpu.core_type = #tpu.core_type<tc>, window_params = [{transform_indices = @transform_0, window_bounds = array<i64: 128, 128>}, {transform_indices = @transform_1, window_bounds = array<i64: 128, 128>}, {transform_indices = @transform_2, window_bounds = array<i64: 512, 128>}, {transform_indices = @transform_3, window_bounds = array<i64: 1, 128>}, {transform_indices = @transform_4, window_bounds = array<i64: 128, 128>}]} {
    %c0 = arith.constant 0 : index
    %c0_0 = arith.constant 0 : index
    %0 = vector.load %arg2[%c0, %c0_0] : memref<128x128xbf16, #tpu.memory_space<vmem>>, vector<128x128xbf16>
    %c0_1 = arith.constant 0 : index
    %c0_2 = arith.constant 0 : index
    %1 = vector.load %arg3[%c0_1, %c0_2] : memref<128x128xbf16, #tpu.memory_space<vmem>>, vector<128x128xbf16>
    %2 = tpu.concatenate %0, %1 in 0 : vector<128x128xbf16>, vector<128x128xbf16> -> vector<256x128xbf16>
    %3 = vector.extract_strided_slice %2 {offsets = [0, 0], sizes = [128, 128], strides = [1, 1]} : vector<256x128xbf16> to vector<128x128xbf16>
    %4 = vector.extract_strided_slice %2 {offsets = [1, 0], sizes = [128, 128], strides = [1, 1]} : vector<256x128xbf16> to vector<128x128xbf16>
    %5 = vector.extract_strided_slice %2 {offsets = [5, 0], sizes = [128, 128], strides = [1, 1]} : vector<256x128xbf16> to vector<128x128xbf16>
    %6 = vector.extract_strided_slice %2 {offsets = [6, 0], sizes = [128, 128], strides = [1, 1]} : vector<256x128xbf16> to vector<128x128xbf16>
    %7 = tpu.concatenate %3, %4, %5, %6 in 1 : vector<128x128xbf16>, vector<128x128xbf16>, vector<128x128xbf16>, vector<128x128xbf16> -> vector<128x512xbf16>
    %c0_3 = arith.constant 0 : index
    %c0_4 = arith.constant 0 : index
    %8 = vector.load %arg4[%c0_3, %c0_4] : memref<512x128xbf16, #tpu.memory_space<vmem>>, vector<512x128xbf16>
    %cst = arith.constant dense<0.000000e+00> : vector<128x128xf32>
    %9 = tpu.matmul %7, %8, %cst {dimension_numbers = #tpu.dot_dimension_numbers<[1], [0], [0], [1], [0, 0, 1, 1], [], []>} : vector<128x512xbf16>, vector<512x128xbf16>, vector<128x128xf32> -> vector<128x128xf32>
    %c0_5 = arith.constant 0 : index
    %c0_6 = arith.constant 0 : index
    %10 = vector.load %arg5[%c0_5, %c0_6] : memref<1x128xf32, #tpu.memory_space<vmem>>, vector<1x128xf32>
    %11 = vector.broadcast %10 : vector<1x128xf32> to vector<128x128xf32>
    %12 = arith.addf %9, %11 : vector<128x128xf32>
    %cst_7 = arith.constant 0.000000e+00 : f32
    %13 = vector.broadcast %cst_7 : f32 to vector<128x128xf32>
    %14 = arith.maximumf %12, %13 : vector<128x128xf32>
    %15 = arith.truncf %14 : vector<128x128xf32> to vector<128x128xbf16>
    %c0_8 = arith.constant 0 : index
    %c0_9 = arith.constant 0 : index
    %16 = vector.load %arg6[%c0_8, %c0_9] : memref<128x128xbf16, #tpu.memory_space<vmem>>, vector<128x128xbf16>
    tpu.vector_store %arg6[%c0_8, %c0_9], %15 {strides = array<i32>} : memref<128x128xbf16, #tpu.memory_space<vmem>>, vector<128x128xbf16>,
    return
  }
  func.func @transform_0(%arg0: i32, %arg1: i32) -> (i32, i32) {
    %c0_i32 = arith.constant 0 : i32
    %c0_i32_0 = arith.constant 0 : i32
    return %arg0, %c0_i32 : i32, i32
  }
  func.func @transform_1(%arg0: i32, %arg1: i32) -> (i32, i32) {
    %c1_i32 = arith.constant 1 : i32
    %0 = arith.addi %arg0, %c1_i32 : i32
    %c0_i32 = arith.constant 0 : i32
    %c0_i32_0 = arith.constant 0 : i32
    return %0, %c0_i32 : i32, i32
  }
  func.func @transform_2(%arg0: i32, %arg1: i32) -> (i32, i32) {
    %c0_i32 = arith.constant 0 : i32
    %c0_i32_0 = arith.constant 0 : i32
    return %c0_i32, %arg1 : i32, i32
  }
  func.func @transform_3(%arg0: i32, %arg1: i32) -> (i32, i32) {
    %c0_i32 = arith.constant 0 : i32
    %c0_i32_0 = arith.constant 0 : i32
    return %c0_i32, %arg1 : i32, i32
  }
  func.func @transform_4(%arg0: i32, %arg1: i32) -> (i32, i32) {
    %c0_i32 = arith.constant 0 : i32
    return %arg0, %arg1 : i32, i32
  }
}

module attributes {stable_mosaic.version = 11 : i64} {
  func.func @_conv_kernel(%arg0: i32, %arg1: i32, %arg2: memref<128x128xbf16, #tpu.memory_space<vmem>>, %arg3: memref<128x128xbf16, #tpu.memory_space<vmem>>, %arg4: memref<1152x128xbf16, #tpu.memory_space<vmem>>, %arg5: memref<1x128xf32, #tpu.memory_space<vmem>>, %arg6: memref<128x128xbf16, #tpu.memory_space<vmem>>) attributes {dimension_semantics = [#tpu.dimension_semantics<parallel>, #tpu.dimension_semantics<parallel>], iteration_bounds = array<i64: 1, 1>, scalar_prefetch = 0 : i64, scratch_operands = 0 : i64, tpu.core_type = #tpu.core_type<tc>, window_params = [{transform_indices = @transform_0, window_bounds = array<i64: 128, 128>}, {transform_indices = @transform_1, window_bounds = array<i64: 128, 128>}, {transform_indices = @transform_2, window_bounds = array<i64: 1152, 128>}, {transform_indices = @transform_3, window_bounds = array<i64: 1, 128>}, {transform_indices = @transform_4, window_bounds = array<i64: 128, 128>}]} {
    %c0 = arith.constant 0 : index
    %c0_0 = arith.constant 0 : index
    %0 = vector.load %arg2[%c0, %c0_0] : memref<128x128xbf16, #tpu.memory_space<vmem>>, vector<128x128xbf16>
    %c0_1 = arith.constant 0 : index
    %c0_2 = arith.constant 0 : index
    %1 = vector.load %arg3[%c0_1, %c0_2] : memref<128x128xbf16, #tpu.memory_space<vmem>>, vector<128x128xbf16>
    %2 = tpu.concatenate %0, %1 in 0 : vector<128x128xbf16>, vector<128x128xbf16> -> vector<256x128xbf16>
    %3 = vector.extract_strided_slice %2 {offsets = [0, 0], sizes = [128, 128], strides = [1, 1]} : vector<256x128xbf16> to vector<128x128xbf16>
    %4 = vector.extract_strided_slice %2 {offsets = [1, 0], sizes = [128, 128], strides = [1, 1]} : vector<256x128xbf16> to vector<128x128xbf16>
    %5 = vector.extract_strided_slice %2 {offsets = [2, 0], sizes = [128, 128], strides = [1, 1]} : vector<256x128xbf16> to vector<128x128xbf16>
    %6 = vector.extract_strided_slice %2 {offsets = [6, 0], sizes = [128, 128], strides = [1, 1]} : vector<256x128xbf16> to vector<128x128xbf16>
    %7 = vector.extract_strided_slice %2 {offsets = [7, 0], sizes = [128, 128], strides = [1, 1]} : vector<256x128xbf16> to vector<128x128xbf16>
    %8 = vector.extract_strided_slice %2 {offsets = [8, 0], sizes = [128, 128], strides = [1, 1]} : vector<256x128xbf16> to vector<128x128xbf16>
    %9 = vector.extract_strided_slice %2 {offsets = [12, 0], sizes = [128, 128], strides = [1, 1]} : vector<256x128xbf16> to vector<128x128xbf16>
    %10 = vector.extract_strided_slice %2 {offsets = [13, 0], sizes = [128, 128], strides = [1, 1]} : vector<256x128xbf16> to vector<128x128xbf16>
    %11 = vector.extract_strided_slice %2 {offsets = [14, 0], sizes = [128, 128], strides = [1, 1]} : vector<256x128xbf16> to vector<128x128xbf16>
    %12 = tpu.concatenate %3, %4, %5, %6, %7, %8, %9, %10, %11 in 1 : vector<128x128xbf16>, vector<128x128xbf16>, vector<128x128xbf16>, vector<128x128xbf16>, vector<128x128xbf16>, vector<128x128xbf16>, vector<128x128xbf16>, vector<128x128xbf16>, vector<128x128xbf16> -> vector<128x1152xbf16>
    %c0_3 = arith.constant 0 : index
    %c0_4 = arith.constant 0 : index
    %13 = vector.load %arg4[%c0_3, %c0_4] : memref<1152x128xbf16, #tpu.memory_space<vmem>>, vector<1152x128xbf16>
    %cst = arith.constant dense<0.000000e+00> : vector<128x128xf32>
    %14 = tpu.matmul %12, %13, %cst {dimension_numbers = #tpu.dot_dimension_numbers<[1], [0], [0], [1], [0, 0, 1, 1], [], []>} : vector<128x1152xbf16>, vector<1152x128xbf16>, vector<128x128xf32> -> vector<128x128xf32>
    %c0_5 = arith.constant 0 : index
    %c0_6 = arith.constant 0 : index
    %15 = vector.load %arg5[%c0_5, %c0_6] : memref<1x128xf32, #tpu.memory_space<vmem>>, vector<1x128xf32>
    %16 = vector.broadcast %15 : vector<1x128xf32> to vector<128x128xf32>
    %17 = arith.addf %14, %16 : vector<128x128xf32>
    %18 = arith.truncf %17 : vector<128x128xf32> to vector<128x128xbf16>
    %c0_7 = arith.constant 0 : index
    %c0_8 = arith.constant 0 : index
    %19 = vector.load %arg6[%c0_7, %c0_8] : memref<128x128xbf16, #tpu.memory_space<vmem>>, vector<128x128xbf16>
    tpu.vector_store %arg6[%c0_7, %c0_8], %18 {strides = array<i32>} : memref<128x128xbf16, #tpu.memory_space<vmem>>, vector<128x128xbf16>,
    return
  }
  func.func @transform_0(%arg0: i32, %arg1: i32) -> (i32, i32) {
    %c0_i32 = arith.constant 0 : i32
    %c0_i32_0 = arith.constant 0 : i32
    return %arg0, %c0_i32 : i32, i32
  }
  func.func @transform_1(%arg0: i32, %arg1: i32) -> (i32, i32) {
    %c1_i32 = arith.constant 1 : i32
    %0 = arith.addi %arg0, %c1_i32 : i32
    %c0_i32 = arith.constant 0 : i32
    %c0_i32_0 = arith.constant 0 : i32
    return %0, %c0_i32 : i32, i32
  }
  func.func @transform_2(%arg0: i32, %arg1: i32) -> (i32, i32) {
    %c0_i32 = arith.constant 0 : i32
    %c0_i32_0 = arith.constant 0 : i32
    return %c0_i32, %arg1 : i32, i32
  }
  func.func @transform_3(%arg0: i32, %arg1: i32) -> (i32, i32) {
    %c0_i32 = arith.constant 0 : i32
    %c0_i32_0 = arith.constant 0 : i32
    return %c0_i32, %arg1 : i32, i32
  }
  func.func @transform_4(%arg0: i32, %arg1: i32) -> (i32, i32) {
    %c0_i32 = arith.constant 0 : i32
    return %arg0, %arg1 : i32, i32
  }
}

module attributes {stable_mosaic.version = 11 : i64} {
  func.func @_conv_kernel(%arg0: i32, %arg1: i32, %arg2: memref<128x128xbf16, #tpu.memory_space<vmem>>, %arg3: memref<128x128xbf16, #tpu.memory_space<vmem>>, %arg4: memref<1152x128xbf16, #tpu.memory_space<vmem>>, %arg5: memref<1x128xf32, #tpu.memory_space<vmem>>, %arg6: memref<128x128xbf16, #tpu.memory_space<vmem>>) attributes {dimension_semantics = [#tpu.dimension_semantics<parallel>, #tpu.dimension_semantics<parallel>], iteration_bounds = array<i64: 1, 1>, scalar_prefetch = 0 : i64, scratch_operands = 0 : i64, tpu.core_type = #tpu.core_type<tc>, window_params = [{transform_indices = @transform_0, window_bounds = array<i64: 128, 128>}, {transform_indices = @transform_1, window_bounds = array<i64: 128, 128>}, {transform_indices = @transform_2, window_bounds = array<i64: 1152, 128>}, {transform_indices = @transform_3, window_bounds = array<i64: 1, 128>}, {transform_indices = @transform_4, window_bounds = array<i64: 128, 128>}]} {
    %c0 = arith.constant 0 : index
    %c0_0 = arith.constant 0 : index
    %0 = vector.load %arg2[%c0, %c0_0] : memref<128x128xbf16, #tpu.memory_space<vmem>>, vector<128x128xbf16>
    %cst = arith.constant 0.000000e+00 : bf16
    %1 = vector.broadcast %cst : bf16 to vector<128x128xbf16>
    %2 = arith.maximumf %0, %1 : vector<128x128xbf16>
    %c0_1 = arith.constant 0 : index
    %c0_2 = arith.constant 0 : index
    %3 = vector.load %arg3[%c0_1, %c0_2] : memref<128x128xbf16, #tpu.memory_space<vmem>>, vector<128x128xbf16>
    %cst_3 = arith.constant 0.000000e+00 : bf16
    %4 = vector.broadcast %cst_3 : bf16 to vector<128x128xbf16>
    %5 = arith.maximumf %3, %4 : vector<128x128xbf16>
    %6 = tpu.concatenate %2, %5 in 0 : vector<128x128xbf16>, vector<128x128xbf16> -> vector<256x128xbf16>
    %7 = vector.extract_strided_slice %6 {offsets = [0, 0], sizes = [128, 128], strides = [1, 1]} : vector<256x128xbf16> to vector<128x128xbf16>
    %8 = vector.extract_strided_slice %6 {offsets = [1, 0], sizes = [128, 128], strides = [1, 1]} : vector<256x128xbf16> to vector<128x128xbf16>
    %9 = vector.extract_strided_slice %6 {offsets = [2, 0], sizes = [128, 128], strides = [1, 1]} : vector<256x128xbf16> to vector<128x128xbf16>
    %10 = vector.extract_strided_slice %6 {offsets = [6, 0], sizes = [128, 128], strides = [1, 1]} : vector<256x128xbf16> to vector<128x128xbf16>
    %11 = vector.extract_strided_slice %6 {offsets = [7, 0], sizes = [128, 128], strides = [1, 1]} : vector<256x128xbf16> to vector<128x128xbf16>
    %12 = vector.extract_strided_slice %6 {offsets = [8, 0], sizes = [128, 128], strides = [1, 1]} : vector<256x128xbf16> to vector<128x128xbf16>
    %13 = vector.extract_strided_slice %6 {offsets = [12, 0], sizes = [128, 128], strides = [1, 1]} : vector<256x128xbf16> to vector<128x128xbf16>
    %14 = vector.extract_strided_slice %6 {offsets = [13, 0], sizes = [128, 128], strides = [1, 1]} : vector<256x128xbf16> to vector<128x128xbf16>
    %15 = vector.extract_strided_slice %6 {offsets = [14, 0], sizes = [128, 128], strides = [1, 1]} : vector<256x128xbf16> to vector<128x128xbf16>
    %16 = tpu.concatenate %7, %8, %9, %10, %11, %12, %13, %14, %15 in 1 : vector<128x128xbf16>, vector<128x128xbf16>, vector<128x128xbf16>, vector<128x128xbf16>, vector<128x128xbf16>, vector<128x128xbf16>, vector<128x128xbf16>, vector<128x128xbf16>, vector<128x128xbf16> -> vector<128x1152xbf16>
    %c0_4 = arith.constant 0 : index
    %c0_5 = arith.constant 0 : index
    %17 = vector.load %arg4[%c0_4, %c0_5] : memref<1152x128xbf16, #tpu.memory_space<vmem>>, vector<1152x128xbf16>
    %cst_6 = arith.constant dense<0.000000e+00> : vector<128x128xf32>
    %18 = tpu.matmul %16, %17, %cst_6 {dimension_numbers = #tpu.dot_dimension_numbers<[1], [0], [0], [1], [0, 0, 1, 1], [], []>} : vector<128x1152xbf16>, vector<1152x128xbf16>, vector<128x128xf32> -> vector<128x128xf32>
    %c0_7 = arith.constant 0 : index
    %c0_8 = arith.constant 0 : index
    %19 = vector.load %arg5[%c0_7, %c0_8] : memref<1x128xf32, #tpu.memory_space<vmem>>, vector<1x128xf32>
    %20 = vector.broadcast %19 : vector<1x128xf32> to vector<128x128xf32>
    %21 = arith.addf %18, %20 : vector<128x128xf32>
    %cst_9 = arith.constant 0.000000e+00 : f32
    %22 = vector.broadcast %cst_9 : f32 to vector<128x128xf32>
    %23 = arith.maximumf %21, %22 : vector<128x128xf32>
    %24 = arith.truncf %23 : vector<128x128xf32> to vector<128x128xbf16>
    %c0_10 = arith.constant 0 : index
    %c0_11 = arith.constant 0 : index
    %25 = vector.load %arg6[%c0_10, %c0_11] : memref<128x128xbf16, #tpu.memory_space<vmem>>, vector<128x128xbf16>
    tpu.vector_store %arg6[%c0_10, %c0_11], %24 {strides = array<i32>} : memref<128x128xbf16, #tpu.memory_space<vmem>>, vector<128x128xbf16>,
    return
  }
  func.func @transform_0(%arg0: i32, %arg1: i32) -> (i32, i32) {
    %c0_i32 = arith.constant 0 : i32
    %c0_i32_0 = arith.constant 0 : i32
    return %arg0, %c0_i32 : i32, i32
  }
  func.func @transform_1(%arg0: i32, %arg1: i32) -> (i32, i32) {
    %c1_i32 = arith.constant 1 : i32
    %0 = arith.addi %arg0, %c1_i32 : i32
    %c0_i32 = arith.constant 0 : i32
    %c0_i32_0 = arith.constant 0 : i32
    return %0, %c0_i32 : i32, i32
  }
  func.func @transform_2(%arg0: i32, %arg1: i32) -> (i32, i32) {
    %c0_i32 = arith.constant 0 : i32
    %c0_i32_0 = arith.constant 0 : i32
    return %c0_i32, %arg1 : i32, i32
  }
  func.func @transform_3(%arg0: i32, %arg1: i32) -> (i32, i32) {
    %c0_i32 = arith.constant 0 : i32
    %c0_i32_0 = arith.constant 0 : i32
    return %c0_i32, %arg1 : i32, i32
  }
  func.func @transform_4(%arg0: i32, %arg1: i32) -> (i32, i32) {
    %c0_i32 = arith.constant 0 : i32
    return %arg0, %arg1 : i32, i32
  }
}

module attributes {stable_mosaic.version = 11 : i64} {
  func.func @_conv_kernel(%arg0: i32, %arg1: i32, %arg2: memref<128x8xbf16, #tpu.memory_space<vmem>>, %arg3: memref<8x128xbf16, #tpu.memory_space<vmem>>, %arg4: memref<1x128xf32, #tpu.memory_space<vmem>>, %arg5: memref<128x128xbf16, #tpu.memory_space<vmem>>, %arg6: memref<128x128xbf16, #tpu.memory_space<vmem>>) attributes {dimension_semantics = [#tpu.dimension_semantics<parallel>, #tpu.dimension_semantics<parallel>], iteration_bounds = array<i64: 1, 1>, scalar_prefetch = 0 : i64, scratch_operands = 0 : i64, tpu.core_type = #tpu.core_type<tc>, window_params = [{transform_indices = @transform_0, window_bounds = array<i64: 128, 8>}, {transform_indices = @transform_1, window_bounds = array<i64: 8, 128>}, {transform_indices = @transform_2, window_bounds = array<i64: 1, 128>}, {transform_indices = @transform_3, window_bounds = array<i64: 128, 128>}, {transform_indices = @transform_4, window_bounds = array<i64: 128, 128>}]} {
    %c0 = arith.constant 0 : index
    %c0_0 = arith.constant 0 : index
    %0 = vector.load %arg2[%c0, %c0_0] : memref<128x8xbf16, #tpu.memory_space<vmem>>, vector<128x8xbf16>
    %c0_1 = arith.constant 0 : index
    %c0_2 = arith.constant 0 : index
    %1 = vector.load %arg3[%c0_1, %c0_2] : memref<8x128xbf16, #tpu.memory_space<vmem>>, vector<8x128xbf16>
    %cst = arith.constant dense<0.000000e+00> : vector<128x128xf32>
    %2 = tpu.matmul %0, %1, %cst {dimension_numbers = #tpu.dot_dimension_numbers<[1], [0], [0], [1], [0, 0, 1, 1], [], []>} : vector<128x8xbf16>, vector<8x128xbf16>, vector<128x128xf32> -> vector<128x128xf32>
    %c0_3 = arith.constant 0 : index
    %c0_4 = arith.constant 0 : index
    %3 = vector.load %arg4[%c0_3, %c0_4] : memref<1x128xf32, #tpu.memory_space<vmem>>, vector<1x128xf32>
    %4 = vector.broadcast %3 : vector<1x128xf32> to vector<128x128xf32>
    %5 = arith.addf %2, %4 : vector<128x128xf32>
    %c0_5 = arith.constant 0 : index
    %c0_6 = arith.constant 0 : index
    %6 = vector.load %arg5[%c0_5, %c0_6] : memref<128x128xbf16, #tpu.memory_space<vmem>>, vector<128x128xbf16>
    %7 = arith.extf %6 : vector<128x128xbf16> to vector<128x128xf32>
    %8 = arith.addf %5, %7 : vector<128x128xf32>
    %9 = arith.truncf %8 : vector<128x128xf32> to vector<128x128xbf16>
    %c0_7 = arith.constant 0 : index
    %c0_8 = arith.constant 0 : index
    %10 = vector.load %arg6[%c0_7, %c0_8] : memref<128x128xbf16, #tpu.memory_space<vmem>>, vector<128x128xbf16>
    tpu.vector_store %arg6[%c0_7, %c0_8], %9 {strides = array<i32>} : memref<128x128xbf16, #tpu.memory_space<vmem>>, vector<128x128xbf16>,
    return
  }
  func.func @transform_0(%arg0: i32, %arg1: i32) -> (i32, i32) {
    %c0_i32 = arith.constant 0 : i32
    %c0_i32_0 = arith.constant 0 : i32
    return %arg0, %c0_i32 : i32, i32
  }
  func.func @transform_1(%arg0: i32, %arg1: i32) -> (i32, i32) {
    %c0_i32 = arith.constant 0 : i32
    %c0_i32_0 = arith.constant 0 : i32
    return %c0_i32, %arg1 : i32, i32
  }
  func.func @transform_2(%arg0: i32, %arg1: i32) -> (i32, i32) {
    %c0_i32 = arith.constant 0 : i32
    %c0_i32_0 = arith.constant 0 : i32
    return %c0_i32, %arg1 : i32, i32
  }
  func.func @transform_3(%arg0: i32, %arg1: i32) -> (i32, i32) {
    %c0_i32 = arith.constant 0 : i32
    return %arg0, %arg1 : i32, i32
  }
  func.func @transform_4(%arg0: i32, %arg1: i32) -> (i32, i32) {
    %c0_i32 = arith.constant 0 : i32
    return %arg0, %arg1 : i32, i32
  }
}

module attributes {stable_mosaic.version = 11 : i64} {
  func.func @_conv_kernel(%arg0: i32, %arg1: i32, %arg2: memref<128x8xbf16, #tpu.memory_space<vmem>>, %arg3: memref<8x128xbf16, #tpu.memory_space<vmem>>, %arg4: memref<1x128xf32, #tpu.memory_space<vmem>>, %arg5: memref<128x128xbf16, #tpu.memory_space<vmem>>, %arg6: memref<128x128xbf16, #tpu.memory_space<vmem>>) attributes {dimension_semantics = [#tpu.dimension_semantics<parallel>, #tpu.dimension_semantics<parallel>], iteration_bounds = array<i64: 1, 1>, scalar_prefetch = 0 : i64, scratch_operands = 0 : i64, tpu.core_type = #tpu.core_type<tc>, window_params = [{transform_indices = @transform_0, window_bounds = array<i64: 128, 8>}, {transform_indices = @transform_1, window_bounds = array<i64: 8, 128>}, {transform_indices = @transform_2, window_bounds = array<i64: 1, 128>}, {transform_indices = @transform_3, window_bounds = array<i64: 128, 128>}, {transform_indices = @transform_4, window_bounds = array<i64: 128, 128>}]} {
    %c0 = arith.constant 0 : index
    %c0_0 = arith.constant 0 : index
    %0 = vector.load %arg2[%c0, %c0_0] : memref<128x8xbf16, #tpu.memory_space<vmem>>, vector<128x8xbf16>
    %c0_1 = arith.constant 0 : index
    %c0_2 = arith.constant 0 : index
    %1 = vector.load %arg3[%c0_1, %c0_2] : memref<8x128xbf16, #tpu.memory_space<vmem>>, vector<8x128xbf16>
    %cst = arith.constant dense<0.000000e+00> : vector<128x128xf32>
    %2 = tpu.matmul %0, %1, %cst {dimension_numbers = #tpu.dot_dimension_numbers<[1], [0], [0], [1], [0, 0, 1, 1], [], []>} : vector<128x8xbf16>, vector<8x128xbf16>, vector<128x128xf32> -> vector<128x128xf32>
    %c0_3 = arith.constant 0 : index
    %c0_4 = arith.constant 0 : index
    %3 = vector.load %arg4[%c0_3, %c0_4] : memref<1x128xf32, #tpu.memory_space<vmem>>, vector<1x128xf32>
    %4 = vector.broadcast %3 : vector<1x128xf32> to vector<128x128xf32>
    %5 = arith.addf %2, %4 : vector<128x128xf32>
    %c0_5 = arith.constant 0 : index
    %c0_6 = arith.constant 0 : index
    %6 = vector.load %arg5[%c0_5, %c0_6] : memref<128x128xbf16, #tpu.memory_space<vmem>>, vector<128x128xbf16>
    %7 = arith.extf %6 : vector<128x128xbf16> to vector<128x128xf32>
    %8 = arith.addf %5, %7 : vector<128x128xf32>
    %cst_7 = arith.constant 0.000000e+00 : f32
    %9 = vector.broadcast %cst_7 : f32 to vector<128x128xf32>
    %10 = arith.maximumf %8, %9 : vector<128x128xf32>
    %11 = arith.truncf %10 : vector<128x128xf32> to vector<128x128xbf16>
    %c0_8 = arith.constant 0 : index
    %c0_9 = arith.constant 0 : index
    %12 = vector.load %arg6[%c0_8, %c0_9] : memref<128x128xbf16, #tpu.memory_space<vmem>>, vector<128x128xbf16>
    tpu.vector_store %arg6[%c0_8, %c0_9], %11 {strides = array<i32>} : memref<128x128xbf16, #tpu.memory_space<vmem>>, vector<128x128xbf16>,
    return
  }
  func.func @transform_0(%arg0: i32, %arg1: i32) -> (i32, i32) {
    %c0_i32 = arith.constant 0 : i32
    %c0_i32_0 = arith.constant 0 : i32
    return %arg0, %c0_i32 : i32, i32
  }
  func.func @transform_1(%arg0: i32, %arg1: i32) -> (i32, i32) {
    %c0_i32 = arith.constant 0 : i32
    %c0_i32_0 = arith.constant 0 : i32
    return %c0_i32, %arg1 : i32, i32
  }
  func.func @transform_2(%arg0: i32, %arg1: i32) -> (i32, i32) {
    %c0_i32 = arith.constant 0 : i32
    %c0_i32_0 = arith.constant 0 : i32
    return %c0_i32, %arg1 : i32, i32
  }
  func.func @transform_3(%arg0: i32, %arg1: i32) -> (i32, i32) {
    %c0_i32 = arith.constant 0 : i32
    return %arg0, %arg1 : i32, i32
  }
  func.func @transform_4(%arg0: i32, %arg1: i32) -> (i32, i32) {
    %c0_i32 = arith.constant 0 : i32
    return %arg0, %arg1 : i32, i32
  }
}

module attributes {stable_mosaic.version = 11 : i64} {
  func.func @_conv_kernel(%arg0: i32, %arg1: i32, %arg2: memref<128x16xbf16, #tpu.memory_space<vmem>>, %arg3: memref<16x128xbf16, #tpu.memory_space<vmem>>, %arg4: memref<1x128xf32, #tpu.memory_space<vmem>>, %arg5: memref<128x128xf32, #tpu.memory_space<vmem>>) attributes {dimension_semantics = [#tpu.dimension_semantics<parallel>, #tpu.dimension_semantics<parallel>], iteration_bounds = array<i64: 1, 1>, scalar_prefetch = 0 : i64, scratch_operands = 0 : i64, tpu.core_type = #tpu.core_type<tc>, window_params = [{transform_indices = @transform_0, window_bounds = array<i64: 128, 16>}, {transform_indices = @transform_1, window_bounds = array<i64: 16, 128>}, {transform_indices = @transform_2, window_bounds = array<i64: 1, 128>}, {transform_indices = @transform_3, window_bounds = array<i64: 128, 128>}]} {
    %c0 = arith.constant 0 : index
    %c0_0 = arith.constant 0 : index
    %0 = vector.load %arg2[%c0, %c0_0] : memref<128x16xbf16, #tpu.memory_space<vmem>>, vector<128x16xbf16>
    %c0_1 = arith.constant 0 : index
    %c0_2 = arith.constant 0 : index
    %1 = vector.load %arg3[%c0_1, %c0_2] : memref<16x128xbf16, #tpu.memory_space<vmem>>, vector<16x128xbf16>
    %cst = arith.constant dense<0.000000e+00> : vector<128x128xf32>
    %2 = tpu.matmul %0, %1, %cst {dimension_numbers = #tpu.dot_dimension_numbers<[1], [0], [0], [1], [0, 0, 1, 1], [], []>} : vector<128x16xbf16>, vector<16x128xbf16>, vector<128x128xf32> -> vector<128x128xf32>
    %c0_3 = arith.constant 0 : index
    %c0_4 = arith.constant 0 : index
    %3 = vector.load %arg4[%c0_3, %c0_4] : memref<1x128xf32, #tpu.memory_space<vmem>>, vector<1x128xf32>
    %4 = vector.broadcast %3 : vector<1x128xf32> to vector<128x128xf32>
    %5 = arith.addf %2, %4 : vector<128x128xf32>
    %c0_5 = arith.constant 0 : index
    %c0_6 = arith.constant 0 : index
    %6 = vector.load %arg5[%c0_5, %c0_6] : memref<128x128xf32, #tpu.memory_space<vmem>>, vector<128x128xf32>
    tpu.vector_store %arg5[%c0_5, %c0_6], %5 {strides = array<i32>} : memref<128x128xf32, #tpu.memory_space<vmem>>, vector<128x128xf32>,
    return
  }
  func.func @transform_0(%arg0: i32, %arg1: i32) -> (i32, i32) {
    %c0_i32 = arith.constant 0 : i32
    %c0_i32_0 = arith.constant 0 : i32
    return %arg0, %c0_i32 : i32, i32
  }
  func.func @transform_1(%arg0: i32, %arg1: i32) -> (i32, i32) {
    %c0_i32 = arith.constant 0 : i32
    %c0_i32_0 = arith.constant 0 : i32
    return %c0_i32, %arg1 : i32, i32
  }
  func.func @transform_2(%arg0: i32, %arg1: i32) -> (i32, i32) {
    %c0_i32 = arith.constant 0 : i32
    %c0_i32_0 = arith.constant 0 : i32
    return %c0_i32, %arg1 : i32, i32
  }
  func.func @transform_3(%arg0: i32, %arg1: i32) -> (i32, i32) {
    %c0_i32 = arith.constant 0 : i32
    return %arg0, %arg1 : i32, i32
  }
}

module attributes {stable_mosaic.version = 11 : i64} {
  func.func @_vq_kernel(%arg0: i32, %arg1: memref<32x128xf32, #tpu.memory_space<vmem>>, %arg2: memref<128x128xf32, #tpu.memory_space<vmem>>, %arg3: memref<1x128xf32, #tpu.memory_space<vmem>>, %arg4: memref<32x1xi32, #tpu.memory_space<vmem>>) attributes {dimension_semantics = [#tpu.dimension_semantics<parallel>], iteration_bounds = array<i64: 1>, scalar_prefetch = 0 : i64, scratch_operands = 0 : i64, tpu.core_type = #tpu.core_type<tc>, window_params = [{transform_indices = @transform_0, window_bounds = array<i64: 32, 128>}, {pipeline_mode = #tpu.pipeline_mode<synchronous>, transform_indices = @transform_1, window_bounds = array<i64: 128, 128>}, {pipeline_mode = #tpu.pipeline_mode<synchronous>, transform_indices = @transform_2, window_bounds = array<i64: 1, 128>}, {transform_indices = @transform_3, window_bounds = array<i64: 32, 1>}]} {
    %c0 = arith.constant 0 : index
    %c0_0 = arith.constant 0 : index
    %0 = vector.load %arg1[%c0, %c0_0] : memref<32x128xf32, #tpu.memory_space<vmem>>, vector<32x128xf32>
    %cst = arith.constant 0x7F800000 : f32
    %1 = vector.broadcast %cst : f32 to vector<32x1xf32>
    %c0_i32 = arith.constant 0 : i32
    %2 = vector.broadcast %c0_i32 : i32 to vector<32x1xi32>
    %c0_1 = arith.constant 0 : index
    %c0_2 = arith.constant 0 : index
    %3 = vector.load %arg2[%c0_1, %c0_2] : memref<128x128xf32, #tpu.memory_space<vmem>>, vector<128x128xf32>
    %c0_3 = arith.constant 0 : index
    %c0_4 = arith.constant 0 : index
    %4 = vector.load %arg3[%c0_3, %c0_4] : memref<1x128xf32, #tpu.memory_space<vmem>>, vector<1x128xf32>
    %cst_5 = arith.constant dense<0.000000e+00> : vector<32x128xf32>
    %5 = tpu.matmul %0, %3, %cst_5 {dimension_numbers = #tpu.dot_dimension_numbers<[1], [1], [0], [0], [0, 0, 1, 0], [], []>} : vector<32x128xf32>, vector<128x128xf32>, vector<32x128xf32> -> vector<32x128xf32>
    %cst_6 = arith.constant 2.000000e+00 : f32
    %6 = vector.broadcast %cst_6 : f32 to vector<32x128xf32>
    %7 = arith.mulf %6, %5 : vector<32x128xf32>
    %8 = vector.broadcast %4 : vector<1x128xf32> to vector<32x128xf32>
    %9 = arith.subf %8, %7 : vector<32x128xf32>
    %10 = tpu.iota {dimensions = array<i32: 1>} : vector<32x128xi32>
    %c0_i32_7 = arith.constant 0 : i32
    %11 = vector.broadcast %c0_i32_7 : i32 to vector<32x128xi32>
    %12 = arith.addi %10, %11 : vector<32x128xi32>
    %c16_i32 = arith.constant 16 : i32
    %13 = vector.broadcast %c16_i32 : i32 to vector<32x128xi32>
    %14 = arith.cmpi slt, %12, %13 : vector<32x128xi32>
    %cst_8 = arith.constant 0x7F800000 : f32
    %15 = vector.broadcast %cst_8 : f32 to vector<32x128xf32>
    %16 = arith.select %14, %9, %15 : vector<32x128xi1>, vector<32x128xf32>
    %cst_9 = arith.constant dense<0x7F800000> : vector<32xf32>
    %17 = vector.multi_reduction <minimumf>, %16, %cst_9 [1] : vector<32x128xf32> to vector<32xf32>
    %18 = vector.shape_cast %17 : vector<32xf32> to vector<32x1xf32>
    %19 = vector.broadcast %18 : vector<32x1xf32> to vector<32x128xf32>
    %20 = arith.cmpf ole, %16, %19 : vector<32x128xf32>
    %c1073741824_i32 = arith.constant 1073741824 : i32
    %21 = vector.broadcast %c1073741824_i32 : i32 to vector<32x128xi32>
    %22 = arith.select %20, %12, %21 : vector<32x128xi1>, vector<32x128xi32>
    %cst_10 = arith.constant dense<2147483647> : vector<32xi32>
    %23 = vector.multi_reduction <minsi>, %22, %cst_10 [1] : vector<32x128xi32> to vector<32xi32>
    %24 = vector.shape_cast %23 : vector<32xi32> to vector<32x1xi32>
    %25 = arith.cmpf olt, %18, %1 : vector<32x1xf32>
    %26 = arith.select %25, %24, %2 : vector<32x1xi1>, vector<32x1xi32>
    %c0_11 = arith.constant 0 : index
    %c0_12 = arith.constant 0 : index
    %27 = vector.load %arg4[%c0_11, %c0_12] : memref<32x1xi32, #tpu.memory_space<vmem>>, vector<32x1xi32>
    tpu.vector_store %arg4[%c0_11, %c0_12], %26 {strides = array<i32>} : memref<32x1xi32, #tpu.memory_space<vmem>>, vector<32x1xi32>,
    return
  }
  func.func @transform_0(%arg0: i32) -> (i32, i32) {
    %c0_i32 = arith.constant 0 : i32
    %c0_i32_0 = arith.constant 0 : i32
    return %arg0, %c0_i32 : i32, i32
  }
  func.func @transform_1(%arg0: i32) -> (i32, i32) {
    %c0_i32 = arith.constant 0 : i32
    %c0_i32_0 = arith.constant 0 : i32
    %c0_i32_1 = arith.constant 0 : i32
    return %c0_i32, %c0_i32_0 : i32, i32
  }
  func.func @transform_2(%arg0: i32) -> (i32, i32) {
    %c0_i32 = arith.constant 0 : i32
    %c0_i32_0 = arith.constant 0 : i32
    %c0_i32_1 = arith.constant 0 : i32
    return %c0_i32, %c0_i32_0 : i32, i32
  }
  func.func @transform_3(%arg0: i32) -> (i32, i32) {
    %c0_i32 = arith.constant 0 : i32
    %c0_i32_0 = arith.constant 0 : i32
    return %arg0, %c0_i32 : i32, i32
  }
}

module attributes {stable_mosaic.version = 11 : i64} {
  func.func @_conv_kernel(%arg0: i32, %arg1: i32, %arg2: memref<128x128xbf16, #tpu.memory_space<vmem>>, %arg3: memref<128x128xbf16, #tpu.memory_space<vmem>>, %arg4: memref<512x128xbf16, #tpu.memory_space<vmem>>, %arg5: memref<1x128xf32, #tpu.memory_space<vmem>>, %arg6: memref<128x128xbf16, #tpu.memory_space<vmem>>) attributes {dimension_semantics = [#tpu.dimension_semantics<parallel>, #tpu.dimension_semantics<parallel>], iteration_bounds = array<i64: 1, 1>, scalar_prefetch = 0 : i64, scratch_operands = 0 : i64, tpu.core_type = #tpu.core_type<tc>, window_params = [{transform_indices = @transform_0, window_bounds = array<i64: 128, 128>}, {transform_indices = @transform_1, window_bounds = array<i64: 128, 128>}, {transform_indices = @transform_2, window_bounds = array<i64: 512, 128>}, {transform_indices = @transform_3, window_bounds = array<i64: 1, 128>}, {transform_indices = @transform_4, window_bounds = array<i64: 128, 128>}]} {
    %c0 = arith.constant 0 : index
    %c0_0 = arith.constant 0 : index
    %0 = vector.load %arg2[%c0, %c0_0] : memref<128x128xbf16, #tpu.memory_space<vmem>>, vector<128x128xbf16>
    %c0_1 = arith.constant 0 : index
    %c0_2 = arith.constant 0 : index
    %1 = vector.load %arg3[%c0_1, %c0_2] : memref<128x128xbf16, #tpu.memory_space<vmem>>, vector<128x128xbf16>
    %2 = tpu.concatenate %0, %1 in 0 : vector<128x128xbf16>, vector<128x128xbf16> -> vector<256x128xbf16>
    %3 = vector.extract_strided_slice %2 {offsets = [0, 0], sizes = [128, 128], strides = [1, 1]} : vector<256x128xbf16> to vector<128x128xbf16>
    %4 = vector.extract_strided_slice %2 {offsets = [1, 0], sizes = [128, 128], strides = [1, 1]} : vector<256x128xbf16> to vector<128x128xbf16>
    %5 = vector.extract_strided_slice %2 {offsets = [6, 0], sizes = [128, 128], strides = [1, 1]} : vector<256x128xbf16> to vector<128x128xbf16>
    %6 = vector.extract_strided_slice %2 {offsets = [7, 0], sizes = [128, 128], strides = [1, 1]} : vector<256x128xbf16> to vector<128x128xbf16>
    %7 = tpu.concatenate %3, %4, %5, %6 in 1 : vector<128x128xbf16>, vector<128x128xbf16>, vector<128x128xbf16>, vector<128x128xbf16> -> vector<128x512xbf16>
    %c0_3 = arith.constant 0 : index
    %c0_4 = arith.constant 0 : index
    %8 = vector.load %arg4[%c0_3, %c0_4] : memref<512x128xbf16, #tpu.memory_space<vmem>>, vector<512x128xbf16>
    %cst = arith.constant dense<0.000000e+00> : vector<128x128xf32>
    %9 = tpu.matmul %7, %8, %cst {dimension_numbers = #tpu.dot_dimension_numbers<[1], [0], [0], [1], [0, 0, 1, 1], [], []>} : vector<128x512xbf16>, vector<512x128xbf16>, vector<128x128xf32> -> vector<128x128xf32>
    %c0_5 = arith.constant 0 : index
    %c0_6 = arith.constant 0 : index
    %10 = vector.load %arg5[%c0_5, %c0_6] : memref<1x128xf32, #tpu.memory_space<vmem>>, vector<1x128xf32>
    %11 = vector.broadcast %10 : vector<1x128xf32> to vector<128x128xf32>
    %12 = arith.addf %9, %11 : vector<128x128xf32>
    %cst_7 = arith.constant 0.000000e+00 : f32
    %13 = vector.broadcast %cst_7 : f32 to vector<128x128xf32>
    %14 = arith.maximumf %12, %13 : vector<128x128xf32>
    %15 = arith.truncf %14 : vector<128x128xf32> to vector<128x128xbf16>
    %c0_8 = arith.constant 0 : index
    %c0_9 = arith.constant 0 : index
    %16 = vector.load %arg6[%c0_8, %c0_9] : memref<128x128xbf16, #tpu.memory_space<vmem>>, vector<128x128xbf16>
    tpu.vector_store %arg6[%c0_8, %c0_9], %15 {strides = array<i32>} : memref<128x128xbf16, #tpu.memory_space<vmem>>, vector<128x128xbf16>,
    return
  }
  func.func @transform_0(%arg0: i32, %arg1: i32) -> (i32, i32) {
    %c0_i32 = arith.constant 0 : i32
    %c0_i32_0 = arith.constant 0 : i32
    return %arg0, %c0_i32 : i32, i32
  }
  func.func @transform_1(%arg0: i32, %arg1: i32) -> (i32, i32) {
    %c1_i32 = arith.constant 1 : i32
    %0 = arith.addi %arg0, %c1_i32 : i32
    %c0_i32 = arith.constant 0 : i32
    %c0_i32_0 = arith.constant 0 : i32
    return %0, %c0_i32 : i32, i32
  }
  func.func @transform_2(%arg0: i32, %arg1: i32) -> (i32, i32) {
    %c0_i32 = arith.constant 0 : i32
    %c0_i32_0 = arith.constant 0 : i32
    return %c0_i32, %arg1 : i32, i32
  }
  func.func @transform_3(%arg0: i32, %arg1: i32) -> (i32, i32) {
    %c0_i32 = arith.constant 0 : i32
    %c0_i32_0 = arith.constant 0 : i32
    return %c0_i32, %arg1 : i32, i32
  }
  func.func @transform_4(%arg0: i32, %arg1: i32) -> (i32, i32) {
    %c0_i32 = arith.constant 0 : i32
    return %arg0, %arg1 : i32, i32
  }
}

module attributes {stable_mosaic.version = 11 : i64} {
  func.func @_conv_kernel(%arg0: i32, %arg1: i32, %arg2: memref<256x128xbf16, #tpu.memory_space<vmem>>, %arg3: memref<256x128xbf16, #tpu.memory_space<vmem>>, %arg4: memref<512x128xbf16, #tpu.memory_space<vmem>>, %arg5: memref<1x128xf32, #tpu.memory_space<vmem>>, %arg6: memref<256x128xf32, #tpu.memory_space<vmem>>) attributes {dimension_semantics = [#tpu.dimension_semantics<parallel>, #tpu.dimension_semantics<parallel>], iteration_bounds = array<i64: 1, 1>, scalar_prefetch = 0 : i64, scratch_operands = 0 : i64, tpu.core_type = #tpu.core_type<tc>, window_params = [{transform_indices = @transform_0, window_bounds = array<i64: 256, 128>}, {transform_indices = @transform_1, window_bounds = array<i64: 256, 128>}, {transform_indices = @transform_2, window_bounds = array<i64: 512, 128>}, {transform_indices = @transform_3, window_bounds = array<i64: 1, 128>}, {transform_indices = @transform_4, window_bounds = array<i64: 256, 128>}]} {
    %c0 = arith.constant 0 : index
    %c0_0 = arith.constant 0 : index
    %0 = vector.load %arg2[%c0, %c0_0] : memref<256x128xbf16, #tpu.memory_space<vmem>>, vector<256x128xbf16>
    %c0_1 = arith.constant 0 : index
    %c0_2 = arith.constant 0 : index
    %1 = vector.load %arg3[%c0_1, %c0_2] : memref<256x128xbf16, #tpu.memory_space<vmem>>, vector<256x128xbf16>
    %2 = tpu.concatenate %0, %1 in 0 : vector<256x128xbf16>, vector<256x128xbf16> -> vector<512x128xbf16>
    %3 = vector.extract_strided_slice %2 {offsets = [0, 0], sizes = [256, 128], strides = [1, 1]} : vector<512x128xbf16> to vector<256x128xbf16>
    %4 = vector.extract_strided_slice %2 {offsets = [1, 0], sizes = [256, 128], strides = [1, 1]} : vector<512x128xbf16> to vector<256x128xbf16>
    %5 = vector.extract_strided_slice %2 {offsets = [10, 0], sizes = [256, 128], strides = [1, 1]} : vector<512x128xbf16> to vector<256x128xbf16>
    %6 = vector.extract_strided_slice %2 {offsets = [11, 0], sizes = [256, 128], strides = [1, 1]} : vector<512x128xbf16> to vector<256x128xbf16>
    %7 = tpu.concatenate %3, %4, %5, %6 in 1 : vector<256x128xbf16>, vector<256x128xbf16>, vector<256x128xbf16>, vector<256x128xbf16> -> vector<256x512xbf16>
    %c0_3 = arith.constant 0 : index
    %c0_4 = arith.constant 0 : index
    %8 = vector.load %arg4[%c0_3, %c0_4] : memref<512x128xbf16, #tpu.memory_space<vmem>>, vector<512x128xbf16>
    %cst = arith.constant dense<0.000000e+00> : vector<256x128xf32>
    %9 = tpu.matmul %7, %8, %cst {dimension_numbers = #tpu.dot_dimension_numbers<[1], [0], [0], [1], [0, 0, 1, 1], [], []>} : vector<256x512xbf16>, vector<512x128xbf16>, vector<256x128xf32> -> vector<256x128xf32>
    %c0_5 = arith.constant 0 : index
    %c0_6 = arith.constant 0 : index
    %10 = vector.load %arg5[%c0_5, %c0_6] : memref<1x128xf32, #tpu.memory_space<vmem>>, vector<1x128xf32>
    %11 = vector.broadcast %10 : vector<1x128xf32> to vector<256x128xf32>
    %12 = arith.addf %9, %11 : vector<256x128xf32>
    %c0_7 = arith.constant 0 : index
    %c0_8 = arith.constant 0 : index
    %13 = vector.load %arg6[%c0_7, %c0_8] : memref<256x128xf32, #tpu.memory_space<vmem>>, vector<256x128xf32>
    tpu.vector_store %arg6[%c0_7, %c0_8], %12 {strides = array<i32>} : memref<256x128xf32, #tpu.memory_space<vmem>>, vector<256x128xf32>,
    return
  }
  func.func @transform_0(%arg0: i32, %arg1: i32) -> (i32, i32) {
    %c0_i32 = arith.constant 0 : i32
    %c0_i32_0 = arith.constant 0 : i32
    return %arg0, %c0_i32 : i32, i32
  }
  func.func @transform_1(%arg0: i32, %arg1: i32) -> (i32, i32) {
    %c1_i32 = arith.constant 1 : i32
    %0 = arith.addi %arg0, %c1_i32 : i32
    %c0_i32 = arith.constant 0 : i32
    %c0_i32_0 = arith.constant 0 : i32
    return %0, %c0_i32 : i32, i32
  }
  func.func @transform_2(%arg0: i32, %arg1: i32) -> (i32, i32) {
    %c0_i32 = arith.constant 0 : i32
    %c0_i32_0 = arith.constant 0 : i32
    return %c0_i32, %arg1 : i32, i32
  }
  func.func @transform_3(%arg0: i32, %arg1: i32) -> (i32, i32) {
    %c0_i32 = arith.constant 0 : i32
    %c0_i32_0 = arith.constant 0 : i32
    return %c0_i32, %arg1 : i32, i32
  }
  func.func @transform_4(%arg0: i32, %arg1: i32) -> (i32, i32) {
    %c0_i32 = arith.constant 0 : i32
    return %arg0, %arg1 : i32, i32
  }
}

</mosaic_0001>

<bundles_post_ra>
// kernel: vqvae_forward.16
= control target key start
LH: loop header
LB: loop body
LE: loop exit
PB: predicated region body
PF: predicated region fallthrough
CT: control target
= control target key end

     0   :  { %vm174_vm0 = vsmask.f32 7424  ;;  %vm323_vm1 = vsmask.f32 3328  ;;  %vm409_vm2 = vcmask 1042432   ;;  %s1871_s2 = inlined_call_operand.vmem [shape: bf16[512,128], index: 2, kind: input, shape index: {}]   ;;  %s1872_s0 = inlined_call_operand.vmem [shape: bf16[512,128], index: 0, kind: input, shape index: {}, may-alias: {0,1}]   ;;  %s1873_s3 = inlined_call_operand.vmem [shape: f32[1,128], index: 3, kind: input, shape index: {}]   ;;  %s1874_s4 = inlined_call_operand.vmem [shape: bf16[256,128], index: 4, kind: output, shape index: {}]   ;;  %s1875_s1 = inlined_call_operand.vmem [shape: bf16[512,128], index: 1, kind: input, shape index: {}, may-alias: {0,1}]  }
   0x1   :  { %v1403_v0 = vld [vmem:[%s1871_s2 + $0x38] sm:$0xff]  ;;  %v1402_v4 = vld [vmem:[%s1871_s2 + $0x30] sm:$0xff]  ;;  %v1401_v8 = vld [vmem:[%s1871_s2 + $0x28] sm:$0xff] }
   0x2   :  { %v1411_v1 = vld [vmem:[%s1871_s2 + $0x78] sm:$0xff]  ;;  %719 = vmatpush.bf16.msra.mxu0 %v1403_v0  ;;  %v1410_v5 = vld [vmem:[%s1871_s2 + $0x70] sm:$0xff]  ;;  %v1409_v9 = vld [vmem:[%s1871_s2 + $0x68] sm:$0xff] }
   0x3   :  { %v1419_v2 = vld [vmem:[%s1871_s2 + $0xb8] sm:$0xff]  ;;  %808 = vmatpush.bf16.msra.mxu1 %v1411_v1  ;;  %v1418_v6 = vld [vmem:[%s1871_s2 + $0xb0] sm:$0xff]  ;;  %v1417_v10 = vld [vmem:[%s1871_s2 + $0xa8] sm:$0xff] }
   0x4   :  { %v1427_v3 = vld [vmem:[%s1871_s2 + $0xf8] sm:$0xff]  ;;  %897 = vmatpush.bf16.msra.mxu2 %v1419_v2  ;;  %v1426_v7 = vld [vmem:[%s1871_s2 + $0xf0] sm:$0xff]  ;;  %v1425_v11 = vld [vmem:[%s1871_s2 + $0xe8] sm:$0xff] }
   0x5   :  { %986 = vmatpush.bf16.msra.mxu3 %v1427_v3  ;;  %v1400_v12 = vld [vmem:[%s1871_s2 + $0x20] sm:$0xff]  ;;  %v1399_v16 = vld [vmem:[%s1871_s2 + $0x18] sm:$0xff]  ;;  %v1615_v21 = vld [vmem:[%s1872_s0 + $0x8] sm:$0xff] }
   0x6   :  { %720 = vmatpush.bf16.msra.mxu0 %v1402_v4  ;;  %v1408_v13 = vld [vmem:[%s1871_s2 + $0x60] sm:$0xff]  ;;  %v1407_v17 = vld [vmem:[%s1871_s2 + $0x58] sm:$0xff]  ;;  %v1398_v22 = vld [vmem:[%s1871_s2 + $0x10] sm:$0xff]  ;;  %v183_v28 = vshll.u32 %v1615_v21, 16  ;;  %v187_v29 = vshrl.u32 %v1615_v21, 16  ;;  %v411_v48 = vrot.slane %v1615_v21, 5 }
   0x7   :  { %809 = vmatpush.bf16.msra.mxu1 %v1410_v5  ;;  %v1416_v14 = vld [vmem:[%s1871_s2 + $0xa0] sm:$0xff]  ;;  %v1415_v19 = vld [vmem:[%s1871_s2 + $0x98] sm:$0xff]  ;;  %v1406_v23 = vld [vmem:[%s1871_s2 + $0x50] sm:$0xff] }
   0x8   :  { %898 = vmatpush.bf16.msra.mxu2 %v1418_v6  ;;  %v1424_v15 = vld [vmem:[%s1871_s2 + $0xe0] sm:$0xff]  ;;  %v1423_v20 = vld [vmem:[%s1871_s2 + $0xd8] sm:$0xff]  ;;  %v1414_v24 = vld [vmem:[%s1871_s2 + $0x90] sm:$0xff]  ;;  %v327_v37 = vrot.slane %v187_v29, 4  ;;  %v328_v38 = vrot.slane %v183_v28, 5  ;;  %v185_v42 = vrot.slane %v183_v28, 1 }
   0x9   :  { %987 = vmatpush.bf16.msra.mxu3 %v1426_v7  ;;  %v1379_v18 = vld [vmem:[%s1872_s0] sm:$0xff]  ;;  %v1422_v26 = vld [vmem:[%s1871_s2 + $0xd0] sm:$0xff]  ;;  %v1397_v30 = vld [vmem:[%s1871_s2 + $0x8] sm:$0xff] }
   0xa   :  { %721 = vmatpush.bf16.msra.mxu0 %v1401_v8  ;;  %v178_v25 = vshll.u32 %v1379_v18, 16  ;;  %v176_v27 = vshrl.u32 %v1379_v18, 16  ;;  %v1405_v31 = vld [vmem:[%s1871_s2 + $0x48] sm:$0xff]  ;;  %v1396_v39 = vld [vmem:[%s1871_s2] sm:$0xff]  ;;  %v329_v46 = vor.u32 %v328_v38, %v327_v37  ;;  %v410_v47 = vrot.slane %v1379_v18, 5  ;;  %v1381_v52 = vld [vmem:[%s1872_s0 + $0x10] sm:$0xff] }
   0xb   :  { %810 = vmatpush.bf16.msra.mxu1 %v1409_v9  ;;  %v1413_v33 = vld [vmem:[%s1871_s2 + $0x88] sm:$0xff]  ;;  %v1404_v40 = vld [vmem:[%s1871_s2 + $0x40] sm:$0xff]  ;;  %v191_v53 = vshll.u32 %v1381_v52, 16  ;;  %v195_v54 = vshrl.u32 %v1381_v52, 16  ;;  %v189_v57 = vor.u32 %v187_v29, %v185_v42  ;;  %v413_v60 = vrot.slane %v1381_v52, 5  ;;  %v1382_v0 = vld [vmem:[%s1872_s0 + $0x18] sm:$0xff] }
   0xc   :  { %899 = vmatpush.bf16.msra.mxu2 %v1417_v10  ;;  %v180_v32 = vrot.slane %v178_v25, 1  ;;  %v1421_v34 = vld [vmem:[%s1871_s2 + $0xc8] sm:$0xff]  ;;  %v324_v35 = vrot.slane %v176_v27, 4  ;;  %v325_v36 = vrot.slane %v178_v25, 5  ;;  %v1412_v43 = vld [vmem:[%s1871_s2 + $0x80] sm:$0xff]  ;;  %v412_v51 = vsel %vm409_vm2, %v410_v47, %v411_v48 }
   0xd   :  { %988 = vmatpush.bf16.msra.mxu3 %v1425_v11  ;;  %v1420_v44 = vld [vmem:[%s1871_s2 + $0xc0] sm:$0xff]  ;;  %v331_v55 = vrot.slane %v195_v54, 4  ;;  %v332_v56 = vrot.slane %v191_v53, 5  ;;  %v193_v58 = vrot.slane %v191_v53, 1  ;;  %v414_v63 = vsel %vm409_vm2, %v411_v48, %v413_v60  ;;  %v1386_v48 = vld [vmem:[%s1872_s0 + $0x38] sm:$0xff] }
   0xe   :  { %722 = vmatpush.bf16.msra.mxu0 %v1400_v12  ;;  %v181_v41 = vor.u32 %v180_v32, %v176_v27  ;;  %v326_v45 = vor.u32 %v325_v36, %v324_v35  ;;  %v199_v1 = vshll.u32 %v1382_v0, 16  ;;  %v203_v2 = vshrl.u32 %v1382_v0, 16  ;;  %v1383_v12 = vld [vmem:[%s1872_s0 + $0x20] sm:$0xff]  ;;  %v1385_v36 = vld [vmem:[%s1872_s0 + $0x30] sm:$0xff] }
   0xf   :  { %811 = vmatpush.bf16.msra.mxu1 %v1408_v13  ;;  %v333_v59 = vor.u32 %v332_v56, %v331_v55  ;;  %v194_v61 = vsel %vm174_vm0, %v189_v57, %v193_v58  ;;  %v197_v5 = vor.u32 %v195_v54, %v193_v58  ;;  %v415_v8 = vrot.slane %v1382_v0, 5 }
  0x10   :  { %900 = vmatpush.bf16.msra.mxu2 %v1416_v14  ;;  %v186_v49 = vsel %vm174_vm0, %v181_v41, %v185_v42  ;;  %v330_v50 = vsel %vm323_vm1, %v326_v45, %v329_v46  ;;  %v335_v3 = vrot.slane %v203_v2, 4  ;;  %v336_v4 = vrot.slane %v199_v1, 5 }
  0x11   :  { %989 = vmatpush.bf16.msra.mxu3 %v1424_v15  ;;  %v334_v62 = vsel %vm323_vm1, %v329_v46, %v333_v59  ;;  %v201_v6 = vrot.slane %v199_v1, 1  ;;  %v416_v11 = vsel %vm409_vm2, %v413_v60, %v415_v8  ;;  %v207_v13 = vshll.u32 %v1383_v12, 16  ;;  %v1387_v60 = vld [vmem:[%s1872_s0 + $0x40] sm:$0xff] }
  0x12   :  { %723 = vmatpush.bf16.msra.mxu0 %v1399_v16  ;;  %v337_v7 = vor.u32 %v336_v4, %v335_v3  ;;  %v211_v14 = vshrl.u32 %v1383_v12, 16  ;;  %v223_v37 = vshll.u32 %v1385_v36, 16  ;;  %v227_v38 = vshrl.u32 %v1385_v36, 16 }
  0x13   :  { %812 = vmatpush.bf16.msra.mxu1 %v1407_v17  ;;  %v202_v9 = vsel %vm174_vm0, %v197_v5, %v201_v6  ;;  %v340_v16 = vrot.slane %v207_v13, 5  ;;  %v205_v17 = vor.u32 %v203_v2, %v201_v6  ;;  %v423_v56 = vrot.slane %v1386_v48, 5 }
  0x14   :  { %901 = vmatpush.bf16.msra.mxu2 %v1415_v19  ;;  %v338_v10 = vsel %vm323_vm1, %v333_v59, %v337_v7  ;;  %v339_v15 = vrot.slane %v211_v14, 4  ;;  %v225_v42 = vrot.slane %v223_v37, 1  ;;  %v425_v4 = vrot.slane %v1387_v60, 5 }
  0x15   :  { %990 = vmatpush.bf16.msra.mxu3 %v1423_v20  ;;  %v417_v20 = vrot.slane %v1383_v12, 5 }
  0x16   :  { %724 = vmatpush.bf16.msra.mxu0 %v1398_v22  ;;  %v341_v19 = vor.u32 %v340_v16, %v339_v15  ;;  %v229_v53 = vor.u32 %v227_v38, %v225_v42 }
  0x17   :  { %813 = vmatpush.bf16.msra.mxu1 %v1406_v23  ;;  %v418_v23 = vsel %vm409_vm2, %v415_v8, %v417_v20  ;;  %v1388_v8 = vld [vmem:[%s1872_s0 + $0x48] sm:$0xff] }
  0x18   :  { %902 = vmatpush.bf16.msra.mxu2 %v1414_v24  ;;  %v342_v22 = vsel %vm323_vm1, %v337_v7, %v341_v19  ;;  %v1384_v24 = vld [vmem:[%s1872_s0 + $0x28] sm:$0xff]  ;;  %v426_v7 = vsel %vm409_vm2, %v423_v56, %v425_v4  ;;  %v427_v16 = vrot.slane %v1388_v8, 5 }
  0x19   :  { %991 = vmatpush.bf16.msra.mxu3 %v1422_v26  ;;  %v215_v25 = vshll.u32 %v1384_v24, 16  ;;  %v219_v26 = vshrl.u32 %v1384_v24, 16  ;;  %v419_v32 = vrot.slane %v1384_v24, 5 }
  0x1a   :  { %725 = vmatpush.bf16.msra.mxu0 %v1397_v30 }
  0x1b   :  { %814 = vmatpush.bf16.msra.mxu1 %v1405_v31  ;;  %v343_v27 = vrot.slane %v219_v26, 4  ;;  %v344_v28 = vrot.slane %v215_v25, 5  ;;  %v217_v30 = vrot.slane %v215_v25, 1  ;;  %v420_v35 = vsel %vm409_vm2, %v417_v20, %v419_v32 }
  0x1c   :  { %903 = vmatpush.bf16.msra.mxu2 %v1413_v33 }
  0x1d   :  { %992 = vmatpush.bf16.msra.mxu3 %v1421_v34  ;;  %v345_v31 = vor.u32 %v344_v28, %v343_v27  ;;  %v221_v41 = vor.u32 %v219_v26, %v217_v30 }
  0x1e   :  { %726 = vmatpush.bf16.msra.mxu0 %v1396_v39  ;;  %v347_v39 = vrot.slane %v227_v38, 4 }
  0x1f   :  { %815 = vmatpush.bf16.msra.mxu1 %v1404_v40  ;;  %v346_v34 = vsel %vm323_vm1, %v341_v19, %v345_v31  ;;  %v348_v40 = vrot.slane %v223_v37, 5  ;;  %v226_v45 = vsel %vm174_vm0, %v221_v41, %v225_v42 }
  0x20   :  { %904 = vmatpush.bf16.msra.mxu2 %v1412_v43 }
  0x21   :  { %993 = vmatpush.bf16.msra.mxu3 %v1420_v44  ;;  %727 = vmatmul.bf16.vlgmr.msra.gmra.mxu0 %v1379_v18  ;;  %v209_v18 = vrot.slane %v207_v13, 1  ;;  %v349_v43 = vor.u32 %v348_v40, %v347_v39  ;;  %v421_v44 = vrot.slane %v1385_v36, 5 }
  0x22   :  { %816 = vmatmul.bf16.vlgmr.msra.gmra.mxu1 %v186_v49  ;;  %v231_v49 = vshll.u32 %v1386_v48, 16 }
  0x23   :  { %905 = vmatmul.bf16.vlgmr.msra.gmra.mxu2 %v330_v50  ;;  %v213_v29 = vor.u32 %v211_v14, %v209_v18  ;;  %v350_v46 = vsel %vm323_vm1, %v345_v31, %v349_v43  ;;  %v422_v47 = vsel %vm409_vm2, %v419_v32, %v421_v44  ;;  %v235_v50 = vshrl.u32 %v1386_v48, 16 }
  0x24   :  { %994 = vmatmul.bf16.vlgmr.msra.gmra.mxu3 %v412_v51  ;;  %v233_v54 = vrot.slane %v231_v49, 1  ;;  %v424_v59 = vsel %vm409_vm2, %v421_v44, %v423_v56 }
  0x25   :  { %v218_v33 = vsel %vm174_vm0, %v213_v29, %v217_v30  ;;  %v351_v51 = vrot.slane %v235_v50, 4 }
  0x26   :  { %v234_v57 = vsel %vm174_vm0, %v229_v53, %v233_v54  ;;  %v237_v1 = vor.u32 %v235_v50, %v233_v54  ;;  %v1729_v50 = vld [vmem:[%s1872_s0 + $0x58] sm:$0xff] }
  0x27   :  { %v267_v56 = vshrl.u32 %v1729_v50, 16 }
  0x31   :  { %732 = vmatmul.bf16.gmra.mxu0 %v1615_v21  ;;  %v210_v21 = vsel %vm174_vm0, %v205_v17, %v209_v18  ;;  %v1708_v17 = vld [vmem:[%s1873_s3] ss:$0 sm:$0xff] }
  0x32   :  { %821 = vmatmul.bf16.gmra.mxu1 %v194_v61  ;;  %v239_v61 = vshll.u32 %v1387_v60, 16 }
  0x33   :  { %910 = vmatmul.bf16.gmra.mxu2 %v334_v62  ;;  %v243_v62 = vshrl.u32 %v1387_v60, 16 }
  0x34   :  { %999 = vmatmul.bf16.gmra.mxu3 %v414_v63  ;;  %v241_v2 = vrot.slane %v239_v61, 1 }
  0x35   :  { %v355_v63 = vrot.slane %v243_v62, 4 }
  0x36   :  { %v242_v5 = vsel %vm174_vm0, %v237_v1, %v241_v2  ;;  %v245_v13 = vor.u32 %v243_v62, %v241_v2 }
  0x41   :  { %737 = vmatmul.bf16.gmra.mxu0 %v1381_v52  ;;  %v352_v52 = vrot.slane %v231_v49, 5 }
  0x42   :  { %826 = vmatmul.bf16.gmra.mxu1 %v202_v9  ;;  %v247_v9 = vshll.u32 %v1388_v8, 16 }
  0x43   :  { %915 = vmatmul.bf16.gmra.mxu2 %v338_v10  ;;  %v353_v55 = vor.u32 %v352_v52, %v351_v51  ;;  %v251_v10 = vshrl.u32 %v1388_v8, 16 }
  0x44   :  { %1004 = vmatmul.bf16.gmra.mxu3 %v416_v11  ;;  %v249_v14 = vrot.slane %v247_v9, 1 }
  0x45   :  { %v354_v58 = vsel %vm323_vm1, %v349_v43, %v353_v55  ;;  %v359_v11 = vrot.slane %v251_v10, 4 }
  0x46   :  { %v250_v20 = vsel %vm174_vm0, %v245_v13, %v249_v14 }
  0x51   :  { %742 = vmatmul.bf16.gmra.mxu0 %v1382_v0  ;;  %v356_v0 = vrot.slane %v239_v61, 5 }
  0x52   :  { %831 = vmatmul.bf16.gmra.mxu1 %v210_v21 }
  0x53   :  { %920 = vmatmul.bf16.gmra.mxu2 %v342_v22  ;;  %v357_v3 = vor.u32 %v356_v0, %v355_v63  ;;  %v428_v22 = vsel %vm409_vm2, %v425_v4, %v427_v16  ;;  %v367_v63 = vrot.slane %v267_v56, 4 }
  0x54   :  { %1009 = vmatmul.bf16.gmra.mxu3 %v418_v23  ;;  %v1716_v23 = vld [vmem:[%s1872_s0 + $0x50] sm:$0xff] }
  0x55   :  { %v358_v6 = vsel %vm323_vm1, %v353_v55, %v357_v3  ;;  %v255_v25 = vshll.u32 %v1716_v23, 16  ;;  %v259_v26 = vshrl.u32 %v1716_v23, 16  ;;  %v429_v39 = vrot.slane %v1716_v23, 5 }
  0x56   :  { %v263_v55 = vshll.u32 %v1729_v50, 16 }
  0x57   :  { %v363_v32 = vrot.slane %v259_v26, 4  ;;  %v257_v37 = vrot.slane %v255_v25, 1  ;;  %v430_v49 = vsel %vm409_vm2, %v427_v16, %v429_v39 }
  0x58   :  { %v368_v0 = vrot.slane %v263_v55, 5  ;;  %v265_v4 = vrot.slane %v263_v55, 1 }
  0x61   :  { %747 = vmatmul.bf16.gmra.mxu0 %v1383_v12  ;;  %v360_v12 = vrot.slane %v247_v9, 5 }
  0x62   :  { %836 = vmatmul.bf16.gmra.mxu1 %v218_v33  ;;  %v364_v33 = vrot.slane %v255_v25, 5 }
  0x63   :  { %925 = vmatmul.bf16.gmra.mxu2 %v346_v34  ;;  %v361_v15 = vor.u32 %v360_v12, %v359_v11 }
  0x64   :  { %1014 = vmatmul.bf16.gmra.mxu3 %v420_v35  ;;  %v365_v38 = vor.u32 %v364_v33, %v363_v32 }
  0x65   :  { %v362_v21 = vsel %vm323_vm1, %v357_v3, %v361_v15  ;;  %v261_v3 = vor.u32 %v259_v26, %v257_v37 }
  0x71   :  { %752 = vmatmul.bf16.gmra.mxu0 %v1384_v24 }
  0x72   :  { %841 = vmatmul.bf16.gmra.mxu1 %v226_v45 }
  0x73   :  { %930 = vmatmul.bf16.gmra.mxu2 %v350_v46 }
  0x74   :  { %1019 = vmatmul.bf16.gmra.mxu3 %v422_v47 }
  0x81   :  { %757 = vmatmul.bf16.gmra.mxu0 %v1385_v36  ;;  %v253_v36 = vor.u32 %v251_v10, %v249_v14  ;;  %v266_v14 = vsel %vm174_vm0, %v261_v3, %v265_v4 }
  0x82   :  { %846 = vmatmul.bf16.gmra.mxu1 %v234_v57 }
  0x83   :  { %935 = vmatmul.bf16.gmra.mxu2 %v354_v58  ;;  %v258_v47 = vsel %vm174_vm0, %v253_v36, %v257_v37 }
  0x84   :  { %1024 = vmatmul.bf16.gmra.mxu3 %v424_v59 }
  0x91   :  { %762 = vmatmul.bf16.gmra.mxu0 %v1386_v48  ;;  %v366_v48 = vsel %vm323_vm1, %v361_v15, %v365_v38 }
  0x92   :  { %851 = vmatmul.bf16.gmra.mxu1 %v242_v5  ;;  %v369_v5 = vor.u32 %v368_v0, %v367_v63 }
  0x93   :  { %940 = vmatmul.bf16.gmra.mxu2 %v358_v6  ;;  %v431_v6 = vrot.slane %v1729_v50, 5 }
  0x94   :  { %1029 = vmatmul.bf16.gmra.mxu3 %v426_v7  ;;  %v370_v15 = vsel %vm323_vm1, %v365_v38, %v369_v5 }
  0x95   :  { %v432_v16 = vsel %vm409_vm2, %v429_v39, %v431_v6 }
  0x9e   :  { %v728_v18 = vpop.f32.mrf.mxu0 }
  0x9f   :  { %v817_v19 = vpop.f32.mrf.mxu1  ;;  %v729_v24 = vadd.f32 %v1708_v17, %v728_v18  ;;  %v1745_v18 = vld [vmem:[%s1872_s0 + $0x60] sm:$0xff] }
  0xa0   :  { %v275_v25 = vshrl.u32 %v1745_v18, 16  ;;  %v433_v38 = vrot.slane %v1745_v18, 5 }
  0xa1   :  { %767 = vmatmul.bf16.gmra.mxu0 %v1387_v60  ;;  %v818_v29 = vadd.f32 %v817_v19, %v729_v24  ;;  %v271_v24 = vshll.u32 %v1745_v18, 16 }
  0xa2   :  { %856 = vmatmul.bf16.gmra.mxu1 %v250_v20 }
  0xa3   :  { %945 = vmatmul.bf16.gmra.mxu2 %v362_v21  ;;  %v372_v32 = vrot.slane %v271_v24, 5  ;;  %v273_v36 = vrot.slane %v271_v24, 1 }
  0xa4   :  { %1034 = vmatmul.bf16.gmra.mxu3 %v428_v22 }
  0xa6   :  { %v906_v27 = vpop.f32.mrf.mxu2  ;;  %v730_v30 = vpop.f32.mrf.mxu0 }
  0xa7   :  { %v995_v28 = vpop.f32.mrf.mxu3  ;;  %v819_v31 = vpop.f32.mrf.mxu1  ;;  %v731_v34 = vadd.f32 %v1708_v17, %v730_v30  ;;  %v907_v35 = vadd.f32 %v906_v27, %v818_v29 }
  0xa9   :  { %v820_v40 = vadd.f32 %v819_v31, %v731_v34  ;;  %v996_v43 = vadd.f32 %v995_v28, %v907_v35  ;;  %v371_v31 = vrot.slane %v275_v25, 4  ;;  %v269_v35 = vor.u32 %v267_v56, %v265_v4 }
  0xab   :  { %v1075_v52 = vmax.f32 %v996_v43, 0.0  ;;  %v373_v37 = vor.u32 %v372_v32, %v371_v31 }
  0xae   :  { %v908_v41 = vpop.f32.mrf.mxu2  ;;  %v733_v45 = vpop.f32.mrf.mxu0 }
  0xaf   :  { %v997_v42 = vpop.f32.mrf.mxu3  ;;  %v909_v44 = vadd.f32 %v908_v41, %v820_v40  ;;  %v822_v46 = vpop.f32.mrf.mxu1  ;;  %v734_v54 = vadd.f32 %v1708_v17, %v733_v45 }
  0xb1   :  { %v998_v51 = vadd.f32 %v997_v42, %v909_v44  ;;  %772 = vmatmul.bf16.gmra.mxu0 %v1388_v8  ;;  %v823_v60 = vadd.f32 %v822_v46, %v734_v54  ;;  %v274_v46 = vsel %vm174_vm0, %v269_v35, %v273_v36 }
  0xb2   :  { %861 = vmatmul.bf16.gmra.mxu1 %v258_v47  ;;  %v374_v47 = vsel %vm323_vm1, %v369_v5, %v373_v37 }
  0xb3   :  { %v1076_v53 = vmax.f32 %v998_v51, 0.0  ;;  %950 = vmatmul.bf16.gmra.mxu2 %v366_v48  ;;  %v434_v48 = vsel %vm409_vm2, %v431_v6, %v433_v38 }
  0xb4   :  { %1039 = vmatmul.bf16.gmra.mxu3 %v430_v49  ;;  %v1762_v49 = vld [vmem:[%s1872_s0 + $0x68] sm:$0xff] }
  0xb5   :  { %v1431_v57 = vpack.c.bf16 %v1076_v53, %v1075_v52  ;;  %v279_v55 = vshll.u32 %v1762_v49, 16  ;;  %v283_v56 = vshrl.u32 %v1762_v49, 16  ;;  %v435_v5 = vrot.slane %v1762_v49, 5 }
  0xb6   :  { %v911_v58 = vpop.f32.mrf.mxu2  ;;  %v735_v61 = vpop.f32.mrf.mxu0 }
  0xb7   :  { %v1000_v59 = vpop.f32.mrf.mxu3  ;;  %1432 = vst [vmem:[%s1874_s4] sm:$0xff] %v1431_v57   ;;  %v824_v62 = vpop.f32.mrf.mxu1  ;;  %v736_v1 = vadd.f32 %v1708_v17, %v735_v61  ;;  %v912_v2 = vadd.f32 %v911_v58, %v823_v60  ;;  %v376_v63 = vrot.slane %v279_v55, 5  ;;  %v281_v3 = vrot.slane %v279_v55, 1 }
  0xb9   :  { %v825_v7 = vadd.f32 %v824_v62, %v736_v1  ;;  %v1001_v10 = vadd.f32 %v1000_v59, %v912_v2  ;;  %v375_v62 = vrot.slane %v283_v56, 4  ;;  %v277_v2 = vor.u32 %v275_v25, %v273_v36 }
  0xbb   :  { %v1077_v20 = vmax.f32 %v1001_v10, 0.0  ;;  %v377_v4 = vor.u32 %v376_v63, %v375_v62 }
  0xbe   :  { %v913_v8 = vpop.f32.mrf.mxu2  ;;  %v738_v12 = vpop.f32.mrf.mxu0 }
  0xbf   :  { %v1002_v9 = vpop.f32.mrf.mxu3  ;;  %v914_v11 = vadd.f32 %v913_v8, %v825_v7  ;;  %v827_v13 = vpop.f32.mrf.mxu1  ;;  %v739_v22 = vadd.f32 %v1708_v17, %v738_v12 }
  0xc1   :  { %v1003_v19 = vadd.f32 %v1002_v9, %v914_v11  ;;  %777 = vmatmul.bf16.gmra.mxu0 %v1716_v23  ;;  %v828_v29 = vadd.f32 %v827_v13, %v739_v22  ;;  %v282_v13 = vsel %vm174_vm0, %v277_v2, %v281_v3 }
  0xc2   :  { %866 = vmatmul.bf16.gmra.mxu1 %v266_v14  ;;  %v378_v14 = vsel %vm323_vm1, %v373_v37, %v377_v4 }
  0xc3   :  { %v1078_v21 = vmax.f32 %v1003_v19, 0.0  ;;  %955 = vmatmul.bf16.gmra.mxu2 %v370_v15  ;;  %v436_v15 = vsel %vm409_vm2, %v433_v38, %v435_v5 }
  0xc4   :  { %1044 = vmatmul.bf16.gmra.mxu3 %v432_v16  ;;  %v1779_v16 = vld [vmem:[%s1872_s0 + $0x70] sm:$0xff] }
  0xc5   :  { %v1436_v26 = vpack.c.bf16 %v1078_v21, %v1077_v20  ;;  %v287_v24 = vshll.u32 %v1779_v16, 16  ;;  %v291_v25 = vshrl.u32 %v1779_v16, 16  ;;  %v437_v37 = vrot.slane %v1779_v16, 5 }
  0xc6   :  { %v916_v27 = vpop.f32.mrf.mxu2  ;;  %v740_v23 = vpop.f32.mrf.mxu0 }
  0xc7   :  { %v1005_v28 = vpop.f32.mrf.mxu3  ;;  %1508 = vst [vmem:[%s1874_s4 + $0x8] sm:$0xff] %v1436_v26   ;;  %v829_v30 = vpop.f32.mrf.mxu1  ;;  %v741_v33 = vadd.f32 %v1708_v17, %v740_v23  ;;  %v917_v34 = vadd.f32 %v916_v27, %v828_v29  ;;  %v380_v31 = vrot.slane %v287_v24, 5  ;;  %v289_v35 = vrot.slane %v287_v24, 1 }
  0xc9   :  { %v830_v39 = vadd.f32 %v829_v30, %v741_v33  ;;  %v1006_v42 = vadd.f32 %v1005_v28, %v917_v34  ;;  %v379_v30 = vrot.slane %v291_v25, 4  ;;  %v285_v34 = vor.u32 %v283_v56, %v281_v3 }
  0xcb   :  { %v1079_v52 = vmax.f32 %v1006_v42, 0.0  ;;  %v381_v36 = vor.u32 %v380_v31, %v379_v30 }
  0xce   :  { %v918_v40 = vpop.f32.mrf.mxu2  ;;  %v743_v44 = vpop.f32.mrf.mxu0 }
  0xcf   :  { %v1007_v41 = vpop.f32.mrf.mxu3  ;;  %v919_v43 = vadd.f32 %v918_v40, %v830_v39  ;;  %v832_v45 = vpop.f32.mrf.mxu1  ;;  %v744_v54 = vadd.f32 %v1708_v17, %v743_v44 }
  0xd1   :  { %v1008_v51 = vadd.f32 %v1007_v41, %v919_v43  ;;  %782 = vmatmul.bf16.gmra.mxu0 %v1729_v50  ;;  %v833_v60 = vadd.f32 %v832_v45, %v744_v54  ;;  %v290_v45 = vsel %vm174_vm0, %v285_v34, %v289_v35 }
  0xd2   :  { %871 = vmatmul.bf16.gmra.mxu1 %v274_v46  ;;  %v382_v46 = vsel %vm323_vm1, %v377_v4, %v381_v36 }
  0xd3   :  { %v1080_v53 = vmax.f32 %v1008_v51, 0.0  ;;  %960 = vmatmul.bf16.gmra.mxu2 %v374_v47  ;;  %v438_v47 = vsel %vm409_vm2, %v435_v5, %v437_v37 }
  0xd4   :  { %1049 = vmatmul.bf16.gmra.mxu3 %v434_v48  ;;  %v1796_v48 = vld [vmem:[%s1872_s0 + $0x78] sm:$0xff] }
  0xd5   :  { %v1441_v57 = vpack.c.bf16 %v1080_v53, %v1079_v52  ;;  %v295_v55 = vshll.u32 %v1796_v48, 16  ;;  %v299_v56 = vshrl.u32 %v1796_v48, 16  ;;  %v439_v4 = vrot.slane %v1796_v48, 5 }
  0xd6   :  { %v921_v58 = vpop.f32.mrf.mxu2  ;;  %v745_v50 = vpop.f32.mrf.mxu0 }
  0xd7   :  { %v1010_v59 = vpop.f32.mrf.mxu3  ;;  %1509 = vst [vmem:[%s1874_s4 + $0x10] sm:$0xff] %v1441_v57   ;;  %v834_v61 = vpop.f32.mrf.mxu1  ;;  %v746_v0 = vadd.f32 %v1708_v17, %v745_v50  ;;  %v922_v1 = vadd.f32 %v921_v58, %v833_v60  ;;  %v384_v62 = vrot.slane %v295_v55, 5  ;;  %v297_v2 = vrot.slane %v295_v55, 1 }
  0xd9   :  { %v835_v6 = vadd.f32 %v834_v61, %v746_v0  ;;  %v1011_v9 = vadd.f32 %v1010_v59, %v922_v1  ;;  %v383_v61 = vrot.slane %v299_v56, 4  ;;  %v293_v1 = vor.u32 %v291_v25, %v289_v35 }
  0xdb   :  { %v1081_v20 = vmax.f32 %v1011_v9, 0.0  ;;  %v385_v3 = vor.u32 %v384_v62, %v383_v61 }
  0xde   :  { %v923_v7 = vpop.f32.mrf.mxu2  ;;  %v748_v11 = vpop.f32.mrf.mxu0 }
  0xdf   :  { %v1012_v8 = vpop.f32.mrf.mxu3  ;;  %v924_v10 = vadd.f32 %v923_v7, %v835_v6  ;;  %v837_v12 = vpop.f32.mrf.mxu1  ;;  %v749_v22 = vadd.f32 %v1708_v17, %v748_v11 }
  0xe1   :  { %v1013_v19 = vadd.f32 %v1012_v8, %v924_v10  ;;  %787 = vmatmul.bf16.gmra.mxu0 %v1745_v18  ;;  %v838_v29 = vadd.f32 %v837_v12, %v749_v22  ;;  %v298_v12 = vsel %vm174_vm0, %v293_v1, %v297_v2 }
  0xe2   :  { %876 = vmatmul.bf16.gmra.mxu1 %v282_v13  ;;  %v386_v13 = vsel %vm323_vm1, %v381_v36, %v385_v3 }
  0xe3   :  { %v1082_v21 = vmax.f32 %v1013_v19, 0.0  ;;  %965 = vmatmul.bf16.gmra.mxu2 %v378_v14  ;;  %v440_v14 = vsel %vm409_vm2, %v437_v37, %v439_v4 }
  0xe4   :  { %1054 = vmatmul.bf16.gmra.mxu3 %v436_v15  ;;  %v1395_v15 = vld [vmem:[%s1875_s1 + $0x80] sm:$0xff] }
  0xe5   :  { %v1446_v26 = vpack.c.bf16 %v1082_v21, %v1081_v20  ;;  %v303_v24 = vshll.u32 %v1395_v15, 16  ;;  %v387_v25 = vshrl.u32 %v1395_v15, 16  ;;  %v441_v36 = vrot.slane %v1395_v15, 5 }
  0xe6   :  { %v926_v27 = vpop.f32.mrf.mxu2  ;;  %v750_v18 = vpop.f32.mrf.mxu0 }
  0xe7   :  { %v1015_v28 = vpop.f32.mrf.mxu3  ;;  %1510 = vst [vmem:[%s1874_s4 + $0x18] sm:$0xff] %v1446_v26   ;;  %v839_v23 = vpop.f32.mrf.mxu1  ;;  %v751_v32 = vadd.f32 %v1708_v17, %v750_v18  ;;  %v927_v33 = vadd.f32 %v926_v27, %v838_v29  ;;  %v390_v30 = vrot.slane %v303_v24, 5  ;;  %v305_v34 = vrot.slane %v303_v24, 1 }
  0xe9   :  { %v840_v38 = vadd.f32 %v839_v23, %v751_v32  ;;  %v1016_v41 = vadd.f32 %v1015_v28, %v927_v33  ;;  %v301_v33 = vor.u32 %v299_v56, %v297_v2 }
  0xeb   :  { %v1083_v52 = vmax.f32 %v1016_v41, 0.0 }
  0xee   :  { %v928_v39 = vpop.f32.mrf.mxu2  ;;  %v753_v43 = vpop.f32.mrf.mxu0 }
  0xef   :  { %v1017_v40 = vpop.f32.mrf.mxu3  ;;  %v929_v42 = vadd.f32 %v928_v39, %v840_v38  ;;  %v842_v44 = vpop.f32.mrf.mxu1  ;;  %v754_v54 = vadd.f32 %v1708_v17, %v753_v43 }
  0xf1   :  { %v1018_v51 = vadd.f32 %v1017_v40, %v929_v42  ;;  %792 = vmatmul.bf16.gmra.mxu0 %v1762_v49  ;;  %v843_v60 = vadd.f32 %v842_v44, %v754_v54  ;;  %v306_v44 = vsel %vm174_vm0, %v301_v33, %v305_v34 }
  0xf2   :  { %881 = vmatmul.bf16.gmra.mxu1 %v290_v45 }
  0xf3   :  { %v1084_v53 = vmax.f32 %v1018_v51, 0.0  ;;  %970 = vmatmul.bf16.gmra.mxu2 %v382_v46  ;;  %v442_v46 = vsel %vm409_vm2, %v439_v4, %v441_v36 }
  0xf4   :  { %1059 = vmatmul.bf16.gmra.mxu3 %v438_v47 }
  0xf5   :  { %v1451_v57 = vpack.c.bf16 %v1084_v53, %v1083_v52 }
  0xf6   :  { %v931_v58 = vpop.f32.mrf.mxu2  ;;  %v755_v49 = vpop.f32.mrf.mxu0 }
  0xf7   :  { %v1020_v59 = vpop.f32.mrf.mxu3  ;;  %1511 = vst [vmem:[%s1874_s4 + $0x20] sm:$0xff] %v1451_v57   ;;  %v844_v50 = vpop.f32.mrf.mxu1  ;;  %v756_v63 = vadd.f32 %v1708_v17, %v755_v49  ;;  %v932_v0 = vadd.f32 %v931_v58, %v843_v60 }
  0xf9   :  { %v845_v5 = vadd.f32 %v844_v50, %v756_v63  ;;  %v1021_v8 = vadd.f32 %v1020_v59, %v932_v0 }
  0xfb   :  { %v1085_v20 = vmax.f32 %v1021_v8, 0.0 }
  0xfe   :  { %v933_v6 = vpop.f32.mrf.mxu2  ;;  %v758_v10 = vpop.f32.mrf.mxu0 }
  0xff   :  { %v1022_v7 = vpop.f32.mrf.mxu3  ;;  %v934_v9 = vadd.f32 %v933_v6, %v845_v5  ;;  %v847_v11 = vpop.f32.mrf.mxu1  ;;  %v759_v22 = vadd.f32 %v1708_v17, %v758_v10 }
 0x101   :  { %v1023_v19 = vadd.f32 %v1022_v7, %v934_v9  ;;  %797 = vmatmul.bf16.gmra.mxu0 %v1779_v16  ;;  %v848_v29 = vadd.f32 %v847_v11, %v759_v22  ;;  %v389_v16 = vrot.slane %v387_v25, 4 }
 0x102   :  { %886 = vmatmul.bf16.gmra.mxu1 %v298_v12 }
 0x103   :  { %v1086_v21 = vmax.f32 %v1023_v19, 0.0  ;;  %975 = vmatmul.bf16.gmra.mxu2 %v386_v13  ;;  %v391_v35 = vor.u32 %v390_v30, %v389_v16 }
 0x104   :  { %1064 = vmatmul.bf16.gmra.mxu3 %v440_v14 }
 0x105   :  { %v1456_v26 = vpack.c.bf16 %v1086_v21, %v1085_v20  ;;  %v392_v45 = vsel %vm323_vm1, %v385_v3, %v391_v35 }
 0x106   :  { %v936_v27 = vpop.f32.mrf.mxu2  ;;  %v760_v18 = vpop.f32.mrf.mxu0 }
 0x107   :  { %v1025_v28 = vpop.f32.mrf.mxu3  ;;  %1512 = vst [vmem:[%s1874_s4 + $0x28] sm:$0xff] %v1456_v26   ;;  %v849_v23 = vpop.f32.mrf.mxu1  ;;  %v761_v31 = vadd.f32 %v1708_v17, %v760_v18  ;;  %v937_v32 = vadd.f32 %v936_v27, %v848_v29 }
 0x109   :  { %v850_v37 = vadd.f32 %v849_v23, %v761_v31  ;;  %v1026_v40 = vadd.f32 %v1025_v28, %v937_v32 }
 0x10b   :  { %v1087_v51 = vmax.f32 %v1026_v40, 0.0 }
 0x10e   :  { %v938_v38 = vpop.f32.mrf.mxu2  ;;  %v763_v42 = vpop.f32.mrf.mxu0 }
 0x10f   :  { %v1027_v39 = vpop.f32.mrf.mxu3  ;;  %v939_v41 = vadd.f32 %v938_v38, %v850_v37  ;;  %v852_v43 = vpop.f32.mrf.mxu1  ;;  %v764_v53 = vadd.f32 %v1708_v17, %v763_v42 }
 0x111   :  { %v1028_v47 = vadd.f32 %v1027_v39, %v939_v41  ;;  %802 = vmatmul.bf16.gmra.mxu0 %v1796_v48  ;;  %v853_v57 = vadd.f32 %v852_v43, %v764_v53 }
 0x112   :  { %891 = vmatmul.bf16.gmra.mxu1 %v306_v44 }
 0x113   :  { %v1088_v52 = vmax.f32 %v1028_v47, 0.0  ;;  %980 = vmatmul.bf16.gmra.mxu2 %v392_v45 }
 0x114   :  { %1069 = vmatmul.bf16.gmra.mxu3 %v442_v46 }
 0x115   :  { %v1461_v54 = vpack.c.bf16 %v1088_v52, %v1087_v51 }
 0x116   :  { %v941_v55 = vpop.f32.mrf.mxu2  ;;  %v765_v58 = vpop.f32.mrf.mxu0 }
 0x117   :  { %v1030_v56 = vpop.f32.mrf.mxu3  ;;  %1513 = vst [vmem:[%s1874_s4 + $0x30] sm:$0xff] %v1461_v54   ;;  %v854_v59 = vpop.f32.mrf.mxu1  ;;  %v766_v60 = vadd.f32 %v1708_v17, %v765_v58  ;;  %v942_v48 = vadd.f32 %v941_v55, %v853_v57 }
 0x119   :  { %v855_v49 = vadd.f32 %v854_v59, %v766_v60  ;;  %v1031_v62 = vadd.f32 %v1030_v56, %v942_v48 }
 0x11b   :  { %v1089_v3 = vmax.f32 %v1031_v62, 0.0 }
 0x11e   :  { %v943_v50 = vpop.f32.mrf.mxu2  ;;  %v768_v0 = vpop.f32.mrf.mxu0 }
 0x11f   :  { %v1032_v61 = vpop.f32.mrf.mxu3  ;;  %v944_v63 = vadd.f32 %v943_v50, %v855_v49  ;;  %v857_v1 = vpop.f32.mrf.mxu1  ;;  %v769_v5 = vadd.f32 %v1708_v17, %v768_v0 }
 0x121   :  { %v1033_v2 = vadd.f32 %v1032_v61, %v944_v63  ;;  %v858_v9 = vadd.f32 %v857_v1, %v769_v5 }
 0x123   :  { %v1090_v4 = vmax.f32 %v1033_v2, 0.0 }
 0x125   :  { %v1466_v6 = vpack.c.bf16 %v1090_v4, %v1089_v3 }
 0x126   :  { %v946_v7 = vpop.f32.mrf.mxu2  ;;  %v770_v10 = vpop.f32.mrf.mxu0 }
 0x127   :  { %v1035_v8 = vpop.f32.mrf.mxu3  ;;  %1514 = vst [vmem:[%s1874_s4 + $0x38] sm:$0xff] %v1466_v6   ;;  %v859_v11 = vpop.f32.mrf.mxu1  ;;  %v771_v12 = vadd.f32 %v1708_v17, %v770_v10  ;;  %v947_v13 = vadd.f32 %v946_v7, %v858_v9 }
 0x129   :  { %v860_v14 = vadd.f32 %v859_v11, %v771_v12  ;;  %v1036_v20 = vadd.f32 %v1035_v8, %v947_v13 }
 0x12b   :  { %v1091_v26 = vmax.f32 %v1036_v20, 0.0 }
 0x12e   :  { %v948_v15 = vpop.f32.mrf.mxu2  ;;  %v773_v22 = vpop.f32.mrf.mxu0 }
 0x12f   :  { %v1037_v19 = vpop.f32.mrf.mxu3  ;;  %v949_v21 = vadd.f32 %v948_v15, %v860_v14  ;;  %v862_v24 = vpop.f32.mrf.mxu1  ;;  %v774_v28 = vadd.f32 %v1708_v17, %v773_v22 }
 0x131   :  { %v1038_v25 = vadd.f32 %v1037_v19, %v949_v21  ;;  %v863_v16 = vadd.f32 %v862_v24, %v774_v28 }
 0x133   :  { %v1092_v27 = vmax.f32 %v1038_v25, 0.0 }
 0x135   :  { %v1471_v29 = vpack.c.bf16 %v1092_v27, %v1091_v26 }
 0x136   :  { %v951_v18 = vpop.f32.mrf.mxu2  ;;  %v775_v30 = vpop.f32.mrf.mxu0 }
 0x137   :  { %v1040_v23 = vpop.f32.mrf.mxu3  ;;  %1515 = vst [vmem:[%s1874_s4 + $0x40] sm:$0xff] %v1471_v29   ;;  %v864_v31 = vpop.f32.mrf.mxu1  ;;  %v776_v32 = vadd.f32 %v1708_v17, %v775_v30  ;;  %v952_v33 = vadd.f32 %v951_v18, %v863_v16 }
 0x139   :  { %v865_v34 = vadd.f32 %v864_v31, %v776_v32  ;;  %v1041_v37 = vadd.f32 %v1040_v23, %v952_v33 }
 0x13b   :  { %v1093_v42 = vmax.f32 %v1041_v37, 0.0 }
 0x13e   :  { %v953_v35 = vpop.f32.mrf.mxu2  ;;  %v778_v39 = vpop.f32.mrf.mxu0 }
 0x13f   :  { %v1042_v36 = vpop.f32.mrf.mxu3  ;;  %v954_v38 = vadd.f32 %v953_v35, %v865_v34  ;;  %v867_v40 = vpop.f32.mrf.mxu1  ;;  %v779_v44 = vadd.f32 %v1708_v17, %v778_v39 }
 0x141   :  { %v1043_v41 = vadd.f32 %v1042_v36, %v954_v38  ;;  %v868_v51 = vadd.f32 %v867_v40, %v779_v44 }
 0x143   :  { %v1094_v43 = vmax.f32 %v1043_v41, 0.0 }
 0x145   :  { %v1476_v45 = vpack.c.bf16 %v1094_v43, %v1093_v42 }
 0x146   :  { %v956_v46 = vpop.f32.mrf.mxu2  ;;  %v780_v52 = vpop.f32.mrf.mxu0 }
 0x147   :  { %v1045_v47 = vpop.f32.mrf.mxu3  ;;  %1516 = vst [vmem:[%s1874_s4 + $0x48] sm:$0xff] %v1476_v45   ;;  %v869_v53 = vpop.f32.mrf.mxu1  ;;  %v781_v54 = vadd.f32 %v1708_v17, %v780_v52  ;;  %v957_v55 = vadd.f32 %v956_v46, %v868_v51 }
 0x149   :  { %v870_v56 = vadd.f32 %v869_v53, %v781_v54  ;;  %v1046_v59 = vadd.f32 %v1045_v47, %v957_v55 }
 0x14b   :  { %v1095_v61 = vmax.f32 %v1046_v59, 0.0 }
 0x14e   :  { %v958_v57 = vpop.f32.mrf.mxu2  ;;  %v783_v48 = vpop.f32.mrf.mxu0 }
 0x14f   :  { %v1047_v58 = vpop.f32.mrf.mxu3  ;;  %v959_v60 = vadd.f32 %v958_v57, %v870_v56  ;;  %v872_v49 = vpop.f32.mrf.mxu1  ;;  %v784_v63 = vadd.f32 %v1708_v17, %v783_v48 }
 0x151   :  { %v1048_v50 = vadd.f32 %v1047_v58, %v959_v60  ;;  %v873_v3 = vadd.f32 %v872_v49, %v784_v63 }
 0x153   :  { %v1096_v62 = vmax.f32 %v1048_v50, 0.0 }
 0x155   :  { %v1481_v0 = vpack.c.bf16 %v1096_v62, %v1095_v61 }
 0x156   :  { %v961_v1 = vpop.f32.mrf.mxu2  ;;  %v785_v4 = vpop.f32.mrf.mxu0 }
 0x157   :  { %v1050_v2 = vpop.f32.mrf.mxu3  ;;  %1517 = vst [vmem:[%s1874_s4 + $0x50] sm:$0xff] %v1481_v0   ;;  %v874_v5 = vpop.f32.mrf.mxu1  ;;  %v786_v6 = vadd.f32 %v1708_v17, %v785_v4  ;;  %v962_v7 = vadd.f32 %v961_v1, %v873_v3 }
 0x159   :  { %v875_v8 = vadd.f32 %v874_v5, %v786_v6  ;;  %v1051_v11 = vadd.f32 %v1050_v2, %v962_v7 }
 0x15b   :  { %v1097_v19 = vmax.f32 %v1051_v11, 0.0 }
 0x15e   :  { %v963_v9 = vpop.f32.mrf.mxu2  ;;  %v788_v13 = vpop.f32.mrf.mxu0 }
 0x15f   :  { %v1052_v10 = vpop.f32.mrf.mxu3  ;;  %v964_v12 = vadd.f32 %v963_v9, %v875_v8  ;;  %v877_v14 = vpop.f32.mrf.mxu1  ;;  %v789_v21 = vadd.f32 %v1708_v17, %v788_v13 }
 0x161   :  { %v1053_v15 = vadd.f32 %v1052_v10, %v964_v12  ;;  %v878_v26 = vadd.f32 %v877_v14, %v789_v21 }
 0x163   :  { %v1098_v20 = vmax.f32 %v1053_v15, 0.0 }
 0x165   :  { %v1486_v22 = vpack.c.bf16 %v1098_v20, %v1097_v19 }
 0x166   :  { %v966_v24 = vpop.f32.mrf.mxu2  ;;  %v790_v27 = vpop.f32.mrf.mxu0 }
 0x167   :  { %v1055_v25 = vpop.f32.mrf.mxu3  ;;  %1518 = vst [vmem:[%s1874_s4 + $0x58] sm:$0xff] %v1486_v22   ;;  %v879_v28 = vpop.f32.mrf.mxu1  ;;  %v791_v29 = vadd.f32 %v1708_v17, %v790_v27  ;;  %v967_v18 = vadd.f32 %v966_v24, %v878_v26 }
 0x169   :  { %v880_v23 = vadd.f32 %v879_v28, %v791_v29  ;;  %v1056_v31 = vadd.f32 %v1055_v25, %v967_v18 }
 0x16b   :  { %v1099_v36 = vmax.f32 %v1056_v31, 0.0 }
 0x16e   :  { %v968_v16 = vpop.f32.mrf.mxu2  ;;  %v793_v33 = vpop.f32.mrf.mxu0 }
 0x16f   :  { %v1057_v30 = vpop.f32.mrf.mxu3  ;;  %v969_v32 = vadd.f32 %v968_v16, %v880_v23  ;;  %v882_v34 = vpop.f32.mrf.mxu1  ;;  %v794_v38 = vadd.f32 %v1708_v17, %v793_v33 }
 0x171   :  { %v1058_v35 = vadd.f32 %v1057_v30, %v969_v32  ;;  %v883_v42 = vadd.f32 %v882_v34, %v794_v38 }
 0x173   :  { %v1100_v37 = vmax.f32 %v1058_v35, 0.0 }
 0x175   :  { %v1491_v39 = vpack.c.bf16 %v1100_v37, %v1099_v36 }
 0x176   :  { %v971_v40 = vpop.f32.mrf.mxu2  ;;  %v795_v43 = vpop.f32.mrf.mxu0 }
 0x177   :  { %v1060_v41 = vpop.f32.mrf.mxu3  ;;  %1519 = vst [vmem:[%s1874_s4 + $0x60] sm:$0xff] %v1491_v39   ;;  %v884_v44 = vpop.f32.mrf.mxu1  ;;  %v796_v45 = vadd.f32 %v1708_v17, %v795_v43  ;;  %v972_v46 = vadd.f32 %v971_v40, %v883_v42 }
 0x179   :  { %v885_v47 = vadd.f32 %v884_v44, %v796_v45  ;;  %v1061_v53 = vadd.f32 %v1060_v41, %v972_v46 }
 0x17b   :  { %v1101_v58 = vmax.f32 %v1061_v53, 0.0 }
 0x17e   :  { %v973_v51 = vpop.f32.mrf.mxu2  ;;  %v798_v55 = vpop.f32.mrf.mxu0 }
 0x17f   :  { %v1062_v52 = vpop.f32.mrf.mxu3  ;;  %v974_v54 = vadd.f32 %v973_v51, %v885_v47  ;;  %v887_v56 = vpop.f32.mrf.mxu1  ;;  %v799_v60 = vadd.f32 %v1708_v17, %v798_v55 }
 0x181   :  { %v1063_v57 = vadd.f32 %v1062_v52, %v974_v54  ;;  %v888_v61 = vadd.f32 %v887_v56, %v799_v60 }
 0x183   :  { %v1102_v59 = vmax.f32 %v1063_v57, 0.0 }
 0x185   :  { %v1496_v48 = vpack.c.bf16 %v1102_v59, %v1101_v58 }
 0x186   :  { %v976_v49 = vpop.f32.mrf.mxu2  ;;  %v800_v62 = vpop.f32.mrf.mxu0 }
 0x187   :  { %v1065_v50 = vpop.f32.mrf.mxu3  ;;  %1520 = vst [vmem:[%s1874_s4 + $0x68] sm:$0xff] %v1496_v48   ;;  %v889_v63 = vpop.f32.mrf.mxu1  ;;  %v801_v0 = vadd.f32 %v1708_v17, %v800_v62  ;;  %v977_v1 = vadd.f32 %v976_v49, %v888_v61 }
 0x189   :  { %v890_v2 = vadd.f32 %v889_v63, %v801_v0  ;;  %v1066_v5 = vadd.f32 %v1065_v50, %v977_v1 }
 0x18b   :  { %v1103_v10 = vmax.f32 %v1066_v5, 0.0 }
 0x18e   :  { %v978_v3 = vpop.f32.mrf.mxu2  ;;  %v803_v7 = vpop.f32.mrf.mxu0 }
 0x18f   :  { %v1067_v4 = vpop.f32.mrf.mxu3  ;;  %v979_v6 = vadd.f32 %v978_v3, %v890_v2  ;;  %v892_v9 = vpop.f32.mrf.mxu1  ;;  %v804_v12 = vadd.f32 %v1708_v17, %v803_v7 }
 0x191   :  { %v1068_v8 = vadd.f32 %v1067_v4, %v979_v6  ;;  %v893_v19 = vadd.f32 %v892_v9, %v804_v12 }
 0x193   :  { %v1104_v11 = vmax.f32 %v1068_v8, 0.0 }
 0x195   :  { %v1501_v13 = vpack.c.bf16 %v1104_v11, %v1103_v10 }
 0x196   :  { %v981_v14 = vpop.f32.mrf.mxu2  ;;  %v805_v20 = vpop.f32.mrf.mxu0 }
 0x197   :  { %v1070_v15 = vpop.f32.mrf.mxu3  ;;  %1521 = vst [vmem:[%s1874_s4 + $0x70] sm:$0xff] %v1501_v13   ;;  %v806_v21 = vadd.f32 %v1708_v17, %v805_v20  ;;  %v982_v22 = vadd.f32 %v981_v14, %v893_v19  ;;  %v894_v24 = vpop.f32.mrf.mxu1 }
 0x199   :  { %v895_v25 = vadd.f32 %v894_v24, %v806_v21  ;;  %v1071_v27 = vadd.f32 %v1070_v15, %v982_v22 }
 0x19b   :  { %v1105_v23 = vmax.f32 %v1071_v27, 0.0 }
 0x19e   :  { %v983_v26 = vpop.f32.mrf.mxu2 }
 0x19f   :  { %v984_v28 = vadd.f32 %v983_v26, %v895_v25  ;;  %v1072_v29 = vpop.f32.mrf.mxu3 }
 0x1a1   :  { %v1073_v18 = vadd.f32 %v1072_v29, %v984_v28 }
 0x1a3   :  { %v1106_v16 = vmax.f32 %v1073_v18, 0.0 }
 0x1a5   :  { %v1506_v30 = vpack.c.bf16 %v1106_v16, %v1105_v23 }
 0x1a7   :  { %1522 = vst [vmem:[%s1874_s4 + $0x78] sm:$0xff] %v1506_v30  }

// kernel: vqvae_forward.17
= control target key start
LH: loop header
LB: loop body
LE: loop exit
PB: predicated region body
PF: predicated region fallthrough
CT: control target
= control target key end

     0   :  { %vm110_vm0 = vsmask.f32 7424  ;;  %vm187_vm1 = vsmask.f32 5376  ;;  %vm233_vm2 = vcmask 1044480   ;;  %s1251_s2 = inlined_call_operand.vmem [shape: bf16[512,128], index: 2, kind: input, shape index: {}]   ;;  %s1252_s0 = inlined_call_operand.vmem [shape: bf16[256,128], index: 0, kind: input, shape index: {}, may-alias: {0,1}]   ;;  %s1253_s3 = inlined_call_operand.vmem [shape: f32[1,128], index: 3, kind: input, shape index: {}]   ;;  %s1254_s1 = inlined_call_operand.vmem [shape: bf16[256,128], index: 1, kind: input, shape index: {}, may-alias: {0,1}]   ;;  %s1255_s4 = inlined_call_operand.vmem [shape: bf16[128,128], index: 4, kind: output, shape index: {}]  }
   0x1   :  { %v955_v0 = vld [vmem:[%s1251_s2 + $0x38] sm:$0xff]  ;;  %v954_v4 = vld [vmem:[%s1251_s2 + $0x30] sm:$0xff]  ;;  %v953_v8 = vld [vmem:[%s1251_s2 + $0x28] sm:$0xff] }
   0x2   :  { %v963_v1 = vld [vmem:[%s1251_s2 + $0x78] sm:$0xff]  ;;  %519 = vmatpush.bf16.msra.mxu0 %v955_v0  ;;  %v962_v5 = vld [vmem:[%s1251_s2 + $0x70] sm:$0xff]  ;;  %v961_v9 = vld [vmem:[%s1251_s2 + $0x68] sm:$0xff] }
   0x3   :  { %v971_v2 = vld [vmem:[%s1251_s2 + $0xb8] sm:$0xff]  ;;  %568 = vmatpush.bf16.msra.mxu1 %v963_v1  ;;  %v970_v6 = vld [vmem:[%s1251_s2 + $0xb0] sm:$0xff]  ;;  %v969_v10 = vld [vmem:[%s1251_s2 + $0xa8] sm:$0xff] }
   0x4   :  { %v979_v3 = vld [vmem:[%s1251_s2 + $0xf8] sm:$0xff]  ;;  %617 = vmatpush.bf16.msra.mxu2 %v971_v2  ;;  %v978_v7 = vld [vmem:[%s1251_s2 + $0xf0] sm:$0xff]  ;;  %v977_v11 = vld [vmem:[%s1251_s2 + $0xe8] sm:$0xff] }
   0x5   :  { %666 = vmatpush.bf16.msra.mxu3 %v979_v3  ;;  %v952_v12 = vld [vmem:[%s1251_s2 + $0x20] sm:$0xff]  ;;  %v951_v16 = vld [vmem:[%s1251_s2 + $0x18] sm:$0xff]  ;;  %v1119_v21 = vld [vmem:[%s1252_s0 + $0x8] sm:$0xff] }
   0x6   :  { %520 = vmatpush.bf16.msra.mxu0 %v954_v4  ;;  %v960_v13 = vld [vmem:[%s1251_s2 + $0x60] sm:$0xff]  ;;  %v959_v17 = vld [vmem:[%s1251_s2 + $0x58] sm:$0xff]  ;;  %v950_v22 = vld [vmem:[%s1251_s2 + $0x10] sm:$0xff]  ;;  %v119_v28 = vshll.u32 %v1119_v21, 16  ;;  %v123_v29 = vshrl.u32 %v1119_v21, 16  ;;  %v235_v48 = vrot.slane %v1119_v21, 3 }
   0x7   :  { %569 = vmatpush.bf16.msra.mxu1 %v962_v5  ;;  %v968_v14 = vld [vmem:[%s1251_s2 + $0xa0] sm:$0xff]  ;;  %v967_v19 = vld [vmem:[%s1251_s2 + $0x98] sm:$0xff]  ;;  %v958_v23 = vld [vmem:[%s1251_s2 + $0x50] sm:$0xff] }
   0x8   :  { %618 = vmatpush.bf16.msra.mxu2 %v970_v6  ;;  %v976_v15 = vld [vmem:[%s1251_s2 + $0xe0] sm:$0xff]  ;;  %v975_v20 = vld [vmem:[%s1251_s2 + $0xd8] sm:$0xff]  ;;  %v966_v24 = vld [vmem:[%s1251_s2 + $0x90] sm:$0xff]  ;;  %v191_v37 = vrot.slane %v123_v29, 2  ;;  %v192_v38 = vrot.slane %v119_v28, 3  ;;  %v121_v42 = vrot.slane %v119_v28, 1 }
   0x9   :  { %667 = vmatpush.bf16.msra.mxu3 %v978_v7  ;;  %v939_v18 = vld [vmem:[%s1252_s0] sm:$0xff]  ;;  %v974_v26 = vld [vmem:[%s1251_s2 + $0xd0] sm:$0xff]  ;;  %v949_v30 = vld [vmem:[%s1251_s2 + $0x8] sm:$0xff] }
   0xa   :  { %521 = vmatpush.bf16.msra.mxu0 %v953_v8  ;;  %v114_v25 = vshll.u32 %v939_v18, 16  ;;  %v112_v27 = vshrl.u32 %v939_v18, 16  ;;  %v957_v31 = vld [vmem:[%s1251_s2 + $0x48] sm:$0xff]  ;;  %v948_v39 = vld [vmem:[%s1251_s2] sm:$0xff]  ;;  %v193_v46 = vor.u32 %v192_v38, %v191_v37  ;;  %v234_v47 = vrot.slane %v939_v18, 3  ;;  %v941_v52 = vld [vmem:[%s1252_s0 + $0x10] sm:$0xff] }
   0xb   :  { %570 = vmatpush.bf16.msra.mxu1 %v961_v9  ;;  %v965_v33 = vld [vmem:[%s1251_s2 + $0x88] sm:$0xff]  ;;  %v956_v40 = vld [vmem:[%s1251_s2 + $0x40] sm:$0xff]  ;;  %v127_v53 = vshll.u32 %v941_v52, 16  ;;  %v131_v54 = vshrl.u32 %v941_v52, 16  ;;  %v125_v57 = vor.u32 %v123_v29, %v121_v42  ;;  %v237_v60 = vrot.slane %v941_v52, 3  ;;  %v942_v0 = vld [vmem:[%s1252_s0 + $0x18] sm:$0xff] }
   0xc   :  { %619 = vmatpush.bf16.msra.mxu2 %v969_v10  ;;  %v116_v32 = vrot.slane %v114_v25, 1  ;;  %v973_v34 = vld [vmem:[%s1251_s2 + $0xc8] sm:$0xff]  ;;  %v188_v35 = vrot.slane %v112_v27, 2  ;;  %v189_v36 = vrot.slane %v114_v25, 3  ;;  %v964_v43 = vld [vmem:[%s1251_s2 + $0x80] sm:$0xff]  ;;  %v236_v51 = vsel %vm233_vm2, %v234_v47, %v235_v48 }
   0xd   :  { %668 = vmatpush.bf16.msra.mxu3 %v977_v11  ;;  %v972_v44 = vld [vmem:[%s1251_s2 + $0xc0] sm:$0xff]  ;;  %v195_v55 = vrot.slane %v131_v54, 2  ;;  %v196_v56 = vrot.slane %v127_v53, 3  ;;  %v129_v58 = vrot.slane %v127_v53, 1  ;;  %v238_v63 = vsel %vm233_vm2, %v235_v48, %v237_v60  ;;  %v946_v48 = vld [vmem:[%s1252_s0 + $0x38] sm:$0xff] }
   0xe   :  { %522 = vmatpush.bf16.msra.mxu0 %v952_v12  ;;  %v117_v41 = vor.u32 %v116_v32, %v112_v27  ;;  %v190_v45 = vor.u32 %v189_v36, %v188_v35  ;;  %v135_v1 = vshll.u32 %v942_v0, 16  ;;  %v139_v2 = vshrl.u32 %v942_v0, 16  ;;  %v943_v12 = vld [vmem:[%s1252_s0 + $0x20] sm:$0xff]  ;;  %v945_v36 = vld [vmem:[%s1252_s0 + $0x30] sm:$0xff] }
   0xf   :  { %571 = vmatpush.bf16.msra.mxu1 %v960_v13  ;;  %v197_v59 = vor.u32 %v196_v56, %v195_v55  ;;  %v130_v61 = vsel %vm110_vm0, %v125_v57, %v129_v58  ;;  %v133_v5 = vor.u32 %v131_v54, %v129_v58  ;;  %v239_v8 = vrot.slane %v942_v0, 3 }
  0x10   :  { %620 = vmatpush.bf16.msra.mxu2 %v968_v14  ;;  %v122_v49 = vsel %vm110_vm0, %v117_v41, %v121_v42  ;;  %v194_v50 = vsel %vm187_vm1, %v190_v45, %v193_v46  ;;  %v199_v3 = vrot.slane %v139_v2, 2  ;;  %v200_v4 = vrot.slane %v135_v1, 3 }
  0x11   :  { %669 = vmatpush.bf16.msra.mxu3 %v976_v15  ;;  %v198_v62 = vsel %vm187_vm1, %v193_v46, %v197_v59  ;;  %v137_v6 = vrot.slane %v135_v1, 1  ;;  %v240_v11 = vsel %vm233_vm2, %v237_v60, %v239_v8  ;;  %v143_v13 = vshll.u32 %v943_v12, 16  ;;  %v947_v60 = vld [vmem:[%s1254_s1 + $0x40] sm:$0xff] }
  0x12   :  { %523 = vmatpush.bf16.msra.mxu0 %v951_v16  ;;  %v201_v7 = vor.u32 %v200_v4, %v199_v3  ;;  %v147_v14 = vshrl.u32 %v943_v12, 16  ;;  %v159_v37 = vshll.u32 %v945_v36, 16  ;;  %v163_v38 = vshrl.u32 %v945_v36, 16 }
  0x13   :  { %572 = vmatpush.bf16.msra.mxu1 %v959_v17  ;;  %v138_v9 = vsel %vm110_vm0, %v133_v5, %v137_v6  ;;  %v204_v16 = vrot.slane %v143_v13, 3  ;;  %v141_v17 = vor.u32 %v139_v2, %v137_v6  ;;  %v247_v56 = vrot.slane %v946_v48, 3 }
  0x14   :  { %621 = vmatpush.bf16.msra.mxu2 %v967_v19  ;;  %v202_v10 = vsel %vm187_vm1, %v197_v59, %v201_v7  ;;  %v203_v15 = vrot.slane %v147_v14, 2  ;;  %v161_v42 = vrot.slane %v159_v37, 1  ;;  %v249_v4 = vrot.slane %v947_v60, 3 }
  0x15   :  { %670 = vmatpush.bf16.msra.mxu3 %v975_v20  ;;  %v241_v20 = vrot.slane %v943_v12, 3 }
  0x16   :  { %524 = vmatpush.bf16.msra.mxu0 %v950_v22  ;;  %v205_v19 = vor.u32 %v204_v16, %v203_v15  ;;  %v165_v53 = vor.u32 %v163_v38, %v161_v42 }
  0x17   :  { %573 = vmatpush.bf16.msra.mxu1 %v958_v23  ;;  %v242_v23 = vsel %vm233_vm2, %v239_v8, %v241_v20  ;;  %v1209_v8 = vld [vmem:[%s1253_s3] ss:$0 sm:$0xff] }
  0x18   :  { %622 = vmatpush.bf16.msra.mxu2 %v966_v24  ;;  %v206_v22 = vsel %vm187_vm1, %v201_v7, %v205_v19  ;;  %v944_v24 = vld [vmem:[%s1252_s0 + $0x28] sm:$0xff]  ;;  %v250_v7 = vsel %vm233_vm2, %v247_v56, %v249_v4 }
  0x19   :  { %671 = vmatpush.bf16.msra.mxu3 %v974_v26  ;;  %v151_v25 = vshll.u32 %v944_v24, 16  ;;  %v155_v26 = vshrl.u32 %v944_v24, 16  ;;  %v243_v32 = vrot.slane %v944_v24, 3 }
  0x1a   :  { %525 = vmatpush.bf16.msra.mxu0 %v949_v30 }
  0x1b   :  { %574 = vmatpush.bf16.msra.mxu1 %v957_v31  ;;  %v207_v27 = vrot.slane %v155_v26, 2  ;;  %v208_v28 = vrot.slane %v151_v25, 3  ;;  %v153_v30 = vrot.slane %v151_v25, 1  ;;  %v244_v35 = vsel %vm233_vm2, %v241_v20, %v243_v32 }
  0x1c   :  { %623 = vmatpush.bf16.msra.mxu2 %v965_v33 }
  0x1d   :  { %672 = vmatpush.bf16.msra.mxu3 %v973_v34  ;;  %v209_v31 = vor.u32 %v208_v28, %v207_v27  ;;  %v157_v41 = vor.u32 %v155_v26, %v153_v30 }
  0x1e   :  { %526 = vmatpush.bf16.msra.mxu0 %v948_v39  ;;  %v211_v39 = vrot.slane %v163_v38, 2 }
  0x1f   :  { %575 = vmatpush.bf16.msra.mxu1 %v956_v40  ;;  %v210_v34 = vsel %vm187_vm1, %v205_v19, %v209_v31  ;;  %v212_v40 = vrot.slane %v159_v37, 3  ;;  %v162_v45 = vsel %vm110_vm0, %v157_v41, %v161_v42 }
  0x20   :  { %624 = vmatpush.bf16.msra.mxu2 %v964_v43 }
  0x21   :  { %673 = vmatpush.bf16.msra.mxu3 %v972_v44  ;;  %527 = vmatmul.bf16.vlgmr.msra.gmra.mxu0 %v939_v18  ;;  %v145_v18 = vrot.slane %v143_v13, 1  ;;  %v213_v43 = vor.u32 %v212_v40, %v211_v39  ;;  %v245_v44 = vrot.slane %v945_v36, 3 }
  0x22   :  { %576 = vmatmul.bf16.vlgmr.msra.gmra.mxu1 %v122_v49  ;;  %v167_v49 = vshll.u32 %v946_v48, 16 }
  0x23   :  { %625 = vmatmul.bf16.vlgmr.msra.gmra.mxu2 %v194_v50  ;;  %v149_v29 = vor.u32 %v147_v14, %v145_v18  ;;  %v214_v46 = vsel %vm187_vm1, %v209_v31, %v213_v43  ;;  %v246_v47 = vsel %vm233_vm2, %v243_v32, %v245_v44  ;;  %v171_v50 = vshrl.u32 %v946_v48, 16 }
  0x24   :  { %674 = vmatmul.bf16.vlgmr.msra.gmra.mxu3 %v236_v51  ;;  %v169_v54 = vrot.slane %v167_v49, 1  ;;  %v248_v59 = vsel %vm233_vm2, %v245_v44, %v247_v56 }
  0x25   :  { %v154_v33 = vsel %vm110_vm0, %v149_v29, %v153_v30  ;;  %v215_v51 = vrot.slane %v171_v50, 2 }
  0x26   :  { %v170_v57 = vsel %vm110_vm0, %v165_v53, %v169_v54  ;;  %v173_v1 = vor.u32 %v171_v50, %v169_v54 }
  0x31   :  { %532 = vmatmul.bf16.gmra.mxu0 %v1119_v21  ;;  %v146_v21 = vsel %vm110_vm0, %v141_v17, %v145_v18 }
  0x32   :  { %581 = vmatmul.bf16.gmra.mxu1 %v130_v61  ;;  %v175_v61 = vshll.u32 %v947_v60, 16 }
  0x33   :  { %630 = vmatmul.bf16.gmra.mxu2 %v198_v62  ;;  %v219_v62 = vshrl.u32 %v947_v60, 16 }
  0x34   :  { %679 = vmatmul.bf16.gmra.mxu3 %v238_v63  ;;  %v177_v2 = vrot.slane %v175_v61, 1 }
  0x35   :  { %v221_v63 = vrot.slane %v219_v62, 2 }
  0x36   :  { %v178_v5 = vsel %vm110_vm0, %v173_v1, %v177_v2 }
  0x41   :  { %537 = vmatmul.bf16.gmra.mxu0 %v941_v52  ;;  %v216_v52 = vrot.slane %v167_v49, 3 }
  0x42   :  { %586 = vmatmul.bf16.gmra.mxu1 %v138_v9 }
  0x43   :  { %635 = vmatmul.bf16.gmra.mxu2 %v202_v10  ;;  %v217_v55 = vor.u32 %v216_v52, %v215_v51 }
  0x44   :  { %684 = vmatmul.bf16.gmra.mxu3 %v240_v11 }
  0x45   :  { %v218_v58 = vsel %vm187_vm1, %v213_v43, %v217_v55 }
  0x51   :  { %542 = vmatmul.bf16.gmra.mxu0 %v942_v0  ;;  %v222_v0 = vrot.slane %v175_v61, 3 }
  0x52   :  { %591 = vmatmul.bf16.gmra.mxu1 %v146_v21 }
  0x53   :  { %640 = vmatmul.bf16.gmra.mxu2 %v206_v22  ;;  %v223_v3 = vor.u32 %v222_v0, %v221_v63 }
  0x54   :  { %689 = vmatmul.bf16.gmra.mxu3 %v242_v23 }
  0x55   :  { %v224_v6 = vsel %vm187_vm1, %v217_v55, %v223_v3 }
  0x61   :  { %547 = vmatmul.bf16.gmra.mxu0 %v943_v12 }
  0x62   :  { %596 = vmatmul.bf16.gmra.mxu1 %v154_v33 }
  0x63   :  { %645 = vmatmul.bf16.gmra.mxu2 %v210_v34 }
  0x64   :  { %694 = vmatmul.bf16.gmra.mxu3 %v244_v35 }
  0x71   :  { %552 = vmatmul.bf16.gmra.mxu0 %v944_v24 }
  0x72   :  { %601 = vmatmul.bf16.gmra.mxu1 %v162_v45 }
  0x73   :  { %650 = vmatmul.bf16.gmra.mxu2 %v214_v46 }
  0x74   :  { %699 = vmatmul.bf16.gmra.mxu3 %v246_v47 }
  0x81   :  { %557 = vmatmul.bf16.gmra.mxu0 %v945_v36 }
  0x82   :  { %606 = vmatmul.bf16.gmra.mxu1 %v170_v57 }
  0x83   :  { %655 = vmatmul.bf16.gmra.mxu2 %v218_v58 }
  0x84   :  { %704 = vmatmul.bf16.gmra.mxu3 %v248_v59 }
  0x91   :  { %562 = vmatmul.bf16.gmra.mxu0 %v946_v48 }
  0x92   :  { %611 = vmatmul.bf16.gmra.mxu1 %v178_v5 }
  0x93   :  { %660 = vmatmul.bf16.gmra.mxu2 %v224_v6 }
  0x94   :  { %709 = vmatmul.bf16.gmra.mxu3 %v250_v7 }
  0x9e   :  { %v528_v9 = vpop.f32.mrf.mxu0 }
  0x9f   :  { %v577_v10 = vpop.f32.mrf.mxu1  ;;  %v529_v11 = vadd.f32 %v1209_v8, %v528_v9 }
  0xa1   :  { %v578_v14 = vadd.f32 %v577_v10, %v529_v11 }
  0xa6   :  { %v626_v12 = vpop.f32.mrf.mxu2  ;;  %v530_v15 = vpop.f32.mrf.mxu0 }
  0xa7   :  { %v675_v13 = vpop.f32.mrf.mxu3  ;;  %v579_v16 = vpop.f32.mrf.mxu1  ;;  %v531_v17 = vadd.f32 %v1209_v8, %v530_v15  ;;  %v627_v18 = vadd.f32 %v626_v12, %v578_v14 }
  0xa9   :  { %v580_v19 = vadd.f32 %v579_v16, %v531_v17  ;;  %v676_v22 = vadd.f32 %v675_v13, %v627_v18 }
  0xab   :  { %v715_v27 = vmax.f32 %v676_v22, 0.0 }
  0xae   :  { %v628_v20 = vpop.f32.mrf.mxu2  ;;  %v533_v24 = vpop.f32.mrf.mxu0 }
  0xaf   :  { %v677_v21 = vpop.f32.mrf.mxu3  ;;  %v629_v23 = vadd.f32 %v628_v20, %v580_v19  ;;  %v582_v25 = vpop.f32.mrf.mxu1  ;;  %v534_v29 = vadd.f32 %v1209_v8, %v533_v24 }
  0xb1   :  { %v678_v26 = vadd.f32 %v677_v21, %v629_v23  ;;  %v583_v33 = vadd.f32 %v582_v25, %v534_v29 }
  0xb3   :  { %v716_v28 = vmax.f32 %v678_v26, 0.0 }
  0xb5   :  { %v983_v30 = vpack.c.bf16 %v716_v28, %v715_v27 }
  0xb6   :  { %v631_v31 = vpop.f32.mrf.mxu2  ;;  %v535_v34 = vpop.f32.mrf.mxu0 }
  0xb7   :  { %v680_v32 = vpop.f32.mrf.mxu3  ;;  %984 = vst [vmem:[%s1255_s4] sm:$0xff] %v983_v30   ;;  %v584_v35 = vpop.f32.mrf.mxu1  ;;  %v536_v36 = vadd.f32 %v1209_v8, %v535_v34  ;;  %v632_v37 = vadd.f32 %v631_v31, %v583_v33 }
  0xb9   :  { %v585_v38 = vadd.f32 %v584_v35, %v536_v36  ;;  %v681_v41 = vadd.f32 %v680_v32, %v632_v37 }
  0xbb   :  { %v717_v46 = vmax.f32 %v681_v41, 0.0 }
  0xbe   :  { %v633_v39 = vpop.f32.mrf.mxu2  ;;  %v538_v43 = vpop.f32.mrf.mxu0 }
  0xbf   :  { %v682_v40 = vpop.f32.mrf.mxu3  ;;  %v634_v42 = vadd.f32 %v633_v39, %v585_v38  ;;  %v587_v44 = vpop.f32.mrf.mxu1  ;;  %v539_v48 = vadd.f32 %v1209_v8, %v538_v43 }
  0xc1   :  { %v683_v45 = vadd.f32 %v682_v40, %v634_v42  ;;  %v588_v52 = vadd.f32 %v587_v44, %v539_v48 }
  0xc3   :  { %v718_v47 = vmax.f32 %v683_v45, 0.0 }
  0xc5   :  { %v988_v49 = vpack.c.bf16 %v718_v47, %v717_v46 }
  0xc6   :  { %v636_v50 = vpop.f32.mrf.mxu2  ;;  %v540_v53 = vpop.f32.mrf.mxu0 }
  0xc7   :  { %v685_v51 = vpop.f32.mrf.mxu3  ;;  %1020 = vst [vmem:[%s1255_s4 + $0x8] sm:$0xff] %v988_v49   ;;  %v589_v54 = vpop.f32.mrf.mxu1  ;;  %v541_v55 = vadd.f32 %v1209_v8, %v540_v53  ;;  %v637_v56 = vadd.f32 %v636_v50, %v588_v52 }
  0xc9   :  { %v590_v57 = vadd.f32 %v589_v54, %v541_v55  ;;  %v686_v60 = vadd.f32 %v685_v51, %v637_v56 }
  0xcb   :  { %v719_v1 = vmax.f32 %v686_v60, 0.0 }
  0xce   :  { %v638_v58 = vpop.f32.mrf.mxu2  ;;  %v543_v62 = vpop.f32.mrf.mxu0 }
  0xcf   :  { %v687_v59 = vpop.f32.mrf.mxu3  ;;  %v639_v61 = vadd.f32 %v638_v58, %v590_v57  ;;  %v592_v63 = vpop.f32.mrf.mxu1  ;;  %v544_v3 = vadd.f32 %v1209_v8, %v543_v62 }
  0xd1   :  { %v688_v0 = vadd.f32 %v687_v59, %v639_v61  ;;  %v593_v7 = vadd.f32 %v592_v63, %v544_v3 }
  0xd3   :  { %v720_v2 = vmax.f32 %v688_v0, 0.0 }
  0xd5   :  { %v993_v4 = vpack.c.bf16 %v720_v2, %v719_v1 }
  0xd6   :  { %v641_v5 = vpop.f32.mrf.mxu2  ;;  %v545_v9 = vpop.f32.mrf.mxu0 }
  0xd7   :  { %v690_v6 = vpop.f32.mrf.mxu3  ;;  %1021 = vst [vmem:[%s1255_s4 + $0x10] sm:$0xff] %v993_v4   ;;  %v594_v10 = vpop.f32.mrf.mxu1  ;;  %v546_v11 = vadd.f32 %v1209_v8, %v545_v9  ;;  %v642_v12 = vadd.f32 %v641_v5, %v593_v7 }
  0xd9   :  { %v595_v13 = vadd.f32 %v594_v10, %v546_v11  ;;  %v691_v16 = vadd.f32 %v690_v6, %v642_v12 }
  0xdb   :  { %v721_v21 = vmax.f32 %v691_v16, 0.0 }
  0xde   :  { %v643_v14 = vpop.f32.mrf.mxu2  ;;  %v548_v18 = vpop.f32.mrf.mxu0 }
  0xdf   :  { %v692_v15 = vpop.f32.mrf.mxu3  ;;  %v644_v17 = vadd.f32 %v643_v14, %v595_v13  ;;  %v597_v19 = vpop.f32.mrf.mxu1  ;;  %v549_v23 = vadd.f32 %v1209_v8, %v548_v18 }
  0xe1   :  { %v693_v20 = vadd.f32 %v692_v15, %v644_v17  ;;  %v598_v27 = vadd.f32 %v597_v19, %v549_v23 }
  0xe3   :  { %v722_v22 = vmax.f32 %v693_v20, 0.0 }
  0xe5   :  { %v998_v24 = vpack.c.bf16 %v722_v22, %v721_v21 }
  0xe6   :  { %v646_v25 = vpop.f32.mrf.mxu2  ;;  %v550_v28 = vpop.f32.mrf.mxu0 }
  0xe7   :  { %v695_v26 = vpop.f32.mrf.mxu3  ;;  %1022 = vst [vmem:[%s1255_s4 + $0x18] sm:$0xff] %v998_v24   ;;  %v599_v29 = vpop.f32.mrf.mxu1  ;;  %v551_v30 = vadd.f32 %v1209_v8, %v550_v28  ;;  %v647_v31 = vadd.f32 %v646_v25, %v598_v27 }
  0xe9   :  { %v600_v32 = vadd.f32 %v599_v29, %v551_v30  ;;  %v696_v35 = vadd.f32 %v695_v26, %v647_v31 }
  0xeb   :  { %v723_v40 = vmax.f32 %v696_v35, 0.0 }
  0xee   :  { %v648_v33 = vpop.f32.mrf.mxu2  ;;  %v553_v37 = vpop.f32.mrf.mxu0 }
  0xef   :  { %v697_v34 = vpop.f32.mrf.mxu3  ;;  %v649_v36 = vadd.f32 %v648_v33, %v600_v32  ;;  %v602_v38 = vpop.f32.mrf.mxu1  ;;  %v554_v42 = vadd.f32 %v1209_v8, %v553_v37 }
  0xf1   :  { %v698_v39 = vadd.f32 %v697_v34, %v649_v36  ;;  %v603_v46 = vadd.f32 %v602_v38, %v554_v42 }
  0xf3   :  { %v724_v41 = vmax.f32 %v698_v39, 0.0 }
  0xf5   :  { %v1003_v43 = vpack.c.bf16 %v724_v41, %v723_v40 }
  0xf6   :  { %v651_v44 = vpop.f32.mrf.mxu2  ;;  %v555_v47 = vpop.f32.mrf.mxu0 }
  0xf7   :  { %v700_v45 = vpop.f32.mrf.mxu3  ;;  %1023 = vst [vmem:[%s1255_s4 + $0x20] sm:$0xff] %v1003_v43   ;;  %v604_v48 = vpop.f32.mrf.mxu1  ;;  %v556_v49 = vadd.f32 %v1209_v8, %v555_v47  ;;  %v652_v50 = vadd.f32 %v651_v44, %v603_v46 }
  0xf9   :  { %v605_v51 = vadd.f32 %v604_v48, %v556_v49  ;;  %v701_v54 = vadd.f32 %v700_v45, %v652_v50 }
  0xfb   :  { %v725_v59 = vmax.f32 %v701_v54, 0.0 }
  0xfe   :  { %v653_v52 = vpop.f32.mrf.mxu2  ;;  %v558_v56 = vpop.f32.mrf.mxu0 }
  0xff   :  { %v702_v53 = vpop.f32.mrf.mxu3  ;;  %v654_v55 = vadd.f32 %v653_v52, %v605_v51  ;;  %v607_v57 = vpop.f32.mrf.mxu1  ;;  %v559_v61 = vadd.f32 %v1209_v8, %v558_v56 }
 0x101   :  { %v703_v58 = vadd.f32 %v702_v53, %v654_v55  ;;  %v608_v1 = vadd.f32 %v607_v57, %v559_v61 }
 0x103   :  { %v726_v60 = vmax.f32 %v703_v58, 0.0 }
 0x105   :  { %v1008_v62 = vpack.c.bf16 %v726_v60, %v725_v59 }
 0x106   :  { %v656_v63 = vpop.f32.mrf.mxu2  ;;  %v560_v2 = vpop.f32.mrf.mxu0 }
 0x107   :  { %v705_v0 = vpop.f32.mrf.mxu3  ;;  %1024 = vst [vmem:[%s1255_s4 + $0x28] sm:$0xff] %v1008_v62   ;;  %v609_v3 = vpop.f32.mrf.mxu1  ;;  %v561_v4 = vadd.f32 %v1209_v8, %v560_v2  ;;  %v657_v5 = vadd.f32 %v656_v63, %v608_v1 }
 0x109   :  { %v610_v6 = vadd.f32 %v609_v3, %v561_v4  ;;  %v706_v10 = vadd.f32 %v705_v0, %v657_v5 }
 0x10b   :  { %v727_v15 = vmax.f32 %v706_v10, 0.0 }
 0x10e   :  { %v658_v7 = vpop.f32.mrf.mxu2  ;;  %v563_v12 = vpop.f32.mrf.mxu0 }
 0x10f   :  { %v707_v9 = vpop.f32.mrf.mxu3  ;;  %v659_v11 = vadd.f32 %v658_v7, %v610_v6  ;;  %v612_v14 = vpop.f32.mrf.mxu1  ;;  %v564_v17 = vadd.f32 %v1209_v8, %v563_v12 }
 0x111   :  { %v708_v13 = vadd.f32 %v707_v9, %v659_v11  ;;  %v613_v21 = vadd.f32 %v612_v14, %v564_v17 }
 0x113   :  { %v728_v16 = vmax.f32 %v708_v13, 0.0 }
 0x115   :  { %v1013_v18 = vpack.c.bf16 %v728_v16, %v727_v15 }
 0x116   :  { %v661_v19 = vpop.f32.mrf.mxu2  ;;  %v565_v22 = vpop.f32.mrf.mxu0 }
 0x117   :  { %v710_v20 = vpop.f32.mrf.mxu3  ;;  %1025 = vst [vmem:[%s1255_s4 + $0x30] sm:$0xff] %v1013_v18   ;;  %v566_v23 = vadd.f32 %v1209_v8, %v565_v22  ;;  %v662_v24 = vadd.f32 %v661_v19, %v613_v21  ;;  %v614_v25 = vpop.f32.mrf.mxu1 }
 0x119   :  { %v615_v26 = vadd.f32 %v614_v25, %v566_v23  ;;  %v711_v28 = vadd.f32 %v710_v20, %v662_v24 }
 0x11b   :  { %v729_v32 = vmax.f32 %v711_v28, 0.0 }
 0x11e   :  { %v663_v27 = vpop.f32.mrf.mxu2 }
 0x11f   :  { %v664_v29 = vadd.f32 %v663_v27, %v615_v26  ;;  %v712_v30 = vpop.f32.mrf.mxu3 }
 0x121   :  { %v713_v31 = vadd.f32 %v712_v30, %v664_v29 }
 0x123   :  { %v730_v33 = vmax.f32 %v713_v31, 0.0 }
 0x125   :  { %v1018_v34 = vpack.c.bf16 %v730_v33, %v729_v32 }
 0x127   :  { %1026 = vst [vmem:[%s1255_s4 + $0x38] sm:$0xff] %v1018_v34  }

// kernel: vqvae_forward.18
= control target key start
LH: loop header
LB: loop body
LE: loop exit
PB: predicated region body
PF: predicated region fallthrough
CT: control target
= control target key end

     0   :  { %vm110_vm0 = vsmask.f32 7424  ;;  %vm187_vm1 = vcmask 1046528   ;;  %vm213_vm2 = vcmask 1044480   ;;  %vm239_vm3 = vsmask.f32 4352  ;;  %s2591_s2 = inlined_call_operand.vmem [shape: bf16[1152,128], index: 2, kind: input, shape index: {}]   ;;  %s2592_s3 = inlined_call_operand.vmem [shape: f32[1,128], index: 3, kind: input, shape index: {}]   ;;  %s2593_s0 = inlined_call_operand.vmem [shape: bf16[256,128], index: 0, kind: input, shape index: {}, may-alias: {0,1}]   ;;  %s2594_s1 = inlined_call_operand.vmem [shape: bf16[256,128], index: 1, kind: input, shape index: {}, may-alias: {0,1}]   ;;  %s2595_s4 = inlined_call_operand.vmem [shape: bf16[128,128], index: 4, kind: output, shape index: {}]  }
   0x1   :  { %v1812_v0 = vld [vmem:[%s2591_s2 + $0x38] sm:$0xff]  ;;  %v1811_v1 = vld [vmem:[%s2591_s2 + $0x30] sm:$0xff]  ;;  %v1810_v2 = vld [vmem:[%s2591_s2 + $0x28] sm:$0xff]  ;;  %vm285_vm4 = vcmask 1043456   ;;  %vm311_vm5 = vcmask 1041408   ;;  %vm381_vm7 = vcmask 1040384  }
   0x2   :  { %1924 = vmatpush.bf16.msra.mxu1 %v1812_v0  ;;  %1925 = vmatpush.bf16.msra.mxu2 %v1812_v0  ;;  %v1809_v3 = vld [vmem:[%s2591_s2 + $0x20] sm:$0xff]  ;;  %v1808_v4 = vld [vmem:[%s2591_s2 + $0x18] sm:$0xff]  ;;  %v1807_v5 = vld [vmem:[%s2591_s2 + $0x10] sm:$0xff]  ;;  %vm337_vm6 = vsmask.f32 1280 }
   0x3   :  { %1926 = vmatpush.bf16.msra.mxu3 %v1812_v0  ;;  %987 = vmatpush.bf16.msra.mxu0 %v1812_v0  ;;  %v1806_v6 = vld [vmem:[%s2591_s2 + $0x8] sm:$0xff]  ;;  %v1805_v7 = vld [vmem:[%s2591_s2] sm:$0xff]  ;;  %v1828_v8 = vld [vmem:[%s2591_s2 + $0xb8] sm:$0xff] }
   0x4   :  { %v1820_v9 = vld [vmem:[%s2591_s2 + $0x78] sm:$0xff]  ;;  %v2007_v10 = vld [vmem:[%s2593_s0 + $0x10] sm:$0xff]  ;;  %v2012_v11 = vld [vmem:[%s2593_s0 + $0x20] sm:$0xff] }
   0x5   :  { %v2017_v12 = vld [vmem:[%s2593_s0 + $0x30] sm:$0xff]  ;;  %v2022_v13 = vld [vmem:[%s2593_s0] sm:$0xff]  ;;  %v1836_v14 = vld [vmem:[%s2591_s2 + $0xf8] sm:$0xff] }
   0x6   :  { %1927 = vmatpush.bf16.msra.mxu1 %v1811_v1  ;;  %1928 = vmatpush.bf16.msra.mxu2 %v1811_v1  ;;  %v1844_v15 = vld [vmem:[%s2591_s2 + $0x138] sm:$0xff]  ;;  %v1827_v16 = vld [vmem:[%s2591_s2 + $0xb0] sm:$0xff]  ;;  %v1826_v20 = vld [vmem:[%s2591_s2 + $0xa8] sm:$0xff]  ;;  %v2111_v38 = vshll.u32 %v2022_v13, 16  ;;  %v2122_v41 = vshrl.u32 %v2022_v13, 16  ;;  %v188_v59 = vrot.slane %v2022_v13, 1 }
   0x7   :  { %1929 = vmatpush.bf16.msra.mxu3 %v1811_v1  ;;  %988 = vmatpush.bf16.msra.mxu0 %v1811_v1  ;;  %v1819_v17 = vld [vmem:[%s2591_s2 + $0x70] sm:$0xff]  ;;  %v1818_v21 = vld [vmem:[%s2591_s2 + $0x68] sm:$0xff]  ;;  %v1825_v24 = vld [vmem:[%s2591_s2 + $0xa0] sm:$0xff]  ;;  %v214_v63 = vrot.slane %v2022_v13, 3 }
   0x8   :  { %v1835_v18 = vld [vmem:[%s2591_s2 + $0xf0] sm:$0xff]  ;;  %v1834_v22 = vld [vmem:[%s2591_s2 + $0xe8] sm:$0xff]  ;;  %v1817_v25 = vld [vmem:[%s2591_s2 + $0x60] sm:$0xff]  ;;  %v116_v46 = vrot.slane %v2111_v38, 1  ;;  %v240_v49 = vrot.slane %v2122_v41, 3  ;;  %v241_v50 = vrot.slane %v2111_v38, 4 }
   0x9   :  { %v1843_v19 = vld [vmem:[%s2591_s2 + $0x130] sm:$0xff]  ;;  %v1842_v23 = vld [vmem:[%s2591_s2 + $0x128] sm:$0xff]  ;;  %v1833_v26 = vld [vmem:[%s2591_s2 + $0xe0] sm:$0xff] }
   0xa   :  { %1930 = vmatpush.bf16.msra.mxu1 %v1810_v2  ;;  %1931 = vmatpush.bf16.msra.mxu2 %v1810_v2  ;;  %v1841_v27 = vld [vmem:[%s2591_s2 + $0x120] sm:$0xff]  ;;  %v1824_v28 = vld [vmem:[%s2591_s2 + $0x98] sm:$0xff]  ;;  %v2084_v31 = vld [vmem:[%s2593_s0 + $0x28] sm:$0xff]  ;;  %v117_v55 = vor.u32 %v116_v46, %v2122_v41  ;;  %v242_v1 = vor.u32 %v241_v50, %v240_v49 }
   0xb   :  { %1932 = vmatpush.bf16.msra.mxu3 %v1810_v2  ;;  %989 = vmatpush.bf16.msra.mxu0 %v1810_v2  ;;  %v1816_v29 = vld [vmem:[%s2591_s2 + $0x58] sm:$0xff]  ;;  %v2094_v33 = vld [vmem:[%s2593_s0 + $0x8] sm:$0xff]  ;;  %v1823_v36 = vld [vmem:[%s2591_s2 + $0x90] sm:$0xff] }
   0xc   :  { %v2079_v30 = vld [vmem:[%s2593_s0 + $0x18] sm:$0xff]  ;;  %v1815_v37 = vld [vmem:[%s2591_s2 + $0x50] sm:$0xff]  ;;  %v2125_v42 = vshll.u32 %v2094_v33, 16  ;;  %v2128_v43 = vshrl.u32 %v2094_v33, 16  ;;  %v1822_v44 = vld [vmem:[%s2591_s2 + $0x88] sm:$0xff]  ;;  %v189_v60 = vrot.slane %v2094_v33, 1 }
   0xd   :  { %v2089_v32 = vld [vmem:[%s2593_s0 + $0x38] sm:$0xff]  ;;  %v1831_v39 = vld [vmem:[%s2591_s2 + $0xd0] sm:$0xff]  ;;  %v1814_v45 = vld [vmem:[%s2591_s2 + $0x48] sm:$0xff]  ;;  %v215_v0 = vrot.slane %v2094_v33, 3  ;;  %v2234_v46 = vshrl.u32 %v2079_v30, 16 }
   0xe   :  { %1933 = vmatpush.bf16.msra.mxu1 %v1809_v3  ;;  %1934 = vmatpush.bf16.msra.mxu2 %v1809_v3  ;;  %v1832_v34 = vld [vmem:[%s2591_s2 + $0xd8] sm:$0xff]  ;;  %v1839_v40 = vld [vmem:[%s2591_s2 + $0x110] sm:$0xff]  ;;  %v1830_v47 = vld [vmem:[%s2591_s2 + $0xc8] sm:$0xff]  ;;  %v243_v51 = vrot.slane %v2128_v43, 3  ;;  %v244_v52 = vrot.slane %v2125_v42, 4  ;;  %v121_v58 = vrot.slane %v2125_v42, 1 }
   0xf   :  { %1935 = vmatpush.bf16.msra.mxu3 %v1809_v3  ;;  %990 = vmatpush.bf16.msra.mxu0 %v1809_v3  ;;  %v1840_v35 = vld [vmem:[%s2591_s2 + $0x118] sm:$0xff]  ;;  %v1838_v48 = vld [vmem:[%s2591_s2 + $0x108] sm:$0xff]  ;;  %v1821_v53 = vld [vmem:[%s2591_s2 + $0x80] sm:$0xff] }
  0x10   :  { %v1813_v54 = vld [vmem:[%s2591_s2 + $0x40] sm:$0xff]  ;;  %v1860_v56 = vld [vmem:[%s2591_s2 + $0x1b8] sm:$0xff]  ;;  %v245_v2 = vor.u32 %v244_v52, %v243_v51  ;;  %v193_v52 = vrot.slane %v2079_v30, 1 }
  0x11   :  { %v1852_v57 = vld [vmem:[%s2591_s2 + $0x178] sm:$0xff]  ;;  %v1829_v61 = vld [vmem:[%s2591_s2 + $0xc0] sm:$0xff] }
  0x12   :  { %1936 = vmatpush.bf16.msra.mxu1 %v1808_v4  ;;  %1937 = vmatpush.bf16.msra.mxu2 %v1808_v4  ;;  %v1837_v62 = vld [vmem:[%s2591_s2 + $0x100] sm:$0xff]  ;;  %v1868_v3 = vld [vmem:[%s2591_s2 + $0x1f8] sm:$0xff] }
  0x13   :  { %1938 = vmatpush.bf16.msra.mxu3 %v1808_v4  ;;  %991 = vmatpush.bf16.msra.mxu0 %v1808_v4  ;;  %v1876_v4 = vld [vmem:[%s2591_s2 + $0x238] sm:$0xff] }
  0x16   :  { %1939 = vmatpush.bf16.msra.mxu1 %v1807_v5  ;;  %1940 = vmatpush.bf16.msra.mxu2 %v1807_v5 }
  0x17   :  { %1941 = vmatpush.bf16.msra.mxu3 %v1807_v5  ;;  %992 = vmatpush.bf16.msra.mxu0 %v1807_v5  ;;  %v122_v5 = vsel %vm110_vm0, %v117_v55, %v121_v58 }
  0x1a   :  { %1942 = vmatpush.bf16.msra.mxu1 %v1806_v6  ;;  %1943 = vmatpush.bf16.msra.mxu2 %v1806_v6 }
  0x1b   :  { %1944 = vmatpush.bf16.msra.mxu3 %v1806_v6  ;;  %993 = vmatpush.bf16.msra.mxu0 %v1806_v6  ;;  %v190_v6 = vsel %vm187_vm1, %v188_v59, %v189_v60  ;;  %v1856_v59 = vld [vmem:[%s2591_s2 + $0x198] sm:$0xff] }
  0x1e   :  { %1945 = vmatpush.bf16.msra.mxu1 %v1805_v7  ;;  %1946 = vmatpush.bf16.msra.mxu2 %v1805_v7 }
  0x1f   :  { %1947 = vmatpush.bf16.msra.mxu3 %v1805_v7  ;;  %994 = vmatpush.bf16.msra.mxu0 %v1805_v7  ;;  %v216_v7 = vsel %vm213_vm2, %v214_v63, %v215_v0  ;;  %v2262_v63 = vshrl.u32 %v2012_v11, 16 }
  0x21   :  { %1005 = vmatmul.bf16.vlgmr.msra.gmra.mxu1 %v2007_v10  ;;  %1015 = vmatmul.bf16.vlgmr.msra.gmra.mxu2 %v2012_v11 }
  0x22   :  { %1085 = vmatpush.bf16.msrb.mxu2 %v1828_v8  ;;  %1036 = vmatpush.bf16.msrb.mxu1 %v1820_v9  ;;  %v246_v8 = vsel %vm239_vm3, %v242_v1, %v245_v2  ;;  %v1859_v9 = vld [vmem:[%s2591_s2 + $0x1b0] sm:$0xff]  ;;  %v255_v1 = vrot.slane %v2262_v63, 3 }
  0x23   :  { %1025 = vmatmul.bf16.vlgmr.msra.gmra.mxu3 %v2017_v12  ;;  %995 = vmatmul.bf16.vlgmr.msra.gmra.mxu0 %v2022_v13 }
  0x24   :  { %1134 = vmatpush.bf16.msrb.mxu3 %v1836_v14  ;;  %1183 = vmatpush.bf16.msrb.mxu0 %v1844_v15  ;;  %v1851_v14 = vld [vmem:[%s2591_s2 + $0x170] sm:$0xff] }
  0x25   :  { %v1867_v15 = vld [vmem:[%s2591_s2 + $0x1f0] sm:$0xff] }
  0x26   :  { %1086 = vmatpush.bf16.msrb.mxu2 %v1827_v16  ;;  %1037 = vmatpush.bf16.msrb.mxu1 %v1819_v17  ;;  %v1875_v16 = vld [vmem:[%s2591_s2 + $0x230] sm:$0xff]  ;;  %v2194_v17 = vshll.u32 %v2007_v10, 16 }
  0x28   :  { %1135 = vmatpush.bf16.msrb.mxu3 %v1835_v18  ;;  %1184 = vmatpush.bf16.msrb.mxu0 %v1843_v19  ;;  %v2197_v18 = vshrl.u32 %v2007_v10, 16  ;;  %v1858_v19 = vld [vmem:[%s2591_s2 + $0x1a8] sm:$0xff] }
  0x2a   :  { %1087 = vmatpush.bf16.msrb.mxu2 %v1826_v20  ;;  %1038 = vmatpush.bf16.msrb.mxu1 %v1818_v21  ;;  %v1850_v20 = vld [vmem:[%s2591_s2 + $0x168] sm:$0xff] }
  0x2b   :  { %v1866_v21 = vld [vmem:[%s2591_s2 + $0x1e8] sm:$0xff] }
  0x2c   :  { %1136 = vmatpush.bf16.msrb.mxu3 %v1834_v22  ;;  %1185 = vmatpush.bf16.msrb.mxu0 %v1842_v23  ;;  %v1874_v22 = vld [vmem:[%s2591_s2 + $0x228] sm:$0xff]  ;;  %v247_v23 = vrot.slane %v2197_v18, 3 }
  0x2e   :  { %1088 = vmatpush.bf16.msrb.mxu2 %v1825_v24  ;;  %1039 = vmatpush.bf16.msrb.mxu1 %v1817_v25  ;;  %v248_v24 = vrot.slane %v2194_v17, 4  ;;  %v125_v25 = vor.u32 %v2128_v43, %v121_v58 }
  0x30   :  { %1137 = vmatpush.bf16.msrb.mxu3 %v1833_v26  ;;  %1186 = vmatpush.bf16.msrb.mxu0 %v1841_v27  ;;  %v129_v26 = vrot.slane %v2194_v17, 1  ;;  %v191_v27 = vrot.slane %v2007_v10, 1 }
  0x31   :  { %1010 = vmatmul.bf16.gmra.mxu1 %v2079_v30  ;;  %1020 = vmatmul.bf16.gmra.mxu2 %v2084_v31 }
  0x32   :  { %1089 = vmatpush.bf16.msrb.mxu2 %v1824_v28  ;;  %1040 = vmatpush.bf16.msrb.mxu1 %v1816_v29  ;;  %v217_v28 = vrot.slane %v2007_v10, 3  ;;  %v249_v29 = vor.u32 %v248_v24, %v247_v23  ;;  %v133_v50 = vor.u32 %v2197_v18, %v129_v26  ;;  %v1871_v23 = vld [vmem:[%s2591_s2 + $0x210] sm:$0xff] }
  0x33   :  { %1030 = vmatmul.bf16.gmra.mxu3 %v2089_v32  ;;  %1000 = vmatmul.bf16.gmra.mxu0 %v2094_v33 }
  0x34   :  { %1138 = vmatpush.bf16.msrb.mxu3 %v1832_v34  ;;  %1187 = vmatpush.bf16.msrb.mxu0 %v1840_v35  ;;  %v130_v34 = vsel %vm110_vm0, %v125_v25, %v129_v26  ;;  %v192_v35 = vsel %vm187_vm1, %v189_v60, %v191_v27  ;;  %v1864_v60 = vld [vmem:[%s2591_s2 + $0x1d8] sm:$0xff] }
  0x36   :  { %1090 = vmatpush.bf16.msrb.mxu2 %v1823_v36  ;;  %1041 = vmatpush.bf16.msrb.mxu1 %v1815_v37  ;;  %v218_v36 = vsel %vm213_vm2, %v215_v0, %v217_v28  ;;  %v250_v37 = vsel %vm239_vm3, %v245_v2, %v249_v29  ;;  %v1872_v0 = vld [vmem:[%s2591_s2 + $0x218] sm:$0xff] }
  0x38   :  { %1139 = vmatpush.bf16.msrb.mxu3 %v1831_v39  ;;  %1188 = vmatpush.bf16.msrb.mxu0 %v1839_v40  ;;  %v1857_v39 = vld [vmem:[%s2591_s2 + $0x1a0] sm:$0xff] }
  0x39   :  { %v1865_v40 = vld [vmem:[%s2591_s2 + $0x1e0] sm:$0xff] }
  0x3a   :  { %1091 = vmatpush.bf16.msrb.mxu2 %v1822_v44  ;;  %1042 = vmatpush.bf16.msrb.mxu1 %v1814_v45  ;;  %v1849_v44 = vld [vmem:[%s2591_s2 + $0x160] sm:$0xff]  ;;  %v2231_v45 = vshll.u32 %v2079_v30, 16 }
  0x3c   :  { %1140 = vmatpush.bf16.msrb.mxu3 %v1830_v47  ;;  %1189 = vmatpush.bf16.msrb.mxu0 %v1838_v48  ;;  %v1873_v47 = vld [vmem:[%s2591_s2 + $0x220] sm:$0xff]  ;;  %v251_v48 = vrot.slane %v2234_v46, 3  ;;  %v252_v49 = vrot.slane %v2231_v45, 4  ;;  %v137_v51 = vrot.slane %v2231_v45, 1 }
  0x3e   :  { %1092 = vmatpush.bf16.msrb.mxu2 %v1821_v53  ;;  %1043 = vmatpush.bf16.msrb.mxu1 %v1813_v54  ;;  %v219_v53 = vrot.slane %v2079_v30, 3  ;;  %v253_v54 = vor.u32 %v252_v49, %v251_v48  ;;  %v138_v55 = vsel %vm110_vm0, %v133_v50, %v137_v51  ;;  %v2315_v48 = vshrl.u32 %v2017_v12, 16  ;;  %v1846_v49 = vld [vmem:[%s2591_s2 + $0x148] sm:$0xff] }
  0x40   :  { %1141 = vmatpush.bf16.msrb.mxu3 %v1829_v61  ;;  %1190 = vmatpush.bf16.msrb.mxu0 %v1837_v62  ;;  %v254_v58 = vsel %vm239_vm3, %v249_v29, %v253_v54  ;;  %v1848_v61 = vld [vmem:[%s2591_s2 + $0x158] sm:$0xff]  ;;  %v2259_v62 = vshll.u32 %v2012_v11, 16  ;;  %v223_v29 = vrot.slane %v2084_v31, 3  ;;  %v263_v50 = vrot.slane %v2315_v48, 3 }
  0x41   :  { %1044 = vmatmul.bf16.vlgmr.msrb.gmra.mxu1 %v122_v5  ;;  %1093 = vmatmul.bf16.vlgmr.msrb.gmra.mxu2 %v190_v6  ;;  %v195_v5 = vrot.slane %v2012_v11, 1  ;;  %v221_v6 = vrot.slane %v2012_v11, 3 }
  0x42   :  { %1281 = vmatpush.bf16.msra.mxu2 %v1860_v56  ;;  %1232 = vmatpush.bf16.msra.mxu1 %v1852_v57  ;;  %v194_v56 = vsel %vm187_vm1, %v191_v27, %v193_v52  ;;  %v220_v57 = vsel %vm213_vm2, %v217_v28, %v219_v53  ;;  %v256_v2 = vrot.slane %v2259_v62, 4  ;;  %v197_v28 = vrot.slane %v2084_v31, 1 }
  0x43   :  { %1142 = vmatmul.bf16.vlgmr.msrb.gmra.mxu3 %v216_v7  ;;  %1191 = vmatmul.bf16.vlgmr.msrb.gmra.mxu0 %v246_v8 }
  0x44   :  { %1330 = vmatpush.bf16.msra.mxu3 %v1868_v3  ;;  %1379 = vmatpush.bf16.msra.mxu0 %v1876_v4  ;;  %v141_v3 = vor.u32 %v2234_v46, %v137_v51  ;;  %v145_v4 = vrot.slane %v2259_v62, 1  ;;  %v257_v7 = vor.u32 %v256_v2, %v255_v1  ;;  %v1861_v1 = vld [vmem:[%s2591_s2 + $0x1c0] sm:$0xff]  ;;  %v2340_v2 = vshll.u32 %v2089_v32, 16 }
  0x46   :  { %1282 = vmatpush.bf16.msra.mxu2 %v1859_v9  ;;  %1233 = vmatpush.bf16.msra.mxu1 %v1851_v14  ;;  %v146_v8 = vsel %vm110_vm0, %v141_v3, %v145_v4  ;;  %v196_v9 = vsel %vm187_vm1, %v193_v52, %v195_v5  ;;  %v222_v14 = vsel %vm213_vm2, %v219_v53, %v221_v6  ;;  %v1870_v52 = vld [vmem:[%s2591_s2 + $0x208] sm:$0xff]  ;;  %v2343_v3 = vshrl.u32 %v2089_v32, 16 }
  0x47   :  { %v149_v26 = vor.u32 %v2262_v63, %v145_v4  ;;  %v1845_v4 = vld [vmem:[%s2591_s2 + $0x140] sm:$0xff] }
  0x48   :  { %1331 = vmatpush.bf16.msra.mxu3 %v1867_v15  ;;  %1380 = vmatpush.bf16.msra.mxu0 %v1875_v16  ;;  %v258_v15 = vsel %vm239_vm3, %v253_v54, %v257_v7  ;;  %v1855_v16 = vld [vmem:[%s2591_s2 + $0x190] sm:$0xff] }
  0x4a   :  { %1283 = vmatpush.bf16.msra.mxu2 %v1858_v19  ;;  %1234 = vmatpush.bf16.msra.mxu1 %v1850_v20  ;;  %v1863_v19 = vld [vmem:[%s2591_s2 + $0x1d0] sm:$0xff] }
  0x4b   :  { %v1847_v20 = vld [vmem:[%s2591_s2 + $0x150] sm:$0xff] }
  0x4c   :  { %1332 = vmatpush.bf16.msra.mxu3 %v1866_v21  ;;  %1381 = vmatpush.bf16.msra.mxu0 %v1874_v22  ;;  %v2287_v21 = vshll.u32 %v2084_v31, 16  ;;  %v2290_v22 = vshrl.u32 %v2084_v31, 16 }
  0x4e   :  { %1284 = vmatpush.bf16.msra.mxu2 %v1857_v39  ;;  %1235 = vmatpush.bf16.msra.mxu1 %v1849_v44  ;;  %v259_v24 = vrot.slane %v2290_v22, 3  ;;  %v260_v25 = vrot.slane %v2287_v21, 4  ;;  %v153_v27 = vrot.slane %v2287_v21, 1  ;;  %v1862_v44 = vld [vmem:[%s2591_s2 + $0x1c8] sm:$0xff] }
  0x50   :  { %1333 = vmatpush.bf16.msra.mxu3 %v1865_v40  ;;  %1382 = vmatpush.bf16.msra.mxu0 %v1873_v47  ;;  %v1854_v40 = vld [vmem:[%s2591_s2 + $0x188] sm:$0xff]  ;;  %v2312_v47 = vshll.u32 %v2017_v12, 16  ;;  %v157_v53 = vor.u32 %v2290_v22, %v153_v27 }
  0x51   :  { %1049 = vmatmul.bf16.gmra.mxu1 %v130_v34  ;;  %1098 = vmatmul.bf16.gmra.mxu2 %v192_v35  ;;  %v261_v34 = vor.u32 %v260_v25, %v259_v24  ;;  %v154_v35 = vsel %vm110_vm0, %v149_v26, %v153_v27  ;;  %v2366_v27 = vld [vmem:[%s2594_s1 + $0x40] sm:$0xff] }
  0x52   :  { %1285 = vmatpush.bf16.msra.mxu2 %v1856_v59  ;;  %1236 = vmatpush.bf16.msra.mxu1 %v1848_v61  ;;  %v264_v51 = vrot.slane %v2312_v47, 4  ;;  %v161_v54 = vrot.slane %v2312_v47, 1 }
  0x53   :  { %1147 = vmatmul.bf16.gmra.mxu3 %v218_v36  ;;  %1196 = vmatmul.bf16.gmra.mxu0 %v250_v37  ;;  %v198_v36 = vsel %vm187_vm1, %v195_v5, %v197_v28  ;;  %v224_v37 = vsel %vm213_vm2, %v221_v6, %v223_v29  ;;  %v262_v39 = vsel %vm239_vm3, %v257_v7, %v261_v34  ;;  %v267_v5 = vrot.slane %v2343_v3, 3  ;;  %v1869_v7 = vld [vmem:[%s2591_s2 + $0x200] sm:$0xff] }
  0x54   :  { %1334 = vmatpush.bf16.msra.mxu3 %v1864_v60  ;;  %1383 = vmatpush.bf16.msra.mxu0 %v1872_v0  ;;  %v1853_v0 = vld [vmem:[%s2591_s2 + $0x180] sm:$0xff]  ;;  %v268_v6 = vrot.slane %v2340_v2, 4 }
  0x56   :  { %1286 = vmatpush.bf16.msra.mxu2 %v1855_v16  ;;  %1237 = vmatpush.bf16.msra.mxu1 %v1847_v20  ;;  %v269_v16 = vor.u32 %v268_v6, %v267_v5 }
  0x58   :  { %1335 = vmatpush.bf16.msra.mxu3 %v1863_v19  ;;  %1384 = vmatpush.bf16.msra.mxu0 %v1871_v23 }
  0x5a   :  { %1287 = vmatpush.bf16.msra.mxu2 %v1854_v40  ;;  %1238 = vmatpush.bf16.msra.mxu1 %v1846_v49 }
  0x5c   :  { %1336 = vmatpush.bf16.msra.mxu3 %v1862_v44  ;;  %1385 = vmatpush.bf16.msra.mxu0 %v1870_v52 }
  0x5e   :  { %1288 = vmatpush.bf16.msra.mxu2 %v1853_v0  ;;  %1239 = vmatpush.bf16.msra.mxu1 %v1845_v4 }
  0x60   :  { %1337 = vmatpush.bf16.msra.mxu3 %v1861_v1  ;;  %1386 = vmatpush.bf16.msra.mxu0 %v1869_v7 }
  0x61   :  { %1054 = vmatmul.bf16.gmra.mxu1 %v138_v55  ;;  %1103 = vmatmul.bf16.gmra.mxu2 %v194_v56  ;;  %v199_v55 = vrot.slane %v2017_v12, 1  ;;  %v225_v56 = vrot.slane %v2017_v12, 3 }
  0x63   :  { %1152 = vmatmul.bf16.gmra.mxu3 %v220_v57  ;;  %1201 = vmatmul.bf16.gmra.mxu0 %v254_v58  ;;  %v265_v57 = vor.u32 %v264_v51, %v263_v50  ;;  %v162_v58 = vsel %vm110_vm0, %v157_v53, %v161_v54  ;;  %v200_v59 = vsel %vm187_vm1, %v197_v28, %v199_v55  ;;  %v2371_v28 = vld [vmem:[%s2592_s3] ss:$0 sm:$0xff]  ;;  %v203_v53 = vrot.slane %v2366_v27, 1 }
  0x64   :  { %v226_v60 = vsel %vm213_vm2, %v223_v29, %v225_v56  ;;  %v2374_v29 = vshll.u32 %v2366_v27, 16 }
  0x65   :  { %v266_v61 = vsel %vm239_vm3, %v261_v34, %v265_v57  ;;  %v270_v26 = vsel %vm239_vm3, %v265_v57, %v269_v16  ;;  %v271_v34 = vshrl.u32 %v2366_v27, 16 }
  0x66   :  { %v274_v50 = vrot.slane %v2374_v29, 4  ;;  %v177_v52 = vrot.slane %v2374_v29, 1 }
  0x67   :  { %v273_v49 = vrot.slane %v271_v34, 3 }
  0x71   :  { %1059 = vmatmul.bf16.gmra.mxu1 %v146_v8  ;;  %1108 = vmatmul.bf16.gmra.mxu2 %v196_v9  ;;  %v165_v8 = vor.u32 %v2315_v48, %v161_v54  ;;  %v169_v9 = vrot.slane %v2340_v2, 1  ;;  %v229_v54 = vrot.slane %v2366_v27, 3 }
  0x73   :  { %1157 = vmatmul.bf16.gmra.mxu3 %v222_v14  ;;  %1206 = vmatmul.bf16.gmra.mxu0 %v258_v15  ;;  %v201_v14 = vrot.slane %v2089_v32, 1  ;;  %v227_v15 = vrot.slane %v2089_v32, 3  ;;  %v170_v20 = vsel %vm110_vm0, %v165_v8, %v169_v9  ;;  %v173_v51 = vor.u32 %v2343_v3, %v169_v9 }
  0x75   :  { %v202_v23 = vsel %vm187_vm1, %v199_v55, %v201_v14  ;;  %v228_v25 = vsel %vm213_vm2, %v225_v56, %v227_v15  ;;  %v275_v55 = vor.u32 %v274_v50, %v273_v49  ;;  %v204_v0 = vsel %vm187_vm1, %v201_v14, %v203_v53 }
  0x76   :  { %v230_v4 = vsel %vm213_vm2, %v227_v15, %v229_v54  ;;  %v338_v15 = vrot.slane %v2122_v41, 6  ;;  %v313_v49 = vrot.slane %v2094_v33, 6  ;;  %v382_v41 = vrot.slane %v2022_v13, 7 }
  0x77   :  { %v276_v5 = vsel %vm239_vm3, %v269_v16, %v275_v55  ;;  %v339_v16 = vrot.slane %v2111_v38, 7  ;;  %v383_v38 = vrot.slane %v2094_v33, 7 }
  0x79   :  { %v340_v50 = vor.u32 %v339_v16, %v338_v15 }
  0x81   :  { %1064 = vmatmul.bf16.gmra.mxu1 %v154_v35  ;;  %1113 = vmatmul.bf16.gmra.mxu2 %v198_v36 }
  0x83   :  { %1162 = vmatmul.bf16.gmra.mxu3 %v224_v37  ;;  %1211 = vmatmul.bf16.gmra.mxu0 %v262_v39 }
  0x91   :  { %1069 = vmatmul.bf16.gmra.mxu1 %v162_v58  ;;  %1118 = vmatmul.bf16.gmra.mxu2 %v200_v59 }
  0x93   :  { %1167 = vmatmul.bf16.gmra.mxu3 %v226_v60  ;;  %1216 = vmatmul.bf16.gmra.mxu0 %v266_v61  ;;  %v178_v61 = vsel %vm110_vm0, %v173_v51, %v177_v52 }
  0x9e   :  { %v2357_v19 = vpop.f32.mrf.mxu1 }
  0xa0   :  { %v996_v24 = vpop.f32.mrf.mxu0 }
  0xa1   :  { %1074 = vmatmul.bf16.gmra.mxu1 %v170_v20  ;;  %1123 = vmatmul.bf16.gmra.mxu2 %v202_v23  ;;  %v341_v23 = vrot.slane %v2128_v43, 6 }
  0xa3   :  { %1172 = vmatmul.bf16.gmra.mxu3 %v228_v25  ;;  %1221 = vmatmul.bf16.gmra.mxu0 %v270_v26  ;;  %v342_v25 = vrot.slane %v2125_v42, 7  ;;  %v286_v26 = vrot.slane %v2022_v13, 4  ;;  %v997_v42 = vadd.f32 %v2371_v28, %v996_v24 }
  0xa4   :  { %v1016_v35 = vpop.f32.mrf.mxu2 }
  0xa5   :  { %v2378_v36 = vadd.f32 %v2371_v28, %v1016_v35  ;;  %v287_v35 = vrot.slane %v2094_v33, 4  ;;  %v343_v51 = vor.u32 %v342_v25, %v341_v23  ;;  %v345_v25 = vrot.slane %v2197_v18, 6 }
  0xa6   :  { %v1026_v37 = vpop.f32.mrf.mxu3  ;;  %v2383_v40 = vpop.f32.mrf.mxu1 }
  0xa7   :  { %v2381_v39 = vadd.f32 %v2371_v28, %v1026_v37  ;;  %v312_v37 = vrot.slane %v2022_v13, 6  ;;  %v344_v33 = vsel %vm337_vm6, %v340_v50, %v343_v51  ;;  %v289_v50 = vrot.slane %v2007_v10, 4 }
  0xa8   :  { %v998_v44 = vpop.f32.mrf.mxu0 }
  0xac   :  { %v1018_v56 = vpop.f32.mrf.mxu2 }
  0xad   :  { %v2393_v57 = vadd.f32 %v2371_v28, %v1018_v56  ;;  %v288_v56 = vsel %vm285_vm4, %v286_v26, %v287_v35  ;;  %v346_v26 = vrot.slane %v2194_v17, 7 }
  0xae   :  { %v1028_v58 = vpop.f32.mrf.mxu3  ;;  %v2398_v60 = vpop.f32.mrf.mxu1 }
  0xaf   :  { %v2396_v59 = vadd.f32 %v2371_v28, %v1028_v58  ;;  %v314_v58 = vsel %vm311_vm5, %v312_v37, %v313_v49 }
  0xb0   :  { %v1001_v1 = vpop.f32.mrf.mxu0 }
  0xb1   :  { %1079 = vmatmul.bf16.gmra.mxu1 %v178_v61  ;;  %1128 = vmatmul.bf16.gmra.mxu2 %v204_v0  ;;  %v384_v0 = vsel %vm381_vm7, %v382_v41, %v383_v38  ;;  %v315_v41 = vrot.slane %v2007_v10, 6 }
  0xb3   :  { %1177 = vmatmul.bf16.gmra.mxu3 %v230_v4  ;;  %1226 = vmatmul.bf16.gmra.mxu0 %v276_v5  ;;  %v999_v4 = vadd.f32 %v2371_v28, %v998_v44  ;;  %v316_v18 = vsel %vm311_vm5, %v313_v49, %v315_v41 }
  0xb4   :  { %v1021_v6 = vpop.f32.mrf.mxu2 }
  0xb5   :  { %v2405_v7 = vadd.f32 %v2371_v28, %v1021_v6 }
  0xb6   :  { %v1031_v8 = vpop.f32.mrf.mxu3  ;;  %v2410_v20 = vpop.f32.mrf.mxu1 }
  0xb7   :  { %v2408_v9 = vadd.f32 %v2371_v28, %v1031_v8 }
  0xb8   :  { %v2412_v14 = vpop.f32.mrf.mxu0 }
  0xbc   :  { %v1023_v52 = vpop.f32.mrf.mxu2 }
  0xbd   :  { %v2426_v43 = vadd.f32 %v2371_v28, %v1023_v52  ;;  %v347_v52 = vor.u32 %v346_v26, %v345_v25  ;;  %v317_v25 = vrot.slane %v2079_v30, 6 }
  0xbe   :  { %v1033_v53 = vpop.f32.mrf.mxu3  ;;  %v1045_v55 = vpop.f32.mrf.mxu1 }
  0xbf   :  { %v2429_v54 = vadd.f32 %v2371_v28, %v1033_v53  ;;  %v1046_v13 = vadd.f32 %v1045_v55, %v997_v42  ;;  %v385_v42 = vrot.slane %v2007_v10, 7  ;;  %v1002_v53 = vadd.f32 %v2371_v28, %v1001_v1 }
  0xc0   :  { %v1192_v61 = vpop.f32.mrf.mxu0 }
  0xc1   :  { %1240 = vmatmul.bf16.vlgmr.msra.gmra.mxu1 %v288_v56  ;;  %1289 = vmatmul.bf16.vlgmr.msra.gmra.mxu2 %v314_v58 }
  0xc3   :  { %1338 = vmatmul.bf16.vlgmr.msra.gmra.mxu3 %v344_v33  ;;  %1387 = vmatmul.bf16.vlgmr.msra.gmra.mxu0 %v384_v0  ;;  %v348_v0 = vsel %vm337_vm6, %v343_v51, %v347_v52  ;;  %v349_v51 = vrot.slane %v2234_v46, 6 }
  0xc4   :  { %v1094_v24 = vpop.f32.mrf.mxu2 }
  0xc5   :  { %v1095_v5 = vadd.f32 %v1094_v24, %v1046_v13  ;;  %v290_v13 = vsel %vm285_vm4, %v287_v35, %v289_v50  ;;  %v386_v24 = vsel %vm381_vm7, %v383_v38, %v385_v42  ;;  %v350_v38 = vrot.slane %v2231_v45, 7 }
  0xc6   :  { %v1143_v6 = vpop.f32.mrf.mxu3  ;;  %v1047_v8 = vpop.f32.mrf.mxu1  ;;  %v318_v45 = vsel %vm311_vm5, %v315_v41, %v317_v25 }
  0xc7   :  { %v1144_v15 = vadd.f32 %v1143_v6, %v1095_v5  ;;  %v1048_v16 = vadd.f32 %v1047_v8, %v999_v4  ;;  %v1004_v4 = vadd.f32 %v2371_v28, %v2412_v14  ;;  %v351_v26 = vor.u32 %v350_v38, %v349_v51 }
  0xc8   :  { %v1194_v23 = vpop.f32.mrf.mxu0  ;;  %v1012_v51 = vadd.f32 %v2371_v28, %v2398_v60 }
  0xc9   :  { %v2438_v37 = vadd.f32 %v1192_v61, %v1144_v15 }
  0xcc   :  { %v1096_v44 = vpop.f32.mrf.mxu2 }
  0xcd   :  { %v1097_v55 = vadd.f32 %v1096_v44, %v1048_v16  ;;  %v387_v44 = vrot.slane %v2079_v30, 7 }
  0xce   :  { %v1145_v56 = vpop.f32.mrf.mxu3  ;;  %v1050_v58 = vpop.f32.mrf.mxu1 }
  0xcf   :  { %v1146_v17 = vadd.f32 %v1145_v56, %v1097_v55  ;;  %v1051_v61 = vadd.f32 %v1050_v58, %v1002_v53  ;;  %v1007_v53 = vadd.f32 %v2371_v28, %v2357_v19 }
  0xd0   :  { %v1197_v33 = vpop.f32.mrf.mxu0 }
  0xd1   :  { %1245 = vmatmul.bf16.gmra.mxu1 %v290_v13  ;;  %1294 = vmatmul.bf16.gmra.mxu2 %v316_v18  ;;  %v2448_v10 = vadd.f32 %v1194_v23, %v1146_v17  ;;  %v291_v23 = vrot.slane %v2079_v30, 4 }
  0xd3   :  { %1343 = vmatmul.bf16.gmra.mxu3 %v348_v0  ;;  %1392 = vmatmul.bf16.gmra.mxu0 %v386_v24  ;;  %v292_v46 = vsel %vm285_vm4, %v289_v50, %v291_v23  ;;  %v1009_v0 = vadd.f32 %v2371_v28, %v2383_v40 }
  0xd4   :  { %v1099_v1 = vpop.f32.mrf.mxu2 }
  0xd5   :  { %v1100_v35 = vadd.f32 %v1099_v1, %v1051_v61  ;;  %v352_v61 = vsel %vm337_vm6, %v347_v52, %v351_v26  ;;  %v353_v52 = vrot.slane %v2262_v63, 6 }
  0xd6   :  { %v1148_v5 = vpop.f32.mrf.mxu3  ;;  %v1052_v49 = vpop.f32.mrf.mxu1 }
  0xd7   :  { %v1149_v6 = vadd.f32 %v1148_v5, %v1100_v35  ;;  %v1053_v8 = vadd.f32 %v1052_v49, %v1004_v4  ;;  %v293_v49 = vrot.slane %v2012_v11, 4 }
  0xd8   :  { %v1199_v15 = vpop.f32.mrf.mxu0 }
  0xd9   :  { %v2454_v16 = vadd.f32 %v1197_v33, %v1149_v6  ;;  %v388_v33 = vsel %vm381_vm7, %v385_v42, %v387_v44  ;;  %v354_v42 = vrot.slane %v2259_v62, 7  ;;  %v319_v6 = vrot.slane %v2012_v11, 6 }
  0xda   :  { %v294_v63 = vsel %vm285_vm4, %v291_v23, %v293_v49 }
  0xdb   :  { %v320_v62 = vsel %vm311_vm5, %v317_v25, %v319_v6 }
  0xdc   :  { %v1101_v14 = vpop.f32.mrf.mxu2 }
  0xdd   :  { %v1102_v55 = vadd.f32 %v1101_v14, %v1053_v8  ;;  %v355_v8 = vor.u32 %v354_v42, %v353_v52 }
  0xde   :  { %v1150_v56 = vpop.f32.mrf.mxu3  ;;  %v1055_v58 = vpop.f32.mrf.mxu1 }
  0xdf   :  { %v1151_v13 = vadd.f32 %v1150_v56, %v1102_v55  ;;  %v1056_v18 = vadd.f32 %v1055_v58, %v1007_v53 }
  0xe0   :  { %v1202_v17 = vpop.f32.mrf.mxu0 }
  0xe1   :  { %1250 = vmatmul.bf16.gmra.mxu1 %v292_v46  ;;  %1299 = vmatmul.bf16.gmra.mxu2 %v318_v45  ;;  %v2465_v30 = vadd.f32 %v1199_v15, %v1151_v13  ;;  %v389_v15 = vrot.slane %v2012_v11, 7  ;;  %v356_v46 = vsel %vm337_vm6, %v351_v26, %v355_v8  ;;  %v1014_v13 = vadd.f32 %v2371_v28, %v2410_v20 }
  0xe2   :  { %v357_v26 = vrot.slane %v2290_v22, 6 }
  0xe3   :  { %1348 = vmatmul.bf16.gmra.mxu3 %v352_v61  ;;  %1397 = vmatmul.bf16.gmra.mxu0 %v388_v33  ;;  %v390_v45 = vsel %vm381_vm7, %v387_v44, %v389_v15  ;;  %v358_v44 = vrot.slane %v2287_v21, 7 }
  0xe4   :  { %v1104_v19 = vpop.f32.mrf.mxu2 }
  0xe5   :  { %v1105_v50 = vadd.f32 %v1104_v19, %v1056_v18 }
  0xe6   :  { %v1153_v24 = vpop.f32.mrf.mxu3  ;;  %v1057_v41 = vpop.f32.mrf.mxu1 }
  0xe7   :  { %v1154_v1 = vadd.f32 %v1153_v24, %v1105_v50  ;;  %v1058_v4 = vadd.f32 %v1057_v41, %v1009_v0  ;;  %v295_v0 = vrot.slane %v2084_v31, 4  ;;  %v321_v50 = vrot.slane %v2084_v31, 6 }
  0xe8   :  { %v1204_v35 = vpop.f32.mrf.mxu0  ;;  %v359_v24 = vor.u32 %v358_v44, %v357_v26  ;;  %v391_v41 = vrot.slane %v2084_v31, 7 }
  0xe9   :  { %v2471_v5 = vadd.f32 %v1202_v17, %v1154_v1  ;;  %v322_v52 = vsel %vm311_vm5, %v319_v6, %v321_v50 }
  0xec   :  { %v1106_v40 = vpop.f32.mrf.mxu2 }
  0xed   :  { %v1107_v38 = vadd.f32 %v1106_v40, %v1058_v4  ;;  %v360_v40 = vsel %vm337_vm6, %v355_v8, %v359_v24  ;;  %v362_v8 = vrot.slane %v2312_v47, 7 }
  0xee   :  { %v1155_v14 = vpop.f32.mrf.mxu3  ;;  %v1060_v53 = vpop.f32.mrf.mxu1 }
  0xef   :  { %v1156_v55 = vadd.f32 %v1155_v14, %v1107_v38  ;;  %v1061_v56 = vadd.f32 %v1060_v53, %v1012_v51  ;;  %v392_v51 = vsel %vm381_vm7, %v389_v15, %v391_v41  ;;  %v297_v15 = vrot.slane %v2017_v12, 4 }
  0xf0   :  { %v1207_v58 = vpop.f32.mrf.mxu0 }
  0xf1   :  { %1255 = vmatmul.bf16.gmra.mxu1 %v294_v63  ;;  %1304 = vmatmul.bf16.gmra.mxu2 %v320_v62  ;;  %v2482_v11 = vadd.f32 %v1204_v35, %v1156_v55  ;;  %v296_v35 = vsel %vm285_vm4, %v293_v49, %v295_v0 }
  0xf3   :  { %1353 = vmatmul.bf16.gmra.mxu3 %v356_v46  ;;  %1402 = vmatmul.bf16.gmra.mxu0 %v390_v45  ;;  %v393_v46 = vrot.slane %v2017_v12, 7 }
  0xf4   :  { %v1109_v60 = vpop.f32.mrf.mxu2 }
  0xf5   :  { %v1110_v23 = vadd.f32 %v1109_v60, %v1061_v56  ;;  %v323_v56 = vrot.slane %v2017_v12, 6 }
  0xf6   :  { %v1158_v18 = vpop.f32.mrf.mxu3  ;;  %v1062_v25 = vpop.f32.mrf.mxu1 }
  0xf7   :  { %v1159_v17 = vadd.f32 %v1158_v18, %v1110_v23  ;;  %v1063_v61 = vadd.f32 %v1062_v25, %v1014_v13  ;;  %v324_v18 = vsel %vm311_vm5, %v321_v50, %v323_v56 }
  0xf8   :  { %v1209_v33 = vpop.f32.mrf.mxu0 }
  0xf9   :  { %v2488_v19 = vadd.f32 %v1207_v58, %v1159_v17 }
  0xfc   :  { %v1111_v28 = vpop.f32.mrf.mxu2 }
  0xfd   :  { %v1112_v20 = vadd.f32 %v1111_v28, %v1063_v61  ;;  %v394_v61 = vsel %vm381_vm7, %v391_v41, %v393_v46  ;;  %v299_v41 = vrot.slane %v2089_v32, 4 }
  0xfe   :  { %v1160_v1 = vpop.f32.mrf.mxu3  ;;  %v1065_v4 = vpop.f32.mrf.mxu1 }
  0xff   :  { %v1161_v22 = vadd.f32 %v1160_v1, %v1112_v20  ;;  %v1066_v21 = vadd.f32 %v1065_v4, %v2378_v36  ;;  %v361_v36 = vrot.slane %v2315_v48, 6  ;;  %v325_v4 = vrot.slane %v2089_v32, 6 }
 0x100   :  { %v1212_v42 = vpop.f32.mrf.mxu0 }
 0x101   :  { %1260 = vmatmul.bf16.gmra.mxu1 %v296_v35  ;;  %1309 = vmatmul.bf16.gmra.mxu2 %v322_v52  ;;  %v2498_v38 = vadd.f32 %v1209_v33, %v1161_v22  ;;  %v363_v58 = vor.u32 %v362_v8, %v361_v36  ;;  %v395_v52 = vrot.slane %v2089_v32, 7 }
 0x103   :  { %1358 = vmatmul.bf16.gmra.mxu3 %v360_v40  ;;  %1407 = vmatmul.bf16.gmra.mxu0 %v392_v51  ;;  %v364_v17 = vsel %vm337_vm6, %v359_v24, %v363_v58  ;;  %v366_v24 = vrot.slane %v2340_v2, 7  ;;  %v326_v51 = vsel %vm311_vm5, %v323_v56, %v325_v4  ;;  %v370_v56 = vrot.slane %v2374_v29, 7 }
 0x104   :  { %v1114_v31 = vpop.f32.mrf.mxu2 }
 0x105   :  { %v1115_v14 = vadd.f32 %v1114_v31, %v1066_v21 }
 0x106   :  { %v1163_v53 = vpop.f32.mrf.mxu3  ;;  %v1067_v49 = vpop.f32.mrf.mxu1 }
 0x107   :  { %v1164_v63 = vadd.f32 %v1163_v53, %v1115_v14  ;;  %v1068_v6 = vadd.f32 %v1067_v49, %v2393_v57  ;;  %v298_v57 = vsel %vm285_vm4, %v295_v0, %v297_v15  ;;  %v396_v53 = vsel %vm381_vm7, %v393_v46, %v395_v52 }
 0x108   :  { %v1214_v62 = vpop.f32.mrf.mxu0  ;;  %v301_v46 = vrot.slane %v2366_v27, 4 }
 0x109   :  { %v2503_v55 = vadd.f32 %v1212_v42, %v1164_v63 }
 0x10c   :  { %v1116_v45 = vpop.f32.mrf.mxu2 }
 0x10d   :  { %v1117_v60 = vadd.f32 %v1116_v45, %v1068_v6  ;;  %v327_v45 = vrot.slane %v2366_v27, 6 }
 0x10e   :  { %v1165_v13 = vpop.f32.mrf.mxu3  ;;  %v1070_v23 = vpop.f32.mrf.mxu1 }
 0x10f   :  { %v1166_v48 = vadd.f32 %v1165_v13, %v1117_v60  ;;  %v1071_v47 = vadd.f32 %v1070_v23, %v2405_v7  ;;  %v365_v7 = vrot.slane %v2343_v3, 6  ;;  %v397_v13 = vrot.slane %v2366_v27, 7 }
 0x110   :  { %v1217_v25 = vpop.f32.mrf.mxu0 }
 0x111   :  { %1265 = vmatmul.bf16.gmra.mxu1 %v298_v57  ;;  %1314 = vmatmul.bf16.gmra.mxu2 %v324_v18  ;;  %v2513_v33 = vadd.f32 %v1214_v62, %v1166_v48  ;;  %v367_v35 = vor.u32 %v366_v24, %v365_v7 }
 0x113   :  { %1363 = vmatmul.bf16.gmra.mxu3 %v364_v17  ;;  %1412 = vmatmul.bf16.gmra.mxu0 %v394_v61  ;;  %v368_v14 = vsel %vm337_vm6, %v363_v58, %v367_v35  ;;  %v398_v61 = vsel %vm381_vm7, %v395_v52, %v397_v13 }
 0x114   :  { %v1119_v12 = vpop.f32.mrf.mxu2 }
 0x115   :  { %v1120_v26 = vadd.f32 %v1119_v12, %v1071_v47  ;;  %v328_v47 = vsel %vm311_vm5, %v325_v4, %v327_v45 }
 0x116   :  { %v1168_v44 = vpop.f32.mrf.mxu3  ;;  %v1072_v0 = vpop.f32.mrf.mxu1 }
 0x117   :  { %v1169_v28 = vadd.f32 %v1168_v44, %v1120_v26  ;;  %v1073_v50 = vadd.f32 %v1072_v0, %v2426_v43  ;;  %v300_v43 = vsel %vm285_vm4, %v297_v15, %v299_v41 }
 0x118   :  { %v1219_v20 = vpop.f32.mrf.mxu0 }
 0x119   :  { %v2518_v1 = vadd.f32 %v1217_v25, %v1169_v28 }
 0x11c   :  { %v1121_v22 = vpop.f32.mrf.mxu2 }
 0x11d   :  { %v1122_v21 = vadd.f32 %v1121_v22, %v1073_v50 }
 0x11e   :  { %v1170_v42 = vpop.f32.mrf.mxu3  ;;  %v1075_v40 = vpop.f32.mrf.mxu1 }
 0x11f   :  { %v1171_v3 = vadd.f32 %v1170_v42, %v1122_v21  ;;  %v1076_v2 = vadd.f32 %v1075_v40, %v2381_v39  ;;  %v369_v39 = vrot.slane %v271_v34, 6 }
 0x120   :  { %v1222_v31 = vpop.f32.mrf.mxu0 }
 0x121   :  { %1270 = vmatmul.bf16.gmra.mxu1 %v300_v43  ;;  %1319 = vmatmul.bf16.gmra.mxu2 %v326_v51  ;;  %v2528_v49 = vadd.f32 %v1219_v20, %v1171_v3  ;;  %v371_v60 = vor.u32 %v370_v56, %v369_v39 }
 0x123   :  { %1368 = vmatmul.bf16.gmra.mxu3 %v368_v14  ;;  %1417 = vmatmul.bf16.gmra.mxu0 %v396_v53  ;;  %v372_v17 = vsel %vm337_vm6, %v367_v35, %v371_v60 }
 0x124   :  { %v1124_v32 = vpop.f32.mrf.mxu2 }
 0x125   :  { %v1125_v63 = vadd.f32 %v1124_v32, %v1076_v2 }
 0x126   :  { %v1173_v6 = vpop.f32.mrf.mxu3  ;;  %v1077_v62 = vpop.f32.mrf.mxu1 }
 0x127   :  { %v1174_v36 = vadd.f32 %v1173_v6, %v1125_v63  ;;  %v1078_v8 = vadd.f32 %v1077_v62, %v2396_v59  ;;  %v302_v59 = vsel %vm285_vm4, %v299_v41, %v301_v46 }
 0x128   :  { %v1224_v15 = vpop.f32.mrf.mxu0 }
 0x129   :  { %v2534_v58 = vadd.f32 %v1222_v31, %v1174_v36 }
 0x12c   :  { %v1126_v23 = vpop.f32.mrf.mxu2 }
 0x12d   :  { %v1127_v57 = vadd.f32 %v1126_v23, %v1078_v8 }
 0x12e   :  { %v1175_v18 = vpop.f32.mrf.mxu3  ;;  %v1080_v48 = vpop.f32.mrf.mxu1 }
 0x12f   :  { %v1176_v34 = vadd.f32 %v1175_v18, %v1127_v57  ;;  %v1081_v29 = vadd.f32 %v1080_v48, %v2408_v9 }
 0x130   :  { %v1227_v25 = vpop.f32.mrf.mxu0 }
 0x131   :  { %1275 = vmatmul.bf16.gmra.mxu1 %v302_v59  ;;  %1324 = vmatmul.bf16.gmra.mxu2 %v328_v47  ;;  %v2544_v12 = vadd.f32 %v1224_v15, %v1176_v34 }
 0x133   :  { %1373 = vmatmul.bf16.gmra.mxu3 %v372_v17  ;;  %1422 = vmatmul.bf16.gmra.mxu0 %v398_v61 }
 0x134   :  { %v1129_v27 = vpop.f32.mrf.mxu2 }
 0x135   :  { %v1130_v26 = vadd.f32 %v1129_v27, %v1081_v29 }
 0x136   :  { %v1178_v44 = vpop.f32.mrf.mxu3  ;;  %v1082_v0 = vpop.f32.mrf.mxu1 }
 0x137   :  { %v1179_v28 = vadd.f32 %v1178_v44, %v1130_v26  ;;  %v1083_v50 = vadd.f32 %v1082_v0, %v2429_v54 }
 0x138   :  { %v1229_v20 = vpop.f32.mrf.mxu0 }
 0x139   :  { %v2547_v9 = vadd.f32 %v1227_v25, %v1179_v28 }
 0x13c   :  { %v1131_v7 = vpop.f32.mrf.mxu2 }
 0x13d   :  { %v1132_v24 = vadd.f32 %v1131_v7, %v1083_v50 }
 0x13e   :  { %v1180_v41 = vpop.f32.mrf.mxu3  ;;  %v1241_v4 = vpop.f32.mrf.mxu1 }
 0x13f   :  { %v1181_v35 = vadd.f32 %v1180_v41, %v1132_v24  ;;  %v1242_v43 = vadd.f32 %v1241_v4, %v2438_v37 }
 0x140   :  { %v1388_v52 = vpop.f32.mrf.mxu0 }
 0x141   :  { %v2549_v22 = vadd.f32 %v1229_v20, %v1181_v35 }
 0x144   :  { %v1290_v21 = vpop.f32.mrf.mxu2 }
 0x145   :  { %v1291_v3 = vadd.f32 %v1290_v21, %v1242_v43 }
 0x146   :  { %v1339_v42 = vpop.f32.mrf.mxu3  ;;  %v1243_v40 = vpop.f32.mrf.mxu1 }
 0x147   :  { %v1244_v54 = vadd.f32 %v1243_v40, %v2448_v10  ;;  %v1340_v31 = vadd.f32 %v1339_v42, %v1291_v3 }
 0x148   :  { %v1390_v51 = vpop.f32.mrf.mxu0 }
 0x149   :  { %v1389_v62 = vadd.f32 %v1388_v52, %v1340_v31 }
 0x14c   :  { %v1292_v2 = vpop.f32.mrf.mxu2 }
 0x14d   :  { %v1293_v14 = vadd.f32 %v1292_v2, %v1244_v54 }
 0x14e   :  { %v1341_v53 = vpop.f32.mrf.mxu3  ;;  %v1246_v32 = vpop.f32.mrf.mxu1 }
 0x14f   :  { %v1342_v63 = vadd.f32 %v1341_v53, %v1293_v14  ;;  %v1247_v56 = vadd.f32 %v1246_v32, %v2454_v16 }
 0x150   :  { %v1393_v6 = vpop.f32.mrf.mxu0 }
 0x151   :  { %v1391_v36 = vadd.f32 %v1390_v51, %v1342_v63 }
 0x153   :  { %v1880_v8 = vpack.c.bf16 %v1391_v36, %v1389_v62 }
 0x154   :  { %v1295_v15 = vpop.f32.mrf.mxu2 }
 0x155   :  { %1881 = vst [vmem:[%s2595_s4] sm:$0xff] %v1880_v8   ;;  %v1296_v46 = vadd.f32 %v1295_v15, %v1247_v56 }
 0x156   :  { %v1344_v37 = vpop.f32.mrf.mxu3  ;;  %v1248_v39 = vpop.f32.mrf.mxu1 }
 0x157   :  { %v1249_v45 = vadd.f32 %v1248_v39, %v2465_v30  ;;  %v1345_v13 = vadd.f32 %v1344_v37, %v1296_v46 }
 0x158   :  { %v1395_v10 = vpop.f32.mrf.mxu0 }
 0x159   :  { %v1394_v47 = vadd.f32 %v1393_v6, %v1345_v13 }
 0x15c   :  { %v1297_v60 = vpop.f32.mrf.mxu2 }
 0x15d   :  { %v1298_v23 = vadd.f32 %v1297_v60, %v1249_v45 }
 0x15e   :  { %v1346_v57 = vpop.f32.mrf.mxu3  ;;  %v1251_v18 = vpop.f32.mrf.mxu1 }
 0x15f   :  { %v1347_v48 = vadd.f32 %v1346_v57, %v1298_v23  ;;  %v1252_v61 = vadd.f32 %v1251_v18, %v2471_v5 }
 0x160   :  { %v1398_v59 = vpop.f32.mrf.mxu0 }
 0x161   :  { %v1396_v34 = vadd.f32 %v1395_v10, %v1347_v48 }
 0x163   :  { %v1885_v29 = vpack.c.bf16 %v1396_v34, %v1394_v47 }
 0x164   :  { %v1300_v25 = vpop.f32.mrf.mxu2 }
 0x165   :  { %1917 = vst [vmem:[%s2595_s4 + $0x8] sm:$0xff] %v1885_v29   ;;  %v1301_v27 = vadd.f32 %v1300_v25, %v1252_v61 }
 0x166   :  { %v1349_v16 = vpop.f32.mrf.mxu3  ;;  %v1253_v17 = vpop.f32.mrf.mxu1 }
 0x167   :  { %v1254_v26 = vadd.f32 %v1253_v17, %v2482_v11  ;;  %v1350_v0 = vadd.f32 %v1349_v16, %v1301_v27 }
 0x168   :  { %v1400_v30 = vpop.f32.mrf.mxu0 }
 0x169   :  { %v1399_v41 = vadd.f32 %v1398_v59, %v1350_v0 }
 0x16c   :  { %v1302_v44 = vpop.f32.mrf.mxu2 }
 0x16d   :  { %v1303_v28 = vadd.f32 %v1302_v44, %v1254_v26 }
 0x16e   :  { %v1351_v50 = vpop.f32.mrf.mxu3  ;;  %v1256_v20 = vpop.f32.mrf.mxu1 }
 0x16f   :  { %v1352_v7 = vadd.f32 %v1351_v50, %v1303_v28  ;;  %v1257_v42 = vadd.f32 %v1256_v20, %v2488_v19 }
 0x170   :  { %v1403_v24 = vpop.f32.mrf.mxu0 }
 0x171   :  { %v1401_v4 = vadd.f32 %v1400_v30, %v1352_v7 }
 0x173   :  { %v1890_v35 = vpack.c.bf16 %v1401_v4, %v1399_v41 }
 0x174   :  { %v1305_v52 = vpop.f32.mrf.mxu2 }
 0x175   :  { %1918 = vst [vmem:[%s2595_s4 + $0x10] sm:$0xff] %v1890_v35   ;;  %v1306_v40 = vadd.f32 %v1305_v52, %v1257_v42 }
 0x176   :  { %v1354_v5 = vpop.f32.mrf.mxu3  ;;  %v1258_v21 = vpop.f32.mrf.mxu1 }
 0x177   :  { %v1259_v43 = vadd.f32 %v1258_v21, %v2498_v38  ;;  %v1355_v3 = vadd.f32 %v1354_v5, %v1306_v40 }
 0x178   :  { %v1405_v11 = vpop.f32.mrf.mxu0 }
 0x179   :  { %v1404_v32 = vadd.f32 %v1403_v24, %v1355_v3 }
 0x17c   :  { %v1307_v51 = vpop.f32.mrf.mxu2 }
 0x17d   :  { %v1308_v54 = vadd.f32 %v1307_v51, %v1259_v43 }
 0x17e   :  { %v1356_v2 = vpop.f32.mrf.mxu3  ;;  %v1261_v31 = vpop.f32.mrf.mxu1 }
 0x17f   :  { %v1357_v14 = vadd.f32 %v1356_v2, %v1308_v54  ;;  %v1262_v8 = vadd.f32 %v1261_v31, %v2503_v55 }
 0x180   :  { %v1408_v53 = vpop.f32.mrf.mxu0 }
 0x181   :  { %v1406_v63 = vadd.f32 %v1405_v11, %v1357_v14 }
 0x183   :  { %v1895_v6 = vpack.c.bf16 %v1406_v63, %v1404_v32 }
 0x184   :  { %v1310_v62 = vpop.f32.mrf.mxu2 }
 0x185   :  { %1919 = vst [vmem:[%s2595_s4 + $0x18] sm:$0xff] %v1895_v6   ;;  %v1311_v15 = vadd.f32 %v1310_v62, %v1262_v8 }
 0x186   :  { %v1359_v19 = vpop.f32.mrf.mxu3  ;;  %v1263_v36 = vpop.f32.mrf.mxu1 }
 0x187   :  { %v1264_v37 = vadd.f32 %v1263_v36, %v2513_v33  ;;  %v1360_v56 = vadd.f32 %v1359_v19, %v1311_v15 }
 0x188   :  { %v1410_v38 = vpop.f32.mrf.mxu0 }
 0x189   :  { %v1409_v23 = vadd.f32 %v1408_v53, %v1360_v56 }
 0x18c   :  { %v1312_v39 = vpop.f32.mrf.mxu2 }
 0x18d   :  { %v1313_v10 = vadd.f32 %v1312_v39, %v1264_v37 }
 0x18e   :  { %v1361_v46 = vpop.f32.mrf.mxu3  ;;  %v1266_v45 = vpop.f32.mrf.mxu1 }
 0x18f   :  { %v1362_v60 = vadd.f32 %v1361_v46, %v1313_v10  ;;  %v1267_v47 = vadd.f32 %v1266_v45, %v2518_v1 }
 0x190   :  { %v1413_v13 = vpop.f32.mrf.mxu0 }
 0x191   :  { %v1411_v57 = vadd.f32 %v1410_v38, %v1362_v60 }
 0x193   :  { %v1900_v18 = vpack.c.bf16 %v1411_v57, %v1409_v23 }
 0x194   :  { %v1315_v48 = vpop.f32.mrf.mxu2 }
 0x195   :  { %1920 = vst [vmem:[%s2595_s4 + $0x20] sm:$0xff] %v1900_v18   ;;  %v1316_v34 = vadd.f32 %v1315_v48, %v1267_v47 }
 0x196   :  { %v1364_v55 = vpop.f32.mrf.mxu3  ;;  %v1268_v59 = vpop.f32.mrf.mxu1 }
 0x197   :  { %v1269_v29 = vadd.f32 %v1268_v59, %v2528_v49  ;;  %v1365_v16 = vadd.f32 %v1364_v55, %v1316_v34 }
 0x198   :  { %v1415_v33 = vpop.f32.mrf.mxu0 }
 0x199   :  { %v1414_v26 = vadd.f32 %v1413_v13, %v1365_v16 }
 0x19c   :  { %v1317_v25 = vpop.f32.mrf.mxu2 }
 0x19d   :  { %v1318_v17 = vadd.f32 %v1317_v25, %v1269_v29 }
 0x19e   :  { %v1366_v61 = vpop.f32.mrf.mxu3  ;;  %v1271_v30 = vpop.f32.mrf.mxu1 }
 0x19f   :  { %v1367_v27 = vadd.f32 %v1366_v61, %v1318_v17  ;;  %v1272_v7 = vadd.f32 %v1271_v30, %v2534_v58 }
 0x1a0   :  { %v1418_v0 = vpop.f32.mrf.mxu0 }
 0x1a1   :  { %v1416_v44 = vadd.f32 %v1415_v33, %v1367_v27 }
 0x1a3   :  { %v1905_v28 = vpack.c.bf16 %v1416_v44, %v1414_v26 }
 0x1a4   :  { %v1320_v50 = vpop.f32.mrf.mxu2 }
 0x1a5   :  { %1921 = vst [vmem:[%s2595_s4 + $0x28] sm:$0xff] %v1905_v28   ;;  %v1321_v49 = vadd.f32 %v1320_v50, %v1272_v7 }
 0x1a6   :  { %v1369_v1 = vpop.f32.mrf.mxu3  ;;  %v1273_v20 = vpop.f32.mrf.mxu1 }
 0x1a7   :  { %v1274_v24 = vadd.f32 %v1273_v20, %v2544_v12  ;;  %v1370_v35 = vadd.f32 %v1369_v1, %v1321_v49 }
 0x1a8   :  { %v1420_v41 = vpop.f32.mrf.mxu0 }
 0x1a9   :  { %v1419_v11 = vadd.f32 %v1418_v0, %v1370_v35 }
 0x1ac   :  { %v1322_v4 = vpop.f32.mrf.mxu2 }
 0x1ad   :  { %v1323_v52 = vadd.f32 %v1322_v4, %v1274_v24 }
 0x1ae   :  { %v1371_v5 = vpop.f32.mrf.mxu3  ;;  %v1276_v21 = vpop.f32.mrf.mxu1 }
 0x1af   :  { %v1372_v42 = vadd.f32 %v1371_v5, %v1323_v52  ;;  %v1277_v54 = vadd.f32 %v1276_v21, %v2547_v9 }
 0x1b0   :  { %v1423_v58 = vpop.f32.mrf.mxu0 }
 0x1b1   :  { %v1421_v40 = vadd.f32 %v1420_v41, %v1372_v42 }
 0x1b3   :  { %v1910_v43 = vpack.c.bf16 %v1421_v40, %v1419_v11 }
 0x1b4   :  { %v1325_v51 = vpop.f32.mrf.mxu2 }
 0x1b5   :  { %1922 = vst [vmem:[%s2595_s4 + $0x30] sm:$0xff] %v1910_v43   ;;  %v1326_v2 = vadd.f32 %v1325_v51, %v1277_v54 }
 0x1b6   :  { %v1374_v3 = vpop.f32.mrf.mxu3  ;;  %v1278_v12 = vpop.f32.mrf.mxu1 }
 0x1b7   :  { %v1279_v31 = vadd.f32 %v1278_v12, %v2549_v22  ;;  %v1375_v53 = vadd.f32 %v1374_v3, %v1326_v2 }
 0x1b8   :  { %v1425_v62 = vpop.f32.mrf.mxu0 }
 0x1b9   :  { %v1424_v19 = vadd.f32 %v1423_v58, %v1375_v53 }
 0x1bc   :  { %v1327_v14 = vpop.f32.mrf.mxu2 }
 0x1bd   :  { %v1328_v32 = vadd.f32 %v1327_v14, %v1279_v31 }
 0x1be   :  { %v1376_v63 = vpop.f32.mrf.mxu3 }
 0x1bf   :  { %v1377_v6 = vadd.f32 %v1376_v63, %v1328_v32 }
 0x1c1   :  { %v1426_v36 = vadd.f32 %v1425_v62, %v1377_v6 }
 0x1c3   :  { %v1915_v8 = vpack.c.bf16 %v1426_v36, %v1424_v19 }
 0x1c5   :  { %1923 = vst [vmem:[%s2595_s4 + $0x38] sm:$0xff] %v1915_v8  }

// kernel: vqvae_forward.20
= control target key start
LH: loop header
LB: loop body
LE: loop exit
PB: predicated region body
PF: predicated region fallthrough
CT: control target
= control target key end

     0   :  { %vm104_vm0 = vcmask 1043456   ;;  %vm79_vm1 = vcmask 64512   ;;  %s508_s1 = inlined_call_operand.vmem [shape: bf16[8,128], index: 1, kind: input, shape index: {}]   ;;  %s509_s0 = inlined_call_operand.vmem [shape: bf16[128,8], index: 0, kind: input, shape index: {}]   ;;  %s510_s2 = inlined_call_operand.vmem [shape: f32[1,128], index: 2, kind: input, shape index: {}]   ;;  %s511_s3 = inlined_call_operand.vmem [shape: bf16[128,128], index: 3, kind: input, shape index: {}]   ;;  %s512_s4 = inlined_call_operand.vmem [shape: bf16[128,128], index: 4, kind: output, shape index: {}]  }
   0x1   :  { %v34_v0 = vld [vmem:[%s508_s1] sm:$0xf]  ;;  %v283_v3 = vld [vmem:[%s509_s0 + $0x10] sm:$0xff]  ;;  %v282_v6 = vld [vmem:[%s509_s0 + $0x8] sm:$0xff] }
   0x2   :  { %v106_v1 = vsel %vm104_vm0, %v34_v0, 0  ;;  %v281_v2 = vld [vmem:[%s509_s0] sm:$0xff]  ;;  %v287_v5 = vld [vmem:[%s509_s0 + $0x30] sm:$0xff]  ;;  %v284_v7 = vld [vmem:[%s509_s0 + $0x18] sm:$0xff] }
   0x3   :  { %115 = vmatpush.bf16.msra.mxu0 %v106_v1  ;;  %375 = vmatpush.bf16.msra.mxu1 %v106_v1  ;;  %v285_v4 = vld [vmem:[%s509_s0 + $0x20] sm:$0xff]  ;;  %v286_v8 = vld [vmem:[%s509_s0 + $0x28] sm:$0xff]  ;;  %v288_v9 = vld [vmem:[%s509_s0 + $0x38] sm:$0xff] }
   0x4   :  { %376 = vmatpush.bf16.msra.mxu2 %v106_v1  ;;  %377 = vmatpush.bf16.msra.mxu3 %v106_v1  ;;  %v442_v12 = vld [vmem:[%s510_s2] ss:$0 sm:$0xff]  ;;  %v362_v14 = vld [vmem:[%s511_s3 + $0x10] sm:$0xff]   ;;  %v361_v51 = vld [vmem:[%s511_s3 + $0x8] sm:$0xff]  }
   0x5   :  { %v290_v13 = vld [vmem:[%s511_s3] sm:$0xff]   ;;  %v299_v16 = vunpack.c.l.bf16 %v362_v14  ;;  %v300_v22 = vunpack.c.h.bf16 %v362_v14  ;;  %v366_v28 = vld [vmem:[%s511_s3 + $0x30] sm:$0xff]   ;;  %v363_v52 = vld [vmem:[%s511_s3 + $0x18] sm:$0xff]   ;;  %v295_v55 = vunpack.c.l.bf16 %v361_v51  ;;  %v296_v61 = vunpack.c.h.bf16 %v361_v51 }
   0x6   :  { %273 = vmatmul.msk.bf16.vlgmr.msra.gmra.mxu0 %vm79_vm1, %v281_v2  ;;  %275 = vmatmul.msk.bf16.vlgmr.msra.gmra.mxu1 %vm79_vm1, %v283_v3  ;;  %v291_v15 = vunpack.c.l.bf16 %v290_v13  ;;  %v292_v21 = vunpack.c.h.bf16 %v290_v13  ;;  %v364_v27 = vld [vmem:[%s511_s3 + $0x20] sm:$0xff]   ;;  %v315_v34 = vunpack.c.l.bf16 %v366_v28  ;;  %v316_v40 = vunpack.c.h.bf16 %v366_v28  ;;  %v365_v3 = vld [vmem:[%s511_s3 + $0x28] sm:$0xff]  }
   0x7   :  { %277 = vmatmul.msk.bf16.vlgmr.msra.gmra.mxu2 %vm79_vm1, %v285_v4  ;;  %279 = vmatmul.msk.bf16.vlgmr.msra.gmra.mxu3 %vm79_vm1, %v287_v5  ;;  %v307_v33 = vunpack.c.l.bf16 %v364_v27  ;;  %v308_v39 = vunpack.c.h.bf16 %v364_v27  ;;  %v303_v56 = vunpack.c.l.bf16 %v363_v52  ;;  %v304_v62 = vunpack.c.h.bf16 %v363_v52  ;;  %v367_v4 = vld [vmem:[%s511_s3 + $0x38] sm:$0xff]  }
  0x16   :  { %274 = vmatmul.msk.bf16.gmra.mxu0 %vm79_vm1, %v282_v6  ;;  %276 = vmatmul.msk.bf16.gmra.mxu1 %vm79_vm1, %v284_v7 }
  0x17   :  { %278 = vmatmul.msk.bf16.gmra.mxu2 %vm79_vm1, %v286_v8  ;;  %280 = vmatmul.msk.bf16.gmra.mxu3 %vm79_vm1, %v288_v9  ;;  %v311_v9 = vunpack.c.l.bf16 %v365_v3 }
  0x83   :  { %v117_v10 = vpop.f32.mrf.mxu0  ;;  %v127_v11 = vpop.f32.mrf.mxu1 }
  0x84   :  { %v118_v17 = vadd.f32 %v442_v12, %v117_v10  ;;  %v128_v18 = vadd.f32 %v442_v12, %v127_v11  ;;  %v319_v10 = vunpack.c.l.bf16 %v367_v4 }
  0x86   :  { %v189_v29 = vadd.f32 %v291_v15, %v118_v17  ;;  %v193_v30 = vadd.f32 %v299_v16, %v128_v18  ;;  %v312_v16 = vunpack.c.h.bf16 %v365_v3  ;;  %v320_v17 = vunpack.c.h.bf16 %v367_v4 }
  0x8a   :  { %v137_v19 = vpop.f32.mrf.mxu2  ;;  %v147_v20 = vpop.f32.mrf.mxu3 }
  0x8b   :  { %v119_v23 = vpop.f32.mrf.mxu0  ;;  %v129_v24 = vpop.f32.mrf.mxu1  ;;  %v138_v37 = vadd.f32 %v442_v12, %v137_v19  ;;  %v148_v38 = vadd.f32 %v442_v12, %v147_v20 }
  0x8c   :  { %v120_v25 = vadd.f32 %v442_v12, %v119_v23  ;;  %v130_v26 = vadd.f32 %v442_v12, %v129_v24 }
  0x8d   :  { %v197_v47 = vadd.f32 %v307_v33, %v138_v37  ;;  %v201_v48 = vadd.f32 %v315_v34, %v148_v38 }
  0x8e   :  { %v190_v31 = vadd.f32 %v292_v21, %v120_v25  ;;  %v194_v32 = vadd.f32 %v300_v22, %v130_v26 }
  0x90   :  { %v324_v35 = vpack.c.bf16 %v190_v31, %v189_v29  ;;  %v334_v36 = vpack.c.bf16 %v194_v32, %v193_v30 }
  0x92   :  { %325 = vst [vmem:[%s512_s4] sm:$0xff] %v324_v35   ;;  %v139_v41 = vpop.f32.mrf.mxu2  ;;  %v149_v42 = vpop.f32.mrf.mxu3 }
  0x93   :  { %369 = vst [vmem:[%s512_s4 + $0x10] sm:$0xff] %v334_v36   ;;  %v140_v43 = vadd.f32 %v442_v12, %v139_v41  ;;  %v150_v44 = vadd.f32 %v442_v12, %v149_v42  ;;  %v122_v45 = vpop.f32.mrf.mxu0  ;;  %v132_v46 = vpop.f32.mrf.mxu1 }
  0x94   :  { %v123_v57 = vadd.f32 %v442_v12, %v122_v45  ;;  %v133_v58 = vadd.f32 %v442_v12, %v132_v46 }
  0x95   :  { %v198_v49 = vadd.f32 %v308_v39, %v140_v43  ;;  %v202_v50 = vadd.f32 %v316_v40, %v150_v44 }
  0x96   :  { %v191_v5 = vadd.f32 %v295_v55, %v123_v57  ;;  %v195_v6 = vadd.f32 %v303_v56, %v133_v58 }
  0x97   :  { %v344_v53 = vpack.c.bf16 %v198_v49, %v197_v47  ;;  %v354_v54 = vpack.c.bf16 %v202_v50, %v201_v48 }
  0x99   :  { %371 = vst [vmem:[%s512_s4 + $0x20] sm:$0xff] %v344_v53  }
  0x9a   :  { %373 = vst [vmem:[%s512_s4 + $0x30] sm:$0xff] %v354_v54   ;;  %v142_v59 = vpop.f32.mrf.mxu2  ;;  %v152_v60 = vpop.f32.mrf.mxu3 }
  0x9b   :  { %v124_v63 = vpop.f32.mrf.mxu0  ;;  %v134_v0 = vpop.f32.mrf.mxu1  ;;  %v143_v14 = vadd.f32 %v442_v12, %v142_v59  ;;  %v153_v15 = vadd.f32 %v442_v12, %v152_v60 }
  0x9c   :  { %v125_v1 = vadd.f32 %v442_v12, %v124_v63  ;;  %v135_v2 = vadd.f32 %v442_v12, %v134_v0 }
  0x9d   :  { %v199_v22 = vadd.f32 %v311_v9, %v143_v14  ;;  %v203_v23 = vadd.f32 %v319_v10, %v153_v15 }
  0x9e   :  { %v192_v7 = vadd.f32 %v296_v61, %v125_v1  ;;  %v196_v8 = vadd.f32 %v304_v62, %v135_v2 }
  0xa0   :  { %v329_v11 = vpack.c.bf16 %v192_v7, %v191_v5  ;;  %v339_v13 = vpack.c.bf16 %v196_v8, %v195_v6 }
  0xa2   :  { %368 = vst [vmem:[%s512_s4 + $0x8] sm:$0xff] %v329_v11   ;;  %v144_v18 = vpop.f32.mrf.mxu2  ;;  %v154_v19 = vpop.f32.mrf.mxu3 }
  0xa3   :  { %370 = vst [vmem:[%s512_s4 + $0x18] sm:$0xff] %v339_v13   ;;  %v145_v20 = vadd.f32 %v442_v12, %v144_v18  ;;  %v155_v21 = vadd.f32 %v442_v12, %v154_v19 }
  0xa5   :  { %v200_v24 = vadd.f32 %v312_v16, %v145_v20  ;;  %v204_v25 = vadd.f32 %v320_v17, %v155_v21 }
  0xa7   :  { %v349_v26 = vpack.c.bf16 %v200_v24, %v199_v22  ;;  %v359_v27 = vpack.c.bf16 %v204_v25, %v203_v23 }
  0xa9   :  { %372 = vst [vmem:[%s512_s4 + $0x28] sm:$0xff] %v349_v26  }
  0xaa   :  { %374 = vst [vmem:[%s512_s4 + $0x38] sm:$0xff] %v359_v27  }

// kernel: vqvae_forward.22
= control target key start
LH: loop header
LB: loop body
LE: loop exit
PB: predicated region body
PF: predicated region fallthrough
CT: control target
= control target key end

     0   :  { %vm104_vm0 = vcmask 1043456   ;;  %vm79_vm1 = vcmask 64512   ;;  %s524_s1 = inlined_call_operand.vmem [shape: bf16[8,128], index: 1, kind: input, shape index: {}]   ;;  %s525_s0 = inlined_call_operand.vmem [shape: bf16[128,8], index: 0, kind: input, shape index: {}]   ;;  %s526_s2 = inlined_call_operand.vmem [shape: f32[1,128], index: 2, kind: input, shape index: {}]   ;;  %s527_s3 = inlined_call_operand.vmem [shape: bf16[128,128], index: 3, kind: input, shape index: {}]   ;;  %s528_s4 = inlined_call_operand.vmem [shape: bf16[128,128], index: 4, kind: output, shape index: {}]  }
   0x1   :  { %v34_v0 = vld [vmem:[%s524_s1] sm:$0xf]  ;;  %v299_v3 = vld [vmem:[%s525_s0 + $0x10] sm:$0xff]  ;;  %v298_v6 = vld [vmem:[%s525_s0 + $0x8] sm:$0xff] }
   0x2   :  { %v106_v1 = vsel %vm104_vm0, %v34_v0, 0  ;;  %v297_v2 = vld [vmem:[%s525_s0] sm:$0xff]  ;;  %v303_v5 = vld [vmem:[%s525_s0 + $0x30] sm:$0xff]  ;;  %v300_v7 = vld [vmem:[%s525_s0 + $0x18] sm:$0xff] }
   0x3   :  { %115 = vmatpush.bf16.msra.mxu0 %v106_v1  ;;  %391 = vmatpush.bf16.msra.mxu1 %v106_v1  ;;  %v301_v4 = vld [vmem:[%s525_s0 + $0x20] sm:$0xff]  ;;  %v302_v8 = vld [vmem:[%s525_s0 + $0x28] sm:$0xff]  ;;  %v304_v9 = vld [vmem:[%s525_s0 + $0x38] sm:$0xff] }
   0x4   :  { %392 = vmatpush.bf16.msra.mxu2 %v106_v1  ;;  %393 = vmatpush.bf16.msra.mxu3 %v106_v1  ;;  %v458_v12 = vld [vmem:[%s526_s2] ss:$0 sm:$0xff]  ;;  %v378_v14 = vld [vmem:[%s527_s3 + $0x10] sm:$0xff]   ;;  %v377_v55 = vld [vmem:[%s527_s3 + $0x8] sm:$0xff]  }
   0x5   :  { %v306_v13 = vld [vmem:[%s527_s3] sm:$0xff]   ;;  %v315_v18 = vunpack.c.l.bf16 %v378_v14  ;;  %v316_v22 = vunpack.c.h.bf16 %v378_v14  ;;  %v382_v28 = vld [vmem:[%s527_s3 + $0x30] sm:$0xff]   ;;  %v379_v56 = vld [vmem:[%s527_s3 + $0x18] sm:$0xff]   ;;  %v311_v62 = vunpack.c.l.bf16 %v377_v55 }
   0x6   :  { %289 = vmatmul.msk.bf16.vlgmr.msra.gmra.mxu0 %vm79_vm1, %v297_v2  ;;  %291 = vmatmul.msk.bf16.vlgmr.msra.gmra.mxu1 %vm79_vm1, %v299_v3  ;;  %v307_v16 = vunpack.c.l.bf16 %v306_v13  ;;  %v308_v21 = vunpack.c.h.bf16 %v306_v13  ;;  %v380_v27 = vld [vmem:[%s527_s3 + $0x20] sm:$0xff]   ;;  %v331_v36 = vunpack.c.l.bf16 %v382_v28  ;;  %v332_v42 = vunpack.c.h.bf16 %v382_v28  ;;  %v383_v13 = vld [vmem:[%s527_s3 + $0x38] sm:$0xff]  }
   0x7   :  { %293 = vmatmul.msk.bf16.vlgmr.msra.gmra.mxu2 %vm79_vm1, %v301_v4  ;;  %295 = vmatmul.msk.bf16.vlgmr.msra.gmra.mxu3 %vm79_vm1, %v303_v5  ;;  %v323_v34 = vunpack.c.l.bf16 %v380_v27  ;;  %v324_v41 = vunpack.c.h.bf16 %v380_v27  ;;  %v319_v0 = vunpack.c.l.bf16 %v379_v56  ;;  %v312_v5 = vunpack.c.h.bf16 %v377_v55 }
   0x8   :  { %v336_v27 = vunpack.c.h.bf16 %v383_v13 }
  0x16   :  { %290 = vmatmul.msk.bf16.gmra.mxu0 %vm79_vm1, %v298_v6  ;;  %292 = vmatmul.msk.bf16.gmra.mxu1 %vm79_vm1, %v300_v7  ;;  %v320_v6 = vunpack.c.h.bf16 %v379_v56 }
  0x17   :  { %294 = vmatmul.msk.bf16.gmra.mxu2 %vm79_vm1, %v302_v8  ;;  %296 = vmatmul.msk.bf16.gmra.mxu3 %vm79_vm1, %v304_v9 }
  0x83   :  { %v117_v10 = vpop.f32.mrf.mxu0  ;;  %v127_v11 = vpop.f32.mrf.mxu1 }
  0x84   :  { %v118_v15 = vadd.f32 %v458_v12, %v117_v10  ;;  %v128_v17 = vadd.f32 %v458_v12, %v127_v11  ;;  %v381_v11 = vld [vmem:[%s527_s3 + $0x28] sm:$0xff]  }
  0x86   :  { %v189_v25 = vadd.f32 %v307_v16, %v118_v15  ;;  %v193_v26 = vadd.f32 %v315_v18, %v128_v17 }
  0x88   :  { %v205_v37 = vmax.f32 %v189_v25, 0.0  ;;  %v209_v38 = vmax.f32 %v193_v26, 0.0  ;;  %v328_v26 = vunpack.c.h.bf16 %v381_v11 }
  0x8a   :  { %v137_v19 = vpop.f32.mrf.mxu2  ;;  %v147_v20 = vpop.f32.mrf.mxu3 }
  0x8b   :  { %v119_v23 = vpop.f32.mrf.mxu0  ;;  %v129_v24 = vpop.f32.mrf.mxu1  ;;  %v138_v33 = vadd.f32 %v458_v12, %v137_v19  ;;  %v148_v35 = vadd.f32 %v458_v12, %v147_v20  ;;  %v327_v19 = vunpack.c.l.bf16 %v381_v11 }
  0x8c   :  { %v120_v29 = vadd.f32 %v458_v12, %v119_v23  ;;  %v130_v30 = vadd.f32 %v458_v12, %v129_v24 }
  0x8d   :  { %v197_v47 = vadd.f32 %v323_v34, %v138_v33  ;;  %v201_v48 = vadd.f32 %v331_v36, %v148_v35 }
  0x8e   :  { %v190_v31 = vadd.f32 %v308_v21, %v120_v29  ;;  %v194_v32 = vadd.f32 %v316_v22, %v130_v30  ;;  %v335_v21 = vunpack.c.l.bf16 %v383_v13 }
  0x8f   :  { %v213_v57 = vmax.f32 %v197_v47, 0.0  ;;  %v217_v58 = vmax.f32 %v201_v48, 0.0 }
  0x90   :  { %v206_v39 = vmax.f32 %v190_v31, 0.0  ;;  %v210_v40 = vmax.f32 %v194_v32, 0.0 }
  0x92   :  { %v340_v43 = vpack.c.bf16 %v206_v39, %v205_v37  ;;  %v350_v44 = vpack.c.bf16 %v210_v40, %v209_v38  ;;  %v139_v45 = vpop.f32.mrf.mxu2  ;;  %v149_v46 = vpop.f32.mrf.mxu3 }
  0x93   :  { %v140_v49 = vadd.f32 %v458_v12, %v139_v45  ;;  %v150_v50 = vadd.f32 %v458_v12, %v149_v46  ;;  %v122_v51 = vpop.f32.mrf.mxu0  ;;  %v132_v52 = vpop.f32.mrf.mxu1 }
  0x94   :  { %341 = vst [vmem:[%s528_s4] sm:$0xff] %v340_v43   ;;  %v123_v61 = vadd.f32 %v458_v12, %v122_v51  ;;  %v133_v63 = vadd.f32 %v458_v12, %v132_v52 }
  0x95   :  { %385 = vst [vmem:[%s528_s4 + $0x10] sm:$0xff] %v350_v44   ;;  %v198_v53 = vadd.f32 %v324_v41, %v140_v49  ;;  %v202_v54 = vadd.f32 %v332_v42, %v150_v50 }
  0x96   :  { %v191_v9 = vadd.f32 %v311_v62, %v123_v61  ;;  %v195_v10 = vadd.f32 %v319_v0, %v133_v63 }
  0x97   :  { %v214_v59 = vmax.f32 %v198_v53, 0.0  ;;  %v218_v60 = vmax.f32 %v202_v54, 0.0 }
  0x98   :  { %v207_v22 = vmax.f32 %v191_v9, 0.0  ;;  %v211_v23 = vmax.f32 %v195_v10, 0.0 }
  0x99   :  { %v360_v1 = vpack.c.bf16 %v214_v59, %v213_v57  ;;  %v370_v2 = vpack.c.bf16 %v218_v60, %v217_v58 }
  0x9a   :  { %v142_v3 = vpop.f32.mrf.mxu2  ;;  %v152_v4 = vpop.f32.mrf.mxu3 }
  0x9b   :  { %387 = vst [vmem:[%s528_s4 + $0x20] sm:$0xff] %v360_v1   ;;  %v124_v7 = vpop.f32.mrf.mxu0  ;;  %v134_v8 = vpop.f32.mrf.mxu1  ;;  %v143_v18 = vadd.f32 %v458_v12, %v142_v3  ;;  %v153_v20 = vadd.f32 %v458_v12, %v152_v4 }
  0x9c   :  { %389 = vst [vmem:[%s528_s4 + $0x30] sm:$0xff] %v370_v2   ;;  %v125_v14 = vadd.f32 %v458_v12, %v124_v7  ;;  %v135_v15 = vadd.f32 %v458_v12, %v134_v8 }
  0x9d   :  { %v199_v32 = vadd.f32 %v327_v19, %v143_v18  ;;  %v203_v33 = vadd.f32 %v335_v21, %v153_v20 }
  0x9e   :  { %v192_v16 = vadd.f32 %v312_v5, %v125_v14  ;;  %v196_v17 = vadd.f32 %v320_v6, %v135_v15 }
  0x9f   :  { %v215_v38 = vmax.f32 %v199_v32, 0.0  ;;  %v219_v39 = vmax.f32 %v203_v33, 0.0 }
  0xa0   :  { %v208_v24 = vmax.f32 %v192_v16, 0.0  ;;  %v212_v25 = vmax.f32 %v196_v17, 0.0 }
  0xa2   :  { %v345_v28 = vpack.c.bf16 %v208_v24, %v207_v22  ;;  %v355_v29 = vpack.c.bf16 %v212_v25, %v211_v23  ;;  %v144_v30 = vpop.f32.mrf.mxu2  ;;  %v154_v31 = vpop.f32.mrf.mxu3 }
  0xa3   :  { %v145_v34 = vadd.f32 %v458_v12, %v144_v30  ;;  %v155_v35 = vadd.f32 %v458_v12, %v154_v31 }
  0xa4   :  { %384 = vst [vmem:[%s528_s4 + $0x8] sm:$0xff] %v345_v28  }
  0xa5   :  { %386 = vst [vmem:[%s528_s4 + $0x18] sm:$0xff] %v355_v29   ;;  %v200_v36 = vadd.f32 %v328_v26, %v145_v34  ;;  %v204_v37 = vadd.f32 %v336_v27, %v155_v35 }
  0xa7   :  { %v216_v40 = vmax.f32 %v200_v36, 0.0  ;;  %v220_v41 = vmax.f32 %v204_v37, 0.0 }
  0xa9   :  { %v365_v42 = vpack.c.bf16 %v216_v40, %v215_v38  ;;  %v375_v43 = vpack.c.bf16 %v220_v41, %v219_v39 }
  0xab   :  { %388 = vst [vmem:[%s528_s4 + $0x28] sm:$0xff] %v365_v42  }
  0xac   :  { %390 = vst [vmem:[%s528_s4 + $0x38] sm:$0xff] %v375_v43  }

// kernel: vqvae_forward.19
= control target key start
LH: loop header
LB: loop body
LE: loop exit
PB: predicated region body
PF: predicated region fallthrough
CT: control target
= control target key end

     0   :  { %vm164_vm0 = vsmask.f32 7424  ;;  %vm241_vm1 = vcmask 1046528   ;;  %vm267_vm2 = vcmask 1044480   ;;  %vm293_vm3 = vsmask.f32 4352  ;;  %s2660_s2 = inlined_call_operand.vmem [shape: bf16[1152,128], index: 2, kind: input, shape index: {}]   ;;  %s2661_s0 = inlined_call_operand.vmem [shape: bf16[256,128], index: 0, kind: input, shape index: {}, may-alias: {0,1}]   ;;  %s2662_s3 = inlined_call_operand.vmem [shape: f32[1,128], index: 3, kind: input, shape index: {}]   ;;  %s2663_s1 = inlined_call_operand.vmem [shape: bf16[256,128], index: 1, kind: input, shape index: {}, may-alias: {0,1}]   ;;  %s2664_s4 = inlined_call_operand.vmem [shape: bf16[128,128], index: 4, kind: output, shape index: {}]  }
   0x1   :  { %v1837_v0 = vld [vmem:[%s2660_s2 + $0x38] sm:$0xff]  ;;  %v1836_v1 = vld [vmem:[%s2660_s2 + $0x30] sm:$0xff]  ;;  %v1835_v2 = vld [vmem:[%s2660_s2 + $0x28] sm:$0xff]  ;;  %vm339_vm4 = vcmask 1043456   ;;  %vm365_vm5 = vcmask 1041408   ;;  %vm435_vm7 = vcmask 1040384  }
   0x2   :  { %1993 = vmatpush.bf16.msra.mxu1 %v1837_v0  ;;  %1994 = vmatpush.bf16.msra.mxu2 %v1837_v0  ;;  %v1979_v3 = vld [vmem:[%s2661_s0 + $0x10] sm:$0xff]   ;;  %v1981_v4 = vld [vmem:[%s2661_s0 + $0x20] sm:$0xff]   ;;  %v1833_v16 = vld [vmem:[%s2660_s2 + $0x18] sm:$0xff]  ;;  %vm391_vm6 = vsmask.f32 1280 }
   0x3   :  { %1995 = vmatpush.bf16.msra.mxu3 %v1837_v0  ;;  %1041 = vmatpush.bf16.msra.mxu0 %v1837_v0  ;;  %v1983_v5 = vld [vmem:[%s2661_s0 + $0x30] sm:$0xff]   ;;  %v1834_v6 = vld [vmem:[%s2660_s2 + $0x20] sm:$0xff]  ;;  %v1912_v8 = vunpack.c.l.bf16 %v1979_v3  ;;  %v1913_v9 = vunpack.c.h.bf16 %v1979_v3  ;;  %v1920_v10 = vunpack.c.l.bf16 %v1981_v4  ;;  %v1921_v11 = vunpack.c.h.bf16 %v1981_v4  ;;  %v1831_v34 = vld [vmem:[%s2660_s2 + $0x8] sm:$0xff] }
   0x4   :  { %v1903_v7 = vld [vmem:[%s2661_s0] sm:$0xff]   ;;  %v1928_v12 = vunpack.c.l.bf16 %v1983_v5  ;;  %v1929_v13 = vunpack.c.h.bf16 %v1983_v5  ;;  %v1832_v25 = vld [vmem:[%s2660_s2 + $0x10] sm:$0xff]  ;;  %v1980_v43 = vld [vmem:[%s2661_s0 + $0x18] sm:$0xff]  }
   0x5   :  { %v1904_v14 = vunpack.c.l.bf16 %v1903_v7  ;;  %v1905_v15 = vunpack.c.h.bf16 %v1903_v7  ;;  %v75_v17 = vmax.f32 %v1912_v8, 0.0  ;;  %v76_v18 = vmax.f32 %v1913_v9, 0.0  ;;  %v1830_v44 = vld [vmem:[%s2660_s2] sm:$0xff]  ;;  %v1982_v45 = vld [vmem:[%s2661_s0 + $0x28] sm:$0xff]   ;;  %v1984_v46 = vld [vmem:[%s2661_s0 + $0x38] sm:$0xff]  }
   0x6   :  { %1996 = vmatpush.bf16.msra.mxu1 %v1836_v1  ;;  %1997 = vmatpush.bf16.msra.mxu2 %v1836_v1  ;;  %v79_v19 = vmax.f32 %v1920_v10, 0.0  ;;  %v80_v20 = vmax.f32 %v1921_v11, 0.0  ;;  %v83_v21 = vmax.f32 %v1928_v12, 0.0  ;;  %v84_v22 = vmax.f32 %v1929_v13, 0.0  ;;  %v1978_v47 = vld [vmem:[%s2661_s0 + $0x8] sm:$0xff]   ;;  %v1853_v51 = vld [vmem:[%s2660_s2 + $0xb8] sm:$0xff] }
   0x7   :  { %1998 = vmatpush.bf16.msra.mxu3 %v1836_v1  ;;  %1042 = vmatpush.bf16.msra.mxu0 %v1836_v1  ;;  %v71_v23 = vmax.f32 %v1904_v14, 0.0  ;;  %v72_v24 = vmax.f32 %v1905_v15, 0.0  ;;  %v91_v26 = vpack.c.bf16 %v75_v17, %v75_v17  ;;  %v92_v27 = vpack.c.bf16 %v76_v18, %v76_v18  ;;  %v1845_v52 = vld [vmem:[%s2660_s2 + $0x78] sm:$0xff]  ;;  %v1852_v0 = vld [vmem:[%s2660_s2 + $0xb0] sm:$0xff]  ;;  %v1851_v12 = vld [vmem:[%s2660_s2 + $0xa8] sm:$0xff] }
   0x8   :  { %v95_v28 = vpack.c.bf16 %v79_v19, %v79_v19  ;;  %v96_v29 = vpack.c.bf16 %v80_v20, %v80_v20  ;;  %v99_v30 = vpack.c.bf16 %v83_v21, %v83_v21  ;;  %v100_v31 = vpack.c.bf16 %v84_v22, %v84_v22  ;;  %v1861_v62 = vld [vmem:[%s2660_s2 + $0xf8] sm:$0xff]  ;;  %v1844_v1 = vld [vmem:[%s2660_s2 + $0x70] sm:$0xff]  ;;  %v1843_v13 = vld [vmem:[%s2660_s2 + $0x68] sm:$0xff] }
   0x9   :  { %v87_v32 = vpack.c.bf16 %v71_v23, %v71_v23  ;;  %v88_v33 = vpack.c.bf16 %v72_v24, %v72_v24  ;;  %v131_v35 = vunpack.c.l.b16 %v91_v26  ;;  %v132_v36 = vunpack.c.l.b16 %v92_v27  ;;  %v1869_v63 = vld [vmem:[%s2660_s2 + $0x138] sm:$0xff]  ;;  %v1860_v10 = vld [vmem:[%s2660_s2 + $0xf0] sm:$0xff]  ;;  %v1859_v22 = vld [vmem:[%s2660_s2 + $0xe8] sm:$0xff] }
   0xa   :  { %1999 = vmatpush.bf16.msra.mxu1 %v1835_v2  ;;  %2000 = vmatpush.bf16.msra.mxu2 %v1835_v2  ;;  %v135_v37 = vunpack.c.l.b16 %v95_v28  ;;  %v136_v38 = vunpack.c.l.b16 %v96_v29  ;;  %v139_v39 = vunpack.c.l.b16 %v99_v30  ;;  %v140_v40 = vunpack.c.l.b16 %v100_v31  ;;  %v1868_v11 = vld [vmem:[%s2660_s2 + $0x130] sm:$0xff]  ;;  %v1867_v23 = vld [vmem:[%s2660_s2 + $0x128] sm:$0xff]  ;;  %v1850_v24 = vld [vmem:[%s2660_s2 + $0xa0] sm:$0xff] }
   0xb   :  { %2001 = vmatpush.bf16.msra.mxu3 %v1835_v2  ;;  %1043 = vmatpush.bf16.msra.mxu0 %v1835_v2  ;;  %v127_v41 = vunpack.c.l.b16 %v87_v32  ;;  %v128_v42 = vunpack.c.l.b16 %v88_v33  ;;  %v2091_v48 = vpack.c.b16 %v132_v36, %v131_v35  ;;  %v1916_v53 = vunpack.c.l.bf16 %v1980_v43  ;;  %v1866_v35 = vld [vmem:[%s2660_s2 + $0x120] sm:$0xff]  ;;  %v1849_v36 = vld [vmem:[%s2660_s2 + $0x98] sm:$0xff] }
   0xc   :  { %v2093_v49 = vpack.c.b16 %v136_v38, %v135_v37  ;;  %v2095_v50 = vpack.c.b16 %v140_v40, %v139_v39  ;;  %v1917_v55 = vunpack.c.h.bf16 %v1980_v43  ;;  %v1924_v56 = vunpack.c.l.bf16 %v1982_v45  ;;  %v1841_v37 = vld [vmem:[%s2660_s2 + $0x58] sm:$0xff] }
   0xd   :  { %v2103_v54 = vpack.c.b16 %v128_v42, %v127_v41  ;;  %v1925_v57 = vunpack.c.h.bf16 %v1982_v45  ;;  %v1932_v58 = vunpack.c.l.bf16 %v1984_v46  ;;  %v1933_v59 = vunpack.c.h.bf16 %v1984_v46  ;;  %v1857_v42 = vld [vmem:[%s2660_s2 + $0xd8] sm:$0xff]  ;;  %v1840_v45 = vld [vmem:[%s2660_s2 + $0x50] sm:$0xff] }
   0xe   :  { %2002 = vmatpush.bf16.msra.mxu1 %v1834_v6  ;;  %2003 = vmatpush.bf16.msra.mxu2 %v1834_v6  ;;  %v1908_v60 = vunpack.c.l.bf16 %v1978_v47  ;;  %v1909_v61 = vunpack.c.h.bf16 %v1978_v47  ;;  %v77_v2 = vmax.f32 %v1916_v53, 0.0  ;;  %v78_v3 = vmax.f32 %v1917_v55, 0.0  ;;  %v1865_v43 = vld [vmem:[%s2660_s2 + $0x118] sm:$0xff]  ;;  %v1856_v47 = vld [vmem:[%s2660_s2 + $0xd0] sm:$0xff] }
   0xf   :  { %2004 = vmatpush.bf16.msra.mxu3 %v1834_v6  ;;  %1044 = vmatpush.bf16.msra.mxu0 %v1834_v6  ;;  %v81_v4 = vmax.f32 %v1924_v56, 0.0  ;;  %v82_v5 = vmax.f32 %v1925_v57, 0.0  ;;  %v85_v6 = vmax.f32 %v1932_v58, 0.0  ;;  %v86_v7 = vmax.f32 %v1933_v59, 0.0  ;;  %v1847_v56 = vld [vmem:[%s2660_s2 + $0x88] sm:$0xff] }
  0x10   :  { %v73_v8 = vmax.f32 %v1908_v60, 0.0  ;;  %v74_v9 = vmax.f32 %v1909_v61, 0.0  ;;  %v93_v14 = vpack.c.bf16 %v77_v2, %v77_v2  ;;  %v94_v15 = vpack.c.bf16 %v78_v3, %v78_v3  ;;  %v1839_v57 = vld [vmem:[%s2660_s2 + $0x48] sm:$0xff]  ;;  %v1838_v2 = vld [vmem:[%s2660_s2 + $0x40] sm:$0xff] }
  0x11   :  { %v98_v17 = vpack.c.bf16 %v82_v5, %v82_v5  ;;  %v101_v18 = vpack.c.bf16 %v85_v6, %v85_v6  ;;  %v102_v19 = vpack.c.bf16 %v86_v7, %v86_v7  ;;  %v2180_v46 = vshll.u32 %v2103_v54, 16  ;;  %v1855_v59 = vld [vmem:[%s2660_s2 + $0xc8] sm:$0xff]  ;;  %v1877_v5 = vld [vmem:[%s2660_s2 + $0x178] sm:$0xff] }
  0x12   :  { %2005 = vmatpush.bf16.msra.mxu1 %v1833_v16  ;;  %2006 = vmatpush.bf16.msra.mxu2 %v1833_v16  ;;  %v89_v20 = vpack.c.bf16 %v73_v8, %v73_v8  ;;  %v90_v21 = vpack.c.bf16 %v74_v9, %v74_v9  ;;  %v133_v26 = vunpack.c.l.b16 %v93_v14  ;;  %v134_v27 = vunpack.c.l.b16 %v94_v15  ;;  %v1863_v60 = vld [vmem:[%s2660_s2 + $0x108] sm:$0xff]  ;;  %v1854_v9 = vld [vmem:[%s2660_s2 + $0xc0] sm:$0xff]  ;;  %v1893_v15 = vld [vmem:[%s2660_s2 + $0x1f8] sm:$0xff] }
  0x13   :  { %2007 = vmatpush.bf16.msra.mxu3 %v1833_v16  ;;  %1045 = vmatpush.bf16.msra.mxu0 %v1833_v16  ;;  %v97_v16 = vpack.c.bf16 %v81_v4, %v81_v4  ;;  %v138_v29 = vunpack.c.l.b16 %v98_v17  ;;  %v141_v30 = vunpack.c.l.b16 %v101_v18  ;;  %v142_v31 = vunpack.c.l.b16 %v102_v19  ;;  %v1885_v4 = vld [vmem:[%s2660_s2 + $0x1b8] sm:$0xff] }
  0x14   :  { %v129_v32 = vunpack.c.l.b16 %v89_v20  ;;  %v130_v33 = vunpack.c.l.b16 %v90_v21  ;;  %v2157_v38 = vpack.c.b16 %v134_v27, %v133_v26  ;;  %v170_v58 = vrot.slane %v2180_v46, 1  ;;  %v1884_v21 = vld [vmem:[%s2660_s2 + $0x1b0] sm:$0xff]  ;;  %v1883_v27 = vld [vmem:[%s2660_s2 + $0x1a8] sm:$0xff] }
  0x15   :  { %v137_v28 = vunpack.c.l.b16 %v97_v16  ;;  %v2161_v40 = vpack.c.b16 %v142_v31, %v141_v30  ;;  %v242_v7 = vrot.slane %v2103_v54, 1  ;;  %v1901_v16 = vld [vmem:[%s2660_s2 + $0x238] sm:$0xff]  ;;  %v2266_v26 = vshrl.u32 %v2091_v48, 16  ;;  %v1899_v30 = vld [vmem:[%s2660_s2 + $0x228] sm:$0xff] }
  0x16   :  { %2008 = vmatpush.bf16.msra.mxu1 %v1832_v25  ;;  %2009 = vmatpush.bf16.msra.mxu2 %v1832_v25  ;;  %v2163_v41 = vpack.c.b16 %v130_v33, %v129_v32 }
  0x17   :  { %2010 = vmatpush.bf16.msra.mxu3 %v1832_v25  ;;  %1046 = vmatpush.bf16.msra.mxu0 %v1832_v25  ;;  %v1842_v25 = vld [vmem:[%s2660_s2 + $0x60] sm:$0xff]  ;;  %v2159_v39 = vpack.c.b16 %v138_v29, %v137_v28  ;;  %v1875_v28 = vld [vmem:[%s2660_s2 + $0x168] sm:$0xff]  ;;  %v301_v31 = vrot.slane %v2266_v26, 3 }
  0x18   :  { %v2194_v53 = vshll.u32 %v2163_v41, 16  ;;  %v2197_v55 = vshrl.u32 %v2163_v41, 16  ;;  %v243_v8 = vrot.slane %v2163_v41, 1  ;;  %v1891_v29 = vld [vmem:[%s2660_s2 + $0x1e8] sm:$0xff] }
  0x1a   :  { %2011 = vmatpush.bf16.msra.mxu1 %v1831_v34  ;;  %2012 = vmatpush.bf16.msra.mxu2 %v1831_v34  ;;  %v175_v6 = vrot.slane %v2194_v53, 1  ;;  %v244_v18 = vsel %vm241_vm1, %v242_v7, %v243_v8  ;;  %v1881_v7 = vld [vmem:[%s2660_s2 + $0x198] sm:$0xff] }
  0x1b   :  { %2013 = vmatpush.bf16.msra.mxu3 %v1831_v34  ;;  %1047 = vmatpush.bf16.msra.mxu0 %v1831_v34  ;;  %v1858_v34 = vld [vmem:[%s2660_s2 + $0xe0] sm:$0xff] }
  0x1c   :  { %v179_v33 = vor.u32 %v2197_v55, %v175_v6 }
  0x1e   :  { %2014 = vmatpush.bf16.msra.mxu1 %v1830_v44  ;;  %2015 = vmatpush.bf16.msra.mxu2 %v1830_v44 }
  0x1f   :  { %2016 = vmatpush.bf16.msra.mxu3 %v1830_v44  ;;  %1048 = vmatpush.bf16.msra.mxu0 %v1830_v44  ;;  %v1848_v44 = vld [vmem:[%s2660_s2 + $0x90] sm:$0xff] }
  0x21   :  { %1059 = vmatmul.bf16.vlgmr.msra.gmra.mxu1 %v2091_v48  ;;  %1069 = vmatmul.bf16.vlgmr.msra.gmra.mxu2 %v2093_v49 }
  0x22   :  { %1139 = vmatpush.bf16.msrb.mxu2 %v1853_v51  ;;  %1090 = vmatpush.bf16.msrb.mxu1 %v1845_v52  ;;  %v1864_v51 = vld [vmem:[%s2660_s2 + $0x110] sm:$0xff]  ;;  %v2191_v52 = vshrl.u32 %v2103_v54, 16 }
  0x23   :  { %1079 = vmatmul.bf16.vlgmr.msra.gmra.mxu3 %v2095_v50  ;;  %1049 = vmatmul.bf16.vlgmr.msra.gmra.mxu0 %v2103_v54 }
  0x24   :  { %1188 = vmatpush.bf16.msrb.mxu3 %v1861_v62  ;;  %1237 = vmatpush.bf16.msrb.mxu0 %v1869_v63  ;;  %v294_v61 = vrot.slane %v2191_v52, 3  ;;  %v295_v62 = vrot.slane %v2180_v46, 4  ;;  %v297_v63 = vrot.slane %v2197_v55, 3  ;;  %v171_v3 = vor.u32 %v170_v58, %v2191_v52 }
  0x25   :  { %v2303_v58 = vshrl.u32 %v2157_v38, 16 }
  0x26   :  { %1140 = vmatpush.bf16.msrb.mxu2 %v1852_v0  ;;  %1091 = vmatpush.bf16.msrb.mxu1 %v1844_v1  ;;  %v298_v0 = vrot.slane %v2194_v53, 4  ;;  %v1846_v1 = vld [vmem:[%s2660_s2 + $0x80] sm:$0xff]  ;;  %v176_v17 = vsel %vm164_vm0, %v171_v3, %v175_v6 }
  0x28   :  { %1189 = vmatpush.bf16.msrb.mxu3 %v1860_v10  ;;  %1238 = vmatpush.bf16.msrb.mxu0 %v1868_v11  ;;  %v1862_v10 = vld [vmem:[%s2660_s2 + $0x100] sm:$0xff]  ;;  %v268_v11 = vrot.slane %v2103_v54, 3  ;;  %v299_v14 = vor.u32 %v298_v0, %v297_v63  ;;  %v247_v0 = vrot.slane %v2157_v38, 1 }
  0x2a   :  { %1141 = vmatpush.bf16.msrb.mxu2 %v1851_v12  ;;  %1092 = vmatpush.bf16.msrb.mxu1 %v1843_v13  ;;  %v269_v12 = vrot.slane %v2163_v41, 3  ;;  %v296_v13 = vor.u32 %v295_v62, %v294_v61 }
  0x2c   :  { %1190 = vmatpush.bf16.msrb.mxu3 %v1859_v22  ;;  %1239 = vmatpush.bf16.msrb.mxu0 %v1867_v23  ;;  %v270_v19 = vsel %vm267_vm2, %v268_v11, %v269_v12  ;;  %v300_v20 = vsel %vm293_vm3, %v296_v13, %v299_v14  ;;  %v1876_v22 = vld [vmem:[%s2660_s2 + $0x170] sm:$0xff]  ;;  %v2331_v11 = vshrl.u32 %v2093_v49, 16 }
  0x2d   :  { %v1892_v23 = vld [vmem:[%s2660_s2 + $0x1f0] sm:$0xff] }
  0x2e   :  { %1142 = vmatpush.bf16.msrb.mxu2 %v1850_v24  ;;  %1093 = vmatpush.bf16.msrb.mxu1 %v1842_v25  ;;  %v1900_v24 = vld [vmem:[%s2660_s2 + $0x230] sm:$0xff]  ;;  %v2263_v25 = vshll.u32 %v2091_v48, 16  ;;  %v309_v13 = vrot.slane %v2331_v11, 3 }
  0x30   :  { %1191 = vmatpush.bf16.msrb.mxu3 %v1858_v34  ;;  %1240 = vmatpush.bf16.msrb.mxu0 %v1866_v35  ;;  %v302_v32 = vrot.slane %v2263_v25, 4  ;;  %v183_v34 = vrot.slane %v2263_v25, 1  ;;  %v245_v35 = vrot.slane %v2091_v48, 1 }
  0x31   :  { %1064 = vmatmul.bf16.gmra.mxu1 %v2157_v38  ;;  %1074 = vmatmul.bf16.gmra.mxu2 %v2159_v39 }
  0x32   :  { %1143 = vmatpush.bf16.msrb.mxu2 %v1849_v36  ;;  %1094 = vmatpush.bf16.msrb.mxu1 %v1841_v37  ;;  %v271_v36 = vrot.slane %v2091_v48, 3  ;;  %v303_v37 = vor.u32 %v302_v32, %v301_v31  ;;  %v187_v62 = vor.u32 %v2266_v26, %v183_v34  ;;  %v1896_v31 = vld [vmem:[%s2660_s2 + $0x210] sm:$0xff] }
  0x33   :  { %1084 = vmatmul.bf16.gmra.mxu3 %v2161_v40  ;;  %1054 = vmatmul.bf16.gmra.mxu0 %v2163_v41 }
  0x34   :  { %1192 = vmatpush.bf16.msrb.mxu3 %v1857_v42  ;;  %1241 = vmatpush.bf16.msrb.mxu0 %v1865_v43  ;;  %v184_v42 = vsel %vm164_vm0, %v179_v33, %v183_v34  ;;  %v246_v43 = vsel %vm241_vm1, %v243_v8, %v245_v35  ;;  %v1889_v8 = vld [vmem:[%s2660_s2 + $0x1d8] sm:$0xff] }
  0x36   :  { %1144 = vmatpush.bf16.msrb.mxu2 %v1848_v44  ;;  %1095 = vmatpush.bf16.msrb.mxu1 %v1840_v45  ;;  %v272_v44 = vsel %vm267_vm2, %v269_v12, %v271_v36  ;;  %v304_v45 = vsel %vm293_vm3, %v299_v14, %v303_v37  ;;  %v1897_v12 = vld [vmem:[%s2660_s2 + $0x218] sm:$0xff] }
  0x38   :  { %1193 = vmatpush.bf16.msrb.mxu3 %v1856_v47  ;;  %1242 = vmatpush.bf16.msrb.mxu0 %v1864_v51  ;;  %v1882_v47 = vld [vmem:[%s2660_s2 + $0x1a0] sm:$0xff] }
  0x39   :  { %v1890_v51 = vld [vmem:[%s2660_s2 + $0x1e0] sm:$0xff] }
  0x3a   :  { %1145 = vmatpush.bf16.msrb.mxu2 %v1847_v56  ;;  %1096 = vmatpush.bf16.msrb.mxu1 %v1839_v57  ;;  %v1874_v56 = vld [vmem:[%s2660_s2 + $0x160] sm:$0xff]  ;;  %v2300_v57 = vshll.u32 %v2157_v38, 16 }
  0x3c   :  { %1194 = vmatpush.bf16.msrb.mxu3 %v1855_v59  ;;  %1243 = vmatpush.bf16.msrb.mxu0 %v1863_v60  ;;  %v1898_v59 = vld [vmem:[%s2660_s2 + $0x220] sm:$0xff]  ;;  %v305_v60 = vrot.slane %v2303_v58, 3  ;;  %v306_v61 = vrot.slane %v2300_v57, 4  ;;  %v191_v63 = vrot.slane %v2300_v57, 1 }
  0x3e   :  { %1146 = vmatpush.bf16.msrb.mxu2 %v1846_v1  ;;  %1097 = vmatpush.bf16.msrb.mxu1 %v1838_v2  ;;  %v273_v1 = vrot.slane %v2157_v38, 3  ;;  %v307_v2 = vor.u32 %v306_v61, %v305_v60  ;;  %v192_v3 = vsel %vm164_vm0, %v187_v62, %v191_v63  ;;  %v2384_v60 = vshrl.u32 %v2095_v50, 16  ;;  %v1871_v61 = vld [vmem:[%s2660_s2 + $0x148] sm:$0xff] }
  0x40   :  { %1195 = vmatpush.bf16.msrb.mxu3 %v1854_v9  ;;  %1244 = vmatpush.bf16.msrb.mxu0 %v1862_v10  ;;  %v308_v6 = vsel %vm293_vm3, %v303_v37, %v307_v2  ;;  %v1873_v9 = vld [vmem:[%s2660_s2 + $0x158] sm:$0xff]  ;;  %v2328_v10 = vshll.u32 %v2093_v49, 16  ;;  %v277_v37 = vrot.slane %v2159_v39, 3  ;;  %v317_v62 = vrot.slane %v2384_v60, 3 }
  0x41   :  { %1098 = vmatmul.bf16.vlgmr.msrb.gmra.mxu1 %v176_v17  ;;  %1147 = vmatmul.bf16.vlgmr.msrb.gmra.mxu2 %v244_v18  ;;  %v249_v17 = vrot.slane %v2093_v49, 1  ;;  %v275_v18 = vrot.slane %v2093_v49, 3 }
  0x42   :  { %1335 = vmatpush.bf16.msra.mxu2 %v1885_v4  ;;  %1286 = vmatpush.bf16.msra.mxu1 %v1877_v5  ;;  %v248_v4 = vsel %vm241_vm1, %v245_v35, %v247_v0  ;;  %v274_v5 = vsel %vm267_vm2, %v271_v36, %v273_v1  ;;  %v310_v14 = vrot.slane %v2328_v10, 4  ;;  %v251_v36 = vrot.slane %v2159_v39, 1 }
  0x43   :  { %1196 = vmatmul.bf16.vlgmr.msrb.gmra.mxu3 %v270_v19  ;;  %1245 = vmatmul.bf16.vlgmr.msrb.gmra.mxu0 %v300_v20 }
  0x44   :  { %1384 = vmatpush.bf16.msra.mxu3 %v1893_v15  ;;  %1433 = vmatpush.bf16.msra.mxu0 %v1901_v16  ;;  %v195_v15 = vor.u32 %v2303_v58, %v191_v63  ;;  %v199_v16 = vrot.slane %v2328_v10, 1  ;;  %v311_v19 = vor.u32 %v310_v14, %v309_v13 }
  0x46   :  { %1336 = vmatpush.bf16.msra.mxu2 %v1884_v21  ;;  %1287 = vmatpush.bf16.msra.mxu1 %v1876_v22  ;;  %v200_v20 = vsel %vm164_vm0, %v195_v15, %v199_v16  ;;  %v250_v21 = vsel %vm241_vm1, %v247_v0, %v249_v17  ;;  %v276_v22 = vsel %vm267_vm2, %v273_v1, %v275_v18  ;;  %v1895_v0 = vld [vmem:[%s2660_s2 + $0x208] sm:$0xff]  ;;  %v1878_v15 = vld [vmem:[%s2660_s2 + $0x180] sm:$0xff] }
  0x47   :  { %v203_v34 = vor.u32 %v2331_v11, %v199_v16  ;;  %v1886_v16 = vld [vmem:[%s2660_s2 + $0x1c0] sm:$0xff] }
  0x48   :  { %1385 = vmatpush.bf16.msra.mxu3 %v1892_v23  ;;  %1434 = vmatpush.bf16.msra.mxu0 %v1900_v24  ;;  %v312_v23 = vsel %vm293_vm3, %v307_v2, %v311_v19  ;;  %v1880_v24 = vld [vmem:[%s2660_s2 + $0x190] sm:$0xff] }
  0x4a   :  { %1337 = vmatpush.bf16.msra.mxu2 %v1883_v27  ;;  %1288 = vmatpush.bf16.msra.mxu1 %v1875_v28  ;;  %v1888_v27 = vld [vmem:[%s2660_s2 + $0x1d0] sm:$0xff] }
  0x4b   :  { %v1872_v28 = vld [vmem:[%s2660_s2 + $0x150] sm:$0xff] }
  0x4c   :  { %1386 = vmatpush.bf16.msra.mxu3 %v1891_v29  ;;  %1435 = vmatpush.bf16.msra.mxu0 %v1899_v30  ;;  %v2356_v29 = vshll.u32 %v2159_v39, 16  ;;  %v2359_v30 = vshrl.u32 %v2159_v39, 16 }
  0x4e   :  { %1338 = vmatpush.bf16.msra.mxu2 %v1882_v47  ;;  %1289 = vmatpush.bf16.msra.mxu1 %v1874_v56  ;;  %v313_v32 = vrot.slane %v2359_v30, 3  ;;  %v314_v33 = vrot.slane %v2356_v29, 4  ;;  %v207_v35 = vrot.slane %v2356_v29, 1  ;;  %v1887_v56 = vld [vmem:[%s2660_s2 + $0x1c8] sm:$0xff] }
  0x50   :  { %1387 = vmatpush.bf16.msra.mxu3 %v1890_v51  ;;  %1436 = vmatpush.bf16.msra.mxu0 %v1898_v59  ;;  %v1879_v51 = vld [vmem:[%s2660_s2 + $0x188] sm:$0xff]  ;;  %v2381_v59 = vshll.u32 %v2095_v50, 16  ;;  %v211_v1 = vor.u32 %v2359_v30, %v207_v35 }
  0x51   :  { %1103 = vmatmul.bf16.gmra.mxu1 %v184_v42  ;;  %1152 = vmatmul.bf16.gmra.mxu2 %v246_v43  ;;  %v315_v42 = vor.u32 %v314_v33, %v313_v32  ;;  %v208_v43 = vsel %vm164_vm0, %v203_v34, %v207_v35  ;;  %v255_v33 = vrot.slane %v2161_v40, 1  ;;  %v281_v34 = vrot.slane %v2161_v40, 3 }
  0x52   :  { %1339 = vmatpush.bf16.msra.mxu2 %v1881_v7  ;;  %1290 = vmatpush.bf16.msra.mxu1 %v1873_v9  ;;  %v318_v63 = vrot.slane %v2381_v59, 4  ;;  %v215_v2 = vrot.slane %v2381_v59, 1 }
  0x53   :  { %1201 = vmatmul.bf16.gmra.mxu3 %v272_v44  ;;  %1250 = vmatmul.bf16.gmra.mxu0 %v304_v45  ;;  %v252_v44 = vsel %vm241_vm1, %v249_v17, %v251_v36  ;;  %v278_v45 = vsel %vm267_vm2, %v275_v18, %v277_v37  ;;  %v316_v47 = vsel %vm293_vm3, %v311_v19, %v315_v42  ;;  %v2412_v17 = vshll.u32 %v2161_v40, 16 }
  0x54   :  { %1388 = vmatpush.bf16.msra.mxu3 %v1889_v8  ;;  %1437 = vmatpush.bf16.msra.mxu0 %v1897_v12  ;;  %v216_v7 = vsel %vm164_vm0, %v211_v1, %v215_v2  ;;  %v2415_v18 = vshrl.u32 %v2161_v40, 16 }
  0x55   :  { %v223_v32 = vrot.slane %v2412_v17, 1 }
  0x56   :  { %1340 = vmatpush.bf16.msra.mxu2 %v1880_v24  ;;  %1291 = vmatpush.bf16.msra.mxu1 %v1872_v28  ;;  %v1894_v28 = vld [vmem:[%s2660_s2 + $0x200] sm:$0xff] }
  0x58   :  { %1389 = vmatpush.bf16.msra.mxu3 %v1888_v27  ;;  %1438 = vmatpush.bf16.msra.mxu0 %v1896_v31  ;;  %v219_v31 = vor.u32 %v2384_v60, %v215_v2 }
  0x5a   :  { %1341 = vmatpush.bf16.msra.mxu2 %v1879_v51  ;;  %1292 = vmatpush.bf16.msra.mxu1 %v1871_v61  ;;  %v2440_v61 = vld [vmem:[%s2662_s3] ss:$0 sm:$0xff] }
  0x5c   :  { %1390 = vmatpush.bf16.msra.mxu3 %v1887_v56  ;;  %1439 = vmatpush.bf16.msra.mxu0 %v1895_v0 }
  0x5e   :  { %1342 = vmatpush.bf16.msra.mxu2 %v1878_v15 }
  0x60   :  { %1391 = vmatpush.bf16.msra.mxu3 %v1886_v16  ;;  %1440 = vmatpush.bf16.msra.mxu0 %v1894_v28 }
  0x61   :  { %1108 = vmatmul.bf16.gmra.mxu1 %v192_v3  ;;  %1157 = vmatmul.bf16.gmra.mxu2 %v248_v4  ;;  %v253_v3 = vrot.slane %v2095_v50, 1  ;;  %v279_v4 = vrot.slane %v2095_v50, 3 }
  0x63   :  { %1206 = vmatmul.bf16.gmra.mxu3 %v274_v5  ;;  %1255 = vmatmul.bf16.gmra.mxu0 %v308_v6  ;;  %v319_v5 = vor.u32 %v318_v63, %v317_v62  ;;  %v1985_v6 = vld [vmem:[%s2663_s1 + $0x40] sm:$0xff]   ;;  %v254_v8 = vsel %vm241_vm1, %v251_v36, %v253_v3  ;;  %v280_v9 = vsel %vm267_vm2, %v277_v37, %v279_v4 }
  0x64   :  { %v1936_v13 = vunpack.c.l.bf16 %v1985_v6  ;;  %v1937_v14 = vunpack.c.h.bf16 %v1985_v6 }
  0x65   :  { %v320_v12 = vsel %vm293_vm3, %v315_v42, %v319_v5 }
  0x66   :  { %v107_v19 = vmax.f32 %v1936_v13, 0.0 }
  0x68   :  { %v109_v24 = vpack.c.bf16 %v107_v19, %v107_v19 }
  0x6a   :  { %v161_v36 = vunpack.c.l.b16 %v109_v24 }
  0x71   :  { %1113 = vmatmul.bf16.gmra.mxu1 %v200_v20  ;;  %1162 = vmatmul.bf16.gmra.mxu2 %v250_v21  ;;  %v108_v20 = vmax.f32 %v1937_v14, 0.0  ;;  %v1870_v21 = vld [vmem:[%s2660_s2 + $0x140] sm:$0xff] }
  0x72   :  { %1293 = vmatpush.bf16.msra.mxu1 %v1870_v21 }
  0x73   :  { %1211 = vmatmul.bf16.gmra.mxu3 %v276_v22  ;;  %1260 = vmatmul.bf16.gmra.mxu0 %v312_v23  ;;  %v321_v22 = vrot.slane %v2415_v18, 3  ;;  %v322_v23 = vrot.slane %v2412_v17, 4  ;;  %v110_v27 = vpack.c.bf16 %v108_v20, %v108_v20 }
  0x75   :  { %v323_v35 = vor.u32 %v322_v23, %v321_v22  ;;  %v162_v37 = vunpack.c.l.b16 %v110_v27 }
  0x77   :  { %v324_v51 = vsel %vm293_vm3, %v319_v5, %v323_v35  ;;  %v2435_v56 = vpack.c.b16 %v162_v37, %v161_v36 }
  0x79   :  { %v2443_v62 = vshll.u32 %v2435_v56, 16  ;;  %v325_v63 = vshrl.u32 %v2435_v56, 16  ;;  %v283_v13 = vrot.slane %v2435_v56, 3 }
  0x7b   :  { %v327_v6 = vrot.slane %v325_v63, 3  ;;  %v284_v27 = vsel %vm267_vm2, %v281_v34, %v283_v13 }
  0x81   :  { %1118 = vmatmul.bf16.gmra.mxu1 %v208_v43  ;;  %1167 = vmatmul.bf16.gmra.mxu2 %v252_v44  ;;  %v224_v43 = vsel %vm164_vm0, %v219_v31, %v223_v32  ;;  %v256_v44 = vsel %vm241_vm1, %v253_v3, %v255_v33 }
  0x83   :  { %1216 = vmatmul.bf16.gmra.mxu3 %v278_v45  ;;  %1265 = vmatmul.bf16.gmra.mxu0 %v316_v47  ;;  %v282_v47 = vsel %vm267_vm2, %v279_v4, %v281_v34  ;;  %v392_v34 = vrot.slane %v2191_v52, 6  ;;  %v436_v52 = vrot.slane %v2103_v54, 7 }
  0x91   :  { %1123 = vmatmul.bf16.gmra.mxu1 %v216_v7  ;;  %1172 = vmatmul.bf16.gmra.mxu2 %v254_v8  ;;  %v328_v7 = vrot.slane %v2443_v62, 4  ;;  %v227_v8 = vor.u32 %v2415_v18, %v223_v32 }
  0x93   :  { %1221 = vmatmul.bf16.gmra.mxu3 %v280_v9  ;;  %1270 = vmatmul.bf16.gmra.mxu0 %v320_v12  ;;  %v231_v9 = vrot.slane %v2443_v62, 1  ;;  %v257_v12 = vrot.slane %v2435_v56, 1  ;;  %v329_v14 = vor.u32 %v328_v7, %v327_v6  ;;  %v367_v6 = vrot.slane %v2163_v41, 6 }
  0x95   :  { %v232_v22 = vsel %vm164_vm0, %v227_v8, %v231_v9  ;;  %v258_v23 = vsel %vm241_vm1, %v255_v33, %v257_v12  ;;  %v330_v28 = vsel %vm293_vm3, %v323_v35, %v329_v14  ;;  %v393_v35 = vrot.slane %v2180_v46, 7 }
  0x96   :  { %v437_v46 = vrot.slane %v2163_v41, 7 }
  0x97   :  { %v394_v7 = vor.u32 %v393_v35, %v392_v34 }
  0x9e   :  { %v2429_v42 = vpop.f32.mrf.mxu1 }
  0xa0   :  { %v1050_v45 = vpop.f32.mrf.mxu0 }
  0xa1   :  { %1128 = vmatmul.bf16.gmra.mxu1 %v224_v43  ;;  %1177 = vmatmul.bf16.gmra.mxu2 %v256_v44  ;;  %v395_v44 = vrot.slane %v2197_v55, 6 }
  0xa3   :  { %1226 = vmatmul.bf16.gmra.mxu3 %v282_v47  ;;  %1275 = vmatmul.bf16.gmra.mxu0 %v324_v51  ;;  %v396_v47 = vrot.slane %v2194_v53, 7  ;;  %v340_v51 = vrot.slane %v2103_v54, 4  ;;  %v1051_v53 = vadd.f32 %v2440_v61, %v1050_v45 }
  0xa4   :  { %v1070_v0 = vpop.f32.mrf.mxu2 }
  0xa5   :  { %v2447_v1 = vadd.f32 %v2440_v61, %v1070_v0  ;;  %v341_v0 = vrot.slane %v2163_v41, 4  ;;  %v397_v8 = vor.u32 %v396_v47, %v395_v44  ;;  %v399_v47 = vrot.slane %v2266_v26, 6 }
  0xa6   :  { %v1080_v2 = vpop.f32.mrf.mxu3  ;;  %v2452_v4 = vpop.f32.mrf.mxu1 }
  0xa7   :  { %v2450_v3 = vadd.f32 %v2440_v61, %v1080_v2  ;;  %v366_v2 = vrot.slane %v2103_v54, 6  ;;  %v398_v41 = vsel %vm391_vm6, %v394_v7, %v397_v8  ;;  %v343_v7 = vrot.slane %v2091_v48, 4 }
  0xa8   :  { %v1052_v5 = vpop.f32.mrf.mxu0 }
  0xac   :  { %v1072_v15 = vpop.f32.mrf.mxu2 }
  0xad   :  { %v2462_v16 = vadd.f32 %v2440_v61, %v1072_v15  ;;  %v342_v15 = vsel %vm339_vm4, %v340_v51, %v341_v0  ;;  %v400_v51 = vrot.slane %v2263_v25, 7 }
  0xae   :  { %v1082_v19 = vpop.f32.mrf.mxu3  ;;  %v2467_v21 = vpop.f32.mrf.mxu1 }
  0xaf   :  { %v2465_v20 = vadd.f32 %v2440_v61, %v1082_v19  ;;  %v368_v19 = vsel %vm365_vm5, %v366_v2, %v367_v6 }
  0xb0   :  { %v1055_v24 = vpop.f32.mrf.mxu0 }
  0xb1   :  { %1133 = vmatmul.bf16.gmra.mxu1 %v232_v22  ;;  %1182 = vmatmul.bf16.gmra.mxu2 %v258_v23  ;;  %v438_v23 = vsel %vm435_vm7, %v436_v52, %v437_v46  ;;  %v369_v52 = vrot.slane %v2091_v48, 6 }
  0xb3   :  { %1231 = vmatmul.bf16.gmra.mxu3 %v284_v27  ;;  %1280 = vmatmul.bf16.gmra.mxu0 %v330_v28  ;;  %v1053_v27 = vadd.f32 %v2440_v61, %v1052_v5  ;;  %v370_v26 = vsel %vm365_vm5, %v367_v6, %v369_v52 }
  0xb4   :  { %v1075_v31 = vpop.f32.mrf.mxu2 }
  0xb5   :  { %v2474_v32 = vadd.f32 %v2440_v61, %v1075_v31 }
  0xb6   :  { %v1085_v36 = vpop.f32.mrf.mxu3  ;;  %v2479_v43 = vpop.f32.mrf.mxu1 }
  0xb7   :  { %v2477_v37 = vadd.f32 %v2440_v61, %v1085_v36 }
  0xb8   :  { %v2481_v33 = vpop.f32.mrf.mxu0 }
  0xbc   :  { %v1077_v9 = vpop.f32.mrf.mxu2 }
  0xbd   :  { %v2495_v55 = vadd.f32 %v2440_v61, %v1077_v9  ;;  %v401_v9 = vor.u32 %v400_v51, %v399_v47  ;;  %v371_v47 = vrot.slane %v2157_v38, 6 }
  0xbe   :  { %v1087_v12 = vpop.f32.mrf.mxu3  ;;  %v1099_v14 = vpop.f32.mrf.mxu1 }
  0xbf   :  { %v2498_v13 = vadd.f32 %v2440_v61, %v1087_v12  ;;  %v1100_v54 = vadd.f32 %v1099_v14, %v1051_v53  ;;  %v439_v53 = vrot.slane %v2091_v48, 7  ;;  %v1056_v12 = vadd.f32 %v2440_v61, %v1055_v24 }
  0xc0   :  { %v1246_v22 = vpop.f32.mrf.mxu0 }
  0xc1   :  { %1294 = vmatmul.bf16.vlgmr.msra.gmra.mxu1 %v342_v15  ;;  %1343 = vmatmul.bf16.vlgmr.msra.gmra.mxu2 %v368_v19 }
  0xc3   :  { %1392 = vmatmul.bf16.vlgmr.msra.gmra.mxu3 %v398_v41  ;;  %1441 = vmatmul.bf16.vlgmr.msra.gmra.mxu0 %v438_v23  ;;  %v402_v23 = vsel %vm391_vm6, %v397_v8, %v401_v9  ;;  %v403_v8 = vrot.slane %v2303_v58, 6 }
  0xc4   :  { %v1148_v45 = vpop.f32.mrf.mxu2 }
  0xc5   :  { %v1149_v28 = vadd.f32 %v1148_v45, %v1100_v54  ;;  %v344_v54 = vsel %vm339_vm4, %v341_v0, %v343_v7  ;;  %v440_v45 = vsel %vm435_vm7, %v437_v46, %v439_v53  ;;  %v404_v46 = vrot.slane %v2300_v57, 7 }
  0xc6   :  { %v1197_v31 = vpop.f32.mrf.mxu3  ;;  %v1101_v36 = vpop.f32.mrf.mxu1  ;;  %v372_v57 = vsel %vm365_vm5, %v369_v52, %v371_v47 }
  0xc7   :  { %v1198_v34 = vadd.f32 %v1197_v31, %v1149_v28  ;;  %v1102_v35 = vadd.f32 %v1101_v36, %v1053_v27  ;;  %v1058_v27 = vadd.f32 %v2440_v61, %v2481_v33  ;;  %v405_v51 = vor.u32 %v404_v46, %v403_v8 }
  0xc8   :  { %v1248_v44 = vpop.f32.mrf.mxu0  ;;  %v1066_v8 = vadd.f32 %v2440_v61, %v2467_v21 }
  0xc9   :  { %v2507_v2 = vadd.f32 %v1246_v22, %v1198_v34 }
  0xcc   :  { %v1150_v5 = vpop.f32.mrf.mxu2 }
  0xcd   :  { %v1151_v14 = vadd.f32 %v1150_v5, %v1102_v35  ;;  %v441_v5 = vrot.slane %v2157_v38, 7 }
  0xce   :  { %v1199_v15 = vpop.f32.mrf.mxu3  ;;  %v1104_v19 = vpop.f32.mrf.mxu1 }
  0xcf   :  { %v1200_v25 = vadd.f32 %v1199_v15, %v1151_v14  ;;  %v1105_v22 = vadd.f32 %v1104_v19, %v1056_v12  ;;  %v1061_v12 = vadd.f32 %v2440_v61, %v2429_v42 }
  0xd0   :  { %v1251_v41 = vpop.f32.mrf.mxu0 }
  0xd1   :  { %1299 = vmatmul.bf16.gmra.mxu1 %v344_v54  ;;  %1348 = vmatmul.bf16.gmra.mxu2 %v370_v26  ;;  %v2517_v48 = vadd.f32 %v1248_v44, %v1200_v25  ;;  %v345_v44 = vrot.slane %v2157_v38, 4 }
  0xd3   :  { %1397 = vmatmul.bf16.gmra.mxu3 %v402_v23  ;;  %1446 = vmatmul.bf16.gmra.mxu0 %v440_v45  ;;  %v346_v58 = vsel %vm339_vm4, %v343_v7, %v345_v44  ;;  %v1063_v23 = vadd.f32 %v2440_v61, %v2452_v4 }
  0xd4   :  { %v1153_v24 = vpop.f32.mrf.mxu2 }
  0xd5   :  { %v1154_v0 = vadd.f32 %v1153_v24, %v1105_v22  ;;  %v406_v22 = vsel %vm391_vm6, %v401_v9, %v405_v51  ;;  %v407_v9 = vrot.slane %v2331_v11, 6 }
  0xd6   :  { %v1202_v28 = vpop.f32.mrf.mxu3  ;;  %v1106_v6 = vpop.f32.mrf.mxu1 }
  0xd7   :  { %v1203_v31 = vadd.f32 %v1202_v28, %v1154_v0  ;;  %v1107_v36 = vadd.f32 %v1106_v6, %v1058_v27  ;;  %v347_v6 = vrot.slane %v2093_v49, 4 }
  0xd8   :  { %v1253_v34 = vpop.f32.mrf.mxu0 }
  0xd9   :  { %v2523_v35 = vadd.f32 %v1251_v41, %v1203_v31  ;;  %v442_v41 = vsel %vm435_vm7, %v439_v53, %v441_v5  ;;  %v408_v53 = vrot.slane %v2328_v10, 7  ;;  %v373_v31 = vrot.slane %v2093_v49, 6 }
  0xda   :  { %v348_v11 = vsel %vm339_vm4, %v345_v44, %v347_v6 }
  0xdb   :  { %v374_v10 = vsel %vm365_vm5, %v371_v47, %v373_v31 }
  0xdc   :  { %v1155_v33 = vpop.f32.mrf.mxu2 }
  0xdd   :  { %v1156_v14 = vadd.f32 %v1155_v33, %v1107_v36  ;;  %v409_v36 = vor.u32 %v408_v53, %v407_v9 }
  0xde   :  { %v1204_v15 = vpop.f32.mrf.mxu3  ;;  %v1109_v19 = vpop.f32.mrf.mxu1 }
  0xdf   :  { %v1205_v54 = vadd.f32 %v1204_v15, %v1156_v14  ;;  %v1110_v26 = vadd.f32 %v1109_v19, %v1061_v12 }
  0xe0   :  { %v1256_v25 = vpop.f32.mrf.mxu0 }
  0xe1   :  { %1304 = vmatmul.bf16.gmra.mxu1 %v346_v58  ;;  %1353 = vmatmul.bf16.gmra.mxu2 %v372_v57  ;;  %v2534_v38 = vadd.f32 %v1253_v34, %v1205_v54  ;;  %v443_v34 = vrot.slane %v2093_v49, 7  ;;  %v410_v58 = vsel %vm391_vm6, %v405_v51, %v409_v36  ;;  %v1068_v54 = vadd.f32 %v2440_v61, %v2479_v43 }
  0xe2   :  { %v411_v51 = vrot.slane %v2359_v30, 6 }
  0xe3   :  { %1402 = vmatmul.bf16.gmra.mxu3 %v406_v22  ;;  %1451 = vmatmul.bf16.gmra.mxu0 %v442_v41  ;;  %v444_v57 = vsel %vm435_vm7, %v441_v5, %v443_v34  ;;  %v412_v5 = vrot.slane %v2356_v29, 7 }
  0xe4   :  { %v1158_v42 = vpop.f32.mrf.mxu2 }
  0xe5   :  { %v1159_v7 = vadd.f32 %v1158_v42, %v1110_v26 }
  0xe6   :  { %v1207_v45 = vpop.f32.mrf.mxu3  ;;  %v1111_v52 = vpop.f32.mrf.mxu1 }
  0xe7   :  { %v1208_v24 = vadd.f32 %v1207_v45, %v1159_v7  ;;  %v1112_v27 = vadd.f32 %v1111_v52, %v1063_v23  ;;  %v349_v23 = vrot.slane %v2159_v39, 4  ;;  %v375_v7 = vrot.slane %v2159_v39, 6 }
  0xe8   :  { %v1258_v0 = vpop.f32.mrf.mxu0  ;;  %v413_v45 = vor.u32 %v412_v5, %v411_v51  ;;  %v445_v52 = vrot.slane %v2159_v39, 7 }
  0xe9   :  { %v2540_v28 = vadd.f32 %v1256_v25, %v1208_v24  ;;  %v376_v9 = vsel %vm365_vm5, %v373_v31, %v375_v7 }
  0xec   :  { %v1160_v4 = vpop.f32.mrf.mxu2 }
  0xed   :  { %v1161_v46 = vadd.f32 %v1160_v4, %v1112_v27  ;;  %v414_v4 = vsel %vm391_vm6, %v409_v36, %v413_v45  ;;  %v416_v36 = vrot.slane %v2381_v59, 7 }
  0xee   :  { %v1209_v33 = vpop.f32.mrf.mxu3  ;;  %v1114_v12 = vpop.f32.mrf.mxu1 }
  0xef   :  { %v1210_v14 = vadd.f32 %v1209_v33, %v1161_v46  ;;  %v1115_v15 = vadd.f32 %v1114_v12, %v1066_v8  ;;  %v446_v8 = vsel %vm435_vm7, %v443_v34, %v445_v52  ;;  %v351_v34 = vrot.slane %v2095_v50, 4 }
  0xf0   :  { %v1261_v19 = vpop.f32.mrf.mxu0 }
  0xf1   :  { %1309 = vmatmul.bf16.gmra.mxu1 %v348_v11  ;;  %1358 = vmatmul.bf16.gmra.mxu2 %v374_v10  ;;  %v2551_v49 = vadd.f32 %v1258_v0, %v1210_v14  ;;  %v350_v0 = vsel %vm339_vm4, %v347_v6, %v349_v23 }
  0xf3   :  { %1407 = vmatmul.bf16.gmra.mxu3 %v410_v58  ;;  %1456 = vmatmul.bf16.gmra.mxu0 %v444_v57  ;;  %v447_v58 = vrot.slane %v2095_v50, 7 }
  0xf4   :  { %v1163_v21 = vpop.f32.mrf.mxu2 }
  0xf5   :  { %v1164_v44 = vadd.f32 %v1163_v21, %v1115_v15  ;;  %v377_v15 = vrot.slane %v2095_v50, 6 }
  0xf6   :  { %v1212_v26 = vpop.f32.mrf.mxu3  ;;  %v1116_v47 = vpop.f32.mrf.mxu1 }
  0xf7   :  { %v1213_v25 = vadd.f32 %v1212_v26, %v1164_v44  ;;  %v1117_v22 = vadd.f32 %v1116_v47, %v1068_v54  ;;  %v378_v26 = vsel %vm365_vm5, %v375_v7, %v377_v15 }
  0xf8   :  { %v1263_v41 = vpop.f32.mrf.mxu0 }
  0xf9   :  { %v2557_v42 = vadd.f32 %v1261_v19, %v1213_v25 }
  0xfc   :  { %v1165_v61 = vpop.f32.mrf.mxu2 }
  0xfd   :  { %v1166_v43 = vadd.f32 %v1165_v61, %v1117_v22  ;;  %v448_v22 = vsel %vm435_vm7, %v445_v52, %v447_v58  ;;  %v353_v52 = vrot.slane %v2161_v40, 4 }
  0xfe   :  { %v1214_v24 = vpop.f32.mrf.mxu3  ;;  %v1119_v27 = vpop.f32.mrf.mxu1 }
  0xff   :  { %v1215_v30 = vadd.f32 %v1214_v24, %v1166_v43  ;;  %v1120_v29 = vadd.f32 %v1119_v27, %v2447_v1  ;;  %v415_v1 = vrot.slane %v2384_v60, 6  ;;  %v379_v27 = vrot.slane %v2161_v40, 6 }
 0x100   :  { %v1266_v53 = vpop.f32.mrf.mxu0 }
 0x101   :  { %1314 = vmatmul.bf16.gmra.mxu1 %v350_v0  ;;  %1363 = vmatmul.bf16.gmra.mxu2 %v376_v9  ;;  %v2567_v46 = vadd.f32 %v1263_v41, %v1215_v30  ;;  %v417_v19 = vor.u32 %v416_v36, %v415_v1  ;;  %v449_v9 = vrot.slane %v2161_v40, 7 }
 0x103   :  { %1412 = vmatmul.bf16.gmra.mxu3 %v414_v4  ;;  %1461 = vmatmul.bf16.gmra.mxu0 %v446_v8  ;;  %v418_v25 = vsel %vm391_vm6, %v413_v45, %v417_v19  ;;  %v420_v45 = vrot.slane %v2412_v17, 7  ;;  %v380_v8 = vsel %vm365_vm5, %v377_v15, %v379_v27  ;;  %v424_v15 = vrot.slane %v2443_v62, 7 }
 0x104   :  { %v1168_v39 = vpop.f32.mrf.mxu2 }
 0x105   :  { %v1169_v33 = vadd.f32 %v1168_v39, %v1120_v29 }
 0x106   :  { %v1217_v12 = vpop.f32.mrf.mxu3  ;;  %v1121_v6 = vpop.f32.mrf.mxu1 }
 0x107   :  { %v1218_v11 = vadd.f32 %v1217_v12, %v1169_v33  ;;  %v1122_v31 = vadd.f32 %v1121_v6, %v2462_v16  ;;  %v352_v16 = vsel %vm339_vm4, %v349_v23, %v351_v34  ;;  %v450_v12 = vsel %vm435_vm7, %v447_v58, %v449_v9 }
 0x108   :  { %v1268_v10 = vpop.f32.mrf.mxu0  ;;  %v355_v58 = vrot.slane %v2435_v56, 4 }
 0x109   :  { %v2572_v14 = vadd.f32 %v1266_v53, %v1218_v11 }
 0x10c   :  { %v1170_v57 = vpop.f32.mrf.mxu2 }
 0x10d   :  { %v1171_v21 = vadd.f32 %v1170_v57, %v1122_v31  ;;  %v381_v57 = vrot.slane %v2435_v56, 6 }
 0x10e   :  { %v1219_v54 = vpop.f32.mrf.mxu3  ;;  %v1124_v44 = vpop.f32.mrf.mxu1 }
 0x10f   :  { %v1220_v60 = vadd.f32 %v1219_v54, %v1171_v21  ;;  %v1125_v59 = vadd.f32 %v1124_v44, %v2474_v32  ;;  %v419_v32 = vrot.slane %v2415_v18, 6  ;;  %v451_v54 = vrot.slane %v2435_v56, 7 }
 0x110   :  { %v1271_v47 = vpop.f32.mrf.mxu0 }
 0x111   :  { %1319 = vmatmul.bf16.gmra.mxu1 %v352_v16  ;;  %1368 = vmatmul.bf16.gmra.mxu2 %v378_v26  ;;  %v2582_v41 = vadd.f32 %v1268_v10, %v1220_v60  ;;  %v421_v0 = vor.u32 %v420_v45, %v419_v32 }
 0x113   :  { %1417 = vmatmul.bf16.gmra.mxu3 %v418_v25  ;;  %1466 = vmatmul.bf16.gmra.mxu0 %v448_v22  ;;  %v422_v33 = vsel %vm391_vm6, %v417_v19, %v421_v0  ;;  %v452_v22 = vsel %vm435_vm7, %v449_v9, %v451_v54 }
 0x114   :  { %v1173_v50 = vpop.f32.mrf.mxu2 }
 0x115   :  { %v1174_v51 = vadd.f32 %v1173_v50, %v1125_v59  ;;  %v382_v59 = vsel %vm365_vm5, %v379_v27, %v381_v57 }
 0x116   :  { %v1222_v5 = vpop.f32.mrf.mxu3  ;;  %v1126_v23 = vpop.f32.mrf.mxu1 }
 0x117   :  { %v1223_v61 = vadd.f32 %v1222_v5, %v1174_v51  ;;  %v1127_v7 = vadd.f32 %v1126_v23, %v2495_v55  ;;  %v354_v55 = vsel %vm339_vm4, %v351_v34, %v353_v52 }
 0x118   :  { %v1273_v43 = vpop.f32.mrf.mxu0 }
 0x119   :  { %v2587_v24 = vadd.f32 %v1271_v47, %v1223_v61 }
 0x11c   :  { %v1175_v30 = vpop.f32.mrf.mxu2 }
 0x11d   :  { %v1176_v29 = vadd.f32 %v1175_v30, %v1127_v7 }
 0x11e   :  { %v1224_v53 = vpop.f32.mrf.mxu3  ;;  %v1129_v4 = vpop.f32.mrf.mxu1 }
 0x11f   :  { %v1225_v18 = vadd.f32 %v1224_v53, %v1176_v29  ;;  %v1130_v17 = vadd.f32 %v1129_v4, %v2450_v3  ;;  %v423_v3 = vrot.slane %v325_v63, 6 }
 0x120   :  { %v1276_v39 = vpop.f32.mrf.mxu0 }
 0x121   :  { %1324 = vmatmul.bf16.gmra.mxu1 %v354_v55  ;;  %1373 = vmatmul.bf16.gmra.mxu2 %v380_v8  ;;  %v2597_v6 = vadd.f32 %v1273_v43, %v1225_v18  ;;  %v425_v21 = vor.u32 %v424_v15, %v423_v3 }
 0x123   :  { %1422 = vmatmul.bf16.gmra.mxu3 %v422_v33  ;;  %1471 = vmatmul.bf16.gmra.mxu0 %v450_v12  ;;  %v426_v25 = vsel %vm391_vm6, %v421_v0, %v425_v21 }
 0x124   :  { %v1178_v40 = vpop.f32.mrf.mxu2 }
 0x125   :  { %v1179_v11 = vadd.f32 %v1178_v40, %v1130_v17 }
 0x126   :  { %v1227_v31 = vpop.f32.mrf.mxu3  ;;  %v1131_v10 = vpop.f32.mrf.mxu1 }
 0x127   :  { %v1228_v1 = vadd.f32 %v1227_v31, %v1179_v11  ;;  %v1132_v36 = vadd.f32 %v1131_v10, %v2465_v20  ;;  %v356_v20 = vsel %vm339_vm4, %v353_v52, %v355_v58 }
 0x128   :  { %v1278_v34 = vpop.f32.mrf.mxu0 }
 0x129   :  { %v2603_v19 = vadd.f32 %v1276_v39, %v1228_v1 }
 0x12c   :  { %v1180_v44 = vpop.f32.mrf.mxu2 }
 0x12d   :  { %v1181_v16 = vadd.f32 %v1180_v44, %v1132_v36 }
 0x12e   :  { %v1229_v26 = vpop.f32.mrf.mxu3  ;;  %v1134_v60 = vpop.f32.mrf.mxu1 }
 0x12f   :  { %v1230_v63 = vadd.f32 %v1229_v26, %v1181_v16  ;;  %v1135_v62 = vadd.f32 %v1134_v60, %v2477_v37 }
 0x130   :  { %v1281_v47 = vpop.f32.mrf.mxu0 }
 0x131   :  { %1329 = vmatmul.bf16.gmra.mxu1 %v356_v20  ;;  %1378 = vmatmul.bf16.gmra.mxu2 %v382_v59  ;;  %v2613_v50 = vadd.f32 %v1278_v34, %v1230_v63 }
 0x133   :  { %1427 = vmatmul.bf16.gmra.mxu3 %v426_v25  ;;  %1476 = vmatmul.bf16.gmra.mxu0 %v452_v22 }
 0x134   :  { %v1183_v56 = vpop.f32.mrf.mxu2 }
 0x135   :  { %v1184_v51 = vadd.f32 %v1183_v56, %v1135_v62 }
 0x136   :  { %v1232_v5 = vpop.f32.mrf.mxu3  ;;  %v1136_v23 = vpop.f32.mrf.mxu1 }
 0x137   :  { %v1233_v61 = vadd.f32 %v1232_v5, %v1184_v51  ;;  %v1137_v7 = vadd.f32 %v1136_v23, %v2498_v13 }
 0x138   :  { %v1283_v43 = vpop.f32.mrf.mxu0 }
 0x139   :  { %v2616_v37 = vadd.f32 %v1281_v47, %v1233_v61 }
 0x13c   :  { %v1185_v32 = vpop.f32.mrf.mxu2 }
 0x13d   :  { %v1186_v45 = vadd.f32 %v1185_v32, %v1137_v7 }
 0x13e   :  { %v1234_v52 = vpop.f32.mrf.mxu3  ;;  %v1295_v27 = vpop.f32.mrf.mxu1 }
 0x13f   :  { %v1235_v0 = vadd.f32 %v1234_v52, %v1186_v45  ;;  %v1296_v53 = vadd.f32 %v1295_v27, %v2507_v2 }
 0x140   :  { %v1442_v9 = vpop.f32.mrf.mxu0 }
 0x141   :  { %v2618_v30 = vadd.f32 %v1283_v43, %v1235_v0 }
 0x144   :  { %v1344_v29 = vpop.f32.mrf.mxu2 }
 0x145   :  { %v1345_v8 = vadd.f32 %v1344_v29, %v1296_v53 }
 0x146   :  { %v1393_v4 = vpop.f32.mrf.mxu3  ;;  %v1297_v55 = vpop.f32.mrf.mxu1 }
 0x147   :  { %v1394_v17 = vadd.f32 %v1393_v4, %v1345_v8  ;;  %v1298_v13 = vadd.f32 %v1297_v55, %v2517_v48 }
 0x148   :  { %v1444_v18 = vpop.f32.mrf.mxu0 }
 0x149   :  { %v1443_v11 = vadd.f32 %v1442_v9, %v1394_v17 }
 0x14b   :  { %v1482_v36 = vmax.f32 %v1443_v11, 0.0 }
 0x14c   :  { %v1346_v39 = vpop.f32.mrf.mxu2 }
 0x14d   :  { %v1347_v33 = vadd.f32 %v1346_v39, %v1298_v13 }
 0x14e   :  { %v1395_v12 = vpop.f32.mrf.mxu3  ;;  %v1300_v40 = vpop.f32.mrf.mxu1 }
 0x14f   :  { %v1396_v31 = vadd.f32 %v1395_v12, %v1347_v33  ;;  %v1301_v2 = vadd.f32 %v1300_v40, %v2523_v35 }
 0x150   :  { %v1447_v10 = vpop.f32.mrf.mxu0 }
 0x151   :  { %v1445_v1 = vadd.f32 %v1444_v18, %v1396_v31 }
 0x153   :  { %v1483_v34 = vmax.f32 %v1445_v1, 0.0 }
 0x154   :  { %v1349_v3 = vpop.f32.mrf.mxu2 }
 0x155   :  { %v1941_v15 = vpack.c.bf16 %v1483_v34, %v1482_v36  ;;  %v1350_v48 = vadd.f32 %v1349_v3, %v1301_v2 }
 0x156   :  { %v1398_v58 = vpop.f32.mrf.mxu3  ;;  %v1302_v57 = vpop.f32.mrf.mxu1 }
 0x157   :  { %1942 = vst [vmem:[%s2664_s4] sm:$0xff] %v1941_v15   ;;  %v1399_v54 = vadd.f32 %v1398_v58, %v1350_v48  ;;  %v1303_v44 = vadd.f32 %v1302_v57, %v2534_v38 }
 0x158   :  { %v1449_v21 = vpop.f32.mrf.mxu0 }
 0x159   :  { %v1448_v59 = vadd.f32 %v1447_v10, %v1399_v54 }
 0x15b   :  { %v1484_v35 = vmax.f32 %v1448_v59, 0.0 }
 0x15c   :  { %v1351_v16 = vpop.f32.mrf.mxu2 }
 0x15d   :  { %v1352_v26 = vadd.f32 %v1351_v16, %v1303_v44 }
 0x15e   :  { %v1400_v60 = vpop.f32.mrf.mxu3  ;;  %v1305_v20 = vpop.f32.mrf.mxu1 }
 0x15f   :  { %v1401_v63 = vadd.f32 %v1400_v60, %v1352_v26  ;;  %v1306_v51 = vadd.f32 %v1305_v20, %v2540_v28 }
 0x160   :  { %v1452_v62 = vpop.f32.mrf.mxu0 }
 0x161   :  { %v1450_v47 = vadd.f32 %v1449_v21, %v1401_v63 }
 0x163   :  { %v1485_v25 = vmax.f32 %v1450_v47, 0.0 }
 0x164   :  { %v1354_v22 = vpop.f32.mrf.mxu2 }
 0x165   :  { %v1946_v56 = vpack.c.bf16 %v1485_v25, %v1484_v35  ;;  %v1355_v38 = vadd.f32 %v1354_v22, %v1306_v51 }
 0x166   :  { %v1403_v5 = vpop.f32.mrf.mxu3  ;;  %v1307_v23 = vpop.f32.mrf.mxu1 }
 0x167   :  { %1986 = vst [vmem:[%s2664_s4 + $0x8] sm:$0xff] %v1946_v56   ;;  %v1404_v7 = vadd.f32 %v1403_v5, %v1355_v38  ;;  %v1308_v43 = vadd.f32 %v1307_v23, %v2551_v49 }
 0x168   :  { %v1454_v61 = vpop.f32.mrf.mxu0 }
 0x169   :  { %v1453_v0 = vadd.f32 %v1452_v62, %v1404_v7 }
 0x16b   :  { %v1486_v28 = vmax.f32 %v1453_v0, 0.0 }
 0x16c   :  { %v1356_v32 = vpop.f32.mrf.mxu2 }
 0x16d   :  { %v1357_v45 = vadd.f32 %v1356_v32, %v1308_v43 }
 0x16e   :  { %v1405_v52 = vpop.f32.mrf.mxu3  ;;  %v1310_v27 = vpop.f32.mrf.mxu1 }
 0x16f   :  { %v1406_v9 = vadd.f32 %v1405_v52, %v1357_v45  ;;  %v1311_v18 = vadd.f32 %v1310_v27, %v2557_v42 }
 0x170   :  { %v1457_v29 = vpop.f32.mrf.mxu0 }
 0x171   :  { %v1455_v53 = vadd.f32 %v1454_v61, %v1406_v9 }
 0x173   :  { %v1487_v4 = vmax.f32 %v1455_v53, 0.0 }
 0x174   :  { %v1359_v55 = vpop.f32.mrf.mxu2 }
 0x175   :  { %v1951_v8 = vpack.c.bf16 %v1487_v4, %v1486_v28  ;;  %v1360_v49 = vadd.f32 %v1359_v55, %v1311_v18 }
 0x176   :  { %v1408_v17 = vpop.f32.mrf.mxu3  ;;  %v1312_v13 = vpop.f32.mrf.mxu1 }
 0x177   :  { %1987 = vst [vmem:[%s2664_s4 + $0x10] sm:$0xff] %v1951_v8   ;;  %v1409_v33 = vadd.f32 %v1408_v17, %v1360_v49  ;;  %v1313_v12 = vadd.f32 %v1312_v13, %v2567_v46 }
 0x178   :  { %v1459_v39 = vpop.f32.mrf.mxu0 }
 0x179   :  { %v1458_v1 = vadd.f32 %v1457_v29, %v1409_v33 }
 0x17b   :  { %v1488_v42 = vmax.f32 %v1458_v1, 0.0 }
 0x17c   :  { %v1361_v40 = vpop.f32.mrf.mxu2 }
 0x17d   :  { %v1362_v11 = vadd.f32 %v1361_v40, %v1313_v12 }
 0x17e   :  { %v1410_v31 = vpop.f32.mrf.mxu3  ;;  %v1315_v10 = vpop.f32.mrf.mxu1 }
 0x17f   :  { %v1411_v36 = vadd.f32 %v1410_v31, %v1362_v11  ;;  %v1316_v57 = vadd.f32 %v1315_v10, %v2572_v14 }
 0x180   :  { %v1462_v34 = vpop.f32.mrf.mxu0 }
 0x181   :  { %v1460_v3 = vadd.f32 %v1459_v39, %v1411_v36 }
 0x183   :  { %v1489_v15 = vmax.f32 %v1460_v3, 0.0 }
 0x184   :  { %v1364_v2 = vpop.f32.mrf.mxu2 }
 0x185   :  { %v1956_v58 = vpack.c.bf16 %v1489_v15, %v1488_v42  ;;  %v1365_v46 = vadd.f32 %v1364_v2, %v1316_v57 }
 0x186   :  { %v1413_v48 = vpop.f32.mrf.mxu3  ;;  %v1317_v21 = vpop.f32.mrf.mxu1 }
 0x187   :  { %1988 = vst [vmem:[%s2664_s4 + $0x18] sm:$0xff] %v1956_v58   ;;  %v1414_v44 = vadd.f32 %v1413_v48, %v1365_v46  ;;  %v1318_v16 = vadd.f32 %v1317_v21, %v2582_v41 }
 0x188   :  { %v1464_v54 = vpop.f32.mrf.mxu0 }
 0x189   :  { %v1463_v63 = vadd.f32 %v1462_v34, %v1414_v44 }
 0x18b   :  { %v1490_v14 = vmax.f32 %v1463_v63, 0.0 }
 0x18c   :  { %v1366_v26 = vpop.f32.mrf.mxu2 }
 0x18d   :  { %v1367_v60 = vadd.f32 %v1366_v26, %v1318_v16 }
 0x18e   :  { %v1415_v20 = vpop.f32.mrf.mxu3  ;;  %v1320_v59 = vpop.f32.mrf.mxu1 }
 0x18f   :  { %v1416_v62 = vadd.f32 %v1415_v20, %v1367_v60  ;;  %v1321_v51 = vadd.f32 %v1320_v59, %v2587_v24 }
 0x190   :  { %v1467_v47 = vpop.f32.mrf.mxu0 }
 0x191   :  { %v1465_v35 = vadd.f32 %v1464_v54, %v1416_v62 }
 0x193   :  { %v1491_v25 = vmax.f32 %v1465_v35, 0.0 }
 0x194   :  { %v1369_v22 = vpop.f32.mrf.mxu2 }
 0x195   :  { %v1961_v56 = vpack.c.bf16 %v1491_v25, %v1490_v14  ;;  %v1370_v41 = vadd.f32 %v1369_v22, %v1321_v51 }
 0x196   :  { %v1418_v5 = vpop.f32.mrf.mxu3  ;;  %v1322_v23 = vpop.f32.mrf.mxu1 }
 0x197   :  { %1989 = vst [vmem:[%s2664_s4 + $0x20] sm:$0xff] %v1961_v56   ;;  %v1419_v61 = vadd.f32 %v1418_v5, %v1370_v41  ;;  %v1323_v7 = vadd.f32 %v1322_v23, %v2597_v6 }
 0x198   :  { %v1469_v38 = vpop.f32.mrf.mxu0 }
 0x199   :  { %v1468_v27 = vadd.f32 %v1467_v47, %v1419_v61 }
 0x19b   :  { %v1492_v24 = vmax.f32 %v1468_v27, 0.0 }
 0x19c   :  { %v1371_v43 = vpop.f32.mrf.mxu2 }
 0x19d   :  { %v1372_v32 = vadd.f32 %v1371_v43, %v1323_v7 }
 0x19e   :  { %v1420_v45 = vpop.f32.mrf.mxu3  ;;  %v1325_v52 = vpop.f32.mrf.mxu1 }
 0x19f   :  { %v1421_v0 = vadd.f32 %v1420_v45, %v1372_v32  ;;  %v1326_v55 = vadd.f32 %v1325_v52, %v2603_v19 }
 0x1a0   :  { %v1472_v29 = vpop.f32.mrf.mxu0 }
 0x1a1   :  { %v1470_v9 = vadd.f32 %v1469_v38, %v1421_v0 }
 0x1a3   :  { %v1493_v53 = vmax.f32 %v1470_v9, 0.0 }
 0x1a4   :  { %v1374_v28 = vpop.f32.mrf.mxu2 }
 0x1a5   :  { %v1966_v4 = vpack.c.bf16 %v1493_v53, %v1492_v24  ;;  %v1375_v6 = vadd.f32 %v1374_v28, %v1326_v55 }
 0x1a6   :  { %v1423_v8 = vpop.f32.mrf.mxu3  ;;  %v1327_v18 = vpop.f32.mrf.mxu1 }
 0x1a7   :  { %1990 = vst [vmem:[%s2664_s4 + $0x28] sm:$0xff] %v1966_v4   ;;  %v1424_v17 = vadd.f32 %v1423_v8, %v1375_v6  ;;  %v1328_v13 = vadd.f32 %v1327_v18, %v2613_v50 }
 0x1a8   :  { %v1474_v49 = vpop.f32.mrf.mxu0 }
 0x1a9   :  { %v1473_v11 = vadd.f32 %v1472_v29, %v1424_v17 }
 0x1ab   :  { %v1494_v1 = vmax.f32 %v1473_v11, 0.0 }
 0x1ac   :  { %v1376_v39 = vpop.f32.mrf.mxu2 }
 0x1ad   :  { %v1377_v33 = vadd.f32 %v1376_v39, %v1328_v13 }
 0x1ae   :  { %v1425_v12 = vpop.f32.mrf.mxu3  ;;  %v1330_v40 = vpop.f32.mrf.mxu1 }
 0x1af   :  { %v1426_v31 = vadd.f32 %v1425_v12, %v1377_v33  ;;  %v1331_v3 = vadd.f32 %v1330_v40, %v2616_v37 }
 0x1b0   :  { %v1477_v15 = vpop.f32.mrf.mxu0 }
 0x1b1   :  { %v1475_v10 = vadd.f32 %v1474_v49, %v1426_v31 }
 0x1b3   :  { %v1495_v19 = vmax.f32 %v1475_v10, 0.0 }
 0x1b4   :  { %v1379_v36 = vpop.f32.mrf.mxu2 }
 0x1b5   :  { %v1971_v34 = vpack.c.bf16 %v1495_v19, %v1494_v1  ;;  %v1380_v50 = vadd.f32 %v1379_v36, %v1331_v3 }
 0x1b6   :  { %v1428_v42 = vpop.f32.mrf.mxu3  ;;  %v1332_v2 = vpop.f32.mrf.mxu1 }
 0x1b7   :  { %1991 = vst [vmem:[%s2664_s4 + $0x30] sm:$0xff] %v1971_v34   ;;  %v1429_v58 = vadd.f32 %v1428_v42, %v1380_v50  ;;  %v1333_v57 = vadd.f32 %v1332_v2, %v2618_v30 }
 0x1b8   :  { %v1479_v16 = vpop.f32.mrf.mxu0 }
 0x1b9   :  { %v1478_v54 = vadd.f32 %v1477_v15, %v1429_v58 }
 0x1bb   :  { %v1496_v60 = vmax.f32 %v1478_v54, 0.0 }
 0x1bc   :  { %v1381_v48 = vpop.f32.mrf.mxu2 }
 0x1bd   :  { %v1382_v21 = vadd.f32 %v1381_v48, %v1333_v57 }
 0x1be   :  { %v1430_v46 = vpop.f32.mrf.mxu3 }
 0x1bf   :  { %v1431_v44 = vadd.f32 %v1430_v46, %v1382_v21 }
 0x1c1   :  { %v1480_v26 = vadd.f32 %v1479_v16, %v1431_v44 }
 0x1c3   :  { %v1497_v37 = vmax.f32 %v1480_v26, 0.0 }
 0x1c5   :  { %v1976_v20 = vpack.c.bf16 %v1497_v37, %v1496_v60 }
 0x1c7   :  { %1992 = vst [vmem:[%s2664_s4 + $0x38] sm:$0xff] %v1976_v20  }

// kernel: vqvae_forward.23
= control target key start
LH: loop header
LB: loop body
LE: loop exit
PB: predicated region body
PF: predicated region fallthrough
CT: control target
= control target key end

     0   :  { %vm83_vm0 = vcmask 130048   ;;  %s340_s1 = inlined_call_operand.vmem [shape: bf16[16,128], index: 1, kind: input, shape index: {}]   ;;  %s341_s0 = inlined_call_operand.vmem [shape: bf16[128,16], index: 0, kind: input, shape index: {}]   ;;  %s342_s2 = inlined_call_operand.vmem [shape: f32[1,128], index: 2, kind: input, shape index: {}]   ;;  %s343_s3 = inlined_call_operand.vmem [shape: f32[128,128], index: 3, kind: output, shape index: {}]  }
   0x1   :  { %v229_v0 = vld [vmem:[%s340_s1] sm:$0xff]  ;;  %v223_v2 = vld [vmem:[%s341_s0 + $0x10] sm:$0xff]  ;;  %v222_v5 = vld [vmem:[%s341_s0 + $0x8] sm:$0xff] }
   0x2   :  { %v221_v1 = vld [vmem:[%s341_s0] sm:$0xff]  ;;  %115 = vmatpush.bf16.msra.mxu0 %v229_v0  ;;  %230 = vmatpush.bf16.msra.mxu1 %v229_v0  ;;  %v227_v4 = vld [vmem:[%s341_s0 + $0x30] sm:$0xff]  ;;  %v224_v6 = vld [vmem:[%s341_s0 + $0x18] sm:$0xff] }
   0x3   :  { %v225_v3 = vld [vmem:[%s341_s0 + $0x20] sm:$0xff]  ;;  %231 = vmatpush.bf16.msra.mxu2 %v229_v0  ;;  %232 = vmatpush.bf16.msra.mxu3 %v229_v0  ;;  %v226_v7 = vld [vmem:[%s341_s0 + $0x28] sm:$0xff]  ;;  %v228_v8 = vld [vmem:[%s341_s0 + $0x38] sm:$0xff] }
   0x4   :  { %v233_v9 = vld [vmem:[%s342_s2] ss:$0 sm:$0xff] }
   0x5   :  { %213 = vmatmul.msk.bf16.vlgmr.msra.gmra.mxu0 %vm83_vm0, %v221_v1  ;;  %215 = vmatmul.msk.bf16.vlgmr.msra.gmra.mxu1 %vm83_vm0, %v223_v2 }
   0x6   :  { %217 = vmatmul.msk.bf16.vlgmr.msra.gmra.mxu2 %vm83_vm0, %v225_v3  ;;  %219 = vmatmul.msk.bf16.vlgmr.msra.gmra.mxu3 %vm83_vm0, %v227_v4 }
  0x15   :  { %214 = vmatmul.msk.bf16.gmra.mxu0 %vm83_vm0, %v222_v5  ;;  %216 = vmatmul.msk.bf16.gmra.mxu1 %vm83_vm0, %v224_v6 }
  0x16   :  { %218 = vmatmul.msk.bf16.gmra.mxu2 %vm83_vm0, %v226_v7  ;;  %220 = vmatmul.msk.bf16.gmra.mxu3 %vm83_vm0, %v228_v8 }
  0x82   :  { %v117_v10 = vpop.f32.mrf.mxu0  ;;  %v127_v11 = vpop.f32.mrf.mxu1 }
  0x83   :  { %v118_v12 = vadd.f32 %v233_v9, %v117_v10  ;;  %v128_v13 = vadd.f32 %v233_v9, %v127_v11 }
  0x85   :  { %157 = vst [vmem:[%s343_s3] sm:$0xff] %v118_v12 }
  0x86   :  { %161 = vst [vmem:[%s343_s3 + $0x20] sm:$0xff] %v128_v13 }
  0x89   :  { %v137_v14 = vpop.f32.mrf.mxu2  ;;  %v147_v15 = vpop.f32.mrf.mxu3 }
  0x8a   :  { %v138_v16 = vadd.f32 %v233_v9, %v137_v14  ;;  %v148_v17 = vadd.f32 %v233_v9, %v147_v15  ;;  %v119_v18 = vpop.f32.mrf.mxu0  ;;  %v129_v19 = vpop.f32.mrf.mxu1 }
  0x8b   :  { %v120_v20 = vadd.f32 %v233_v9, %v119_v18  ;;  %v130_v21 = vadd.f32 %v233_v9, %v129_v19 }
  0x8c   :  { %165 = vst [vmem:[%s343_s3 + $0x40] sm:$0xff] %v138_v16 }
  0x8d   :  { %169 = vst [vmem:[%s343_s3 + $0x60] sm:$0xff] %v148_v17 }
  0x8e   :  { %158 = vst [vmem:[%s343_s3 + $0x8] sm:$0xff] %v120_v20 }
  0x8f   :  { %162 = vst [vmem:[%s343_s3 + $0x28] sm:$0xff] %v130_v21 }
  0x91   :  { %v139_v22 = vpop.f32.mrf.mxu2  ;;  %v149_v23 = vpop.f32.mrf.mxu3 }
  0x92   :  { %v140_v24 = vadd.f32 %v233_v9, %v139_v22  ;;  %v150_v25 = vadd.f32 %v233_v9, %v149_v23  ;;  %v122_v26 = vpop.f32.mrf.mxu0  ;;  %v132_v27 = vpop.f32.mrf.mxu1 }
  0x93   :  { %v123_v28 = vadd.f32 %v233_v9, %v122_v26  ;;  %v133_v29 = vadd.f32 %v233_v9, %v132_v27 }
  0x94   :  { %166 = vst [vmem:[%s343_s3 + $0x48] sm:$0xff] %v140_v24 }
  0x95   :  { %170 = vst [vmem:[%s343_s3 + $0x68] sm:$0xff] %v150_v25 }
  0x96   :  { %159 = vst [vmem:[%s343_s3 + $0x10] sm:$0xff] %v123_v28 }
  0x97   :  { %163 = vst [vmem:[%s343_s3 + $0x30] sm:$0xff] %v133_v29 }
  0x99   :  { %v142_v30 = vpop.f32.mrf.mxu2  ;;  %v152_v31 = vpop.f32.mrf.mxu3 }
  0x9a   :  { %v143_v32 = vadd.f32 %v233_v9, %v142_v30  ;;  %v153_v33 = vadd.f32 %v233_v9, %v152_v31  ;;  %v124_v34 = vpop.f32.mrf.mxu0  ;;  %v134_v35 = vpop.f32.mrf.mxu1 }
  0x9b   :  { %v125_v36 = vadd.f32 %v233_v9, %v124_v34  ;;  %v135_v37 = vadd.f32 %v233_v9, %v134_v35 }
  0x9c   :  { %167 = vst [vmem:[%s343_s3 + $0x50] sm:$0xff] %v143_v32 }
  0x9d   :  { %171 = vst [vmem:[%s343_s3 + $0x70] sm:$0xff] %v153_v33 }
  0x9e   :  { %160 = vst [vmem:[%s343_s3 + $0x18] sm:$0xff] %v125_v36 }
  0x9f   :  { %164 = vst [vmem:[%s343_s3 + $0x38] sm:$0xff] %v135_v37 }
  0xa1   :  { %v144_v38 = vpop.f32.mrf.mxu2  ;;  %v154_v39 = vpop.f32.mrf.mxu3 }
  0xa2   :  { %v145_v40 = vadd.f32 %v233_v9, %v144_v38  ;;  %v155_v41 = vadd.f32 %v233_v9, %v154_v39 }
  0xa4   :  { %168 = vst [vmem:[%s343_s3 + $0x58] sm:$0xff] %v145_v40 }
  0xa5   :  { %172 = vst [vmem:[%s343_s3 + $0x78] sm:$0xff] %v155_v41 }

// kernel: vqvae_forward.24
= control target key start
LH: loop header
LB: loop body
LE: loop exit
PB: predicated region body
PF: predicated region fallthrough
CT: control target
= control target key end

     0   :  { %v75_v20 = vlaneseq  ;;  %vm162_vm9 = vcmask 7168   ;;  %s335_s1 = inlined_call_operand.vmem [shape: f32[128,128], index: 1, kind: input, shape index: {}]   ;;  %s336_s2 = inlined_call_operand.vmem [shape: f32[1,128], index: 2, kind: input, shape index: {}]   ;;  %s337_s0 = inlined_call_operand.vmem [shape: f32[32,128], index: 0, kind: input, shape index: {}]   ;;  %s338_s3 = inlined_call_operand.vmem [shape: s32[32,1], index: 3, kind: output, shape index: {}]  }
   0x1   :  { %v33_v0 = vld [vmem:[%s335_s1 + $0x78] sm:$0xff]  ;;  %v32_v1 = vld [vmem:[%s335_s1 + $0x70] sm:$0xff]  ;;  %v31_v2 = vld [vmem:[%s335_s1 + $0x68] sm:$0xff] }
   0x2   :  { %35 = vmatpush.xpose.msra.mxu0 %v33_v0  ;;  %172 = vmatpush.xpose.msra.mxu2 %v33_v0  ;;  %v30_v3 = vld [vmem:[%s335_s1 + $0x60] sm:$0xff]  ;;  %v29_v4 = vld [vmem:[%s335_s1 + $0x58] sm:$0xff]  ;;  %v28_v5 = vld [vmem:[%s335_s1 + $0x50] sm:$0xff]  ;;  %v76_v21 = vand.u32 127, %v75_v20 }
   0x3   :  { %171 = vmatpush.xpose.msra.mxu1 %v33_v0  ;;  %173 = vmatpush.xpose.msra.mxu3 %v33_v0  ;;  %v27_v6 = vld [vmem:[%s335_s1 + $0x48] sm:$0xff]  ;;  %v26_v7 = vld [vmem:[%s335_s1 + $0x40] sm:$0xff]  ;;  %v25_v8 = vld [vmem:[%s335_s1 + $0x38] sm:$0xff] }
   0x4   :  { %v24_v9 = vld [vmem:[%s335_s1 + $0x30] sm:$0xff]  ;;  %v23_v10 = vld [vmem:[%s335_s1 + $0x28] sm:$0xff]  ;;  %v22_v11 = vld [vmem:[%s335_s1 + $0x20] sm:$0xff]  ;;  %vm77_vm0 = vcmp.lt.s32.totalorder %v76_v21, 16 }
   0x5   :  { %v21_v12 = vld [vmem:[%s335_s1 + $0x18] sm:$0xff]  ;;  %v20_v13 = vld [vmem:[%s335_s1 + $0x10] sm:$0xff]  ;;  %v19_v14 = vld [vmem:[%s335_s1 + $0x8] sm:$0xff] }
   0x6   :  { %36 = vmatpush.xpose.msra.mxu0 %v32_v1  ;;  %175 = vmatpush.xpose.msra.mxu2 %v32_v1  ;;  %v18_v15 = vld [vmem:[%s335_s1] sm:$0xff]  ;;  %v16_v17 = vld [vmem:[%s337_s0 + $0x10] sm:$0xff]  ;;  %v15_v18 = vld [vmem:[%s337_s0 + $0x8] sm:$0xff] }
   0x7   :  { %174 = vmatpush.xpose.msra.mxu1 %v32_v1  ;;  %176 = vmatpush.xpose.msra.mxu3 %v32_v1  ;;  %v14_v16 = vld [vmem:[%s337_s0] sm:$0xff]  ;;  %v17_v19 = vld [vmem:[%s337_s0 + $0x18] sm:$0xff] }
   0x8   :  { %v219_v22 = vld [vmem:[%s336_s2] ss:$0 sm:$0xff] }
   0xa   :  { %37 = vmatpush.xpose.msra.mxu0 %v31_v2  ;;  %178 = vmatpush.xpose.msra.mxu2 %v31_v2 }
   0xb   :  { %177 = vmatpush.xpose.msra.mxu1 %v31_v2  ;;  %179 = vmatpush.xpose.msra.mxu3 %v31_v2 }
   0xe   :  { %38 = vmatpush.xpose.msra.mxu0 %v30_v3  ;;  %181 = vmatpush.xpose.msra.mxu2 %v30_v3 }
   0xf   :  { %180 = vmatpush.xpose.msra.mxu1 %v30_v3  ;;  %182 = vmatpush.xpose.msra.mxu3 %v30_v3 }
  0x12   :  { %39 = vmatpush.xpose.msra.mxu0 %v29_v4  ;;  %184 = vmatpush.xpose.msra.mxu2 %v29_v4 }
  0x13   :  { %183 = vmatpush.xpose.msra.mxu1 %v29_v4  ;;  %185 = vmatpush.xpose.msra.mxu3 %v29_v4 }
  0x16   :  { %40 = vmatpush.xpose.msra.mxu0 %v28_v5  ;;  %187 = vmatpush.xpose.msra.mxu2 %v28_v5 }
  0x17   :  { %186 = vmatpush.xpose.msra.mxu1 %v28_v5  ;;  %188 = vmatpush.xpose.msra.mxu3 %v28_v5 }
  0x1a   :  { %41 = vmatpush.xpose.msra.mxu0 %v27_v6  ;;  %190 = vmatpush.xpose.msra.mxu2 %v27_v6 }
  0x1b   :  { %189 = vmatpush.xpose.msra.mxu1 %v27_v6  ;;  %191 = vmatpush.xpose.msra.mxu3 %v27_v6 }
  0x1e   :  { %42 = vmatpush.xpose.msra.mxu0 %v26_v7  ;;  %193 = vmatpush.xpose.msra.mxu2 %v26_v7 }
  0x1f   :  { %192 = vmatpush.xpose.msra.mxu1 %v26_v7  ;;  %194 = vmatpush.xpose.msra.mxu3 %v26_v7 }
  0x22   :  { %43 = vmatpush.xpose.msra.mxu0 %v25_v8  ;;  %196 = vmatpush.xpose.msra.mxu2 %v25_v8 }
  0x23   :  { %195 = vmatpush.xpose.msra.mxu1 %v25_v8  ;;  %197 = vmatpush.xpose.msra.mxu3 %v25_v8 }
  0x26   :  { %44 = vmatpush.xpose.msra.mxu0 %v24_v9  ;;  %199 = vmatpush.xpose.msra.mxu2 %v24_v9 }
  0x27   :  { %198 = vmatpush.xpose.msra.mxu1 %v24_v9  ;;  %200 = vmatpush.xpose.msra.mxu3 %v24_v9 }
  0x2a   :  { %45 = vmatpush.xpose.msra.mxu0 %v23_v10  ;;  %202 = vmatpush.xpose.msra.mxu2 %v23_v10 }
  0x2b   :  { %201 = vmatpush.xpose.msra.mxu1 %v23_v10  ;;  %203 = vmatpush.xpose.msra.mxu3 %v23_v10 }
  0x2e   :  { %46 = vmatpush.xpose.msra.mxu0 %v22_v11  ;;  %205 = vmatpush.xpose.msra.mxu2 %v22_v11 }
  0x2f   :  { %204 = vmatpush.xpose.msra.mxu1 %v22_v11  ;;  %206 = vmatpush.xpose.msra.mxu3 %v22_v11 }
  0x32   :  { %47 = vmatpush.xpose.msra.mxu0 %v21_v12  ;;  %208 = vmatpush.xpose.msra.mxu2 %v21_v12 }
  0x33   :  { %207 = vmatpush.xpose.msra.mxu1 %v21_v12  ;;  %209 = vmatpush.xpose.msra.mxu3 %v21_v12 }
  0x36   :  { %48 = vmatpush.xpose.msra.mxu0 %v20_v13  ;;  %211 = vmatpush.xpose.msra.mxu2 %v20_v13 }
  0x37   :  { %210 = vmatpush.xpose.msra.mxu1 %v20_v13  ;;  %212 = vmatpush.xpose.msra.mxu3 %v20_v13 }
  0x3a   :  { %49 = vmatpush.xpose.msra.mxu0 %v19_v14  ;;  %214 = vmatpush.xpose.msra.mxu2 %v19_v14 }
  0x3b   :  { %213 = vmatpush.xpose.msra.mxu1 %v19_v14  ;;  %215 = vmatpush.xpose.msra.mxu3 %v19_v14 }
  0x3e   :  { %50 = vmatpush.xpose.msra.mxu0 %v18_v15  ;;  %217 = vmatpush.xpose.msra.mxu2 %v18_v15 }
  0x3f   :  { %216 = vmatpush.xpose.msra.mxu1 %v18_v15  ;;  %218 = vmatpush.xpose.msra.mxu3 %v18_v15 }
  0x41   :  { %51 = vmatmul.f32.vlgmr.msra.gmra.mxu0 %v14_v16  ;;  %57 = vmatmul.f32.vlgmr.msra.gmra.mxu2 %v16_v17 }
  0x42   :  { %54 = vmatmul.f32.vlgmr.msra.gmra.mxu1 %v15_v18  ;;  %60 = vmatmul.f32.vlgmr.msra.gmra.mxu3 %v17_v19 }
  0xbe   :  { %v52_v23 = vpop.f32.mrf.mxu0 }
  0xbf   :  { %v64_v24 = vmul.f32 2.0, %v52_v23  ;;  %v55_v25 = vpop.f32.mrf.mxu1 }
  0xc0   :  { %v65_v27 = vmul.f32 2.0, %v55_v25 }
  0xc1   :  { %v71_v26 = vsub.f32 %v219_v22, %v64_v24 }
  0xc2   :  { %v72_v31 = vsub.f32 %v219_v22, %v65_v27 }
  0xc3   :  { %v78_v28 = vsel %vm77_vm0, %v71_v26, inf }
  0xc4   :  { %v58_v29 = vpop.f32.mrf.mxu2  ;;  %82 = vmin.xlane.f32.xlu0 %v78_v28  ;;  %v79_v36 = vsel %vm77_vm0, %v72_v31, inf }
  0xc5   :  { %v66_v30 = vmul.f32 2.0, %v58_v29  ;;  %v61_v32 = vpop.f32.mrf.mxu3 }
  0xc6   :  { %v67_v34 = vmul.f32 2.0, %v61_v32 }
  0xc7   :  { %v73_v33 = vsub.f32 %v219_v22, %v66_v30 }
  0xc8   :  { %v74_v37 = vsub.f32 %v219_v22, %v67_v34 }
  0xc9   :  { %v80_v35 = vsel %vm77_vm0, %v73_v33, inf }
  0xca   :  { %86 = vmin.xlane.f32.xlu1 %v80_v35  ;;  %v81_v38 = vsel %vm77_vm0, %v74_v37, inf }
  0xcc   :  { %84 = vmin.xlane.f32.xlu0 %v79_v36 }
  0xd2   :  { %88 = vmin.xlane.f32.xlu1 %v81_v38 }
 0x137   :  { %v83_v39 = vpop.xlane.xlu0 %82 }
 0x138   :  { %vm90_vm1 = vcmp.le.f32.partialorder %v78_v28, %v83_v39  ;;  %vm154_vm10 = vcmp.lt.f32.partialorder %v83_v39, inf }
 0x139   :  { %v94_v40 = vsel %vm90_vm1, %v76_v21, 1073741824 }
 0x13a   :  { %v99_v41 = vshra.s32 %v94_v40, 16  ;;  %v98_v55 = vand.u32 65535, %v94_v40 }
 0x13c   :  { %v101_v42 = vcvt.s32.f32 %v99_v41  ;;  %v100_v57 = vcvt.s32.f32 %v98_v55 }
 0x13d   :  { %v307_v43 = vpop.xlane.xlu1 %86 }
 0x13e   :  { %vm92_vm2 = vcmp.le.f32.partialorder %v80_v35, %v307_v43  ;;  %102 = vmin.xlane.f32.xlu2 %v101_v42  ;;  %vm156_vm11 = vcmp.lt.f32.partialorder %v307_v43, inf }
 0x13f   :  { %v96_v44 = vsel %vm92_vm2, %v76_v21, 1073741824  ;;  %v310_v45 = vpop.xlane.xlu0 %84 }
 0x140   :  { %vm91_vm3 = vcmp.le.f32.partialorder %v79_v36, %v310_v45  ;;  %v127_v46 = vshra.s32 %v96_v44, 16  ;;  %v126_v59 = vand.u32 65535, %v96_v44  ;;  %vm155_vm12 = vcmp.lt.f32.partialorder %v310_v45, inf }
 0x141   :  { %v95_v47 = vsel %vm91_vm3, %v76_v21, 1073741824 }
 0x142   :  { %v129_v48 = vcvt.s32.f32 %v127_v46  ;;  %v113_v49 = vshra.s32 %v95_v47, 16  ;;  %v112_v60 = vand.u32 65535, %v95_v47  ;;  %v128_v62 = vcvt.s32.f32 %v126_v59 }
 0x144   :  { %130 = vmin.xlane.f32.xlu0 %v129_v48  ;;  %v115_v50 = vcvt.s32.f32 %v113_v49  ;;  %v114_v1 = vcvt.s32.f32 %v112_v60 }
 0x145   :  { %v313_v51 = vpop.xlane.xlu1 %88 }
 0x146   :  { %vm93_vm4 = vcmp.le.f32.partialorder %v81_v38, %v313_v51  ;;  %116 = vmin.xlane.f32.xlu2 %v115_v50  ;;  %vm157_vm13 = vcmp.lt.f32.partialorder %v313_v51, inf }
 0x147   :  { %v97_v52 = vsel %vm93_vm4, %v76_v21, 1073741824 }
 0x148   :  { %v141_v53 = vshra.s32 %v97_v52, 16  ;;  %v140_v3 = vand.u32 65535, %v97_v52 }
 0x14a   :  { %v143_v54 = vcvt.s32.f32 %v141_v53  ;;  %v142_v5 = vcvt.s32.f32 %v140_v3 }
 0x14c   :  { %144 = vmin.xlane.f32.xlu1 %v143_v54 }
 0x1b1   :  { %v103_v56 = vpop.xlane.xlu2 %102 }
 0x1b2   :  { %vm104_vm5 = vcmp.eq.f32.partialorder %v101_v42, %v103_v56  ;;  %v109_v7 = vcvt.f32.s32 %v103_v56 }
 0x1b3   :  { %v105_v58 = vsel %vm104_vm5, %v100_v57, inf }
 0x1b4   :  { %106 = vmin.xlane.f32.xlu2 %v105_v58  ;;  %v110_v9 = vshll.u32 %v109_v7, 16 }
 0x1b7   :  { %v131_v61 = vpop.xlane.xlu0 %130 }
 0x1b8   :  { %vm132_vm6 = vcmp.eq.f32.partialorder %v129_v48, %v131_v61  ;;  %v137_v11 = vcvt.f32.s32 %v131_v61 }
 0x1b9   :  { %v117_v63 = vpop.xlane.xlu2 %116  ;;  %v133_v0 = vsel %vm132_vm6, %v128_v62, inf }
 0x1ba   :  { %134 = vmin.xlane.f32.xlu1 %v133_v0  ;;  %vm118_vm7 = vcmp.eq.f32.partialorder %v115_v50, %v117_v63  ;;  %v123_v13 = vcvt.f32.s32 %v117_v63  ;;  %v138_v16 = vshll.u32 %v137_v11, 16 }
 0x1bb   :  { %v119_v2 = vsel %vm118_vm7, %v114_v1, inf }
 0x1bc   :  { %120 = vmin.xlane.f32.xlu0 %v119_v2  ;;  %v124_v19 = vshll.u32 %v123_v13, 16 }
 0x1bf   :  { %v145_v4 = vpop.xlane.xlu1 %144 }
 0x1c0   :  { %vm146_vm8 = vcmp.eq.f32.partialorder %v143_v54, %v145_v4  ;;  %v151_v22 = vcvt.f32.s32 %v145_v4 }
 0x1c1   :  { %v147_v6 = vsel %vm146_vm8, %v142_v5, inf }
 0x1c2   :  { %148 = vmin.xlane.f32.xlu2 %v147_v6  ;;  %v152_v27 = vshll.u32 %v151_v22, 16 }
 0x227   :  { %v107_v8 = vpop.xlane.xlu2 %106 }
 0x228   :  { %v108_v10 = vcvt.f32.s32 %v107_v8 }
 0x22a   :  { %v111_v12 = vadd.s32 %v110_v9, %v108_v10 }
 0x22c   :  { %v158_v14 = vsel %vm154_vm10, %v111_v12, 0 }
 0x22d   :  { %163 = vst.msk [vmem:[%s338_s3] sm:$0xff] %vm162_vm9, %v158_v14  ;;  %v135_v15 = vpop.xlane.xlu1 %134 }
 0x22e   :  { %v136_v17 = vcvt.f32.s32 %v135_v15 }
 0x22f   :  { %v121_v18 = vpop.xlane.xlu0 %120 }
 0x230   :  { %v139_v20 = vadd.s32 %v138_v16, %v136_v17  ;;  %v122_v21 = vcvt.f32.s32 %v121_v18 }
 0x232   :  { %v160_v23 = vsel %vm156_vm11, %v139_v20, 0  ;;  %v125_v24 = vadd.s32 %v124_v19, %v122_v21 }
 0x233   :  { %165 = vst.msk [vmem:[%s338_s3 + $0x10] sm:$0xff] %vm162_vm9, %v160_v23 }
 0x234   :  { %v159_v25 = vsel %vm155_vm12, %v125_v24, 0 }
 0x235   :  { %164 = vst.msk [vmem:[%s338_s3 + $0x8] sm:$0xff] %vm162_vm9, %v159_v25  ;;  %v149_v26 = vpop.xlane.xlu2 %148 }
 0x236   :  { %v150_v28 = vcvt.f32.s32 %v149_v26 }
 0x238   :  { %v153_v29 = vadd.s32 %v152_v27, %v150_v28 }
 0x23a   :  { %v161_v30 = vsel %vm157_vm13, %v153_v29, 0 }
 0x23b   :  { %166 = vst.msk [vmem:[%s338_s3 + $0x18] sm:$0xff] %vm162_vm9, %v161_v30 }

// kernel: vqvae_forward.30
= control target key start
LH: loop header
LB: loop body
LE: loop exit
PB: predicated region body
PF: predicated region fallthrough
CT: control target
= control target key end

     0   :  { %vm110_vm0 = vsmask.f32 7424  ;;  %vm187_vm1 = vcmask 1044480   ;;  %vm213_vm2 = vsmask.f32 4352  ;;  %s1251_s2 = inlined_call_operand.vmem [shape: bf16[512,128], index: 2, kind: input, shape index: {}]   ;;  %s1252_s0 = inlined_call_operand.vmem [shape: bf16[256,128], index: 0, kind: input, shape index: {}, may-alias: {0,1}]   ;;  %s1253_s3 = inlined_call_operand.vmem [shape: f32[1,128], index: 3, kind: input, shape index: {}]   ;;  %s1254_s1 = inlined_call_operand.vmem [shape: bf16[256,128], index: 1, kind: input, shape index: {}, may-alias: {0,1}]   ;;  %s1255_s4 = inlined_call_operand.vmem [shape: bf16[128,128], index: 4, kind: output, shape index: {}]  }
   0x1   :  { %v955_v0 = vld [vmem:[%s1251_s2 + $0x38] sm:$0xff]  ;;  %v954_v4 = vld [vmem:[%s1251_s2 + $0x30] sm:$0xff]  ;;  %v953_v8 = vld [vmem:[%s1251_s2 + $0x28] sm:$0xff] }
   0x2   :  { %v963_v1 = vld [vmem:[%s1251_s2 + $0x78] sm:$0xff]  ;;  %519 = vmatpush.bf16.msra.mxu0 %v955_v0  ;;  %v962_v5 = vld [vmem:[%s1251_s2 + $0x70] sm:$0xff]  ;;  %v961_v9 = vld [vmem:[%s1251_s2 + $0x68] sm:$0xff] }
   0x3   :  { %v971_v2 = vld [vmem:[%s1251_s2 + $0xb8] sm:$0xff]  ;;  %568 = vmatpush.bf16.msra.mxu1 %v963_v1  ;;  %v970_v6 = vld [vmem:[%s1251_s2 + $0xb0] sm:$0xff]  ;;  %v969_v10 = vld [vmem:[%s1251_s2 + $0xa8] sm:$0xff] }
   0x4   :  { %v979_v3 = vld [vmem:[%s1251_s2 + $0xf8] sm:$0xff]  ;;  %617 = vmatpush.bf16.msra.mxu2 %v971_v2  ;;  %v978_v7 = vld [vmem:[%s1251_s2 + $0xf0] sm:$0xff]  ;;  %v977_v11 = vld [vmem:[%s1251_s2 + $0xe8] sm:$0xff] }
   0x5   :  { %666 = vmatpush.bf16.msra.mxu3 %v979_v3  ;;  %v952_v12 = vld [vmem:[%s1251_s2 + $0x20] sm:$0xff]  ;;  %v951_v16 = vld [vmem:[%s1251_s2 + $0x18] sm:$0xff]  ;;  %v1119_v21 = vld [vmem:[%s1252_s0 + $0x8] sm:$0xff] }
   0x6   :  { %520 = vmatpush.bf16.msra.mxu0 %v954_v4  ;;  %v960_v13 = vld [vmem:[%s1251_s2 + $0x60] sm:$0xff]  ;;  %v959_v17 = vld [vmem:[%s1251_s2 + $0x58] sm:$0xff]  ;;  %v950_v22 = vld [vmem:[%s1251_s2 + $0x10] sm:$0xff]  ;;  %v119_v28 = vshll.u32 %v1119_v21, 16  ;;  %v123_v29 = vshrl.u32 %v1119_v21, 16  ;;  %v189_v46 = vrot.slane %v1119_v21, 3 }
   0x7   :  { %569 = vmatpush.bf16.msra.mxu1 %v962_v5  ;;  %v968_v14 = vld [vmem:[%s1251_s2 + $0xa0] sm:$0xff]  ;;  %v967_v19 = vld [vmem:[%s1251_s2 + $0x98] sm:$0xff]  ;;  %v958_v23 = vld [vmem:[%s1251_s2 + $0x50] sm:$0xff] }
   0x8   :  { %618 = vmatpush.bf16.msra.mxu2 %v970_v6  ;;  %v976_v15 = vld [vmem:[%s1251_s2 + $0xe0] sm:$0xff]  ;;  %v975_v20 = vld [vmem:[%s1251_s2 + $0xd8] sm:$0xff]  ;;  %v966_v24 = vld [vmem:[%s1251_s2 + $0x90] sm:$0xff]  ;;  %v217_v37 = vrot.slane %v123_v29, 3  ;;  %v218_v38 = vrot.slane %v119_v28, 4  ;;  %v121_v42 = vrot.slane %v119_v28, 1 }
   0x9   :  { %667 = vmatpush.bf16.msra.mxu3 %v978_v7  ;;  %v939_v18 = vld [vmem:[%s1252_s0] sm:$0xff]  ;;  %v974_v26 = vld [vmem:[%s1251_s2 + $0xd0] sm:$0xff]  ;;  %v949_v30 = vld [vmem:[%s1251_s2 + $0x8] sm:$0xff] }
   0xa   :  { %521 = vmatpush.bf16.msra.mxu0 %v953_v8  ;;  %v114_v25 = vshll.u32 %v939_v18, 16  ;;  %v112_v27 = vshrl.u32 %v939_v18, 16  ;;  %v957_v31 = vld [vmem:[%s1251_s2 + $0x48] sm:$0xff]  ;;  %v948_v39 = vld [vmem:[%s1251_s2] sm:$0xff]  ;;  %v188_v45 = vrot.slane %v939_v18, 3  ;;  %v219_v48 = vor.u32 %v218_v38, %v217_v37  ;;  %v941_v52 = vld [vmem:[%s1252_s0 + $0x10] sm:$0xff] }
   0xb   :  { %570 = vmatpush.bf16.msra.mxu1 %v961_v9  ;;  %v965_v33 = vld [vmem:[%s1251_s2 + $0x88] sm:$0xff]  ;;  %v956_v40 = vld [vmem:[%s1251_s2 + $0x40] sm:$0xff]  ;;  %v127_v53 = vshll.u32 %v941_v52, 16  ;;  %v131_v54 = vshrl.u32 %v941_v52, 16  ;;  %v125_v57 = vor.u32 %v123_v29, %v121_v42  ;;  %v191_v59 = vrot.slane %v941_v52, 3  ;;  %v942_v0 = vld [vmem:[%s1252_s0 + $0x18] sm:$0xff] }
   0xc   :  { %619 = vmatpush.bf16.msra.mxu2 %v969_v10  ;;  %v116_v32 = vrot.slane %v114_v25, 1  ;;  %v973_v34 = vld [vmem:[%s1251_s2 + $0xc8] sm:$0xff]  ;;  %v214_v35 = vrot.slane %v112_v27, 3  ;;  %v215_v36 = vrot.slane %v114_v25, 4  ;;  %v964_v43 = vld [vmem:[%s1251_s2 + $0x80] sm:$0xff]  ;;  %v190_v50 = vsel %vm187_vm1, %v188_v45, %v189_v46 }
   0xd   :  { %668 = vmatpush.bf16.msra.mxu3 %v977_v11  ;;  %v972_v44 = vld [vmem:[%s1251_s2 + $0xc0] sm:$0xff]  ;;  %v221_v55 = vrot.slane %v131_v54, 3  ;;  %v222_v56 = vrot.slane %v127_v53, 4  ;;  %v129_v58 = vrot.slane %v127_v53, 1  ;;  %v192_v62 = vsel %vm187_vm1, %v189_v46, %v191_v59 }
   0xe   :  { %522 = vmatpush.bf16.msra.mxu0 %v952_v12  ;;  %v117_v41 = vor.u32 %v116_v32, %v112_v27  ;;  %v216_v47 = vor.u32 %v215_v36, %v214_v35  ;;  %v135_v1 = vshll.u32 %v942_v0, 16  ;;  %v139_v2 = vshrl.u32 %v942_v0, 16  ;;  %v943_v12 = vld [vmem:[%s1252_s0 + $0x20] sm:$0xff]  ;;  %v945_v36 = vld [vmem:[%s1252_s0 + $0x30] sm:$0xff] }
   0xf   :  { %571 = vmatpush.bf16.msra.mxu1 %v960_v13  ;;  %v223_v60 = vor.u32 %v222_v56, %v221_v55  ;;  %v130_v61 = vsel %vm110_vm0, %v125_v57, %v129_v58  ;;  %v133_v5 = vor.u32 %v131_v54, %v129_v58  ;;  %v193_v7 = vrot.slane %v942_v0, 3 }
  0x10   :  { %620 = vmatpush.bf16.msra.mxu2 %v968_v14  ;;  %v122_v49 = vsel %vm110_vm0, %v117_v41, %v121_v42  ;;  %v220_v51 = vsel %vm213_vm2, %v216_v47, %v219_v48  ;;  %v225_v3 = vrot.slane %v139_v2, 3  ;;  %v226_v4 = vrot.slane %v135_v1, 4 }
  0x11   :  { %669 = vmatpush.bf16.msra.mxu3 %v976_v15  ;;  %v224_v63 = vsel %vm213_vm2, %v219_v48, %v223_v60  ;;  %v137_v6 = vrot.slane %v135_v1, 1  ;;  %v194_v10 = vsel %vm187_vm1, %v191_v59, %v193_v7  ;;  %v143_v13 = vshll.u32 %v943_v12, 16  ;;  %v946_v48 = vld [vmem:[%s1252_s0 + $0x38] sm:$0xff] }
  0x12   :  { %523 = vmatpush.bf16.msra.mxu0 %v951_v16  ;;  %v227_v8 = vor.u32 %v226_v4, %v225_v3  ;;  %v147_v14 = vshrl.u32 %v943_v12, 16  ;;  %v159_v37 = vshll.u32 %v945_v36, 16  ;;  %v163_v38 = vshrl.u32 %v945_v36, 16 }
  0x13   :  { %572 = vmatpush.bf16.msra.mxu1 %v959_v17  ;;  %v138_v9 = vsel %vm110_vm0, %v133_v5, %v137_v6  ;;  %v230_v16 = vrot.slane %v143_v13, 4  ;;  %v141_v17 = vor.u32 %v139_v2, %v137_v6  ;;  %v201_v55 = vrot.slane %v946_v48, 3 }
  0x14   :  { %621 = vmatpush.bf16.msra.mxu2 %v967_v19  ;;  %v228_v11 = vsel %vm213_vm2, %v223_v60, %v227_v8  ;;  %v229_v15 = vrot.slane %v147_v14, 3  ;;  %v195_v19 = vrot.slane %v943_v12, 3  ;;  %v161_v42 = vrot.slane %v159_v37, 1  ;;  %v947_v60 = vld [vmem:[%s1254_s1 + $0x40] sm:$0xff] }
  0x15   :  { %670 = vmatpush.bf16.msra.mxu3 %v975_v20  ;;  %v203_v3 = vrot.slane %v947_v60, 3 }
  0x16   :  { %524 = vmatpush.bf16.msra.mxu0 %v950_v22  ;;  %v231_v20 = vor.u32 %v230_v16, %v229_v15  ;;  %v196_v22 = vsel %vm187_vm1, %v193_v7, %v195_v19  ;;  %v165_v53 = vor.u32 %v163_v38, %v161_v42 }
  0x17   :  { %573 = vmatpush.bf16.msra.mxu1 %v958_v23  ;;  %v204_v6 = vsel %vm187_vm1, %v201_v55, %v203_v3 }
  0x18   :  { %622 = vmatpush.bf16.msra.mxu2 %v966_v24  ;;  %v232_v23 = vsel %vm213_vm2, %v227_v8, %v231_v20  ;;  %v944_v24 = vld [vmem:[%s1252_s0 + $0x28] sm:$0xff]  ;;  %v1209_v8 = vld [vmem:[%s1253_s3] ss:$0 sm:$0xff] }
  0x19   :  { %671 = vmatpush.bf16.msra.mxu3 %v974_v26  ;;  %v151_v25 = vshll.u32 %v944_v24, 16  ;;  %v155_v26 = vshrl.u32 %v944_v24, 16 }
  0x1a   :  { %525 = vmatpush.bf16.msra.mxu0 %v949_v30 }
  0x1b   :  { %574 = vmatpush.bf16.msra.mxu1 %v957_v31  ;;  %v233_v27 = vrot.slane %v155_v26, 3  ;;  %v234_v28 = vrot.slane %v151_v25, 4  ;;  %v153_v30 = vrot.slane %v151_v25, 1  ;;  %v197_v31 = vrot.slane %v944_v24, 3 }
  0x1c   :  { %623 = vmatpush.bf16.msra.mxu2 %v965_v33 }
  0x1d   :  { %672 = vmatpush.bf16.msra.mxu3 %v973_v34  ;;  %v235_v32 = vor.u32 %v234_v28, %v233_v27  ;;  %v198_v34 = vsel %vm187_vm1, %v195_v19, %v197_v31  ;;  %v157_v41 = vor.u32 %v155_v26, %v153_v30 }
  0x1e   :  { %526 = vmatpush.bf16.msra.mxu0 %v948_v39  ;;  %v237_v39 = vrot.slane %v163_v38, 3 }
  0x1f   :  { %575 = vmatpush.bf16.msra.mxu1 %v956_v40  ;;  %v236_v35 = vsel %vm213_vm2, %v231_v20, %v235_v32  ;;  %v238_v40 = vrot.slane %v159_v37, 4  ;;  %v162_v45 = vsel %vm110_vm0, %v157_v41, %v161_v42 }
  0x20   :  { %624 = vmatpush.bf16.msra.mxu2 %v964_v43  ;;  %v199_v43 = vrot.slane %v945_v36, 3 }
  0x21   :  { %673 = vmatpush.bf16.msra.mxu3 %v972_v44  ;;  %527 = vmatmul.bf16.vlgmr.msra.gmra.mxu0 %v939_v18  ;;  %v145_v18 = vrot.slane %v143_v13, 1  ;;  %v239_v44 = vor.u32 %v238_v40, %v237_v39 }
  0x22   :  { %576 = vmatmul.bf16.vlgmr.msra.gmra.mxu1 %v122_v49  ;;  %v200_v46 = vsel %vm187_vm1, %v197_v31, %v199_v43  ;;  %v167_v49 = vshll.u32 %v946_v48, 16  ;;  %v202_v58 = vsel %vm187_vm1, %v199_v43, %v201_v55 }
  0x23   :  { %625 = vmatmul.bf16.vlgmr.msra.gmra.mxu2 %v190_v50  ;;  %v149_v29 = vor.u32 %v147_v14, %v145_v18  ;;  %v240_v47 = vsel %vm213_vm2, %v235_v32, %v239_v44  ;;  %v171_v50 = vshrl.u32 %v946_v48, 16 }
  0x24   :  { %674 = vmatmul.bf16.vlgmr.msra.gmra.mxu3 %v220_v51  ;;  %v169_v54 = vrot.slane %v167_v49, 1 }
  0x25   :  { %v154_v33 = vsel %vm110_vm0, %v149_v29, %v153_v30  ;;  %v241_v51 = vrot.slane %v171_v50, 3 }
  0x26   :  { %v170_v57 = vsel %vm110_vm0, %v165_v53, %v169_v54  ;;  %v173_v1 = vor.u32 %v171_v50, %v169_v54 }
  0x31   :  { %532 = vmatmul.bf16.gmra.mxu0 %v1119_v21  ;;  %v146_v21 = vsel %vm110_vm0, %v141_v17, %v145_v18 }
  0x32   :  { %581 = vmatmul.bf16.gmra.mxu1 %v130_v61  ;;  %v175_v61 = vshll.u32 %v947_v60, 16 }
  0x33   :  { %630 = vmatmul.bf16.gmra.mxu2 %v192_v62  ;;  %v245_v62 = vshrl.u32 %v947_v60, 16 }
  0x34   :  { %679 = vmatmul.bf16.gmra.mxu3 %v224_v63  ;;  %v177_v2 = vrot.slane %v175_v61, 1 }
  0x35   :  { %v247_v63 = vrot.slane %v245_v62, 3 }
  0x36   :  { %v178_v5 = vsel %vm110_vm0, %v173_v1, %v177_v2 }
  0x41   :  { %537 = vmatmul.bf16.gmra.mxu0 %v941_v52  ;;  %v242_v52 = vrot.slane %v167_v49, 4 }
  0x42   :  { %586 = vmatmul.bf16.gmra.mxu1 %v138_v9 }
  0x43   :  { %635 = vmatmul.bf16.gmra.mxu2 %v194_v10  ;;  %v243_v56 = vor.u32 %v242_v52, %v241_v51 }
  0x44   :  { %684 = vmatmul.bf16.gmra.mxu3 %v228_v11 }
  0x45   :  { %v244_v59 = vsel %vm213_vm2, %v239_v44, %v243_v56 }
  0x51   :  { %542 = vmatmul.bf16.gmra.mxu0 %v942_v0  ;;  %v248_v0 = vrot.slane %v175_v61, 4 }
  0x52   :  { %591 = vmatmul.bf16.gmra.mxu1 %v146_v21 }
  0x53   :  { %640 = vmatmul.bf16.gmra.mxu2 %v196_v22  ;;  %v249_v4 = vor.u32 %v248_v0, %v247_v63 }
  0x54   :  { %689 = vmatmul.bf16.gmra.mxu3 %v232_v23 }
  0x55   :  { %v250_v7 = vsel %vm213_vm2, %v243_v56, %v249_v4 }
  0x61   :  { %547 = vmatmul.bf16.gmra.mxu0 %v943_v12 }
  0x62   :  { %596 = vmatmul.bf16.gmra.mxu1 %v154_v33 }
  0x63   :  { %645 = vmatmul.bf16.gmra.mxu2 %v198_v34 }
  0x64   :  { %694 = vmatmul.bf16.gmra.mxu3 %v236_v35 }
  0x71   :  { %552 = vmatmul.bf16.gmra.mxu0 %v944_v24 }
  0x72   :  { %601 = vmatmul.bf16.gmra.mxu1 %v162_v45 }
  0x73   :  { %650 = vmatmul.bf16.gmra.mxu2 %v200_v46 }
  0x74   :  { %699 = vmatmul.bf16.gmra.mxu3 %v240_v47 }
  0x81   :  { %557 = vmatmul.bf16.gmra.mxu0 %v945_v36 }
  0x82   :  { %606 = vmatmul.bf16.gmra.mxu1 %v170_v57 }
  0x83   :  { %655 = vmatmul.bf16.gmra.mxu2 %v202_v58 }
  0x84   :  { %704 = vmatmul.bf16.gmra.mxu3 %v244_v59 }
  0x91   :  { %562 = vmatmul.bf16.gmra.mxu0 %v946_v48 }
  0x92   :  { %611 = vmatmul.bf16.gmra.mxu1 %v178_v5 }
  0x93   :  { %660 = vmatmul.bf16.gmra.mxu2 %v204_v6 }
  0x94   :  { %709 = vmatmul.bf16.gmra.mxu3 %v250_v7 }
  0x9e   :  { %v528_v9 = vpop.f32.mrf.mxu0 }
  0x9f   :  { %v577_v10 = vpop.f32.mrf.mxu1  ;;  %v529_v11 = vadd.f32 %v1209_v8, %v528_v9 }
  0xa1   :  { %v578_v14 = vadd.f32 %v577_v10, %v529_v11 }
  0xa6   :  { %v626_v12 = vpop.f32.mrf.mxu2  ;;  %v530_v15 = vpop.f32.mrf.mxu0 }
  0xa7   :  { %v675_v13 = vpop.f32.mrf.mxu3  ;;  %v579_v16 = vpop.f32.mrf.mxu1  ;;  %v531_v17 = vadd.f32 %v1209_v8, %v530_v15  ;;  %v627_v18 = vadd.f32 %v626_v12, %v578_v14 }
  0xa9   :  { %v580_v19 = vadd.f32 %v579_v16, %v531_v17  ;;  %v676_v22 = vadd.f32 %v675_v13, %v627_v18 }
  0xab   :  { %v715_v27 = vmax.f32 %v676_v22, 0.0 }
  0xae   :  { %v628_v20 = vpop.f32.mrf.mxu2  ;;  %v533_v24 = vpop.f32.mrf.mxu0 }
  0xaf   :  { %v677_v21 = vpop.f32.mrf.mxu3  ;;  %v629_v23 = vadd.f32 %v628_v20, %v580_v19  ;;  %v582_v25 = vpop.f32.mrf.mxu1  ;;  %v534_v29 = vadd.f32 %v1209_v8, %v533_v24 }
  0xb1   :  { %v678_v26 = vadd.f32 %v677_v21, %v629_v23  ;;  %v583_v33 = vadd.f32 %v582_v25, %v534_v29 }
  0xb3   :  { %v716_v28 = vmax.f32 %v678_v26, 0.0 }
  0xb5   :  { %v983_v30 = vpack.c.bf16 %v716_v28, %v715_v27 }
  0xb6   :  { %v631_v31 = vpop.f32.mrf.mxu2  ;;  %v535_v34 = vpop.f32.mrf.mxu0 }
  0xb7   :  { %v680_v32 = vpop.f32.mrf.mxu3  ;;  %984 = vst [vmem:[%s1255_s4] sm:$0xff] %v983_v30   ;;  %v584_v35 = vpop.f32.mrf.mxu1  ;;  %v536_v36 = vadd.f32 %v1209_v8, %v535_v34  ;;  %v632_v37 = vadd.f32 %v631_v31, %v583_v33 }
  0xb9   :  { %v585_v38 = vadd.f32 %v584_v35, %v536_v36  ;;  %v681_v41 = vadd.f32 %v680_v32, %v632_v37 }
  0xbb   :  { %v717_v46 = vmax.f32 %v681_v41, 0.0 }
  0xbe   :  { %v633_v39 = vpop.f32.mrf.mxu2  ;;  %v538_v43 = vpop.f32.mrf.mxu0 }
  0xbf   :  { %v682_v40 = vpop.f32.mrf.mxu3  ;;  %v634_v42 = vadd.f32 %v633_v39, %v585_v38  ;;  %v587_v44 = vpop.f32.mrf.mxu1  ;;  %v539_v48 = vadd.f32 %v1209_v8, %v538_v43 }
  0xc1   :  { %v683_v45 = vadd.f32 %v682_v40, %v634_v42  ;;  %v588_v52 = vadd.f32 %v587_v44, %v539_v48 }
  0xc3   :  { %v718_v47 = vmax.f32 %v683_v45, 0.0 }
  0xc5   :  { %v988_v49 = vpack.c.bf16 %v718_v47, %v717_v46 }
  0xc6   :  { %v636_v50 = vpop.f32.mrf.mxu2  ;;  %v540_v53 = vpop.f32.mrf.mxu0 }
  0xc7   :  { %v685_v51 = vpop.f32.mrf.mxu3  ;;  %1020 = vst [vmem:[%s1255_s4 + $0x8] sm:$0xff] %v988_v49   ;;  %v589_v54 = vpop.f32.mrf.mxu1  ;;  %v541_v55 = vadd.f32 %v1209_v8, %v540_v53  ;;  %v637_v56 = vadd.f32 %v636_v50, %v588_v52 }
  0xc9   :  { %v590_v57 = vadd.f32 %v589_v54, %v541_v55  ;;  %v686_v60 = vadd.f32 %v685_v51, %v637_v56 }
  0xcb   :  { %v719_v1 = vmax.f32 %v686_v60, 0.0 }
  0xce   :  { %v638_v58 = vpop.f32.mrf.mxu2  ;;  %v543_v62 = vpop.f32.mrf.mxu0 }
  0xcf   :  { %v687_v59 = vpop.f32.mrf.mxu3  ;;  %v639_v61 = vadd.f32 %v638_v58, %v590_v57  ;;  %v592_v63 = vpop.f32.mrf.mxu1  ;;  %v544_v3 = vadd.f32 %v1209_v8, %v543_v62 }
  0xd1   :  { %v688_v0 = vadd.f32 %v687_v59, %v639_v61  ;;  %v593_v7 = vadd.f32 %v592_v63, %v544_v3 }
  0xd3   :  { %v720_v2 = vmax.f32 %v688_v0, 0.0 }
  0xd5   :  { %v993_v4 = vpack.c.bf16 %v720_v2, %v719_v1 }
  0xd6   :  { %v641_v5 = vpop.f32.mrf.mxu2  ;;  %v545_v9 = vpop.f32.mrf.mxu0 }
  0xd7   :  { %v690_v6 = vpop.f32.mrf.mxu3  ;;  %1021 = vst [vmem:[%s1255_s4 + $0x10] sm:$0xff] %v993_v4   ;;  %v594_v10 = vpop.f32.mrf.mxu1  ;;  %v546_v11 = vadd.f32 %v1209_v8, %v545_v9  ;;  %v642_v12 = vadd.f32 %v641_v5, %v593_v7 }
  0xd9   :  { %v595_v13 = vadd.f32 %v594_v10, %v546_v11  ;;  %v691_v16 = vadd.f32 %v690_v6, %v642_v12 }
  0xdb   :  { %v721_v21 = vmax.f32 %v691_v16, 0.0 }
  0xde   :  { %v643_v14 = vpop.f32.mrf.mxu2  ;;  %v548_v18 = vpop.f32.mrf.mxu0 }
  0xdf   :  { %v692_v15 = vpop.f32.mrf.mxu3  ;;  %v644_v17 = vadd.f32 %v643_v14, %v595_v13  ;;  %v597_v19 = vpop.f32.mrf.mxu1  ;;  %v549_v23 = vadd.f32 %v1209_v8, %v548_v18 }
  0xe1   :  { %v693_v20 = vadd.f32 %v692_v15, %v644_v17  ;;  %v598_v27 = vadd.f32 %v597_v19, %v549_v23 }
  0xe3   :  { %v722_v22 = vmax.f32 %v693_v20, 0.0 }
  0xe5   :  { %v998_v24 = vpack.c.bf16 %v722_v22, %v721_v21 }
  0xe6   :  { %v646_v25 = vpop.f32.mrf.mxu2  ;;  %v550_v28 = vpop.f32.mrf.mxu0 }
  0xe7   :  { %v695_v26 = vpop.f32.mrf.mxu3  ;;  %1022 = vst [vmem:[%s1255_s4 + $0x18] sm:$0xff] %v998_v24   ;;  %v599_v29 = vpop.f32.mrf.mxu1  ;;  %v551_v30 = vadd.f32 %v1209_v8, %v550_v28  ;;  %v647_v31 = vadd.f32 %v646_v25, %v598_v27 }
  0xe9   :  { %v600_v32 = vadd.f32 %v599_v29, %v551_v30  ;;  %v696_v35 = vadd.f32 %v695_v26, %v647_v31 }
  0xeb   :  { %v723_v40 = vmax.f32 %v696_v35, 0.0 }
  0xee   :  { %v648_v33 = vpop.f32.mrf.mxu2  ;;  %v553_v37 = vpop.f32.mrf.mxu0 }
  0xef   :  { %v697_v34 = vpop.f32.mrf.mxu3  ;;  %v649_v36 = vadd.f32 %v648_v33, %v600_v32  ;;  %v602_v38 = vpop.f32.mrf.mxu1  ;;  %v554_v42 = vadd.f32 %v1209_v8, %v553_v37 }
  0xf1   :  { %v698_v39 = vadd.f32 %v697_v34, %v649_v36  ;;  %v603_v46 = vadd.f32 %v602_v38, %v554_v42 }
  0xf3   :  { %v724_v41 = vmax.f32 %v698_v39, 0.0 }
  0xf5   :  { %v1003_v43 = vpack.c.bf16 %v724_v41, %v723_v40 }
  0xf6   :  { %v651_v44 = vpop.f32.mrf.mxu2  ;;  %v555_v47 = vpop.f32.mrf.mxu0 }
  0xf7   :  { %v700_v45 = vpop.f32.mrf.mxu3  ;;  %1023 = vst [vmem:[%s1255_s4 + $0x20] sm:$0xff] %v1003_v43   ;;  %v604_v48 = vpop.f32.mrf.mxu1  ;;  %v556_v49 = vadd.f32 %v1209_v8, %v555_v47  ;;  %v652_v50 = vadd.f32 %v651_v44, %v603_v46 }
  0xf9   :  { %v605_v51 = vadd.f32 %v604_v48, %v556_v49  ;;  %v701_v54 = vadd.f32 %v700_v45, %v652_v50 }
  0xfb   :  { %v725_v59 = vmax.f32 %v701_v54, 0.0 }
  0xfe   :  { %v653_v52 = vpop.f32.mrf.mxu2  ;;  %v558_v56 = vpop.f32.mrf.mxu0 }
  0xff   :  { %v702_v53 = vpop.f32.mrf.mxu3  ;;  %v654_v55 = vadd.f32 %v653_v52, %v605_v51  ;;  %v607_v57 = vpop.f32.mrf.mxu1  ;;  %v559_v61 = vadd.f32 %v1209_v8, %v558_v56 }
 0x101   :  { %v703_v58 = vadd.f32 %v702_v53, %v654_v55  ;;  %v608_v1 = vadd.f32 %v607_v57, %v559_v61 }
 0x103   :  { %v726_v60 = vmax.f32 %v703_v58, 0.0 }
 0x105   :  { %v1008_v62 = vpack.c.bf16 %v726_v60, %v725_v59 }
 0x106   :  { %v656_v63 = vpop.f32.mrf.mxu2  ;;  %v560_v2 = vpop.f32.mrf.mxu0 }
 0x107   :  { %v705_v0 = vpop.f32.mrf.mxu3  ;;  %1024 = vst [vmem:[%s1255_s4 + $0x28] sm:$0xff] %v1008_v62   ;;  %v609_v3 = vpop.f32.mrf.mxu1  ;;  %v561_v4 = vadd.f32 %v1209_v8, %v560_v2  ;;  %v657_v5 = vadd.f32 %v656_v63, %v608_v1 }
 0x109   :  { %v610_v6 = vadd.f32 %v609_v3, %v561_v4  ;;  %v706_v10 = vadd.f32 %v705_v0, %v657_v5 }
 0x10b   :  { %v727_v15 = vmax.f32 %v706_v10, 0.0 }
 0x10e   :  { %v658_v7 = vpop.f32.mrf.mxu2  ;;  %v563_v12 = vpop.f32.mrf.mxu0 }
 0x10f   :  { %v707_v9 = vpop.f32.mrf.mxu3  ;;  %v659_v11 = vadd.f32 %v658_v7, %v610_v6  ;;  %v612_v14 = vpop.f32.mrf.mxu1  ;;  %v564_v17 = vadd.f32 %v1209_v8, %v563_v12 }
 0x111   :  { %v708_v13 = vadd.f32 %v707_v9, %v659_v11  ;;  %v613_v21 = vadd.f32 %v612_v14, %v564_v17 }
 0x113   :  { %v728_v16 = vmax.f32 %v708_v13, 0.0 }
 0x115   :  { %v1013_v18 = vpack.c.bf16 %v728_v16, %v727_v15 }
 0x116   :  { %v661_v19 = vpop.f32.mrf.mxu2  ;;  %v565_v22 = vpop.f32.mrf.mxu0 }
 0x117   :  { %v710_v20 = vpop.f32.mrf.mxu3  ;;  %1025 = vst [vmem:[%s1255_s4 + $0x30] sm:$0xff] %v1013_v18   ;;  %v566_v23 = vadd.f32 %v1209_v8, %v565_v22  ;;  %v662_v24 = vadd.f32 %v661_v19, %v613_v21  ;;  %v614_v25 = vpop.f32.mrf.mxu1 }
 0x119   :  { %v615_v26 = vadd.f32 %v614_v25, %v566_v23  ;;  %v711_v28 = vadd.f32 %v710_v20, %v662_v24 }
 0x11b   :  { %v729_v32 = vmax.f32 %v711_v28, 0.0 }
 0x11e   :  { %v663_v27 = vpop.f32.mrf.mxu2 }
 0x11f   :  { %v664_v29 = vadd.f32 %v663_v27, %v615_v26  ;;  %v712_v30 = vpop.f32.mrf.mxu3 }
 0x121   :  { %v713_v31 = vadd.f32 %v712_v30, %v664_v29 }
 0x123   :  { %v730_v33 = vmax.f32 %v713_v31, 0.0 }
 0x125   :  { %v1018_v34 = vpack.c.bf16 %v730_v33, %v729_v32 }
 0x127   :  { %1026 = vst [vmem:[%s1255_s4 + $0x38] sm:$0xff] %v1018_v34  }

// kernel: vqvae_forward.31
= control target key start
LH: loop header
LB: loop body
LE: loop exit
PB: predicated region body
PF: predicated region fallthrough
CT: control target
= control target key end

     0   :  { %vm174_vm0 = vsmask.f32 7424  ;;  %vm323_vm1 = vcmask 1042432   ;;  %vm373_vm2 = vsmask.f32 2304  ;;  %s1760_s2 = inlined_call_operand.vmem [shape: bf16[512,128], index: 2, kind: input, shape index: {}]   ;;  %s1761_s0 = inlined_call_operand.vmem [shape: bf16[512,128], index: 0, kind: input, shape index: {}, may-alias: {0,1}]   ;;  %s1762_s3 = inlined_call_operand.vmem [shape: f32[1,128], index: 3, kind: input, shape index: {}]   ;;  %s1763_s4 = inlined_call_operand.vmem [shape: f32[256,128], index: 4, kind: output, shape index: {}]   ;;  %s1764_s1 = inlined_call_operand.vmem [shape: bf16[512,128], index: 1, kind: input, shape index: {}, may-alias: {0,1}]  }
   0x1   :  { %v1339_v0 = vld [vmem:[%s1760_s2 + $0x38] sm:$0xff]  ;;  %v1338_v4 = vld [vmem:[%s1760_s2 + $0x30] sm:$0xff]  ;;  %v1337_v8 = vld [vmem:[%s1760_s2 + $0x28] sm:$0xff] }
   0x2   :  { %v1347_v1 = vld [vmem:[%s1760_s2 + $0x78] sm:$0xff]  ;;  %719 = vmatpush.bf16.msra.mxu0 %v1339_v0  ;;  %v1346_v5 = vld [vmem:[%s1760_s2 + $0x70] sm:$0xff]  ;;  %v1345_v9 = vld [vmem:[%s1760_s2 + $0x68] sm:$0xff] }
   0x3   :  { %v1355_v2 = vld [vmem:[%s1760_s2 + $0xb8] sm:$0xff]  ;;  %808 = vmatpush.bf16.msra.mxu1 %v1347_v1  ;;  %v1354_v6 = vld [vmem:[%s1760_s2 + $0xb0] sm:$0xff]  ;;  %v1353_v10 = vld [vmem:[%s1760_s2 + $0xa8] sm:$0xff] }
   0x4   :  { %v1363_v3 = vld [vmem:[%s1760_s2 + $0xf8] sm:$0xff]  ;;  %897 = vmatpush.bf16.msra.mxu2 %v1355_v2  ;;  %v1362_v7 = vld [vmem:[%s1760_s2 + $0xf0] sm:$0xff]  ;;  %v1361_v11 = vld [vmem:[%s1760_s2 + $0xe8] sm:$0xff] }
   0x5   :  { %986 = vmatpush.bf16.msra.mxu3 %v1363_v3  ;;  %v1336_v12 = vld [vmem:[%s1760_s2 + $0x20] sm:$0xff]  ;;  %v1335_v16 = vld [vmem:[%s1760_s2 + $0x18] sm:$0xff]  ;;  %v1456_v21 = vld [vmem:[%s1761_s0 + $0x8] sm:$0xff] }
   0x6   :  { %720 = vmatpush.bf16.msra.mxu0 %v1338_v4  ;;  %v1344_v13 = vld [vmem:[%s1760_s2 + $0x60] sm:$0xff]  ;;  %v1343_v17 = vld [vmem:[%s1760_s2 + $0x58] sm:$0xff]  ;;  %v1334_v22 = vld [vmem:[%s1760_s2 + $0x10] sm:$0xff]  ;;  %v183_v28 = vshll.u32 %v1456_v21, 16  ;;  %v187_v29 = vshrl.u32 %v1456_v21, 16  ;;  %v325_v46 = vrot.slane %v1456_v21, 5 }
   0x7   :  { %809 = vmatpush.bf16.msra.mxu1 %v1346_v5  ;;  %v1352_v14 = vld [vmem:[%s1760_s2 + $0xa0] sm:$0xff]  ;;  %v1351_v19 = vld [vmem:[%s1760_s2 + $0x98] sm:$0xff]  ;;  %v1342_v23 = vld [vmem:[%s1760_s2 + $0x50] sm:$0xff] }
   0x8   :  { %898 = vmatpush.bf16.msra.mxu2 %v1354_v6  ;;  %v1360_v15 = vld [vmem:[%s1760_s2 + $0xe0] sm:$0xff]  ;;  %v1359_v20 = vld [vmem:[%s1760_s2 + $0xd8] sm:$0xff]  ;;  %v1350_v24 = vld [vmem:[%s1760_s2 + $0x90] sm:$0xff]  ;;  %v377_v37 = vrot.slane %v187_v29, 5  ;;  %v378_v38 = vrot.slane %v183_v28, 6  ;;  %v185_v42 = vrot.slane %v183_v28, 1 }
   0x9   :  { %987 = vmatpush.bf16.msra.mxu3 %v1362_v7  ;;  %v1315_v18 = vld [vmem:[%s1761_s0] sm:$0xff]  ;;  %v1358_v26 = vld [vmem:[%s1760_s2 + $0xd0] sm:$0xff]  ;;  %v1333_v30 = vld [vmem:[%s1760_s2 + $0x8] sm:$0xff] }
   0xa   :  { %721 = vmatpush.bf16.msra.mxu0 %v1337_v8  ;;  %v178_v25 = vshll.u32 %v1315_v18, 16  ;;  %v176_v27 = vshrl.u32 %v1315_v18, 16  ;;  %v1341_v31 = vld [vmem:[%s1760_s2 + $0x48] sm:$0xff]  ;;  %v1332_v39 = vld [vmem:[%s1760_s2] sm:$0xff]  ;;  %v324_v45 = vrot.slane %v1315_v18, 5  ;;  %v379_v48 = vor.u32 %v378_v38, %v377_v37  ;;  %v1317_v52 = vld [vmem:[%s1761_s0 + $0x10] sm:$0xff] }
   0xb   :  { %810 = vmatpush.bf16.msra.mxu1 %v1345_v9  ;;  %v1349_v33 = vld [vmem:[%s1760_s2 + $0x88] sm:$0xff]  ;;  %v1340_v40 = vld [vmem:[%s1760_s2 + $0x40] sm:$0xff]  ;;  %v191_v53 = vshll.u32 %v1317_v52, 16  ;;  %v195_v54 = vshrl.u32 %v1317_v52, 16  ;;  %v189_v57 = vor.u32 %v187_v29, %v185_v42  ;;  %v327_v59 = vrot.slane %v1317_v52, 5  ;;  %v1318_v0 = vld [vmem:[%s1761_s0 + $0x18] sm:$0xff] }
   0xc   :  { %899 = vmatpush.bf16.msra.mxu2 %v1353_v10  ;;  %v180_v32 = vrot.slane %v178_v25, 1  ;;  %v1357_v34 = vld [vmem:[%s1760_s2 + $0xc8] sm:$0xff]  ;;  %v374_v35 = vrot.slane %v176_v27, 5  ;;  %v375_v36 = vrot.slane %v178_v25, 6  ;;  %v1348_v43 = vld [vmem:[%s1760_s2 + $0x80] sm:$0xff]  ;;  %v326_v50 = vsel %vm323_vm1, %v324_v45, %v325_v46 }
   0xd   :  { %988 = vmatpush.bf16.msra.mxu3 %v1361_v11  ;;  %v1356_v44 = vld [vmem:[%s1760_s2 + $0xc0] sm:$0xff]  ;;  %v381_v55 = vrot.slane %v195_v54, 5  ;;  %v382_v56 = vrot.slane %v191_v53, 6  ;;  %v193_v58 = vrot.slane %v191_v53, 1  ;;  %v328_v62 = vsel %vm323_vm1, %v325_v46, %v327_v59 }
   0xe   :  { %722 = vmatpush.bf16.msra.mxu0 %v1336_v12  ;;  %v181_v41 = vor.u32 %v180_v32, %v176_v27  ;;  %v376_v47 = vor.u32 %v375_v36, %v374_v35  ;;  %v199_v1 = vshll.u32 %v1318_v0, 16  ;;  %v203_v2 = vshrl.u32 %v1318_v0, 16  ;;  %v1319_v12 = vld [vmem:[%s1761_s0 + $0x20] sm:$0xff]  ;;  %v1321_v36 = vld [vmem:[%s1761_s0 + $0x30] sm:$0xff] }
   0xf   :  { %811 = vmatpush.bf16.msra.mxu1 %v1344_v13  ;;  %v383_v60 = vor.u32 %v382_v56, %v381_v55  ;;  %v194_v61 = vsel %vm174_vm0, %v189_v57, %v193_v58  ;;  %v197_v5 = vor.u32 %v195_v54, %v193_v58  ;;  %v329_v7 = vrot.slane %v1318_v0, 5 }
  0x10   :  { %900 = vmatpush.bf16.msra.mxu2 %v1352_v14  ;;  %v186_v49 = vsel %vm174_vm0, %v181_v41, %v185_v42  ;;  %v380_v51 = vsel %vm373_vm2, %v376_v47, %v379_v48  ;;  %v385_v3 = vrot.slane %v203_v2, 5  ;;  %v386_v4 = vrot.slane %v199_v1, 6 }
  0x11   :  { %989 = vmatpush.bf16.msra.mxu3 %v1360_v15  ;;  %v384_v63 = vsel %vm373_vm2, %v379_v48, %v383_v60  ;;  %v201_v6 = vrot.slane %v199_v1, 1  ;;  %v330_v10 = vsel %vm323_vm1, %v327_v59, %v329_v7  ;;  %v207_v13 = vshll.u32 %v1319_v12, 16  ;;  %v1322_v48 = vld [vmem:[%s1761_s0 + $0x38] sm:$0xff] }
  0x12   :  { %723 = vmatpush.bf16.msra.mxu0 %v1335_v16  ;;  %v387_v8 = vor.u32 %v386_v4, %v385_v3  ;;  %v211_v14 = vshrl.u32 %v1319_v12, 16  ;;  %v223_v37 = vshll.u32 %v1321_v36, 16  ;;  %v227_v38 = vshrl.u32 %v1321_v36, 16 }
  0x13   :  { %812 = vmatpush.bf16.msra.mxu1 %v1343_v17  ;;  %v202_v9 = vsel %vm174_vm0, %v197_v5, %v201_v6  ;;  %v390_v16 = vrot.slane %v207_v13, 6  ;;  %v205_v17 = vor.u32 %v203_v2, %v201_v6  ;;  %v337_v55 = vrot.slane %v1322_v48, 5 }
  0x14   :  { %901 = vmatpush.bf16.msra.mxu2 %v1351_v19  ;;  %v388_v11 = vsel %vm373_vm2, %v383_v60, %v387_v8  ;;  %v389_v15 = vrot.slane %v211_v14, 5  ;;  %v331_v19 = vrot.slane %v1319_v12, 5  ;;  %v225_v42 = vrot.slane %v223_v37, 1  ;;  %v1323_v60 = vld [vmem:[%s1761_s0 + $0x40] sm:$0xff] }
  0x15   :  { %990 = vmatpush.bf16.msra.mxu3 %v1359_v20  ;;  %v339_v3 = vrot.slane %v1323_v60, 5 }
  0x16   :  { %724 = vmatpush.bf16.msra.mxu0 %v1334_v22  ;;  %v391_v20 = vor.u32 %v390_v16, %v389_v15  ;;  %v332_v22 = vsel %vm323_vm1, %v329_v7, %v331_v19  ;;  %v229_v53 = vor.u32 %v227_v38, %v225_v42  ;;  %v1549_v15 = vld [vmem:[%s1762_s3] ss:$0 sm:$0xff] }
  0x17   :  { %813 = vmatpush.bf16.msra.mxu1 %v1342_v23  ;;  %v340_v6 = vsel %vm323_vm1, %v337_v55, %v339_v3 }
  0x18   :  { %902 = vmatpush.bf16.msra.mxu2 %v1350_v24  ;;  %v392_v23 = vsel %vm373_vm2, %v387_v8, %v391_v20  ;;  %v1320_v24 = vld [vmem:[%s1761_s0 + $0x28] sm:$0xff] }
  0x19   :  { %991 = vmatpush.bf16.msra.mxu3 %v1358_v26  ;;  %v215_v25 = vshll.u32 %v1320_v24, 16  ;;  %v219_v26 = vshrl.u32 %v1320_v24, 16  ;;  %v1324_v8 = vld [vmem:[%s1761_s0 + $0x48] sm:$0xff] }
  0x1a   :  { %725 = vmatpush.bf16.msra.mxu0 %v1333_v30  ;;  %v341_v16 = vrot.slane %v1324_v8, 5 }
  0x1b   :  { %814 = vmatpush.bf16.msra.mxu1 %v1341_v31  ;;  %v393_v27 = vrot.slane %v219_v26, 5  ;;  %v394_v28 = vrot.slane %v215_v25, 6  ;;  %v217_v30 = vrot.slane %v215_v25, 1  ;;  %v333_v31 = vrot.slane %v1320_v24, 5 }
  0x1c   :  { %903 = vmatpush.bf16.msra.mxu2 %v1349_v33 }
  0x1d   :  { %992 = vmatpush.bf16.msra.mxu3 %v1357_v34  ;;  %v395_v32 = vor.u32 %v394_v28, %v393_v27  ;;  %v334_v34 = vsel %vm323_vm1, %v331_v19, %v333_v31  ;;  %v221_v41 = vor.u32 %v219_v26, %v217_v30 }
  0x1e   :  { %726 = vmatpush.bf16.msra.mxu0 %v1332_v39  ;;  %v397_v39 = vrot.slane %v227_v38, 5 }
  0x1f   :  { %815 = vmatpush.bf16.msra.mxu1 %v1340_v40  ;;  %v396_v35 = vsel %vm373_vm2, %v391_v20, %v395_v32  ;;  %v398_v40 = vrot.slane %v223_v37, 6  ;;  %v226_v45 = vsel %vm174_vm0, %v221_v41, %v225_v42 }
  0x20   :  { %904 = vmatpush.bf16.msra.mxu2 %v1348_v43  ;;  %v335_v43 = vrot.slane %v1321_v36, 5 }
  0x21   :  { %993 = vmatpush.bf16.msra.mxu3 %v1356_v44  ;;  %727 = vmatmul.bf16.vlgmr.msra.gmra.mxu0 %v1315_v18  ;;  %v209_v18 = vrot.slane %v207_v13, 1  ;;  %v399_v44 = vor.u32 %v398_v40, %v397_v39 }
  0x22   :  { %816 = vmatmul.bf16.vlgmr.msra.gmra.mxu1 %v186_v49  ;;  %v336_v46 = vsel %vm323_vm1, %v333_v31, %v335_v43  ;;  %v231_v49 = vshll.u32 %v1322_v48, 16  ;;  %v338_v58 = vsel %vm323_vm1, %v335_v43, %v337_v55 }
  0x23   :  { %905 = vmatmul.bf16.vlgmr.msra.gmra.mxu2 %v326_v50  ;;  %v213_v29 = vor.u32 %v211_v14, %v209_v18  ;;  %v400_v47 = vsel %vm373_vm2, %v395_v32, %v399_v44  ;;  %v235_v50 = vshrl.u32 %v1322_v48, 16 }
  0x24   :  { %994 = vmatmul.bf16.vlgmr.msra.gmra.mxu3 %v380_v51  ;;  %v233_v54 = vrot.slane %v231_v49, 1 }
  0x25   :  { %v218_v33 = vsel %vm174_vm0, %v213_v29, %v217_v30  ;;  %v401_v51 = vrot.slane %v235_v50, 5 }
  0x26   :  { %v234_v57 = vsel %vm174_vm0, %v229_v53, %v233_v54  ;;  %v237_v1 = vor.u32 %v235_v50, %v233_v54 }
  0x31   :  { %732 = vmatmul.bf16.gmra.mxu0 %v1456_v21  ;;  %v210_v21 = vsel %vm174_vm0, %v205_v17, %v209_v18 }
  0x32   :  { %821 = vmatmul.bf16.gmra.mxu1 %v194_v61  ;;  %v239_v61 = vshll.u32 %v1323_v60, 16 }
  0x33   :  { %910 = vmatmul.bf16.gmra.mxu2 %v328_v62  ;;  %v243_v62 = vshrl.u32 %v1323_v60, 16 }
  0x34   :  { %999 = vmatmul.bf16.gmra.mxu3 %v384_v63  ;;  %v241_v2 = vrot.slane %v239_v61, 1 }
  0x35   :  { %v405_v63 = vrot.slane %v243_v62, 5 }
  0x36   :  { %v242_v5 = vsel %vm174_vm0, %v237_v1, %v241_v2  ;;  %v245_v13 = vor.u32 %v243_v62, %v241_v2 }
  0x41   :  { %737 = vmatmul.bf16.gmra.mxu0 %v1317_v52  ;;  %v402_v52 = vrot.slane %v231_v49, 6 }
  0x42   :  { %826 = vmatmul.bf16.gmra.mxu1 %v202_v9  ;;  %v247_v9 = vshll.u32 %v1324_v8, 16 }
  0x43   :  { %915 = vmatmul.bf16.gmra.mxu2 %v330_v10  ;;  %v403_v56 = vor.u32 %v402_v52, %v401_v51  ;;  %v251_v10 = vshrl.u32 %v1324_v8, 16  ;;  %v1574_v51 = vld [vmem:[%s1761_s0 + $0x58] sm:$0xff] }
  0x44   :  { %1004 = vmatmul.bf16.gmra.mxu3 %v388_v11  ;;  %v249_v14 = vrot.slane %v247_v9, 1  ;;  %v263_v54 = vshll.u32 %v1574_v51, 16  ;;  %v267_v55 = vshrl.u32 %v1574_v51, 16 }
  0x45   :  { %v404_v59 = vsel %vm373_vm2, %v399_v44, %v403_v56  ;;  %v409_v11 = vrot.slane %v251_v10, 5 }
  0x46   :  { %v250_v20 = vsel %vm174_vm0, %v245_v13, %v249_v14  ;;  %v253_v37 = vor.u32 %v251_v10, %v249_v14  ;;  %v418_v62 = vrot.slane %v263_v54, 6  ;;  %v265_v2 = vrot.slane %v263_v54, 1 }
  0x51   :  { %742 = vmatmul.bf16.gmra.mxu0 %v1318_v0  ;;  %v406_v0 = vrot.slane %v239_v61, 6  ;;  %v417_v61 = vrot.slane %v267_v55, 5 }
  0x52   :  { %831 = vmatmul.bf16.gmra.mxu1 %v210_v21 }
  0x53   :  { %920 = vmatmul.bf16.gmra.mxu2 %v332_v22  ;;  %v407_v4 = vor.u32 %v406_v0, %v405_v63  ;;  %v342_v22 = vsel %vm323_vm1, %v339_v3, %v341_v16  ;;  %v345_v3 = vrot.slane %v1574_v51, 5 }
  0x54   :  { %1009 = vmatmul.bf16.gmra.mxu3 %v392_v23 }
  0x55   :  { %v408_v7 = vsel %vm373_vm2, %v403_v56, %v407_v4 }
  0x61   :  { %747 = vmatmul.bf16.gmra.mxu0 %v1319_v12  ;;  %v410_v12 = vrot.slane %v247_v9, 6 }
  0x62   :  { %836 = vmatmul.bf16.gmra.mxu1 %v218_v33 }
  0x63   :  { %925 = vmatmul.bf16.gmra.mxu2 %v334_v34  ;;  %v411_v17 = vor.u32 %v410_v12, %v409_v11 }
  0x64   :  { %1014 = vmatmul.bf16.gmra.mxu3 %v396_v35 }
  0x65   :  { %v412_v23 = vsel %vm373_vm2, %v407_v4, %v411_v17  ;;  %v419_v4 = vor.u32 %v418_v62, %v417_v61 }
  0x71   :  { %752 = vmatmul.bf16.gmra.mxu0 %v1320_v24  ;;  %v1558_v24 = vld [vmem:[%s1761_s0 + $0x50] sm:$0xff] }
  0x72   :  { %841 = vmatmul.bf16.gmra.mxu1 %v226_v45  ;;  %v255_v26 = vshll.u32 %v1558_v24, 16  ;;  %v259_v27 = vshrl.u32 %v1558_v24, 16  ;;  %v343_v39 = vrot.slane %v1558_v24, 5 }
  0x73   :  { %930 = vmatmul.bf16.gmra.mxu2 %v336_v46 }
  0x74   :  { %1019 = vmatmul.bf16.gmra.mxu3 %v400_v47  ;;  %v413_v33 = vrot.slane %v259_v27, 5  ;;  %v414_v34 = vrot.slane %v255_v26, 6  ;;  %v257_v38 = vrot.slane %v255_v26, 1  ;;  %v344_v49 = vsel %vm323_vm1, %v341_v16, %v343_v39  ;;  %v1593_v16 = vld [vmem:[%s1761_s0 + $0x60] sm:$0xff] }
  0x75   :  { %v346_v13 = vsel %vm323_vm1, %v343_v39, %v345_v3 }
  0x76   :  { %v415_v40 = vor.u32 %v414_v34, %v413_v33  ;;  %v258_v47 = vsel %vm174_vm0, %v253_v37, %v257_v38  ;;  %v261_v1 = vor.u32 %v259_v27, %v257_v38 }
  0x78   :  { %v416_v50 = vsel %vm373_vm2, %v411_v17, %v415_v40  ;;  %v266_v11 = vsel %vm174_vm0, %v261_v1, %v265_v2  ;;  %v420_v14 = vsel %vm373_vm2, %v415_v40, %v419_v4 }
  0x81   :  { %757 = vmatmul.bf16.gmra.mxu0 %v1321_v36 }
  0x82   :  { %846 = vmatmul.bf16.gmra.mxu1 %v234_v57 }
  0x83   :  { %935 = vmatmul.bf16.gmra.mxu2 %v338_v58 }
  0x84   :  { %1024 = vmatmul.bf16.gmra.mxu3 %v404_v59 }
  0x91   :  { %762 = vmatmul.bf16.gmra.mxu0 %v1322_v48 }
  0x92   :  { %851 = vmatmul.bf16.gmra.mxu1 %v242_v5 }
  0x93   :  { %940 = vmatmul.bf16.gmra.mxu2 %v340_v6 }
  0x94   :  { %1029 = vmatmul.bf16.gmra.mxu3 %v408_v7 }
  0x9e   :  { %v728_v18 = vpop.f32.mrf.mxu0 }
  0x9f   :  { %v817_v19 = vpop.f32.mrf.mxu1  ;;  %v729_v21 = vadd.f32 %v1549_v15, %v728_v18 }
  0xa1   :  { %767 = vmatmul.bf16.gmra.mxu0 %v1323_v60  ;;  %v818_v25 = vadd.f32 %v817_v19, %v729_v21  ;;  %v271_v19 = vshll.u32 %v1593_v16, 16 }
  0xa2   :  { %856 = vmatmul.bf16.gmra.mxu1 %v250_v20  ;;  %v275_v20 = vshrl.u32 %v1593_v16, 16 }
  0xa3   :  { %945 = vmatmul.bf16.gmra.mxu2 %v342_v22 }
  0xa4   :  { %1034 = vmatmul.bf16.gmra.mxu3 %v412_v23  ;;  %v421_v27 = vrot.slane %v275_v20, 5 }
  0xa6   :  { %v906_v28 = vpop.f32.mrf.mxu2  ;;  %v730_v31 = vpop.f32.mrf.mxu0 }
  0xa7   :  { %v995_v29 = vpop.f32.mrf.mxu3  ;;  %v907_v30 = vadd.f32 %v906_v28, %v818_v25  ;;  %v819_v32 = vpop.f32.mrf.mxu1  ;;  %v731_v36 = vadd.f32 %v1549_v15, %v730_v31  ;;  %v422_v28 = vrot.slane %v271_v19, 6  ;;  %v273_v31 = vrot.slane %v271_v19, 1 }
  0xa9   :  { %v996_v35 = vadd.f32 %v995_v29, %v907_v30  ;;  %v820_v41 = vadd.f32 %v819_v32, %v731_v36  ;;  %v269_v30 = vor.u32 %v267_v55, %v265_v2  ;;  %v347_v32 = vrot.slane %v1593_v16, 5 }
  0xaa   :  { %v423_v33 = vor.u32 %v422_v28, %v421_v27 }
  0xab   :  { %1075 = vst [vmem:[%s1763_s4] sm:$0xff] %v996_v35  ;;  %v274_v40 = vsel %vm174_vm0, %v269_v30, %v273_v31 }
  0xae   :  { %v908_v42 = vpop.f32.mrf.mxu2  ;;  %v733_v45 = vpop.f32.mrf.mxu0 }
  0xaf   :  { %v997_v43 = vpop.f32.mrf.mxu3  ;;  %v909_v44 = vadd.f32 %v908_v42, %v820_v41  ;;  %v822_v46 = vpop.f32.mrf.mxu1  ;;  %v734_v48 = vadd.f32 %v1549_v15, %v733_v45  ;;  %v348_v42 = vsel %vm323_vm1, %v345_v3, %v347_v32 }
  0xb1   :  { %v998_v52 = vadd.f32 %v997_v43, %v909_v44  ;;  %772 = vmatmul.bf16.gmra.mxu0 %v1324_v8  ;;  %v823_v53 = vadd.f32 %v822_v46, %v734_v48  ;;  %v424_v43 = vsel %vm373_vm2, %v419_v4, %v423_v33  ;;  %v1613_v44 = vld [vmem:[%s1761_s0 + $0x68] sm:$0xff] }
  0xb2   :  { %861 = vmatmul.bf16.gmra.mxu1 %v258_v47  ;;  %v279_v47 = vshll.u32 %v1613_v44, 16  ;;  %v283_v48 = vshrl.u32 %v1613_v44, 16 }
  0xb3   :  { %1076 = vst [vmem:[%s1763_s4 + $0x8] sm:$0xff] %v998_v52  ;;  %950 = vmatmul.bf16.gmra.mxu2 %v344_v49 }
  0xb4   :  { %1039 = vmatmul.bf16.gmra.mxu3 %v416_v50  ;;  %v425_v55 = vrot.slane %v283_v48, 5 }
  0xb6   :  { %v911_v56 = vpop.f32.mrf.mxu2  ;;  %v735_v59 = vpop.f32.mrf.mxu0 }
  0xb7   :  { %v1000_v57 = vpop.f32.mrf.mxu3  ;;  %v912_v58 = vadd.f32 %v911_v56, %v823_v53  ;;  %v824_v60 = vpop.f32.mrf.mxu1  ;;  %v736_v0 = vadd.f32 %v1549_v15, %v735_v59  ;;  %v426_v56 = vrot.slane %v279_v47, 6  ;;  %v281_v59 = vrot.slane %v279_v47, 1 }
  0xb9   :  { %v1001_v63 = vadd.f32 %v1000_v57, %v912_v58  ;;  %v825_v5 = vadd.f32 %v824_v60, %v736_v0  ;;  %v277_v58 = vor.u32 %v275_v20, %v273_v31  ;;  %v349_v60 = vrot.slane %v1613_v44, 5 }
  0xba   :  { %v427_v61 = vor.u32 %v426_v56, %v425_v55 }
  0xbb   :  { %1077 = vst [vmem:[%s1763_s4 + $0x10] sm:$0xff] %v1001_v63  ;;  %v282_v4 = vsel %vm174_vm0, %v277_v58, %v281_v59 }
  0xbe   :  { %v913_v6 = vpop.f32.mrf.mxu2  ;;  %v738_v9 = vpop.f32.mrf.mxu0 }
  0xbf   :  { %v1002_v7 = vpop.f32.mrf.mxu3  ;;  %v914_v8 = vadd.f32 %v913_v6, %v825_v5  ;;  %v827_v10 = vpop.f32.mrf.mxu1  ;;  %v739_v12 = vadd.f32 %v1549_v15, %v738_v9  ;;  %v350_v6 = vsel %vm323_vm1, %v347_v32, %v349_v60 }
  0xc1   :  { %v1003_v17 = vadd.f32 %v1002_v7, %v914_v8  ;;  %777 = vmatmul.bf16.gmra.mxu0 %v1558_v24  ;;  %v828_v18 = vadd.f32 %v827_v10, %v739_v12  ;;  %v428_v7 = vsel %vm373_vm2, %v423_v33, %v427_v61  ;;  %v1633_v8 = vld [vmem:[%s1761_s0 + $0x70] sm:$0xff] }
  0xc2   :  { %866 = vmatmul.bf16.gmra.mxu1 %v266_v11  ;;  %v287_v11 = vshll.u32 %v1633_v8, 16  ;;  %v291_v12 = vshrl.u32 %v1633_v8, 16 }
  0xc3   :  { %1078 = vst [vmem:[%s1763_s4 + $0x18] sm:$0xff] %v1003_v17  ;;  %955 = vmatmul.bf16.gmra.mxu2 %v346_v13 }
  0xc4   :  { %1044 = vmatmul.bf16.gmra.mxu3 %v420_v14  ;;  %v429_v20 = vrot.slane %v291_v12, 5 }
  0xc6   :  { %v916_v21 = vpop.f32.mrf.mxu2  ;;  %v740_v25 = vpop.f32.mrf.mxu0 }
  0xc7   :  { %v1005_v22 = vpop.f32.mrf.mxu3  ;;  %v917_v23 = vadd.f32 %v916_v21, %v828_v18  ;;  %v829_v26 = vpop.f32.mrf.mxu1  ;;  %v741_v29 = vadd.f32 %v1549_v15, %v740_v25  ;;  %v430_v21 = vrot.slane %v287_v11, 6  ;;  %v289_v25 = vrot.slane %v287_v11, 1 }
  0xc9   :  { %v1006_v24 = vadd.f32 %v1005_v22, %v917_v23  ;;  %v830_v34 = vadd.f32 %v829_v26, %v741_v29  ;;  %v285_v23 = vor.u32 %v283_v48, %v281_v59  ;;  %v351_v26 = vrot.slane %v1633_v8, 5 }
  0xca   :  { %v431_v27 = vor.u32 %v430_v21, %v429_v20 }
  0xcb   :  { %1079 = vst [vmem:[%s1763_s4 + $0x20] sm:$0xff] %v1006_v24  ;;  %v290_v33 = vsel %vm174_vm0, %v285_v23, %v289_v25 }
  0xce   :  { %v918_v35 = vpop.f32.mrf.mxu2  ;;  %v743_v38 = vpop.f32.mrf.mxu0 }
  0xcf   :  { %v1007_v36 = vpop.f32.mrf.mxu3  ;;  %v919_v37 = vadd.f32 %v918_v35, %v830_v34  ;;  %v832_v39 = vpop.f32.mrf.mxu1  ;;  %v744_v41 = vadd.f32 %v1549_v15, %v743_v38  ;;  %v352_v35 = vsel %vm323_vm1, %v349_v60, %v351_v26 }
  0xd1   :  { %v1008_v45 = vadd.f32 %v1007_v36, %v919_v37  ;;  %782 = vmatmul.bf16.gmra.mxu0 %v1574_v51  ;;  %v833_v46 = vadd.f32 %v832_v39, %v744_v41  ;;  %v432_v36 = vsel %vm373_vm2, %v427_v61, %v431_v27  ;;  %v1653_v37 = vld [vmem:[%s1761_s0 + $0x78] sm:$0xff] }
  0xd2   :  { %871 = vmatmul.bf16.gmra.mxu1 %v274_v40  ;;  %v295_v40 = vshll.u32 %v1653_v37, 16  ;;  %v299_v41 = vshrl.u32 %v1653_v37, 16 }
  0xd3   :  { %1080 = vst [vmem:[%s1763_s4 + $0x28] sm:$0xff] %v1008_v45  ;;  %960 = vmatmul.bf16.gmra.mxu2 %v348_v42 }
  0xd4   :  { %1049 = vmatmul.bf16.gmra.mxu3 %v424_v43  ;;  %v433_v48 = vrot.slane %v299_v41, 5 }
  0xd6   :  { %v921_v49 = vpop.f32.mrf.mxu2  ;;  %v745_v53 = vpop.f32.mrf.mxu0 }
  0xd7   :  { %v1010_v50 = vpop.f32.mrf.mxu3  ;;  %v922_v52 = vadd.f32 %v921_v49, %v833_v46  ;;  %v834_v54 = vpop.f32.mrf.mxu1  ;;  %v746_v57 = vadd.f32 %v1549_v15, %v745_v53  ;;  %v434_v49 = vrot.slane %v295_v40, 6  ;;  %v297_v53 = vrot.slane %v295_v40, 1 }
  0xd9   :  { %v1011_v51 = vadd.f32 %v1010_v50, %v922_v52  ;;  %v835_v62 = vadd.f32 %v834_v54, %v746_v57  ;;  %v293_v52 = vor.u32 %v291_v12, %v289_v25  ;;  %v353_v54 = vrot.slane %v1653_v37, 5 }
  0xda   :  { %v435_v55 = vor.u32 %v434_v49, %v433_v48 }
  0xdb   :  { %1081 = vst [vmem:[%s1763_s4 + $0x30] sm:$0xff] %v1011_v51  ;;  %v298_v61 = vsel %vm174_vm0, %v293_v52, %v297_v53 }
  0xde   :  { %v923_v63 = vpop.f32.mrf.mxu2  ;;  %v748_v2 = vpop.f32.mrf.mxu0 }
  0xdf   :  { %v1012_v0 = vpop.f32.mrf.mxu3  ;;  %v924_v1 = vadd.f32 %v923_v63, %v835_v62  ;;  %v837_v3 = vpop.f32.mrf.mxu1  ;;  %v749_v5 = vadd.f32 %v1549_v15, %v748_v2  ;;  %v354_v63 = vsel %vm323_vm1, %v351_v26, %v353_v54 }
  0xe1   :  { %v1013_v9 = vadd.f32 %v1012_v0, %v924_v1  ;;  %787 = vmatmul.bf16.gmra.mxu0 %v1593_v16  ;;  %v838_v10 = vadd.f32 %v837_v3, %v749_v5  ;;  %v436_v0 = vsel %vm373_vm2, %v431_v27, %v435_v55  ;;  %v1331_v1 = vld [vmem:[%s1764_s1 + $0x80] sm:$0xff] }
  0xe2   :  { %876 = vmatmul.bf16.gmra.mxu1 %v282_v4  ;;  %v303_v4 = vshll.u32 %v1331_v1, 16  ;;  %v437_v5 = vshrl.u32 %v1331_v1, 16 }
  0xe3   :  { %1082 = vst [vmem:[%s1763_s4 + $0x38] sm:$0xff] %v1013_v9  ;;  %965 = vmatmul.bf16.gmra.mxu2 %v350_v6 }
  0xe4   :  { %1054 = vmatmul.bf16.gmra.mxu3 %v428_v7  ;;  %v439_v12 = vrot.slane %v437_v5, 5 }
  0xe6   :  { %v926_v13 = vpop.f32.mrf.mxu2  ;;  %v750_v18 = vpop.f32.mrf.mxu0 }
  0xe7   :  { %v1015_v14 = vpop.f32.mrf.mxu3  ;;  %v927_v17 = vadd.f32 %v926_v13, %v838_v10  ;;  %v839_v19 = vpop.f32.mrf.mxu1  ;;  %v751_v22 = vadd.f32 %v1549_v15, %v750_v18  ;;  %v440_v13 = vrot.slane %v303_v4, 6  ;;  %v305_v18 = vrot.slane %v303_v4, 1 }
  0xe9   :  { %v1016_v16 = vadd.f32 %v1015_v14, %v927_v17  ;;  %v840_v28 = vadd.f32 %v839_v19, %v751_v22  ;;  %v301_v17 = vor.u32 %v299_v41, %v297_v53  ;;  %v355_v19 = vrot.slane %v1331_v1, 5 }
  0xea   :  { %v441_v20 = vor.u32 %v440_v13, %v439_v12 }
  0xeb   :  { %1083 = vst [vmem:[%s1763_s4 + $0x40] sm:$0xff] %v1016_v16  ;;  %v306_v27 = vsel %vm174_vm0, %v301_v17, %v305_v18 }
  0xee   :  { %v928_v24 = vpop.f32.mrf.mxu2  ;;  %v753_v31 = vpop.f32.mrf.mxu0 }
  0xef   :  { %v1017_v29 = vpop.f32.mrf.mxu3  ;;  %v929_v30 = vadd.f32 %v928_v24, %v840_v28  ;;  %v842_v32 = vpop.f32.mrf.mxu1  ;;  %v754_v34 = vadd.f32 %v1549_v15, %v753_v31  ;;  %v356_v24 = vsel %vm323_vm1, %v353_v54, %v355_v19 }
  0xf1   :  { %v1018_v38 = vadd.f32 %v1017_v29, %v929_v30  ;;  %792 = vmatmul.bf16.gmra.mxu0 %v1613_v44  ;;  %v843_v39 = vadd.f32 %v842_v32, %v754_v34  ;;  %v442_v29 = vsel %vm373_vm2, %v435_v55, %v441_v20 }
  0xf2   :  { %881 = vmatmul.bf16.gmra.mxu1 %v290_v33 }
  0xf3   :  { %1084 = vst [vmem:[%s1763_s4 + $0x48] sm:$0xff] %v1018_v38  ;;  %970 = vmatmul.bf16.gmra.mxu2 %v352_v35 }
  0xf4   :  { %1059 = vmatmul.bf16.gmra.mxu3 %v432_v36 }
  0xf6   :  { %v931_v42 = vpop.f32.mrf.mxu2  ;;  %v755_v46 = vpop.f32.mrf.mxu0 }
  0xf7   :  { %v1020_v43 = vpop.f32.mrf.mxu3  ;;  %v932_v45 = vadd.f32 %v931_v42, %v843_v39  ;;  %v844_v47 = vpop.f32.mrf.mxu1  ;;  %v756_v50 = vadd.f32 %v1549_v15, %v755_v46 }
  0xf9   :  { %v1021_v44 = vadd.f32 %v1020_v43, %v932_v45  ;;  %v845_v56 = vadd.f32 %v844_v47, %v756_v50 }
  0xfb   :  { %1085 = vst [vmem:[%s1763_s4 + $0x50] sm:$0xff] %v1021_v44 }
  0xfe   :  { %v933_v51 = vpop.f32.mrf.mxu2  ;;  %v758_v59 = vpop.f32.mrf.mxu0 }
  0xff   :  { %v1022_v57 = vpop.f32.mrf.mxu3  ;;  %v934_v58 = vadd.f32 %v933_v51, %v845_v56  ;;  %v847_v60 = vpop.f32.mrf.mxu1  ;;  %v759_v62 = vadd.f32 %v1549_v15, %v758_v59 }
 0x101   :  { %v1023_v2 = vadd.f32 %v1022_v57, %v934_v58  ;;  %797 = vmatmul.bf16.gmra.mxu0 %v1633_v8  ;;  %v848_v3 = vadd.f32 %v847_v60, %v759_v62 }
 0x102   :  { %886 = vmatmul.bf16.gmra.mxu1 %v298_v61 }
 0x103   :  { %1086 = vst [vmem:[%s1763_s4 + $0x58] sm:$0xff] %v1023_v2  ;;  %975 = vmatmul.bf16.gmra.mxu2 %v354_v63 }
 0x104   :  { %1064 = vmatmul.bf16.gmra.mxu3 %v436_v0 }
 0x106   :  { %v936_v6 = vpop.f32.mrf.mxu2  ;;  %v760_v10 = vpop.f32.mrf.mxu0 }
 0x107   :  { %v1025_v7 = vpop.f32.mrf.mxu3  ;;  %v937_v9 = vadd.f32 %v936_v6, %v848_v3  ;;  %v849_v11 = vpop.f32.mrf.mxu1  ;;  %v761_v8 = vadd.f32 %v1549_v15, %v760_v10 }
 0x109   :  { %v1026_v14 = vadd.f32 %v1025_v7, %v937_v9  ;;  %v850_v21 = vadd.f32 %v849_v11, %v761_v8 }
 0x10b   :  { %1087 = vst [vmem:[%s1763_s4 + $0x60] sm:$0xff] %v1026_v14 }
 0x10e   :  { %v938_v16 = vpop.f32.mrf.mxu2  ;;  %v763_v25 = vpop.f32.mrf.mxu0 }
 0x10f   :  { %v1027_v22 = vpop.f32.mrf.mxu3  ;;  %v939_v23 = vadd.f32 %v938_v16, %v850_v21  ;;  %v852_v26 = vpop.f32.mrf.mxu1  ;;  %v764_v28 = vadd.f32 %v1549_v15, %v763_v25 }
 0x111   :  { %v1028_v30 = vadd.f32 %v1027_v22, %v939_v23  ;;  %802 = vmatmul.bf16.gmra.mxu0 %v1653_v37  ;;  %v853_v31 = vadd.f32 %v852_v26, %v764_v28 }
 0x112   :  { %891 = vmatmul.bf16.gmra.mxu1 %v306_v27 }
 0x113   :  { %1088 = vst [vmem:[%s1763_s4 + $0x68] sm:$0xff] %v1028_v30  ;;  %980 = vmatmul.bf16.gmra.mxu2 %v356_v24 }
 0x114   :  { %1069 = vmatmul.bf16.gmra.mxu3 %v442_v29 }
 0x116   :  { %v941_v32 = vpop.f32.mrf.mxu2  ;;  %v765_v35 = vpop.f32.mrf.mxu0 }
 0x117   :  { %v1030_v33 = vpop.f32.mrf.mxu3  ;;  %v942_v34 = vadd.f32 %v941_v32, %v853_v31  ;;  %v854_v36 = vpop.f32.mrf.mxu1  ;;  %v766_v39 = vadd.f32 %v1549_v15, %v765_v35 }
 0x119   :  { %v1031_v38 = vadd.f32 %v1030_v33, %v942_v34  ;;  %v855_v37 = vadd.f32 %v854_v36, %v766_v39 }
 0x11b   :  { %1089 = vst [vmem:[%s1763_s4 + $0x70] sm:$0xff] %v1031_v38 }
 0x11e   :  { %v943_v40 = vpop.f32.mrf.mxu2  ;;  %v768_v43 = vpop.f32.mrf.mxu0 }
 0x11f   :  { %v1032_v41 = vpop.f32.mrf.mxu3  ;;  %v944_v42 = vadd.f32 %v943_v40, %v855_v37  ;;  %v857_v45 = vpop.f32.mrf.mxu1  ;;  %v769_v46 = vadd.f32 %v1549_v15, %v768_v43 }
 0x121   :  { %v1033_v47 = vadd.f32 %v1032_v41, %v944_v42  ;;  %v858_v48 = vadd.f32 %v857_v45, %v769_v46 }
 0x123   :  { %1090 = vst [vmem:[%s1763_s4 + $0x78] sm:$0xff] %v1033_v47 }
 0x126   :  { %v946_v49 = vpop.f32.mrf.mxu2  ;;  %v770_v52 = vpop.f32.mrf.mxu0 }
 0x127   :  { %v1035_v44 = vpop.f32.mrf.mxu3  ;;  %v947_v50 = vadd.f32 %v946_v49, %v858_v48  ;;  %v859_v53 = vpop.f32.mrf.mxu1  ;;  %v771_v55 = vadd.f32 %v1549_v15, %v770_v52 }
 0x129   :  { %v1036_v54 = vadd.f32 %v1035_v44, %v947_v50  ;;  %v860_v56 = vadd.f32 %v859_v53, %v771_v55 }
 0x12b   :  { %1091 = vst [vmem:[%s1763_s4 + $0x80] sm:$0xff] %v1036_v54 }
 0x12e   :  { %v948_v51 = vpop.f32.mrf.mxu2  ;;  %v773_v59 = vpop.f32.mrf.mxu0 }
 0x12f   :  { %v1037_v57 = vpop.f32.mrf.mxu3  ;;  %v949_v58 = vadd.f32 %v948_v51, %v860_v56  ;;  %v862_v60 = vpop.f32.mrf.mxu1  ;;  %v774_v61 = vadd.f32 %v1549_v15, %v773_v59 }
 0x131   :  { %v1038_v62 = vadd.f32 %v1037_v57, %v949_v58  ;;  %v863_v63 = vadd.f32 %v862_v60, %v774_v61 }
 0x133   :  { %1092 = vst [vmem:[%s1763_s4 + $0x88] sm:$0xff] %v1038_v62 }
 0x136   :  { %v951_v0 = vpop.f32.mrf.mxu2  ;;  %v775_v3 = vpop.f32.mrf.mxu0 }
 0x137   :  { %v1040_v1 = vpop.f32.mrf.mxu3  ;;  %v952_v2 = vadd.f32 %v951_v0, %v863_v63  ;;  %v864_v4 = vpop.f32.mrf.mxu1  ;;  %v776_v6 = vadd.f32 %v1549_v15, %v775_v3 }
 0x139   :  { %v1041_v5 = vadd.f32 %v1040_v1, %v952_v2  ;;  %v865_v7 = vadd.f32 %v864_v4, %v776_v6 }
 0x13b   :  { %1093 = vst [vmem:[%s1763_s4 + $0x90] sm:$0xff] %v1041_v5 }
 0x13e   :  { %v953_v9 = vpop.f32.mrf.mxu2  ;;  %v778_v12 = vpop.f32.mrf.mxu0 }
 0x13f   :  { %v1042_v10 = vpop.f32.mrf.mxu3  ;;  %v954_v11 = vadd.f32 %v953_v9, %v865_v7  ;;  %v867_v13 = vpop.f32.mrf.mxu1  ;;  %v779_v14 = vadd.f32 %v1549_v15, %v778_v12 }
 0x141   :  { %v1043_v8 = vadd.f32 %v1042_v10, %v954_v11  ;;  %v868_v17 = vadd.f32 %v867_v13, %v779_v14 }
 0x143   :  { %1094 = vst [vmem:[%s1763_s4 + $0x98] sm:$0xff] %v1043_v8 }
 0x146   :  { %v956_v18 = vpop.f32.mrf.mxu2  ;;  %v780_v21 = vpop.f32.mrf.mxu0 }
 0x147   :  { %v1045_v19 = vpop.f32.mrf.mxu3  ;;  %v957_v20 = vadd.f32 %v956_v18, %v868_v17  ;;  %v869_v16 = vpop.f32.mrf.mxu1  ;;  %v781_v23 = vadd.f32 %v1549_v15, %v780_v21 }
 0x149   :  { %v1046_v22 = vadd.f32 %v1045_v19, %v957_v20  ;;  %v870_v25 = vadd.f32 %v869_v16, %v781_v23 }
 0x14b   :  { %1095 = vst [vmem:[%s1763_s4 + $0xa0] sm:$0xff] %v1046_v22 }
 0x14e   :  { %v958_v26 = vpop.f32.mrf.mxu2  ;;  %v783_v24 = vpop.f32.mrf.mxu0 }
 0x14f   :  { %v1047_v27 = vpop.f32.mrf.mxu3  ;;  %v959_v28 = vadd.f32 %v958_v26, %v870_v25  ;;  %v872_v29 = vpop.f32.mrf.mxu1  ;;  %v784_v30 = vadd.f32 %v1549_v15, %v783_v24 }
 0x151   :  { %v1048_v31 = vadd.f32 %v1047_v27, %v959_v28  ;;  %v873_v32 = vadd.f32 %v872_v29, %v784_v30 }
 0x153   :  { %1096 = vst [vmem:[%s1763_s4 + $0xa8] sm:$0xff] %v1048_v31 }
 0x156   :  { %v961_v33 = vpop.f32.mrf.mxu2  ;;  %v785_v36 = vpop.f32.mrf.mxu0 }
 0x157   :  { %v1050_v34 = vpop.f32.mrf.mxu3  ;;  %v962_v35 = vadd.f32 %v961_v33, %v873_v32  ;;  %v874_v38 = vpop.f32.mrf.mxu1  ;;  %v786_v37 = vadd.f32 %v1549_v15, %v785_v36 }
 0x159   :  { %v1051_v39 = vadd.f32 %v1050_v34, %v962_v35  ;;  %v875_v40 = vadd.f32 %v874_v38, %v786_v37 }
 0x15b   :  { %1097 = vst [vmem:[%s1763_s4 + $0xb0] sm:$0xff] %v1051_v39 }
 0x15e   :  { %v963_v41 = vpop.f32.mrf.mxu2  ;;  %v788_v45 = vpop.f32.mrf.mxu0 }
 0x15f   :  { %v1052_v42 = vpop.f32.mrf.mxu3  ;;  %v964_v43 = vadd.f32 %v963_v41, %v875_v40  ;;  %v877_v46 = vpop.f32.mrf.mxu1  ;;  %v789_v47 = vadd.f32 %v1549_v15, %v788_v45 }
 0x161   :  { %v1053_v48 = vadd.f32 %v1052_v42, %v964_v43  ;;  %v878_v49 = vadd.f32 %v877_v46, %v789_v47 }
 0x163   :  { %1098 = vst [vmem:[%s1763_s4 + $0xb8] sm:$0xff] %v1053_v48 }
 0x166   :  { %v966_v44 = vpop.f32.mrf.mxu2  ;;  %v790_v53 = vpop.f32.mrf.mxu0 }
 0x167   :  { %v1055_v50 = vpop.f32.mrf.mxu3  ;;  %v967_v52 = vadd.f32 %v966_v44, %v878_v49  ;;  %v879_v54 = vpop.f32.mrf.mxu1  ;;  %v791_v56 = vadd.f32 %v1549_v15, %v790_v53 }
 0x169   :  { %v1056_v55 = vadd.f32 %v1055_v50, %v967_v52  ;;  %v880_v51 = vadd.f32 %v879_v54, %v791_v56 }
 0x16b   :  { %1099 = vst [vmem:[%s1763_s4 + $0xc0] sm:$0xff] %v1056_v55 }
 0x16e   :  { %v968_v57 = vpop.f32.mrf.mxu2  ;;  %v793_v60 = vpop.f32.mrf.mxu0 }
 0x16f   :  { %v1057_v58 = vpop.f32.mrf.mxu3  ;;  %v969_v59 = vadd.f32 %v968_v57, %v880_v51  ;;  %v882_v61 = vpop.f32.mrf.mxu1  ;;  %v794_v62 = vadd.f32 %v1549_v15, %v793_v60 }
 0x171   :  { %v1058_v63 = vadd.f32 %v1057_v58, %v969_v59  ;;  %v883_v0 = vadd.f32 %v882_v61, %v794_v62 }
 0x173   :  { %1100 = vst [vmem:[%s1763_s4 + $0xc8] sm:$0xff] %v1058_v63 }
 0x176   :  { %v971_v1 = vpop.f32.mrf.mxu2  ;;  %v795_v4 = vpop.f32.mrf.mxu0 }
 0x177   :  { %v1060_v2 = vpop.f32.mrf.mxu3  ;;  %v972_v3 = vadd.f32 %v971_v1, %v883_v0  ;;  %v884_v5 = vpop.f32.mrf.mxu1  ;;  %v796_v7 = vadd.f32 %v1549_v15, %v795_v4 }
 0x179   :  { %v1061_v6 = vadd.f32 %v1060_v2, %v972_v3  ;;  %v885_v9 = vadd.f32 %v884_v5, %v796_v7 }
 0x17b   :  { %1101 = vst [vmem:[%s1763_s4 + $0xd0] sm:$0xff] %v1061_v6 }
 0x17e   :  { %v973_v10 = vpop.f32.mrf.mxu2  ;;  %v798_v13 = vpop.f32.mrf.mxu0 }
 0x17f   :  { %v1062_v11 = vpop.f32.mrf.mxu3  ;;  %v974_v12 = vadd.f32 %v973_v10, %v885_v9  ;;  %v887_v14 = vpop.f32.mrf.mxu1  ;;  %v799_v8 = vadd.f32 %v1549_v15, %v798_v13 }
 0x181   :  { %v1063_v17 = vadd.f32 %v1062_v11, %v974_v12  ;;  %v888_v18 = vadd.f32 %v887_v14, %v799_v8 }
 0x183   :  { %1102 = vst [vmem:[%s1763_s4 + $0xd8] sm:$0xff] %v1063_v17 }
 0x186   :  { %v976_v19 = vpop.f32.mrf.mxu2  ;;  %v800_v16 = vpop.f32.mrf.mxu0 }
 0x187   :  { %v1065_v20 = vpop.f32.mrf.mxu3  ;;  %v977_v21 = vadd.f32 %v976_v19, %v888_v18  ;;  %v889_v22 = vpop.f32.mrf.mxu1  ;;  %v801_v25 = vadd.f32 %v1549_v15, %v800_v16 }
 0x189   :  { %v1066_v23 = vadd.f32 %v1065_v20, %v977_v21  ;;  %v890_v26 = vadd.f32 %v889_v22, %v801_v25 }
 0x18b   :  { %1103 = vst [vmem:[%s1763_s4 + $0xe0] sm:$0xff] %v1066_v23 }
 0x18e   :  { %v978_v27 = vpop.f32.mrf.mxu2  ;;  %v803_v29 = vpop.f32.mrf.mxu0 }
 0x18f   :  { %v1067_v28 = vpop.f32.mrf.mxu3  ;;  %v979_v24 = vadd.f32 %v978_v27, %v890_v26  ;;  %v804_v30 = vadd.f32 %v1549_v15, %v803_v29  ;;  %v892_v32 = vpop.f32.mrf.mxu1 }
 0x191   :  { %v1068_v31 = vadd.f32 %v1067_v28, %v979_v24  ;;  %v893_v33 = vadd.f32 %v892_v32, %v804_v30 }
 0x193   :  { %1104 = vst [vmem:[%s1763_s4 + $0xe8] sm:$0xff] %v1068_v31 }
 0x196   :  { %v981_v34 = vpop.f32.mrf.mxu2  ;;  %v805_v38 = vpop.f32.mrf.mxu0 }
 0x197   :  { %v1070_v35 = vpop.f32.mrf.mxu3  ;;  %v982_v36 = vadd.f32 %v981_v34, %v893_v33  ;;  %v806_v37 = vadd.f32 %v1549_v15, %v805_v38  ;;  %v894_v40 = vpop.f32.mrf.mxu1 }
 0x199   :  { %v1071_v39 = vadd.f32 %v1070_v35, %v982_v36  ;;  %v895_v41 = vadd.f32 %v894_v40, %v806_v37 }
 0x19b   :  { %1105 = vst [vmem:[%s1763_s4 + $0xf0] sm:$0xff] %v1071_v39 }
 0x19e   :  { %v983_v42 = vpop.f32.mrf.mxu2 }
 0x19f   :  { %v984_v43 = vadd.f32 %v983_v42, %v895_v41  ;;  %v1072_v45 = vpop.f32.mrf.mxu3 }
 0x1a1   :  { %v1073_v46 = vadd.f32 %v1072_v45, %v984_v43 }
 0x1a3   :  { %1106 = vst [vmem:[%s1763_s4 + $0xf8] sm:$0xff] %v1073_v46 }

</bundles_post_ra>
